<compile_context>
chip_gen: v7x
topology: tpu7x:2x2x1
jax: 0.10.0
libtpu: 0.0.40
codegen_flags: <defaults>
</compile_context>

<pallas_src>
import jax
import jax.numpy as jnp
from jax.experimental import pallas as pl
from jax.experimental.pallas import tpu as pltpu


def _vmem_limit_bytes():
    """Per-generation scoped-VMEM limit (v5e/v6e: 128 MiB physical, v7x: 64)."""
    try:
        kind = jax.devices()[0].device_kind.lower()
    except Exception:
        kind = ""
    if "v5" in kind or "v6" in kind:
        return 96 * 1024 * 1024
    return 48 * 1024 * 1024            # conservative default; fits v7x


# ----------------------------------------------------------------------------
# Conv 3x3 (stride 1, "same" pad) + bias + ReLU, optionally fused 2x2/2 maxpool
# ----------------------------------------------------------------------------
def conv3x3_relu(x, w, b, *, pool=False):
    """x: (N,H,W,Cin) bf16.  w: (9*Cin, Cout) bf16, rows ordered tap-major
    (tap = ky*3+kx) then input channel.  b: (1, Cout) f32.
    Returns (N,Ho,Wo,Cout) bf16 with Ho,Wo = H,W (or halved if pool)."""
    N, H, W, Cin = x.shape
    K, Cout = w.shape
    assert K == 9 * Cin
    if pool:
        assert H % 2 == 0 and W % 2 == 0
        Ho, Wo = H // 2, W // 2
    else:
        Ho, Wo = H, W

    # Cout tiling: 256 fills the v6e/v7x MXU (also fine on v5e's 4x128 MXU:
    # same bytes, two passes).  Cout <= 128 layers are a single tile.
    TC = 256 if (Cout % 256 == 0) else Cout

    # Image chunking on a grid axis; keep the f32 accumulator ~<= 128 KiB.
    # TODO(synk): for much larger spatial inputs (one image > budget), chunk
    # rows within an image on an extra grid axis instead of whole images.
    ACC_BUDGET = 128 * 1024
    per_img = H * W * TC * 4
    imgs = max(1, min(N, ACC_BUDGET // max(per_img, 1)))
    while N % imgs != 0:
        imgs -= 1
    TM = imgs * H * W

    def kernel(x_ref, w_ref, b_ref, o_ref, xpad_ref):
        # "same" padding staged in a bf16 VMEM scratch (no host pad / extra HBM
        # round trip).  Rebuilt every grid step so both grid axes stay parallel
        # (cheap next to the Cout-tile matmuls whenever there is >1 tile).
        xpad_ref[...] = jnp.zeros_like(xpad_ref)
        xpad_ref[:, 1:H + 1, 1:W + 1, :] = x_ref[...]

        # Accumulate the 9 taps directly -- no (M, 9*Cin) im2col scratch.
        acc = jnp.zeros((TM, TC), jnp.float32)
        for t in range(9):                                   # static unroll
            dy, dx = divmod(t, 3)
            lhs = xpad_ref[:, dy:dy + H, dx:dx + W, :].reshape(TM, Cin)
            acc = acc + jnp.dot(lhs, w_ref[t * Cin:(t + 1) * Cin, :],
                                preferred_element_type=jnp.float32)
        acc = jnp.maximum(acc + b_ref[...], 0.0)             # f32 bias + ReLU

        if pool:
            # 2x2 stride-2 maxpool fused on the in-register activation.
            y5 = acc.reshape(imgs, Ho, 2, W, TC)             # lane dim unchanged
            hm = jnp.maximum(y5[:, :, 0], y5[:, :, 1])       # pool along H
            out = jnp.max(hm.reshape(imgs, Ho, Wo, 2, TC), axis=3)  # along W
            o_ref[...] = out.astype(o_ref.dtype)
        else:
            o_ref[...] = acc.reshape(imgs, H, W, TC).astype(o_ref.dtype)

    # Grid order: Cout tile outer, image chunk inner, so the (large) weight
    # tile stays resident across the fast axis and only activations re-stream.
    grid = (Cout // TC, N // imgs)
    return pl.pallas_call(
        kernel,
        out_shape=jax.ShapeDtypeStruct((N, Ho, Wo, Cout), jnp.bfloat16),
        grid=grid,
        in_specs=[
            pl.BlockSpec((imgs, H, W, Cin), lambda j, i: (i, 0, 0, 0)),
            pl.BlockSpec((K, TC), lambda j, i: (0, j)),
            pl.BlockSpec((1, TC), lambda j, i: (0, j)),
        ],
        out_specs=pl.BlockSpec((imgs, Ho, Wo, TC), lambda j, i: (i, 0, 0, j)),
        scratch_shapes=[pltpu.VMEM((imgs, H + 2, W + 2, Cin), jnp.bfloat16)],
        compiler_params=pltpu.CompilerParams(
            dimension_semantics=("parallel", "parallel"),
            vmem_limit_bytes=_vmem_limit_bytes(),
        ),
    )(x, w, b)


# ----------------------------------------------------------------------------
# Fused chain of 1x1-spatial conv layers (exact center-tap matmuls) + ReLU
# ----------------------------------------------------------------------------
def center_tap(w, cin):
    """Rows of the (9*cin, cout) tap-major weight for the center tap (t=4)."""
    return w[4 * cin:5 * cin, :]


def dense_chain_relu(x2d, wb_list):
    """x2d: (N, C0) bf16.  wb_list: [(w_i (C_i, C_{i+1}) bf16, b_i (1, C_{i+1}) f32)].
    Runs all layers back-to-back in one kernel; weights stay resident in VMEM."""
    N, _ = x2d.shape
    n_layers = len(wb_list)
    c_last = wb_list[-1][0].shape[1]

    def kernel(*refs):
        x_ref = refs[0]
        o_ref = refs[-1]
        h = x_ref[...]
        for t in range(n_layers):
            w_ref, b_ref = refs[1 + 2 * t], refs[2 + 2 * t]
            acc = jnp.dot(h, w_ref[...], preferred_element_type=jnp.float32)
            h = jnp.maximum(acc + b_ref[...], 0.0).astype(jnp.bfloat16)
        o_ref[...] = h.astype(o_ref.dtype)

    args = [x2d]
    in_specs = [pl.BlockSpec(x2d.shape, lambda i: (0, 0))]
    for w_t, b_t in wb_list:
        args += [w_t, b_t]
        in_specs += [pl.BlockSpec(w_t.shape, lambda i: (0, 0)),
                     pl.BlockSpec(b_t.shape, lambda i: (0, 0))]

    return pl.pallas_call(
        kernel,
        out_shape=jax.ShapeDtypeStruct((N, c_last), jnp.bfloat16),
        grid=(1,),
        in_specs=in_specs,
        out_specs=pl.BlockSpec((N, c_last), lambda i: (0, 0)),
        compiler_params=pltpu.CompilerParams(
            dimension_semantics=("arbitrary",),
            vmem_limit_bytes=_vmem_limit_bytes(),
        ),
    )(*args)


# ----------------------------------------------------------------------------
# Parameters (deterministic He-style init, matching PHOCNet._init_weights_he)
# ----------------------------------------------------------------------------
_LAYERS = [
    ("conv1_1", None, 64, False), ("conv1_2", 64, 64, True),
    ("conv2_1", 64, 128, False), ("conv2_2", 128, 128, True),
    ("conv3_1", 128, 256, False), ("conv3_2", 256, 256, False),
    ("conv3_3", 256, 256, True),
    ("conv3_4", 256, 256, False), ("conv3_5", 256, 256, False),
    ("conv3_6", 256, 256, True),
    ("conv4_1", 256, 512, False), ("conv4_2", 512, 512, False),
    ("conv4_3", 512, 512, False),
]


def init_params(key, input_channels=1):
    """std = sqrt(2/(3*3*Cout)) (the module's own fan-out rule), zero bias.
    Weights stored (9*Cin, Cout) bf16 (MXU operand dtype), rows ordered
    tap-major (tap = ky*3+kx) then Cin, i.e. PyTorch's (Cout,Cin,ky,kx)
    permuted to (ky,kx,Cin,Cout) and reshaped."""
    params = {}
    for name, cin, cout, _ in _LAYERS:
        cin = input_channels if cin is None else cin
        key, wk = jax.random.split(key)
        std = (2.0 / (3 * 3 * cout)) ** 0.5
        w = (std * jax.random.normal(wk, (9 * cin, cout))).astype(jnp.bfloat16)
        b = jnp.zeros((1, cout), jnp.float32)
        params[name] = (w, b)
    return params


def _pad_cin_to(w, cin, cin_pad):
    """Zero-pad the input-channel dim of a (9*cin, cout) tap-major weight."""
    w9 = w.reshape(9, cin, -1)
    w9 = jnp.pad(w9, ((0, 0), (0, cin_pad - cin), (0, 0)))
    return w9.reshape(9 * cin_pad, -1)


# ----------------------------------------------------------------------------
# Full PHOCNet forward
# ----------------------------------------------------------------------------
def phocnet_forward(x_nchw, params):
    """x_nchw: (N, C, H, W) f32  ->  (N, 512, H//16, W//16) f32."""
    y = jnp.transpose(x_nchw, (0, 2, 3, 1)).astype(jnp.bfloat16)   # NHWC, bf16

    idx = 0
    while idx < len(_LAYERS):
        name, _, _, pool = _LAYERS[idx]
        N, H, W, cin = y.shape
        w, b = params[name]

        if H == 1 and W == 1 and not pool:
            # Remaining layers are all 1x1-spatial, no pool: with pad=1 only
            # the center tap sees non-zero input, so each layer is an exact
            # (N, Cin) @ (Cin, Cout) matmul.  Fuse the whole tail into one
            # kernel (weights DMA'd once, activations never leave VMEM).
            tail = _LAYERS[idx:]
            assert all(not t[3] for t in tail)
            wb_list, c = [], cin
            for tname, _, tcout, _ in tail:
                tw, tb = params[tname]
                wb_list.append((center_tap(tw, c), tb))
                c = tcout
            y2 = dense_chain_relu(y.reshape(N, cin), wb_list)
            y = y2.reshape(N, 1, 1, c)
            break

        # Keep the channel (lane) dim a multiple of 8 on the first layer; the
        # extra channels and weight rows are zero, so the result is exact.
        if cin % 8 != 0:
            cpad = ((cin + 7) // 8) * 8
            y = jnp.pad(y, ((0, 0), (0, 0), (0, 0), (0, cpad - cin)))
            w = _pad_cin_to(w, cin, cpad)

        y = conv3x3_relu(y, w, b, pool=pool)
        idx += 1

    # TODO(synk): also fuse the 2x2-spatial conv3_4..3_6 block into a single
    # pallas_call (activations resident in VMEM) to shave 2 more launches.
    return jnp.transpose(y, (0, 3, 1, 2)).astype(jnp.float32)      # NCHW f32


if __name__ == "__main__":
    key = jax.random.PRNGKey(0)
    key, xk = jax.random.split(key)
    # Small input consistent with the module: batch=2, input_channels=1, 16x16.
    x = jax.random.normal(xk, (2, 1, 16, 16), dtype=jnp.float32)
    params = init_params(key, input_channels=1)

    out = jax.block_until_ready(phocnet_forward(x, params))

    assert out.shape == (2, 512, 1, 1), out.shape
    assert bool(jnp.all(out >= 0.0))                 # ReLU output non-negative
    assert bool(jnp.all(jnp.isfinite(out)))
    print("KERNEL_OK")
</pallas_src>

<mosaic_0001>
module attributes {stable_mosaic.version = 11 : i64} {
  func.func @kernel(%arg0: i32, %arg1: i32, %arg2: memref<2x16x16x8xbf16, #tpu.memory_space<vmem>>, %arg3: memref<72x64xbf16, #tpu.memory_space<vmem>>, %arg4: memref<1x64xf32, #tpu.memory_space<vmem>>, %arg5: memref<2x16x16x64xbf16, #tpu.memory_space<vmem>>, %arg6: memref<2x18x18x8xbf16, #tpu.memory_space<vmem>>) attributes {dimension_semantics = [#tpu.dimension_semantics<parallel>, #tpu.dimension_semantics<parallel>], iteration_bounds = array<i64: 1, 1>, scalar_prefetch = 0 : i64, scratch_operands = 1 : i64, tpu.core_type = #tpu.core_type<tc>, window_params = [{transform_indices = @transform_0, window_bounds = array<i64: 2, 16, 16, 8>}, {transform_indices = @transform_1, window_bounds = array<i64: 72, 64>}, {transform_indices = @transform_2, window_bounds = array<i64: 1, 64>}, {transform_indices = @transform_3, window_bounds = array<i64: 2, 16, 16, 64>}]} {
    %cst = arith.constant 0.000000e+00 : bf16
    %0 = vector.broadcast %cst : bf16 to vector<2x18x18x8xbf16>
    %c0 = arith.constant 0 : index
    %c0_0 = arith.constant 0 : index
    %c0_1 = arith.constant 0 : index
    %c0_2 = arith.constant 0 : index
    %1 = vector.load %arg6[%c0, %c0_0, %c0_1, %c0_2] : memref<2x18x18x8xbf16, #tpu.memory_space<vmem>>, vector<2x18x18x8xbf16>
    tpu.vector_store %arg6[%c0, %c0_0, %c0_1, %c0_2], %0 {strides = array<i32>} : memref<2x18x18x8xbf16, #tpu.memory_space<vmem>>, vector<2x18x18x8xbf16>,
    %c0_3 = arith.constant 0 : index
    %c0_4 = arith.constant 0 : index
    %c0_5 = arith.constant 0 : index
    %c0_6 = arith.constant 0 : index
    %2 = vector.load %arg2[%c0_3, %c0_4, %c0_5, %c0_6] : memref<2x16x16x8xbf16, #tpu.memory_space<vmem>>, vector<2x16x16x8xbf16>
    %c0_7 = arith.constant 0 : index
    %c1 = arith.constant 1 : index
    %c1_8 = arith.constant 1 : index
    %c0_9 = arith.constant 0 : index
    %3 = vector.load %arg6[%c0_7, %c1, %c1_8, %c0_9] : memref<2x18x18x8xbf16, #tpu.memory_space<vmem>>, vector<2x16x16x8xbf16>
    tpu.vector_store %arg6[%c0_7, %c1, %c1_8, %c0_9], %2 {strides = array<i32>} : memref<2x18x18x8xbf16, #tpu.memory_space<vmem>>, vector<2x16x16x8xbf16>,
    %cst_10 = arith.constant 0.000000e+00 : f32
    %4 = vector.broadcast %cst_10 : f32 to vector<512x64xf32>
    %c0_11 = arith.constant 0 : index
    %c0_12 = arith.constant 0 : index
    %c0_13 = arith.constant 0 : index
    %c0_14 = arith.constant 0 : index
    %5 = vector.load %arg6[%c0_11, %c0_12, %c0_13, %c0_14] : memref<2x18x18x8xbf16, #tpu.memory_space<vmem>>, vector<2x16x16x8xbf16>
    %6 = vector.shape_cast %5 : vector<2x16x16x8xbf16> to vector<512x8xbf16>
    %c0_15 = arith.constant 0 : index
    %c0_16 = arith.constant 0 : index
    %7 = vector.load %arg3[%c0_15, %c0_16] : memref<72x64xbf16, #tpu.memory_space<vmem>>, vector<8x64xbf16>
    %cst_17 = arith.constant dense<0.000000e+00> : vector<512x64xf32>
    %8 = tpu.matmul %6, %7, %cst_17 {dimension_numbers = #tpu.dot_dimension_numbers<[1], [0], [0], [1], [0, 0, 1, 1], [], []>} : vector<512x8xbf16>, vector<8x64xbf16>, vector<512x64xf32> -> vector<512x64xf32>
    %9 = arith.addf %4, %8 : vector<512x64xf32>
    %c0_18 = arith.constant 0 : index
    %c0_19 = arith.constant 0 : index
    %c1_20 = arith.constant 1 : index
    %c0_21 = arith.constant 0 : index
    %10 = vector.load %arg6[%c0_18, %c0_19, %c1_20, %c0_21] : memref<2x18x18x8xbf16, #tpu.memory_space<vmem>>, vector<2x16x16x8xbf16>
    %11 = vector.shape_cast %10 : vector<2x16x16x8xbf16> to vector<512x8xbf16>
    %c8 = arith.constant 8 : index
    %c0_22 = arith.constant 0 : index
    %12 = vector.load %arg3[%c8, %c0_22] : memref<72x64xbf16, #tpu.memory_space<vmem>>, vector<8x64xbf16>
    %cst_23 = arith.constant dense<0.000000e+00> : vector<512x64xf32>
    %13 = tpu.matmul %11, %12, %cst_23 {dimension_numbers = #tpu.dot_dimension_numbers<[1], [0], [0], [1], [0, 0, 1, 1], [], []>} : vector<512x8xbf16>, vector<8x64xbf16>, vector<512x64xf32> -> vector<512x64xf32>
    %14 = arith.addf %9, %13 : vector<512x64xf32>
    %c0_24 = arith.constant 0 : index
    %c0_25 = arith.constant 0 : index
    %c2 = arith.constant 2 : index
    %c0_26 = arith.constant 0 : index
    %15 = vector.load %arg6[%c0_24, %c0_25, %c2, %c0_26] : memref<2x18x18x8xbf16, #tpu.memory_space<vmem>>, vector<2x16x16x8xbf16>
    %16 = vector.shape_cast %15 : vector<2x16x16x8xbf16> to vector<512x8xbf16>
    %c16 = arith.constant 16 : index
    %c0_27 = arith.constant 0 : index
    %17 = vector.load %arg3[%c16, %c0_27] : memref<72x64xbf16, #tpu.memory_space<vmem>>, vector<8x64xbf16>
    %cst_28 = arith.constant dense<0.000000e+00> : vector<512x64xf32>
    %18 = tpu.matmul %16, %17, %cst_28 {dimension_numbers = #tpu.dot_dimension_numbers<[1], [0], [0], [1], [0, 0, 1, 1], [], []>} : vector<512x8xbf16>, vector<8x64xbf16>, vector<512x64xf32> -> vector<512x64xf32>
    %19 = arith.addf %14, %18 : vector<512x64xf32>
    %c0_29 = arith.constant 0 : index
    %c1_30 = arith.constant 1 : index
    %c0_31 = arith.constant 0 : index
    %c0_32 = arith.constant 0 : index
    %20 = vector.load %arg6[%c0_29, %c1_30, %c0_31, %c0_32] : memref<2x18x18x8xbf16, #tpu.memory_space<vmem>>, vector<2x16x16x8xbf16>
    %21 = vector.shape_cast %20 : vector<2x16x16x8xbf16> to vector<512x8xbf16>
    %c24 = arith.constant 24 : index
    %c0_33 = arith.constant 0 : index
    %22 = vector.load %arg3[%c24, %c0_33] : memref<72x64xbf16, #tpu.memory_space<vmem>>, vector<8x64xbf16>
    %cst_34 = arith.constant dense<0.000000e+00> : vector<512x64xf32>
    %23 = tpu.matmul %21, %22, %cst_34 {dimension_numbers = #tpu.dot_dimension_numbers<[1], [0], [0], [1], [0, 0, 1, 1], [], []>} : vector<512x8xbf16>, vector<8x64xbf16>, vector<512x64xf32> -> vector<512x64xf32>
    %24 = arith.addf %19, %23 : vector<512x64xf32>
    %c0_35 = arith.constant 0 : index
    %c1_36 = arith.constant 1 : index
    %c1_37 = arith.constant 1 : index
    %c0_38 = arith.constant 0 : index
    %25 = vector.load %arg6[%c0_35, %c1_36, %c1_37, %c0_38] : memref<2x18x18x8xbf16, #tpu.memory_space<vmem>>, vector<2x16x16x8xbf16>
    %26 = vector.shape_cast %25 : vector<2x16x16x8xbf16> to vector<512x8xbf16>
    %c32 = arith.constant 32 : index
    %c0_39 = arith.constant 0 : index
    %27 = vector.load %arg3[%c32, %c0_39] : memref<72x64xbf16, #tpu.memory_space<vmem>>, vector<8x64xbf16>
    %cst_40 = arith.constant dense<0.000000e+00> : vector<512x64xf32>
    %28 = tpu.matmul %26, %27, %cst_40 {dimension_numbers = #tpu.dot_dimension_numbers<[1], [0], [0], [1], [0, 0, 1, 1], [], []>} : vector<512x8xbf16>, vector<8x64xbf16>, vector<512x64xf32> -> vector<512x64xf32>
    %29 = arith.addf %24, %28 : vector<512x64xf32>
    %c0_41 = arith.constant 0 : index
    %c1_42 = arith.constant 1 : index
    %c2_43 = arith.constant 2 : index
    %c0_44 = arith.constant 0 : index
    %30 = vector.load %arg6[%c0_41, %c1_42, %c2_43, %c0_44] : memref<2x18x18x8xbf16, #tpu.memory_space<vmem>>, vector<2x16x16x8xbf16>
    %31 = vector.shape_cast %30 : vector<2x16x16x8xbf16> to vector<512x8xbf16>
    %c40 = arith.constant 40 : index
    %c0_45 = arith.constant 0 : index
    %32 = vector.load %arg3[%c40, %c0_45] : memref<72x64xbf16, #tpu.memory_space<vmem>>, vector<8x64xbf16>
    %cst_46 = arith.constant dense<0.000000e+00> : vector<512x64xf32>
    %33 = tpu.matmul %31, %32, %cst_46 {dimension_numbers = #tpu.dot_dimension_numbers<[1], [0], [0], [1], [0, 0, 1, 1], [], []>} : vector<512x8xbf16>, vector<8x64xbf16>, vector<512x64xf32> -> vector<512x64xf32>
    %34 = arith.addf %29, %33 : vector<512x64xf32>
    %c0_47 = arith.constant 0 : index
    %c2_48 = arith.constant 2 : index
    %c0_49 = arith.constant 0 : index
    %c0_50 = arith.constant 0 : index
    %35 = vector.load %arg6[%c0_47, %c2_48, %c0_49, %c0_50] : memref<2x18x18x8xbf16, #tpu.memory_space<vmem>>, vector<2x16x16x8xbf16>
    %36 = vector.shape_cast %35 : vector<2x16x16x8xbf16> to vector<512x8xbf16>
    %c48 = arith.constant 48 : index
    %c0_51 = arith.constant 0 : index
    %37 = vector.load %arg3[%c48, %c0_51] : memref<72x64xbf16, #tpu.memory_space<vmem>>, vector<8x64xbf16>
    %cst_52 = arith.constant dense<0.000000e+00> : vector<512x64xf32>
    %38 = tpu.matmul %36, %37, %cst_52 {dimension_numbers = #tpu.dot_dimension_numbers<[1], [0], [0], [1], [0, 0, 1, 1], [], []>} : vector<512x8xbf16>, vector<8x64xbf16>, vector<512x64xf32> -> vector<512x64xf32>
    %39 = arith.addf %34, %38 : vector<512x64xf32>
    %c0_53 = arith.constant 0 : index
    %c2_54 = arith.constant 2 : index
    %c1_55 = arith.constant 1 : index
    %c0_56 = arith.constant 0 : index
    %40 = vector.load %arg6[%c0_53, %c2_54, %c1_55, %c0_56] : memref<2x18x18x8xbf16, #tpu.memory_space<vmem>>, vector<2x16x16x8xbf16>
    %41 = vector.shape_cast %40 : vector<2x16x16x8xbf16> to vector<512x8xbf16>
    %c56 = arith.constant 56 : index
    %c0_57 = arith.constant 0 : index
    %42 = vector.load %arg3[%c56, %c0_57] : memref<72x64xbf16, #tpu.memory_space<vmem>>, vector<8x64xbf16>
    %cst_58 = arith.constant dense<0.000000e+00> : vector<512x64xf32>
    %43 = tpu.matmul %41, %42, %cst_58 {dimension_numbers = #tpu.dot_dimension_numbers<[1], [0], [0], [1], [0, 0, 1, 1], [], []>} : vector<512x8xbf16>, vector<8x64xbf16>, vector<512x64xf32> -> vector<512x64xf32>
    %44 = arith.addf %39, %43 : vector<512x64xf32>
    %c0_59 = arith.constant 0 : index
    %c2_60 = arith.constant 2 : index
    %c2_61 = arith.constant 2 : index
    %c0_62 = arith.constant 0 : index
    %45 = vector.load %arg6[%c0_59, %c2_60, %c2_61, %c0_62] : memref<2x18x18x8xbf16, #tpu.memory_space<vmem>>, vector<2x16x16x8xbf16>
    %46 = vector.shape_cast %45 : vector<2x16x16x8xbf16> to vector<512x8xbf16>
    %c64 = arith.constant 64 : index
    %c0_63 = arith.constant 0 : index
    %47 = vector.load %arg3[%c64, %c0_63] : memref<72x64xbf16, #tpu.memory_space<vmem>>, vector<8x64xbf16>
    %cst_64 = arith.constant dense<0.000000e+00> : vector<512x64xf32>
    %48 = tpu.matmul %46, %47, %cst_64 {dimension_numbers = #tpu.dot_dimension_numbers<[1], [0], [0], [1], [0, 0, 1, 1], [], []>} : vector<512x8xbf16>, vector<8x64xbf16>, vector<512x64xf32> -> vector<512x64xf32>
    %49 = arith.addf %44, %48 : vector<512x64xf32>
    %c0_65 = arith.constant 0 : index
    %c0_66 = arith.constant 0 : index
    %50 = vector.load %arg4[%c0_65, %c0_66] : memref<1x64xf32, #tpu.memory_space<vmem>>, vector<1x64xf32>
    %51 = vector.broadcast %50 : vector<1x64xf32> to vector<512x64xf32>
    %52 = arith.addf %49, %51 : vector<512x64xf32>
    %cst_67 = arith.constant 0.000000e+00 : f32
    %53 = vector.broadcast %cst_67 : f32 to vector<512x64xf32>
    %54 = arith.maximumf %52, %53 : vector<512x64xf32>
    %55 = vector.shape_cast %54 : vector<512x64xf32> to vector<2x16x16x64xf32>
    %56 = arith.truncf %55 : vector<2x16x16x64xf32> to vector<2x16x16x64xbf16>
    %c0_68 = arith.constant 0 : index
    %c0_69 = arith.constant 0 : index
    %c0_70 = arith.constant 0 : index
    %c0_71 = arith.constant 0 : index
    %57 = vector.load %arg5[%c0_68, %c0_69, %c0_70, %c0_71] : memref<2x16x16x64xbf16, #tpu.memory_space<vmem>>, vector<2x16x16x64xbf16>
    tpu.vector_store %arg5[%c0_68, %c0_69, %c0_70, %c0_71], %56 {strides = array<i32>} : memref<2x16x16x64xbf16, #tpu.memory_space<vmem>>, vector<2x16x16x64xbf16>,
    return
  }
  func.func @transform_0(%arg0: i32, %arg1: i32) -> (i32, i32, i32, i32) {
    %c0_i32 = arith.constant 0 : i32
    %c0_i32_0 = arith.constant 0 : i32
    %c0_i32_1 = arith.constant 0 : i32
    %c0_i32_2 = arith.constant 0 : i32
    return %arg1, %c0_i32, %c0_i32_0, %c0_i32_1 : i32, i32, i32, i32
  }
  func.func @transform_1(%arg0: i32, %arg1: i32) -> (i32, i32) {
    %c0_i32 = arith.constant 0 : i32
    %c0_i32_0 = arith.constant 0 : i32
    return %c0_i32, %arg0 : i32, i32
  }
  func.func @transform_2(%arg0: i32, %arg1: i32) -> (i32, i32) {
    %c0_i32 = arith.constant 0 : i32
    %c0_i32_0 = arith.constant 0 : i32
    return %c0_i32, %arg0 : i32, i32
  }
  func.func @transform_3(%arg0: i32, %arg1: i32) -> (i32, i32, i32, i32) {
    %c0_i32 = arith.constant 0 : i32
    %c0_i32_0 = arith.constant 0 : i32
    %c0_i32_1 = arith.constant 0 : i32
    return %arg1, %c0_i32, %c0_i32_0, %arg0 : i32, i32, i32, i32
  }
}

</mosaic_0001>

<bundles_post_ra>
// kernel: tpu_custom_call.1
= control target key start
LH: loop header
LB: loop body
LE: loop exit
PB: predicated region body
PF: predicated region fallthrough
CT: control target
= control target key end

     0   :  { %vm2125_vm0 = vcmask 1043456   ;;  %vm16_vm1 = vcmask 60416   ;;  %vm19_vm2 = vcmask 57344   ;;  %v12820_v5 = vmov 0   ;;  %s15996_s0 = inlined_call_operand.vmem [shape: bf16[2,16,16,8], index: 0, kind: input, shape index: {}]   ;;  %s15997_s1 = inlined_call_operand.vmem [shape: bf16[72,64], index: 1, kind: input, shape index: {}]   ;;  %s15998_s2 = inlined_call_operand.vmem [shape: f32[1,64], index: 2, kind: input, shape index: {}]   ;;  %s15999_s3 = inlined_call_operand.hbm [shape: bf16[2,16,16,64], index: 3, kind: output, shape index: {}]  }
   0x1   :  { %v1931_v0 = vld [vmem:[%s15997_s1 + $0x4] sm:$0xf]  ;;  %v5379_v1 = vld [vmem:[%s15997_s1 + $0x10] sm:$0xf]  ;;  %v12859_v4 = vld [vmem:[%s15996_s0] sm:$0xf] }
   0x2   :  { %12499 = vmatprep.subr.msk.bf16.mxu1 %vm2125_vm0, %v1931_v0  ;;  %12503 = vmatprep.subr.msk.bf16.mxu0 %vm2125_vm0, %v5379_v1  ;;  %v2127_v2 = vsel %vm2125_vm0, %v1931_v0, 0  ;;  %v12854_v3 = vsel %vm2125_vm0, %v5379_v1, 0  ;;  %17 = vst.msk [vmem:[#allocation2] sm:$0xf] %vm16_vm1, %v12820_v5  ;;  %18 = vst.msk [vmem:[#allocation2 + $0x4] sm:$0xf] %vm16_vm1, %v12820_v5 }
   0x3   :  { %16021 = vst [vmem:[#allocation6_spill] sm:$0xff] %v12854_v3  ;;  %11392 = vmatpush3.bf16.msra.mxu1 %v2127_v2  ;;  %11656 = vmatpush3.bf16.msra.mxu0 %v12854_v3  ;;  %20 = vst.msk [vmem:[#allocation2 + $0x8] sm:$0x1] %vm19_vm2, %v12820_v5  ;;  %v194_v6 = vshrl.u32 %v12859_v4, 16  ;;  %v127_v7 = vld [vmem:[%s15996_s0 + $0x4] sm:$0xf] }
   0x4   :  { %21 = vst.msk [vmem:[#allocation2 + $0xc] sm:$0xf] %vm16_vm1, %v12820_v5  ;;  %22 = vst.msk [vmem:[#allocation2 + $0x10] sm:$0xf] %vm16_vm1, %v12820_v5  ;;  %vm190_vm3 = vsmask.f32 256 }
   0x5   :  { %23 = vst.msk [vmem:[#allocation2 + $0x14] sm:$0x1] %vm19_vm2, %v12820_v5  ;;  %26 = vst.msk [vmem:[#allocation2 + $0x20] sm:$0x1] %vm19_vm2, %v12820_v5  ;;  %vm191_vm4 = vsmask.f32 4368 }
   0x6   :  { %24 = vst.msk [vmem:[#allocation2 + $0x18] sm:$0xf] %vm16_vm1, %v12820_v5  ;;  %25 = vst.msk [vmem:[#allocation2 + $0x1c] sm:$0xf] %vm16_vm1, %v12820_v5  ;;  %vm1160_vm5 = vsmask.f32 3328 }
   0x7   :  { %27 = vst.msk [vmem:[#allocation2 + $0x24] sm:$0xf] %vm16_vm1, %v12820_v5  ;;  %28 = vst.msk [vmem:[#allocation2 + $0x28] sm:$0xf] %vm16_vm1, %v12820_v5  ;;  %v196_v8 = vrot.slane %v194_v6, 7  ;;  %v197_v9 = vshll.u32 %v12859_v4, 16 }
   0x8   :  { %29 = vst.msk [vmem:[#allocation2 + $0x2c] sm:$0x1] %vm19_vm2, %v12820_v5  ;;  %32 = vst.msk [vmem:[#allocation2 + $0x38] sm:$0x1] %vm19_vm2, %v12820_v5  ;;  %v202_v10 = vshrl.u32 %v127_v7, 16  ;;  %v205_v11 = vshll.u32 %v127_v7, 16 }
   0x9   :  { %30 = vst.msk [vmem:[#allocation2 + $0x30] sm:$0xf] %vm16_vm1, %v12820_v5  ;;  %31 = vst.msk [vmem:[#allocation2 + $0x34] sm:$0xf] %vm16_vm1, %v12820_v5  ;;  %v13086_v12 = vld [vmem:[%s15997_s1] sm:$0xf]  ;;  %v199_v18 = vor.u32 %v197_v9, %v196_v8 }
   0xa   :  { %33 = vst.msk [vmem:[#allocation2 + $0x3c] sm:$0xf] %vm16_vm1, %v12820_v5  ;;  %34 = vst.msk [vmem:[#allocation2 + $0x40] sm:$0xf] %vm16_vm1, %v12820_v5  ;;  %vm1161_vm6 = vsmask.f32 7440  ;;  %12500 = vmatprep.subr.msk.bf16.mxu1 %vm2125_vm0, %v13086_v12 }
   0xb   :  { %35 = vst.msk [vmem:[#allocation2 + $0x44] sm:$0x1] %vm19_vm2, %v12820_v5  ;;  %38 = vst.msk [vmem:[#allocation2 + $0x50] sm:$0x1] %vm19_vm2, %v12820_v5  ;;  %vm835_vm7 = vsmask.f32 7938 }
   0xc   :  { %36 = vst.msk [vmem:[#allocation2 + $0x48] sm:$0xf] %vm16_vm1, %v12820_v5  ;;  %37 = vst.msk [vmem:[#allocation2 + $0x4c] sm:$0xf] %vm16_vm1, %v12820_v5  ;;  %v13093_v13 = vld [vmem:[%s15997_s1 + $0x14] sm:$0xf] }
   0xd   :  { %39 = vst.msk [vmem:[#allocation2 + $0x54] sm:$0xf] %vm16_vm1, %v12820_v5  ;;  %40 = vst.msk [vmem:[#allocation2 + $0x58] sm:$0xf] %vm16_vm1, %v12820_v5  ;;  %v204_v14 = vrot.slane %v202_v10, 7  ;;  %12505 = vmatprep.subr.msk.bf16.mxu0 %vm2125_vm0, %v13093_v13  ;;  %v200_v19 = vrot.slane %v196_v8, 4 }
   0xe   :  { %41 = vst.msk [vmem:[#allocation2 + $0x5c] sm:$0x1] %vm19_vm2, %v12820_v5  ;;  %44 = vst.msk [vmem:[#allocation2 + $0x68] sm:$0x1] %vm19_vm2, %v12820_v5  ;;  %v128_v15 = vld [vmem:[%s15996_s0 + $0x8] sm:$0xf] }
   0xf   :  { %42 = vst.msk [vmem:[#allocation2 + $0x60] sm:$0xf] %vm16_vm1, %v12820_v5  ;;  %43 = vst.msk [vmem:[#allocation2 + $0x64] sm:$0xf] %vm16_vm1, %v12820_v5  ;;  %v129_v16 = vld [vmem:[%s15996_s0 + $0xc] sm:$0xf]  ;;  %v207_v23 = vor.u32 %v205_v11, %v204_v14 }
  0x10   :  { %45 = vst.msk [vmem:[#allocation2 + $0x6c] sm:$0xf] %vm16_vm1, %v12820_v5  ;;  %46 = vst.msk [vmem:[#allocation2 + $0x70] sm:$0xf] %vm16_vm1, %v12820_v5  ;;  %v211_v20 = vshrl.u32 %v128_v15, 16  ;;  %v214_v21 = vshll.u32 %v128_v15, 16 }
  0x11   :  { %47 = vst.msk [vmem:[#allocation2 + $0x74] sm:$0x1] %vm19_vm2, %v12820_v5  ;;  %50 = vst.msk [vmem:[#allocation2 + $0x80] sm:$0x1] %vm19_vm2, %v12820_v5  ;;  %v130_v22 = vld [vmem:[%s15996_s0 + $0x10] sm:$0xf] }
  0x12   :  { %48 = vst.msk [vmem:[#allocation2 + $0x78] sm:$0xf] %vm16_vm1, %v12820_v5  ;;  %49 = vst.msk [vmem:[#allocation2 + $0x7c] sm:$0xf] %vm16_vm1, %v12820_v5  ;;  %v209_v24 = vrot.slane %v204_v14, 4  ;;  %v219_v26 = vshrl.u32 %v129_v16, 16 }
  0x13   :  { %51 = vst.msk [vmem:[#allocation2 + $0x84] sm:$0xf] %vm16_vm1, %v12820_v5  ;;  %52 = vst.msk [vmem:[#allocation2 + $0x88] sm:$0xf] %vm16_vm1, %v12820_v5  ;;  %v228_v27 = vshrl.u32 %v130_v22, 16  ;;  %v222_v41 = vshll.u32 %v129_v16, 16 }
  0x14   :  { %53 = vst.msk [vmem:[#allocation2 + $0x8c] sm:$0x1] %vm19_vm2, %v12820_v5  ;;  %56 = vst.msk [vmem:[#allocation2 + $0x98] sm:$0x1] %vm19_vm2, %v12820_v5  ;;  %v1063_v28 = vld [vmem:[#allocation2] sm:$0xf] }
  0x15   :  { %54 = vst.msk [vmem:[#allocation2 + $0x90] sm:$0xf] %vm16_vm1, %v12820_v5  ;;  %55 = vst.msk [vmem:[#allocation2 + $0x94] sm:$0xf] %vm16_vm1, %v12820_v5  ;;  %v1064_v29 = vld [vmem:[#allocation2 + $0x4] sm:$0xf] }
  0x16   :  { %57 = vst.msk [vmem:[#allocation2 + $0x9c] sm:$0xf] %vm16_vm1, %v12820_v5  ;;  %58 = vst.msk [vmem:[#allocation2 + $0xa0] sm:$0xf] %vm16_vm1, %v12820_v5  ;;  %v1128_v30 = vld [vmem:[#allocation2 + $0x8] sm:$0x1] }
  0x17   :  { %59 = vst.msk [vmem:[#allocation2 + $0xa4] sm:$0x1] %vm19_vm2, %v12820_v5  ;;  %62 = vst.msk [vmem:[#allocation2 + $0xb0] sm:$0x1] %vm19_vm2, %v12820_v5  ;;  %v1164_v31 = vshrl.u32 %v1063_v28, 16  ;;  %v1167_v32 = vshll.u32 %v1063_v28, 16 }
  0x18   :  { %60 = vst.msk [vmem:[#allocation2 + $0xa8] sm:$0xf] %vm16_vm1, %v12820_v5  ;;  %61 = vst.msk [vmem:[#allocation2 + $0xac] sm:$0xf] %vm16_vm1, %v12820_v5  ;;  %v1173_v33 = vshll.u32 %v1064_v29, 16  ;;  %v1177_v34 = vshrl.u32 %v1064_v29, 16 }
  0x19   :  { %63 = vst.msk [vmem:[#allocation2 + $0xb4] sm:$0xf] %vm16_vm1, %v12820_v5  ;;  %64 = vst.msk [vmem:[#allocation2 + $0xb8] sm:$0xf] %vm16_vm1, %v12820_v5  ;;  %v837_v35 = vld [vmem:[#allocation2 + $0xc] sm:$0xf] }
  0x1a   :  { %65 = vst.msk [vmem:[#allocation2 + $0xbc] sm:$0x1] %vm19_vm2, %v12820_v5  ;;  %68 = vst.msk [vmem:[#allocation2 + $0xc8] sm:$0x1] %vm19_vm2, %v12820_v5  ;;  %v1183_v37 = vshll.u32 %v1128_v30, 16  ;;  %v1166_v42 = vrot.slane %v1164_v31, 4 }
  0x1b   :  { %66 = vst.msk [vmem:[#allocation2 + $0xc0] sm:$0xf] %vm16_vm1, %v12820_v5  ;;  %67 = vst.msk [vmem:[#allocation2 + $0xc4] sm:$0xf] %vm16_vm1, %v12820_v5  ;;  %v843_v40 = vld [vmem:[#allocation2 + $0x14] sm:$0x1] }
  0x1c   :  { %69 = vst.msk [vmem:[#allocation2 + $0xcc] sm:$0xf] %vm16_vm1, %v12820_v5  ;;  %70 = vst.msk [vmem:[#allocation2 + $0xd0] sm:$0xf] %vm16_vm1, %v12820_v5  ;;  %v1169_v43 = vrot.slane %v1167_v32, 5  ;;  %v1175_v44 = vrot.slane %v1173_v33, 5 }
  0x1d   :  { %71 = vst.msk [vmem:[#allocation2 + $0xd4] sm:$0x1] %vm19_vm2, %v12820_v5  ;;  %74 = vst.msk [vmem:[#allocation2 + $0xe0] sm:$0x1] %vm19_vm2, %v12820_v5  ;;  %v1179_v45 = vrot.slane %v1177_v34, 4  ;;  %v1185_v46 = vrot.slane %v1183_v37, 5 }
  0x1e   :  { %72 = vst.msk [vmem:[#allocation2 + $0xd8] sm:$0xf] %vm16_vm1, %v12820_v5  ;;  %73 = vst.msk [vmem:[#allocation2 + $0xdc] sm:$0xf] %vm16_vm1, %v12820_v5  ;;  %v213_v48 = vrot.slane %v211_v20, 7  ;;  %v221_v49 = vrot.slane %v219_v26, 7  ;;  %v1170_v50 = vor.u32 %v1169_v43, %v1166_v42 }
  0x1f   :  { %75 = vst.msk [vmem:[#allocation2 + $0xe4] sm:$0xf] %vm16_vm1, %v12820_v5  ;;  %76 = vst.msk [vmem:[#allocation2 + $0xe8] sm:$0xf] %vm16_vm1, %v12820_v5  ;;  %v1180_v51 = vor.u32 %v1179_v45, %v1175_v44  ;;  %v846_v52 = vld [vmem:[#allocation2 + $0x18] sm:$0xf] }
  0x20   :  { %77 = vst.msk [vmem:[#allocation2 + $0xec] sm:$0x1] %vm19_vm2, %v12820_v5  ;;  %80 = vst.msk [vmem:[#allocation2 + $0xf8] sm:$0x1] %vm19_vm2, %v12820_v5  ;;  %v850_v53 = vld [vmem:[#allocation2 + $0x20] sm:$0x1]  ;;  %v216_v57 = vor.u32 %v214_v21, %v213_v48  ;;  %v224_v59 = vor.u32 %v222_v41, %v221_v49 }
  0x21   :  { %78 = vst.msk [vmem:[#allocation2 + $0xf0] sm:$0xf] %vm16_vm1, %v12820_v5  ;;  %79 = vst.msk [vmem:[#allocation2 + $0xf4] sm:$0xf] %vm16_vm1, %v12820_v5  ;;  %v13131_v54 = vrot.slane %v228_v27, 7  ;;  %v231_v55 = vshll.u32 %v130_v22, 16 }
  0x22   :  { %81 = vst.msk [vmem:[#allocation2 + $0xfc] sm:$0xf] %vm16_vm1, %v12820_v5  ;;  %82 = vst.msk [vmem:[#allocation2 + $0x100] sm:$0xf] %vm16_vm1, %v12820_v5  ;;  %v217_v58 = vrot.slane %v213_v48, 4  ;;  %v226_v60 = vrot.slane %v221_v49, 4 }
  0x23   :  { %83 = vst.msk [vmem:[#allocation2 + $0x104] sm:$0x1] %vm19_vm2, %v12820_v5  ;;  %86 = vst.msk [vmem:[#allocation2 + $0x110] sm:$0x1] %vm19_vm2, %v12820_v5  ;;  %v853_v61 = vld [vmem:[#allocation2 + $0x24] sm:$0xf]  ;;  %v233_v0 = vor.u32 %v231_v55, %v13131_v54 }
  0x24   :  { %84 = vst.msk [vmem:[#allocation2 + $0x108] sm:$0xf] %vm16_vm1, %v12820_v5  ;;  %85 = vst.msk [vmem:[#allocation2 + $0x10c] sm:$0xf] %vm16_vm1, %v12820_v5  ;;  %v1171_v62 = vrot.slane %v1170_v50, 4  ;;  %v1181_v63 = vrot.slane %v1180_v51, 4 }
  0x25   :  { %87 = vst.msk [vmem:[#allocation2 + $0x114] sm:$0xf] %vm16_vm1, %v12820_v5  ;;  %88 = vst.msk [vmem:[#allocation2 + $0x118] sm:$0xf] %vm16_vm1, %v12820_v5  ;;  %vm2028_vm12 = vcmask 64512   ;;  %v2675_v31 = vsel %vm2125_vm0, %v13086_v12, 0 }
  0x26   :  { %89 = vst.msk [vmem:[#allocation2 + $0x11c] sm:$0x1] %vm19_vm2, %v12820_v5  ;;  %92 = vst.msk [vmem:[#allocation2 + $0x128] sm:$0x1] %vm19_vm2, %v12820_v5  ;;  %v13165_v41 = vsel %vm2125_vm0, %v13093_v13, 0  ;;  %v234_v50 = vrot.slane %v13131_v54, 4 }
  0x27   :  { %90 = vst.msk [vmem:[#allocation2 + $0x120] sm:$0xf] %vm16_vm1, %v12820_v5  ;;  %91 = vst.msk [vmem:[#allocation2 + $0x124] sm:$0xf] %vm16_vm1, %v12820_v5  ;;  %v131_v55 = vld [vmem:[%s15996_s0 + $0x14] sm:$0xf] }
  0x28   :  { %93 = vst.msk [vmem:[#allocation2 + $0x12c] sm:$0xf] %vm16_vm1, %v12820_v5  ;;  %94 = vst.msk [vmem:[#allocation2 + $0x130] sm:$0xf] %vm16_vm1, %v12820_v5  ;;  %vm3062_vm13 = vcmask 1042432   ;;  %vm3063_vm14 = vcmask 1046532  }
  0x29   :  { %95 = vst.msk [vmem:[#allocation2 + $0x134] sm:$0x1] %vm19_vm2, %v12820_v5  ;;  %98 = vst.msk [vmem:[#allocation2 + $0x140] sm:$0x1] %vm19_vm2, %v12820_v5 }
  0x2a   :  { %96 = vst.msk [vmem:[#allocation2 + $0x138] sm:$0xf] %vm16_vm1, %v12820_v5  ;;  %97 = vst.msk [vmem:[#allocation2 + $0x13c] sm:$0xf] %vm16_vm1, %v12820_v5 }
  0x2b   :  { %99 = vst.msk [vmem:[#allocation2 + $0x144] sm:$0xf] %vm16_vm1, %v12820_v5  ;;  %100 = vst.msk [vmem:[#allocation2 + $0x148] sm:$0xf] %vm16_vm1, %v12820_v5 }
  0x2c   :  { %101 = vst.msk [vmem:[#allocation2 + $0x14c] sm:$0x1] %vm19_vm2, %v12820_v5  ;;  %104 = vst.msk [vmem:[#allocation2 + $0x158] sm:$0x1] %vm19_vm2, %v12820_v5 }
  0x2d   :  { %102 = vst.msk [vmem:[#allocation2 + $0x150] sm:$0xf] %vm16_vm1, %v12820_v5  ;;  %103 = vst.msk [vmem:[#allocation2 + $0x154] sm:$0xf] %vm16_vm1, %v12820_v5 }
  0x2e   :  { %105 = vst.msk [vmem:[#allocation2 + $0x15c] sm:$0xf] %vm16_vm1, %v12820_v5  ;;  %106 = vst.msk [vmem:[#allocation2 + $0x160] sm:$0xf] %vm16_vm1, %v12820_v5 }
  0x2f   :  { %107 = vst.msk [vmem:[#allocation2 + $0x164] sm:$0x1] %vm19_vm2, %v12820_v5  ;;  %110 = vst.msk [vmem:[#allocation2 + $0x170] sm:$0x1] %vm19_vm2, %v12820_v5 }
  0x30   :  { %108 = vst.msk [vmem:[#allocation2 + $0x168] sm:$0xf] %vm16_vm1, %v12820_v5  ;;  %109 = vst.msk [vmem:[#allocation2 + $0x16c] sm:$0xf] %vm16_vm1, %v12820_v5 }
  0x31   :  { %111 = vst.msk [vmem:[#allocation2 + $0x174] sm:$0xf] %vm16_vm1, %v12820_v5  ;;  %112 = vst.msk [vmem:[#allocation2 + $0x178] sm:$0xf] %vm16_vm1, %v12820_v5 }
  0x32   :  { %113 = vst.msk [vmem:[#allocation2 + $0x17c] sm:$0x1] %vm19_vm2, %v12820_v5  ;;  %116 = vst.msk [vmem:[#allocation2 + $0x188] sm:$0x1] %vm19_vm2, %v12820_v5 }
  0x33   :  { %114 = vst.msk [vmem:[#allocation2 + $0x180] sm:$0xf] %vm16_vm1, %v12820_v5  ;;  %115 = vst.msk [vmem:[#allocation2 + $0x184] sm:$0xf] %vm16_vm1, %v12820_v5 }
  0x34   :  { %117 = vst.msk [vmem:[#allocation2 + $0x18c] sm:$0xf] %vm16_vm1, %v12820_v5  ;;  %118 = vst.msk [vmem:[#allocation2 + $0x190] sm:$0xf] %vm16_vm1, %v12820_v5 }
  0x35   :  { %119 = vst.msk [vmem:[#allocation2 + $0x194] sm:$0x1] %vm19_vm2, %v12820_v5  ;;  %122 = vst.msk [vmem:[#allocation2 + $0x1a0] sm:$0x1] %vm19_vm2, %v12820_v5 }
  0x36   :  { %120 = vst.msk [vmem:[#allocation2 + $0x198] sm:$0xf] %vm16_vm1, %v12820_v5  ;;  %121 = vst.msk [vmem:[#allocation2 + $0x19c] sm:$0xf] %vm16_vm1, %v12820_v5 }
  0x37   :  { %123 = vst.msk [vmem:[#allocation2 + $0x1a4] sm:$0xf] %vm16_vm1, %v12820_v5  ;;  %124 = vst.msk [vmem:[#allocation2 + $0x1a8] sm:$0xf] %vm16_vm1, %v12820_v5 }
  0x38   :  { %125 = vst.msk [vmem:[#allocation2 + $0x1ac] sm:$0x1] %vm19_vm2, %v12820_v5  ;;  %vm13105_vm8 = vmor %vm190_vm3, %vm191_vm4 }
  0x39   :  { %vm13114_vm9 = vmand %vm16_vm1, %vm835_vm7  ;;  %v208_v38 = vsel %vm13105_vm8, %v200_v19, %v207_v23  ;;  %v225_v1 = vsel %vm13105_vm8, %v217_v58, %v224_v59 }
  0x3a   :  { %vm13120_vm10 = vmand %vm19_vm2, %vm190_vm3  ;;  %v838_v39 = vsel %vm13114_vm9, %v199_v18, %v837_v35  ;;  %840 = vst.msk [vmem:[#allocation2 + $0x10] sm:$0xf] %vm16_vm1, %v208_v38  ;;  %v847_v2 = vsel %vm13114_vm9, %v216_v57, %v846_v52  ;;  %v854_v7 = vsel %vm13114_vm9, %v233_v0, %v853_v61 }
  0x3b   :  { %839 = vst [vmem:[#allocation2 + $0xc] sm:$0xf] %v838_v39  ;;  %v844_v47 = vsel %vm13120_vm10, %v209_v24, %v843_v40  ;;  %vm13135_vm11 = vmor %vm1160_vm5, %vm1161_vm6  ;;  %v851_v4 = vsel %vm13120_vm10, %v226_v60, %v850_v53 }
  0x3c   :  { %845 = vst [vmem:[#allocation2 + $0x14] sm:$0x1] %v844_v47  ;;  %v1176_v5 = vsel %vm13135_vm11, %v1171_v62, %v1175_v44  ;;  %v1186_v6 = vsel %vm13135_vm11, %v1181_v63, %v1185_v46  ;;  %848 = vst [vmem:[#allocation2 + $0x18] sm:$0xf] %v847_v2 }
  0x3d   :  { %849 = vst.msk [vmem:[#allocation2 + $0x1c] sm:$0xf] %vm16_vm1, %v225_v1  ;;  %852 = vst [vmem:[#allocation2 + $0x20] sm:$0x1] %v851_v4  ;;  %v10293_v8 = vcombine.low %v1176_v5, %v1186_v6  ;;  %v236_v5 = vshrl.u32 %v131_v55, 16  ;;  %v239_v6 = vshll.u32 %v131_v55, 16 }
  0x3e   :  { %855 = vst [vmem:[#allocation2 + $0x24] sm:$0xf] %v854_v7  ;;  %vm13595_vm15 = vmor %vm3062_vm13, %vm3063_vm14 }
  0x3f   :  { %11393 = vmatprep.mubr.msk.bf16.mxu1 %vm2028_vm12, %v10293_v8 }
  0x41   :  { %v1066_v10 = vld [vmem:[#allocation2 + $0x10] sm:$0xf] }
  0x42   :  { %v1065_v9 = vld [vmem:[#allocation2 + $0xc] sm:$0xf]  ;;  %v1197_v16 = vshll.u32 %v1066_v10, 16  ;;  %v1201_v18 = vshrl.u32 %v1066_v10, 16  ;;  %v13154_v20 = vld [vmem:[#allocation2 + $0x10] sm:$0xf] }
  0x43   :  { %v4515_v11 = vld [vmem:[#allocation2 + $0xc] sm:$0xf]  ;;  %v1188_v14 = vshrl.u32 %v1065_v9, 16  ;;  %v1191_v15 = vshll.u32 %v1065_v9, 16  ;;  %v1129_v19 = vld [vmem:[#allocation2 + $0x14] sm:$0x1] }
  0x44   :  { %v4612_v21 = vshrl.u32 %v4515_v11, 16  ;;  %v1199_v24 = vrot.slane %v1197_v16, 5  ;;  %v1203_v26 = vrot.slane %v1201_v18, 4  ;;  %v13156_v27 = vld [vmem:[#allocation2 + $0x14] sm:$0x1]  ;;  %v1207_v28 = vshll.u32 %v1129_v19, 16 }
  0x45   :  { %v1190_v22 = vrot.slane %v1188_v14, 4  ;;  %v1193_v23 = vrot.slane %v1191_v15, 5  ;;  %v4615_v30 = vshll.u32 %v4515_v11, 16  ;;  %v4621_v34 = vshll.u32 %v13154_v20, 16  ;;  %v4518_v40 = vld [vmem:[#allocation2 + $0x18] sm:$0xf] }
  0x46   :  { %v4614_v29 = vrot.slane %v4612_v21, 4  ;;  %v1204_v33 = vor.u32 %v1203_v26, %v1199_v24  ;;  %v4625_v35 = vshrl.u32 %v13154_v20, 16  ;;  %v1209_v37 = vrot.slane %v1207_v28, 5  ;;  %v4519_v12 = vld [vmem:[#allocation2 + $0x1c] sm:$0xf] }
  0x47   :  { %v1194_v32 = vor.u32 %v1193_v23, %v1190_v22  ;;  %v4617_v38 = vrot.slane %v4615_v30, 5  ;;  %v4631_v39 = vshll.u32 %v13156_v27, 16  ;;  %v4623_v44 = vrot.slane %v4621_v34, 5  ;;  %v4520_v48 = vld [vmem:[#allocation2 + $0x20] sm:$0x1] }
  0x48   :  { %v1205_v43 = vrot.slane %v1204_v33, 4  ;;  %v4627_v45 = vrot.slane %v4625_v35, 4  ;;  %v4636_v49 = vshrl.u32 %v4518_v40, 16  ;;  %v4639_v13 = vshll.u32 %v4518_v40, 16  ;;  %v1067_v0 = vld [vmem:[#allocation2 + $0x18] sm:$0xf] }
  0x49   :  { %v1195_v42 = vrot.slane %v1194_v32, 4  ;;  %v4618_v46 = vor.u32 %v4617_v38, %v4614_v29  ;;  %v4633_v47 = vrot.slane %v4631_v39, 5  ;;  %v4645_v60 = vshll.u32 %v4519_v12, 16  ;;  %v1068_v4 = vld [vmem:[#allocation2 + $0x1c] sm:$0xf] }
  0x4a   :  { %v1210_v52 = vsel %vm13135_vm11, %v1205_v43, %v1209_v37  ;;  %v4628_v53 = vor.u32 %v4627_v45, %v4623_v44  ;;  %v4638_v59 = vrot.slane %v4636_v49, 4  ;;  %v4641_v62 = vrot.slane %v4639_v13, 5  ;;  %v1130_v11 = vld [vmem:[#allocation2 + $0x20] sm:$0x1]  ;;  %v1069_v30 = vld [vmem:[#allocation2 + $0x24] sm:$0xf] }
  0x4b   :  { %v1200_v51 = vsel %vm13135_vm11, %v1195_v42, %v1199_v24  ;;  %v4619_v58 = vrot.slane %v4618_v46, 4  ;;  %v4649_v63 = vshrl.u32 %v4519_v12, 16  ;;  %v4655_v54 = vshll.u32 %v4520_v48, 16  ;;  %v857_v35 = vld [vmem:[#allocation2 + $0x2c] sm:$0x1] }
  0x4c   :  { %v10294_v57 = vcombine.low %v1200_v51, %v1210_v52  ;;  %v4629_v61 = vrot.slane %v4628_v53, 4  ;;  %v4647_v2 = vrot.slane %v4645_v60, 5  ;;  %v6058_v8 = vrot.slane %v13154_v20, 5  ;;  %v4521_v42 = vld [vmem:[#allocation2 + $0x24] sm:$0xf] }
  0x4d   :  { %v4624_v1 = vsel %vm13135_vm11, %v4619_v58, %v4623_v44  ;;  %v4642_v9 = vor.u32 %v4641_v62, %v4638_v59  ;;  %v4651_v10 = vrot.slane %v4649_v63, 4  ;;  %v4657_v15 = vrot.slane %v4655_v54, 5  ;;  %v132_v46 = vld [vmem:[%s15996_s0 + $0x18] sm:$0xf]  ;;  %v133_v52 = vld [vmem:[%s15996_s0 + $0x1c] sm:$0xf] }
  0x4e   :  { %11394 = vmatmul.mubr.msk.bf16.vlgmr.msra.gmra.mrb[0].mxu1 %vm2028_vm12, %v10294_v57  ;;  %v4634_v7 = vsel %vm13135_vm11, %v4629_v61, %v4633_v47  ;;  %v1212_v16 = vshrl.u32 %v1067_v0, 16  ;;  %v1215_v18 = vshll.u32 %v1067_v0, 16  ;;  %v1221_v22 = vshll.u32 %v1068_v4, 16  ;;  %v134_v61 = vld [vmem:[%s15996_s0 + $0x20] sm:$0xf] }
  0x4f   :  { %11458 = vmatpush3.bf16.msra.mxu1 %v2675_v31  ;;  %v10581_v14 = vcombine.low %v4624_v1, %v4634_v7  ;;  %v4643_v19 = vrot.slane %v4642_v9, 4  ;;  %v4652_v21 = vor.u32 %v4651_v10, %v4647_v2  ;;  %v1225_v23 = vshrl.u32 %v1068_v4, 16 }
  0x50   :  { %v1214_v24 = vrot.slane %v1212_v16, 4  ;;  %v1217_v26 = vrot.slane %v1215_v18, 5  ;;  %v1231_v28 = vshll.u32 %v1130_v11, 16  ;;  %v238_v29 = vrot.slane %v236_v5, 7 }
  0x51   :  { %11657 = vmatprep.mubr.msk.bf16.mxu0 %vm2028_vm12, %v10581_v14  ;;  %v4648_v31 = vsel %vm13135_vm11, %v4643_v19, %v4647_v2  ;;  %v4653_v32 = vrot.slane %v4652_v21, 4  ;;  %v1223_v33 = vrot.slane %v1221_v22, 5  ;;  %v1227_v34 = vrot.slane %v1225_v23, 4  ;;  %v864_v22 = vld [vmem:[#allocation2 + $0x38] sm:$0x1] }
  0x52   :  { %v1218_v37 = vor.u32 %v1217_v26, %v1214_v24  ;;  %v1233_v38 = vrot.slane %v1231_v28, 5  ;;  %v241_v39 = vor.u32 %v239_v6, %v238_v29  ;;  %v243_v40 = vrot.slane %v238_v29, 4  ;;  %v135_v6 = vld [vmem:[%s15996_s0 + $0x24] sm:$0xf] }
  0x53   :  { %v4658_v43 = vsel %vm13135_vm11, %v4653_v32, %v4657_v15  ;;  %v1228_v44 = vor.u32 %v1227_v34, %v1223_v33  ;;  %v1236_v45 = vshrl.u32 %v1069_v30, 16  ;;  %v1239_v12 = vshll.u32 %v1069_v30, 16 }
  0x54   :  { %v10582_v47 = vcombine.low %v4648_v31, %v4658_v43  ;;  %v1219_v48 = vrot.slane %v1218_v37, 4  ;;  %v242_v49 = vsel %vm13105_vm8, %v234_v50, %v241_v39  ;;  %v858_v51 = vsel %vm13120_vm10, %v243_v40, %v857_v35 }
  0x55   :  { %v1229_v53 = vrot.slane %v1228_v44, 4  ;;  %856 = vst.msk [vmem:[#allocation2 + $0x28] sm:$0xf] %vm16_vm1, %v242_v49  ;;  %859 = vst [vmem:[#allocation2 + $0x2c] sm:$0x1] %v858_v51  ;;  %v1238_v13 = vrot.slane %v1236_v45, 4 }
  0x56   :  { %v1241_v55 = vrot.slane %v1239_v12, 5  ;;  %v4660_v57 = vshrl.u32 %v4521_v42, 16  ;;  %11658 = vmatmul.mubr.msk.bf16.vlgmr.msra.gmra.mrb[0].mxu0 %vm2028_vm12, %v10582_v47  ;;  %v1224_v58 = vsel %vm13135_vm11, %v1219_v48, %v1223_v33  ;;  %v4663_v50 = vshll.u32 %v4521_v42, 16  ;;  %v867_v42 = vld [vmem:[#allocation2 + $0x3c] sm:$0xf] }
  0x57   :  { %v245_v59 = vshrl.u32 %v132_v46, 16  ;;  %v248_v60 = vshll.u32 %v132_v46, 16  ;;  %11722 = vmatpush3.bf16.msra.mxu0 %v13165_v41  ;;  %v1234_v62 = vsel %vm13135_vm11, %v1229_v53, %v1233_v38  ;;  %v253_v0 = vshrl.u32 %v133_v52, 16  ;;  %v860_v41 = vld [vmem:[#allocation2 + $0x30] sm:$0xf] }
  0x58   :  { %v1242_v63 = vor.u32 %v1241_v55, %v1238_v13  ;;  %v4662_v54 = vrot.slane %v4660_v57, 4  ;;  %v10295_v1 = vcombine.low %v1224_v58, %v1234_v62  ;;  %v4665_v2 = vrot.slane %v4663_v50, 5  ;;  %v13223_v46 = vld [vmem:[%s15996_s0 + $0x28] sm:$0xf] }
  0x59   :  { %v247_v4 = vrot.slane %v245_v59, 7  ;;  %v256_v5 = vshll.u32 %v133_v52, 16  ;;  %v6061_v7 = vrot.slane %v13156_v27, 5  ;;  %v255_v10 = vrot.slane %v253_v0, 7 }
  0x5a   :  { %v13210_v9 = vrot.slane %v1242_v63, 4  ;;  %v262_v11 = vshrl.u32 %v134_v61, 16  ;;  %11397 = vmatprep.mubr.msk.bf16.mxu1 %vm2028_vm12, %v10295_v1  ;;  %v4666_v14 = vor.u32 %v4665_v2, %v4662_v54  ;;  %v265_v18 = vshll.u32 %v134_v61, 16 }
  0x5b   :  { %v250_v15 = vor.u32 %v248_v60, %v247_v4  ;;  %v251_v16 = vrot.slane %v247_v4, 4  ;;  %v258_v19 = vor.u32 %v256_v5, %v255_v10  ;;  %v260_v21 = vrot.slane %v255_v10, 4 }
  0x5c   :  { %v264_v23 = vrot.slane %v262_v11, 7  ;;  %v270_v24 = vshrl.u32 %v135_v6, 16  ;;  %v1070_v26 = vld [vmem:[#allocation2 + $0x28] sm:$0xf]  ;;  %v1131_v28 = vld [vmem:[#allocation2 + $0x2c] sm:$0x1] }
  0x5d   :  { %v4522_v29 = vld [vmem:[#allocation2 + $0x28] sm:$0xf]  ;;  %v861_v30 = vsel %vm13114_vm9, %v250_v15, %v860_v41  ;;  %v1245_v31 = vshll.u32 %v1070_v26, 16  ;;  %v1249_v32 = vshrl.u32 %v1070_v26, 16  ;;  %v1255_v33 = vshll.u32 %v1131_v28, 16 }
  0x5e   :  { %v4523_v34 = vld [vmem:[#allocation2 + $0x2c] sm:$0x1]  ;;  %862 = vst [vmem:[#allocation2 + $0x30] sm:$0xf] %v861_v30  ;;  %v273_v35 = vshll.u32 %v135_v6, 16  ;;  %v4669_v37 = vshll.u32 %v4522_v29, 16  ;;  %v259_v40 = vsel %vm13105_vm8, %v251_v16, %v258_v19  ;;  %v865_v12 = vsel %vm13120_vm10, %v260_v21, %v864_v22 }
  0x5f   :  { %v4673_v38 = vshrl.u32 %v4522_v29, 16  ;;  %v4679_v39 = vshll.u32 %v4523_v34, 16  ;;  %v1247_v43 = vrot.slane %v1245_v31, 5  ;;  %v1251_v44 = vrot.slane %v1249_v32, 4  ;;  %863 = vst.msk [vmem:[#allocation2 + $0x34] sm:$0xf] %vm16_vm1, %v259_v40 }
  0x60   :  { %v4667_v45 = vrot.slane %v4666_v14, 4  ;;  %v1257_v47 = vrot.slane %v1255_v33, 5  ;;  %v4671_v48 = vrot.slane %v4669_v37, 5  ;;  %866 = vst [vmem:[#allocation2 + $0x38] sm:$0x1] %v865_v12  ;;  %v267_v51 = vor.u32 %v265_v18, %v264_v23 }
  0x61   :  { %v4675_v49 = vrot.slane %v4673_v38, 4  ;;  %v1248_v52 = vsel %vm13135_vm11, %v13210_v9, %v1247_v43  ;;  %v1252_v53 = vor.u32 %v1251_v44, %v1247_v43  ;;  %v4681_v13 = vrot.slane %v4679_v39, 5  ;;  %v871_v19 = vld [vmem:[#allocation2 + $0x44] sm:$0x1] }
  0x62   :  { %v272_v55 = vrot.slane %v270_v24, 7  ;;  %v268_v58 = vrot.slane %v264_v23, 4  ;;  %v868_v50 = vsel %vm13114_vm9, %v267_v51, %v867_v42  ;;  %v279_v59 = vshrl.u32 %v13223_v46, 16 }
  0x63   :  { %v4676_v57 = vor.u32 %v4675_v49, %v4671_v48  ;;  %v1253_v60 = vrot.slane %v1252_v53, 4  ;;  %869 = vst [vmem:[#allocation2 + $0x3c] sm:$0xf] %v868_v50  ;;  %v282_v63 = vshll.u32 %v13223_v46, 16  ;;  %v4672_v54 = vsel %vm13135_vm11, %v4667_v45, %v4671_v48 }
  0x64   :  { %v275_v61 = vor.u32 %v273_v35, %v272_v55  ;;  %v277_v62 = vrot.slane %v272_v55, 4  ;;  %v13234_v4 = vrot.slane %v279_v59, 7 }
  0x65   :  { %v4677_v0 = vrot.slane %v4676_v57, 4  ;;  %v4524_v1 = vld [vmem:[#allocation2 + $0x30] sm:$0xf]  ;;  %v1258_v5 = vsel %vm13135_vm11, %v1253_v60, %v1257_v47 }
  0x66   :  { %v1071_v2 = vld [vmem:[#allocation2 + $0x30] sm:$0xf]  ;;  %v4684_v6 = vshrl.u32 %v4524_v1, 16  ;;  %v4687_v9 = vshll.u32 %v4524_v1, 16  ;;  %v10296_v41 = vcombine.low %v1248_v52, %v1258_v5  ;;  %v4525_v14 = vld [vmem:[#allocation2 + $0x34] sm:$0xf]  ;;  %v276_v18 = vsel %vm13105_vm8, %v268_v58, %v275_v61 }
  0x67   :  { %v1260_v10 = vshrl.u32 %v1071_v2, 16  ;;  %v4682_v11 = vsel %vm13135_vm11, %v4677_v0, %v4681_v13  ;;  %v1072_v15 = vld [vmem:[#allocation2 + $0x34] sm:$0xf]  ;;  %v1263_v16 = vshll.u32 %v1071_v2, 16  ;;  %v4526_v22 = vld [vmem:[#allocation2 + $0x38] sm:$0x1]  ;;  %v872_v46 = vsel %vm13120_vm10, %v277_v62, %v871_v19 }
  0x68   :  { %v10583_v21 = vcombine.low %v4672_v54, %v4682_v11  ;;  %v4686_v23 = vrot.slane %v4684_v6, 4  ;;  %v4689_v24 = vrot.slane %v4687_v9, 5  ;;  %v4693_v26 = vshll.u32 %v4525_v14, 16  ;;  %870 = vst.msk [vmem:[#allocation2 + $0x40] sm:$0xf] %vm16_vm1, %v276_v18  ;;  %11398 = vmatmul.mubr.msk.bf16.gmra.mrb[4].mxu1 %vm2028_vm12, %v10296_v41 }
  0x69   :  { %v4697_v28 = vshrl.u32 %v4525_v14, 16  ;;  %v4703_v29 = vshll.u32 %v4526_v22, 16  ;;  %v1132_v30 = vld [vmem:[#allocation2 + $0x38] sm:$0x1]  ;;  %v1262_v31 = vrot.slane %v1260_v10, 4  ;;  %v1265_v32 = vrot.slane %v1263_v16, 5 }
  0x6a   :  { %11661 = vmatprep.mubr.msk.bf16.mxu0 %vm2028_vm12, %v10583_v21  ;;  %v4690_v33 = vor.u32 %v4689_v24, %v4686_v23  ;;  %v4695_v34 = vrot.slane %v4693_v26, 5  ;;  %v1269_v35 = vshll.u32 %v1072_v15, 16  ;;  %v1273_v37 = vshrl.u32 %v1072_v15, 16  ;;  %v1073_v43 = vld [vmem:[#allocation2 + $0x3c] sm:$0xf] }
  0x6b   :  { %v4699_v38 = vrot.slane %v4697_v28, 4  ;;  %v4705_v39 = vrot.slane %v4703_v29, 5  ;;  %v1266_v40 = vor.u32 %v1265_v32, %v1262_v31  ;;  %v1279_v42 = vshll.u32 %v1132_v30, 16  ;;  %v4527_v47 = vld [vmem:[#allocation2 + $0x3c] sm:$0xf] }
  0x6c   :  { %v4691_v44 = vrot.slane %v4690_v33, 4  ;;  %v1271_v45 = vrot.slane %v1269_v35, 5  ;;  %v1275_v12 = vrot.slane %v1273_v37, 4  ;;  %873 = vst [vmem:[#allocation2 + $0x44] sm:$0x1] %v872_v46  ;;  %v1284_v52 = vshrl.u32 %v1073_v43, 16 }
  0x6d   :  { %v4700_v48 = vor.u32 %v4699_v38, %v4695_v34  ;;  %v1267_v49 = vrot.slane %v1266_v40, 4  ;;  %v1281_v51 = vrot.slane %v1279_v42, 5  ;;  %v1287_v55 = vshll.u32 %v1073_v43, 16  ;;  %v874_v41 = vld [vmem:[#allocation2 + $0x48] sm:$0xf] }
  0x6e   :  { %v4696_v53 = vsel %vm13135_vm11, %v4691_v44, %v4695_v34  ;;  %v1276_v13 = vor.u32 %v1275_v12, %v1271_v45  ;;  %v4708_v57 = vshrl.u32 %v4527_v47, 16  ;;  %v1286_v60 = vrot.slane %v1284_v52, 4  ;;  %v137_v22 = vld [vmem:[%s15996_s0 + $0x2c] sm:$0xf]  ;;  %v138_v34 = vld [vmem:[%s15996_s0 + $0x30] sm:$0xf] }
  0x6f   :  { %v4701_v58 = vrot.slane %v4700_v48, 4  ;;  %v1272_v50 = vsel %vm13135_vm11, %v1267_v49, %v1271_v45  ;;  %v1074_v59 = vld [vmem:[#allocation2 + $0x40] sm:$0xf]  ;;  %v284_v62 = vor.u32 %v282_v63, %v13234_v4  ;;  %v1289_v0 = vrot.slane %v1287_v55, 5  ;;  %v139_v35 = vld [vmem:[%s15996_s0 + $0x34] sm:$0xf] }
  0x70   :  { %v4528_v61 = vld [vmem:[#allocation2 + $0x40] sm:$0xf]  ;;  %v1277_v54 = vrot.slane %v1276_v13, 4  ;;  %v1293_v1 = vshll.u32 %v1074_v59, 16  ;;  %v1297_v2 = vshrl.u32 %v1074_v59, 16  ;;  %v4710_v6 = vrot.slane %v4708_v57, 4 }
  0x71   :  { %v4706_v5 = vsel %vm13135_vm11, %v4701_v58, %v4705_v39  ;;  %v4711_v9 = vshll.u32 %v4527_v47, 16  ;;  %v4717_v10 = vshll.u32 %v4528_v61, 16  ;;  %v1290_v15 = vor.u32 %v1289_v0, %v1286_v60  ;;  %v13275_v42 = vld [vmem:[%s15996_s0 + $0x38] sm:$0xf]  ;;  %v878_v46 = vld [vmem:[#allocation2 + $0x50] sm:$0x1] }
  0x72   :  { %v10584_v11 = vcombine.low %v4696_v53, %v4706_v5  ;;  %v1282_v14 = vsel %vm13135_vm11, %v1277_v54, %v1281_v51  ;;  %v1295_v16 = vrot.slane %v1293_v1, 5  ;;  %v1299_v19 = vrot.slane %v1297_v2, 4 }
  0x73   :  { %v10297_v18 = vcombine.low %v1272_v50, %v1282_v14  ;;  %v4713_v63 = vrot.slane %v4711_v9, 5  ;;  %v4719_v21 = vrot.slane %v4717_v10, 5  ;;  %v1133_v23 = vld [vmem:[#allocation2 + $0x44] sm:$0x1]  ;;  %v1291_v24 = vrot.slane %v1290_v15, 4 }
  0x74   :  { %11662 = vmatmul.mubr.msk.bf16.gmra.mrb[4].mxu0 %vm2028_vm12, %v10584_v11  ;;  %v4529_v26 = vld [vmem:[#allocation2 + $0x44] sm:$0x1]  ;;  %v4721_v28 = vshrl.u32 %v4528_v61, 16  ;;  %v875_v29 = vsel %vm13114_vm9, %v284_v62, %v874_v41  ;;  %v1300_v30 = vor.u32 %v1299_v19, %v1295_v16  ;;  %v1303_v31 = vshll.u32 %v1133_v23, 16  ;;  %v881_v62 = vld [vmem:[#allocation2 + $0x54] sm:$0xf] }
  0x75   :  { %11401 = vmatprep.mubr.msk.bf16.mxu1 %vm2028_vm12, %v10297_v18  ;;  %v4714_v32 = vor.u32 %v4713_v63, %v4710_v6  ;;  %v4727_v33 = vshll.u32 %v4529_v26, 16  ;;  %876 = vst [vmem:[#allocation2 + $0x48] sm:$0xf] %v875_v29  ;;  %v1296_v37 = vsel %vm13135_vm11, %v1291_v24, %v1295_v16  ;;  %v285_v39 = vrot.slane %v13234_v4, 4  ;;  %v885_v9 = vld [vmem:[#allocation2 + $0x5c] sm:$0x1] }
  0x76   :  { %v4723_v38 = vrot.slane %v4721_v28, 4  ;;  %v287_v40 = vshrl.u32 %v137_v22, 16  ;;  %v1301_v43 = vrot.slane %v1300_v30, 4  ;;  %v1305_v44 = vrot.slane %v1303_v31, 5  ;;  %v141_v10 = vld [vmem:[%s15996_s0 + $0x3c] sm:$0xf] }
  0x77   :  { %v4715_v45 = vrot.slane %v4714_v32, 4  ;;  %v4729_v12 = vrot.slane %v4727_v33, 5  ;;  %v290_v49 = vshll.u32 %v137_v22, 16  ;;  %v296_v51 = vshrl.u32 %v138_v34, 16  ;;  %v13297_v22 = vld [vmem:[%s15996_s0 + $0x40] sm:$0xf] }
  0x78   :  { %v4724_v47 = vor.u32 %v4723_v38, %v4719_v21  ;;  %v289_v48 = vrot.slane %v287_v40, 7  ;;  %v1306_v52 = vsel %vm13135_vm11, %v1301_v43, %v1305_v44  ;;  %v299_v53 = vshll.u32 %v138_v34, 16  ;;  %v13307_v33 = vld [vmem:[%s15996_s0 + $0x44] sm:$0xf] }
  0x79   :  { %v4720_v4 = vsel %vm13135_vm11, %v4715_v45, %v4719_v21  ;;  %v304_v13 = vshrl.u32 %v139_v35, 16  ;;  %v10298_v55 = vcombine.low %v1296_v37, %v1306_v52  ;;  %v298_v59 = vrot.slane %v296_v51, 7 }
  0x7a   :  { %v4725_v57 = vrot.slane %v4724_v47, 4  ;;  %v292_v58 = vor.u32 %v290_v49, %v289_v48  ;;  %v294_v50 = vrot.slane %v289_v48, 4  ;;  %v307_v61 = vshll.u32 %v139_v35, 16 }
  0x7b   :  { %v306_v60 = vrot.slane %v304_v13, 7  ;;  %v313_v54 = vshrl.u32 %v13275_v42, 16  ;;  %11402 = vmatmul.mubr.msk.bf16.gmra.mrb[8].mxu1 %vm2028_vm12, %v10298_v55  ;;  %v316_v41 = vshll.u32 %v13275_v42, 16  ;;  %v301_v19 = vor.u32 %v299_v53, %v298_v59 }
  0x7c   :  { %v4730_v0 = vsel %vm13135_vm11, %v4725_v57, %v4729_v12  ;;  %v293_v1 = vsel %vm13105_vm8, %v285_v39, %v292_v58  ;;  %v879_v2 = vsel %vm13120_vm10, %v294_v50, %v878_v46  ;;  %v4530_v5 = vld [vmem:[#allocation2 + $0x48] sm:$0xf]  ;;  %v302_v63 = vrot.slane %v298_v59, 4  ;;  %v888_v39 = vld [vmem:[#allocation2 + $0x60] sm:$0xf] }
  0x7d   :  { %v1075_v6 = vld [vmem:[#allocation2 + $0x48] sm:$0xf]  ;;  %v10585_v11 = vcombine.low %v4720_v4, %v4730_v0  ;;  %877 = vst.msk [vmem:[#allocation2 + $0x4c] sm:$0xf] %vm16_vm1, %v293_v1  ;;  %880 = vst [vmem:[#allocation2 + $0x50] sm:$0x1] %v879_v2  ;;  %v309_v21 = vor.u32 %v307_v61, %v306_v60  ;;  %v882_v31 = vsel %vm13114_vm9, %v301_v19, %v881_v62 }
  0x7e   :  { %v4732_v14 = vshrl.u32 %v4530_v5, 16  ;;  %v4735_v15 = vshll.u32 %v4530_v5, 16  ;;  %v1308_v16 = vshrl.u32 %v1075_v6, 16  ;;  %v1311_v18 = vshll.u32 %v1075_v6, 16  ;;  %883 = vst [vmem:[#allocation2 + $0x54] sm:$0xf] %v882_v31 }
  0x7f   :  { %11665 = vmatprep.mubr.msk.bf16.mxu0 %vm2028_vm12, %v10585_v11  ;;  %v311_v28 = vrot.slane %v306_v60, 4  ;;  %v310_v30 = vsel %vm13105_vm8, %v302_v63, %v309_v21  ;;  %v315_v32 = vrot.slane %v313_v54, 7  ;;  %v321_v37 = vshrl.u32 %v141_v10, 16 }
  0x80   :  { %v4734_v23 = vrot.slane %v4732_v14, 4  ;;  %v4737_v24 = vrot.slane %v4735_v15, 5  ;;  %v1310_v26 = vrot.slane %v1308_v16, 4  ;;  %v1313_v29 = vrot.slane %v1311_v18, 5  ;;  %884 = vst.msk [vmem:[#allocation2 + $0x58] sm:$0xf] %vm16_vm1, %v310_v30 }
  0x81   :  { %v886_v35 = vsel %vm13120_vm10, %v311_v28, %v885_v9  ;;  %v324_v38 = vshll.u32 %v141_v10, 16  ;;  %v318_v42 = vor.u32 %v316_v41, %v315_v32  ;;  %v319_v43 = vrot.slane %v315_v32, 4 }
  0x82   :  { %v4738_v34 = vor.u32 %v4737_v24, %v4734_v23  ;;  %v1314_v40 = vor.u32 %v1313_v29, %v1310_v26  ;;  %887 = vst [vmem:[#allocation2 + $0x5c] sm:$0x1] %v886_v35  ;;  %v330_v44 = vshrl.u32 %v13297_v22, 16  ;;  %v13313_v12 = vrot.slane %v321_v37, 7 }
  0x83   :  { %v333_v46 = vshll.u32 %v13297_v22, 16  ;;  %v338_v47 = vshrl.u32 %v13307_v33, 16  ;;  %v889_v52 = vsel %vm13114_vm9, %v318_v42, %v888_v39 }
  0x84   :  { %v4739_v45 = vrot.slane %v4738_v34, 4  ;;  %v4531_v48 = vld [vmem:[#allocation2 + $0x4c] sm:$0xf]  ;;  %v4532_v49 = vld [vmem:[#allocation2 + $0x50] sm:$0x1]  ;;  %v1315_v57 = vrot.slane %v1314_v40, 4  ;;  %v326_v60 = vor.u32 %v324_v38, %v13313_v12 }
  0x85   :  { %v1076_v51 = vld [vmem:[#allocation2 + $0x4c] sm:$0xf]  ;;  %v4741_v4 = vshll.u32 %v4531_v48, 16  ;;  %v4745_v53 = vshrl.u32 %v4531_v48, 16  ;;  %v4751_v13 = vshll.u32 %v4532_v49, 16  ;;  %v328_v0 = vrot.slane %v13313_v12, 4 }
  0x86   :  { %v1134_v55 = vld [vmem:[#allocation2 + $0x50] sm:$0x1]  ;;  %890 = vst [vmem:[#allocation2 + $0x60] sm:$0xf] %v889_v52  ;;  %v1317_v58 = vshll.u32 %v1076_v51, 16  ;;  %v1321_v50 = vshrl.u32 %v1076_v51, 16  ;;  %v327_v9 = vsel %vm13105_vm8, %v319_v43, %v326_v60 }
  0x87   :  { %v1327_v59 = vshll.u32 %v1134_v55, 16  ;;  %v4743_v61 = vrot.slane %v4741_v4, 5  ;;  %v4747_v62 = vrot.slane %v4745_v53, 4  ;;  %v4753_v54 = vrot.slane %v4751_v13, 5  ;;  %v1077_v6 = vld [vmem:[#allocation2 + $0x54] sm:$0xf] }
  0x88   :  { %v1319_v1 = vrot.slane %v1317_v58, 5  ;;  %v1323_v2 = vrot.slane %v1321_v50, 4  ;;  %v1078_v11 = vld [vmem:[#allocation2 + $0x58] sm:$0xf]  ;;  %v1332_v15 = vshrl.u32 %v1077_v6, 16  ;;  %v1335_v16 = vshll.u32 %v1077_v6, 16 }
  0x89   :  { %v1329_v5 = vrot.slane %v1327_v59, 5  ;;  %v4744_v10 = vsel %vm13135_vm11, %v4739_v45, %v4743_v61  ;;  %v4748_v41 = vor.u32 %v4747_v62, %v4743_v61  ;;  %v1135_v14 = vld [vmem:[#allocation2 + $0x5c] sm:$0x1]  ;;  %891 = vst.msk [vmem:[#allocation2 + $0x64] sm:$0xf] %vm16_vm1, %v327_v9  ;;  %v1341_v63 = vshll.u32 %v1078_v11, 16 }
  0x8a   :  { %v1320_v18 = vsel %vm13135_vm11, %v1315_v57, %v1319_v1  ;;  %v1324_v19 = vor.u32 %v1323_v2, %v1319_v1  ;;  %v1345_v21 = vshrl.u32 %v1078_v11, 16  ;;  %v4533_v23 = vld [vmem:[#allocation2 + $0x54] sm:$0xf]  ;;  %v1334_v26 = vrot.slane %v1332_v15, 4  ;;  %v4534_v34 = vld [vmem:[#allocation2 + $0x58] sm:$0xf] }
  0x8b   :  { %v4749_v24 = vrot.slane %v4748_v41, 4  ;;  %v1337_v28 = vrot.slane %v1335_v16, 5  ;;  %v1351_v29 = vshll.u32 %v1135_v14, 16  ;;  %v1343_v31 = vrot.slane %v1341_v63, 5  ;;  %v4535_v40 = vld [vmem:[#allocation2 + $0x5c] sm:$0x1] }
  0x8c   :  { %v1325_v30 = vrot.slane %v1324_v19, 4  ;;  %v1347_v32 = vrot.slane %v1345_v21, 4  ;;  %v4756_v35 = vshrl.u32 %v4533_v23, 16  ;;  %v4759_v42 = vshll.u32 %v4533_v23, 16  ;;  %v892_v43 = vld [vmem:[#allocation2 + $0x68] sm:$0x1] }
  0x8d   :  { %v4754_v37 = vsel %vm13135_vm11, %v4749_v24, %v4753_v54  ;;  %v1338_v38 = vor.u32 %v1337_v28, %v1334_v26  ;;  %v1353_v39 = vrot.slane %v1351_v29, 5  ;;  %v4536_v51 = vld [vmem:[#allocation2 + $0x60] sm:$0xf]  ;;  %v4765_v13 = vshll.u32 %v4534_v34, 16  ;;  %v6894_v26 = vld [vmem:[%s15997_s1 + $0x18] sm:$0xf] }
  0x8e   :  { %v10586_v45 = vcombine.low %v4744_v10, %v4754_v37  ;;  %v1330_v12 = vsel %vm13135_vm11, %v1325_v30, %v1329_v5  ;;  %v1348_v48 = vor.u32 %v1347_v32, %v1343_v31  ;;  %v4758_v49 = vrot.slane %v4756_v35, 4  ;;  %v1079_v1 = vld [vmem:[#allocation2 + $0x60] sm:$0xf]  ;;  %12506 = vmatprep.subr.msk.bf16.mxu0 %vm2125_vm0, %v6894_v26 }
  0x8f   :  { %v10299_v52 = vcombine.low %v1320_v18, %v1330_v12  ;;  %v1339_v4 = vrot.slane %v1338_v38, 4  ;;  %v4761_v53 = vrot.slane %v4759_v42, 5  ;;  %v4769_v57 = vshrl.u32 %v4534_v34, 16  ;;  %v895_v38 = vld [vmem:[#allocation2 + $0x6c] sm:$0xf] }
  0x90   :  { %11666 = vmatmul.mubr.msk.bf16.gmra.mrb[8].mxu0 %vm2028_vm12, %v10586_v45  ;;  %v1349_v55 = vrot.slane %v1348_v48, 4  ;;  %v4775_v58 = vshll.u32 %v4535_v40, 16  ;;  %v893_v50 = vsel %vm13120_vm10, %v328_v0, %v892_v43  ;;  %v4537_v59 = vld [vmem:[#allocation2 + $0x64] sm:$0xf]  ;;  %v4767_v62 = vrot.slane %v4765_v13, 5 }
  0x91   :  { %11405 = vmatprep.mubr.msk.bf16.mxu1 %vm2028_vm12, %v10299_v52  ;;  %v1344_v60 = vsel %vm13135_vm11, %v1339_v4, %v1343_v31  ;;  %v4762_v61 = vor.u32 %v4761_v53, %v4758_v49  ;;  %894 = vst [vmem:[#allocation2 + $0x68] sm:$0x1] %v893_v50  ;;  %v4780_v54 = vshrl.u32 %v4536_v51, 16  ;;  %v4771_v5 = vrot.slane %v4769_v57, 4  ;;  %v1080_v10 = vld [vmem:[#allocation2 + $0x64] sm:$0xf] }
  0x92   :  { %v1354_v2 = vsel %vm13135_vm11, %v1349_v55, %v1353_v39  ;;  %v4777_v6 = vrot.slane %v4775_v58, 5  ;;  %v4783_v9 = vshll.u32 %v4536_v51, 16  ;;  %v4789_v14 = vshll.u32 %v4537_v59, 16  ;;  %v144_v48 = vld [vmem:[%s15996_s0 + $0x48] sm:$0xf] }
  0x93   :  { %v10300_v41 = vcombine.low %v1344_v60, %v1354_v2  ;;  %v4763_v0 = vrot.slane %v4762_v61, 4  ;;  %v4782_v11 = vrot.slane %v4780_v54, 4  ;;  %v4772_v15 = vor.u32 %v4771_v5, %v4767_v62  ;;  %v146_v61 = vld [vmem:[%s15996_s0 + $0x50] sm:$0xf] }
  0x94   :  { %v4785_v16 = vrot.slane %v4783_v9, 5  ;;  %v4793_v18 = vshrl.u32 %v4537_v59, 16  ;;  %v1356_v19 = vshrl.u32 %v1079_v1, 16  ;;  %v4791_v21 = vrot.slane %v4789_v14, 5 }
  0x95   :  { %11406 = vmatmul.mubr.msk.bf16.gmra.mrb[12].mxu1 %vm2028_vm12, %v10300_v41  ;;  %v4768_v63 = vsel %vm13135_vm11, %v4763_v0, %v4767_v62  ;;  %v1359_v23 = vshll.u32 %v1079_v1, 16  ;;  %v1365_v24 = vshll.u32 %v1080_v10, 16  ;;  %v4773_v28 = vrot.slane %v4772_v15, 4 }
  0x96   :  { %v4786_v29 = vor.u32 %v4785_v16, %v4782_v11  ;;  %v4795_v30 = vrot.slane %v4793_v18, 4  ;;  %v1358_v31 = vrot.slane %v1356_v19, 4  ;;  %v1369_v35 = vshrl.u32 %v1080_v10, 16  ;;  %v902_v11 = vld [vmem:[#allocation2 + $0x78] sm:$0xf] }
  0x97   :  { %v1361_v32 = vrot.slane %v1359_v23, 5  ;;  %v1367_v34 = vrot.slane %v1365_v24, 5  ;;  %v332_v37 = vrot.slane %v330_v44, 7  ;;  %v4778_v39 = vsel %vm13135_vm11, %v4773_v28, %v4777_v6  ;;  %v899_v44 = vld [vmem:[#allocation2 + $0x74] sm:$0x1] }
  0x98   :  { %v4538_v40 = vld [vmem:[#allocation2 + $0x68] sm:$0x1]  ;;  %v4787_v42 = vrot.slane %v4786_v29, 4  ;;  %v4796_v43 = vor.u32 %v4795_v30, %v4791_v21  ;;  %v340_v12 = vrot.slane %v338_v47, 7  ;;  %v10587_v49 = vcombine.low %v4768_v63, %v4778_v39  ;;  %v145_v47 = vld [vmem:[%s15996_s0 + $0x4c] sm:$0xf] }
  0x99   :  { %v1136_v45 = vld [vmem:[#allocation2 + $0x68] sm:$0x1]  ;;  %v4799_v51 = vshll.u32 %v4538_v40, 16  ;;  %v1362_v52 = vor.u32 %v1361_v32, %v1358_v31  ;;  %v1371_v4 = vrot.slane %v1369_v35, 4  ;;  %v335_v57 = vor.u32 %v333_v46, %v332_v37  ;;  %v147_v46 = vld [vmem:[%s15996_s0 + $0x54] sm:$0xf] }
  0x9a   :  { %v4792_v53 = vsel %vm13135_vm11, %v4787_v42, %v4791_v21  ;;  %v4797_v13 = vrot.slane %v4796_v43, 4  ;;  %v1375_v55 = vshll.u32 %v1136_v45, 16  ;;  %11669 = vmatprep.mubr.msk.bf16.mxu0 %vm2028_vm12, %v10587_v49  ;;  %v336_v60 = vrot.slane %v332_v37, 4  ;;  %v13384_v19 = vld [vmem:[%s15996_s0 + $0x58] sm:$0xf] }
  0x9b   :  { %v4801_v58 = vrot.slane %v4799_v51, 5  ;;  %v1363_v50 = vrot.slane %v1362_v52, 4  ;;  %v1372_v59 = vor.u32 %v1371_v4, %v1367_v34  ;;  %v341_v54 = vshll.u32 %v13307_v33, 16  ;;  %v906_v40 = vld [vmem:[#allocation2 + $0x80] sm:$0x1] }
  0x9c   :  { %v1377_v62 = vrot.slane %v1375_v55, 5  ;;  %v345_v1 = vrot.slane %v340_v12, 4  ;;  %v896_v22 = vsel %vm13114_vm9, %v335_v57, %v895_v38  ;;  %v347_v9 = vshrl.u32 %v144_v48, 16 }
  0x9d   :  { %v4802_v2 = vsel %vm13135_vm11, %v4797_v13, %v4801_v58  ;;  %v1368_v5 = vsel %vm13135_vm11, %v1363_v50, %v1367_v34  ;;  %v1373_v6 = vrot.slane %v1372_v59, 4  ;;  %897 = vst [vmem:[#allocation2 + $0x6c] sm:$0xf] %v896_v22  ;;  %v343_v41 = vor.u32 %v341_v54, %v340_v12  ;;  %v913_v54 = vld [vmem:[#allocation2 + $0x8c] sm:$0x1] }
  0x9e   :  { %v10588_v10 = vcombine.low %v4792_v53, %v4802_v2  ;;  %v900_v33 = vsel %vm13120_vm10, %v345_v1, %v899_v44  ;;  %v350_v0 = vshll.u32 %v144_v48, 16  ;;  %v349_v15 = vrot.slane %v347_v9, 7  ;;  %v909_v53 = vld [vmem:[#allocation2 + $0x84] sm:$0xf] }
  0x9f   :  { %v1378_v14 = vsel %vm13135_vm11, %v1373_v6, %v1377_v62  ;;  %901 = vst [vmem:[#allocation2 + $0x74] sm:$0x1] %v900_v33  ;;  %v355_v16 = vshrl.u32 %v145_v47, 16  ;;  %v358_v18 = vshll.u32 %v145_v47, 16  ;;  %v344_v21 = vsel %vm13105_vm8, %v336_v60, %v343_v41 }
  0xa0   :  { %11670 = vmatmul.mubr.msk.bf16.gmra.mrb[12].mxu0 %vm2028_vm12, %v10588_v10  ;;  %v10301_v63 = vcombine.low %v1368_v5, %v1378_v14  ;;  %v364_v23 = vshrl.u32 %v146_v61, 16  ;;  %v367_v24 = vshll.u32 %v146_v61, 16  ;;  %898 = vst.msk [vmem:[#allocation2 + $0x70] sm:$0xf] %vm16_vm1, %v344_v21  ;;  %v352_v26 = vor.u32 %v350_v0, %v349_v15 }
  0xa1   :  { %v353_v28 = vrot.slane %v349_v15, 4  ;;  %v357_v29 = vrot.slane %v355_v16, 7  ;;  %v372_v30 = vshrl.u32 %v147_v46, 16  ;;  %v375_v32 = vshll.u32 %v147_v46, 16 }
  0xa2   :  { %11409 = vmatprep.mubr.msk.bf16.mxu1 %vm2028_vm12, %v10301_v63  ;;  %v366_v31 = vrot.slane %v364_v23, 7  ;;  %v381_v34 = vshrl.u32 %v13384_v19, 16  ;;  %v384_v35 = vshll.u32 %v13384_v19, 16  ;;  %v903_v39 = vsel %vm13114_vm9, %v352_v26, %v902_v11 }
  0xa3   :  { %v360_v37 = vor.u32 %v358_v18, %v357_v29  ;;  %v362_v38 = vrot.slane %v357_v29, 4  ;;  %v374_v42 = vrot.slane %v372_v30, 7  ;;  %904 = vst [vmem:[#allocation2 + $0x78] sm:$0xf] %v903_v39 }
  0xa4   :  { %v1081_v43 = vld [vmem:[#allocation2 + $0x6c] sm:$0xf]  ;;  %v369_v12 = vor.u32 %v367_v24, %v366_v31  ;;  %v370_v48 = vrot.slane %v366_v31, 4  ;;  %v13395_v49 = vrot.slane %v381_v34, 7 }
  0xa5   :  { %v4539_v45 = vld [vmem:[#allocation2 + $0x6c] sm:$0xf]  ;;  %v1380_v51 = vshrl.u32 %v1081_v43, 16  ;;  %v1383_v52 = vshll.u32 %v1081_v43, 16  ;;  %v361_v57 = vsel %vm13105_vm8, %v353_v28, %v360_v37  ;;  %v907_v47 = vsel %vm13120_vm10, %v362_v38, %v906_v40 }
  0xa6   :  { %v4804_v4 = vshrl.u32 %v4539_v45, 16  ;;  %v4807_v44 = vshll.u32 %v4539_v45, 16  ;;  %v1137_v13 = vld [vmem:[#allocation2 + $0x74] sm:$0x1]  ;;  %v377_v58 = vor.u32 %v375_v32, %v374_v42  ;;  %v379_v50 = vrot.slane %v374_v42, 4 }
  0xa7   :  { %v4541_v55 = vld [vmem:[#allocation2 + $0x74] sm:$0x1]  ;;  %v1382_v59 = vrot.slane %v1380_v51, 4  ;;  %v1385_v60 = vrot.slane %v1383_v52, 5  ;;  %v1399_v61 = vshll.u32 %v1137_v13, 16  ;;  %v910_v6 = vsel %vm13114_vm9, %v369_v12, %v909_v53 }
  0xa8   :  { %v4806_v62 = vrot.slane %v4804_v4, 4  ;;  %905 = vst.msk [vmem:[#allocation2 + $0x7c] sm:$0xf] %vm16_vm1, %v361_v57  ;;  %908 = vst [vmem:[#allocation2 + $0x80] sm:$0x1] %v907_v47  ;;  %v4809_v46 = vrot.slane %v4807_v44, 5  ;;  %v378_v5 = vsel %vm13105_vm8, %v370_v48, %v377_v58  ;;  %v914_v23 = vsel %vm13120_vm10, %v379_v50, %v913_v54 }
  0xa9   :  { %v1082_v1 = vld [vmem:[#allocation2 + $0x70] sm:$0xf]  ;;  %v4823_v2 = vshll.u32 %v4541_v55, 16  ;;  %v1386_v9 = vor.u32 %v1385_v60, %v1382_v59  ;;  %v1401_v33 = vrot.slane %v1399_v61, 5  ;;  %911 = vst [vmem:[#allocation2 + $0x84] sm:$0xf] %v910_v6 }
  0xaa   :  { %v4540_v22 = vld [vmem:[#allocation2 + $0x70] sm:$0xf]  ;;  %v1389_v10 = vshll.u32 %v1082_v1, 16  ;;  %v1393_v41 = vshrl.u32 %v1082_v1, 16  ;;  %912 = vst.msk [vmem:[#allocation2 + $0x88] sm:$0xf] %vm16_vm1, %v378_v5  ;;  %v4810_v0 = vor.u32 %v4809_v46, %v4806_v62 }
  0xab   :  { %v4813_v11 = vshll.u32 %v4540_v22, 16  ;;  %v4817_v14 = vshrl.u32 %v4540_v22, 16  ;;  %v4825_v15 = vrot.slane %v4823_v2, 5  ;;  %v1387_v16 = vrot.slane %v1386_v9, 4  ;;  %v4542_v21 = vld [vmem:[#allocation2 + $0x78] sm:$0xf] }
  0xac   :  { %v1391_v18 = vrot.slane %v1389_v10, 5  ;;  %v1395_v63 = vrot.slane %v1393_v41, 4  ;;  %v4811_v24 = vrot.slane %v4810_v0, 4  ;;  %v4828_v29 = vshrl.u32 %v4542_v21, 16  ;;  %v1083_v30 = vld [vmem:[#allocation2 + $0x78] sm:$0xf] }
  0xad   :  { %v4815_v26 = vrot.slane %v4813_v11, 5  ;;  %v4819_v28 = vrot.slane %v4817_v14, 4  ;;  %915 = vst [vmem:[#allocation2 + $0x8c] sm:$0x1] %v914_v23  ;;  %v4831_v34 = vshll.u32 %v4542_v21, 16  ;;  %v1404_v37 = vshrl.u32 %v1083_v30, 16 }
  0xae   :  { %v1392_v31 = vsel %vm13135_vm11, %v1387_v16, %v1391_v18  ;;  %v1396_v32 = vor.u32 %v1395_v63, %v1391_v18  ;;  %v4830_v43 = vrot.slane %v4828_v29, 4  ;;  %v1407_v45 = vshll.u32 %v1083_v30, 16 }
  0xaf   :  { %v4816_v38 = vsel %vm13135_vm11, %v4811_v24, %v4815_v26  ;;  %v4820_v39 = vor.u32 %v4819_v28, %v4815_v26  ;;  %v4543_v40 = vld [vmem:[#allocation2 + $0x7c] sm:$0xf]  ;;  %v4544_v42 = vld [vmem:[#allocation2 + $0x80] sm:$0x1]  ;;  %v4833_v48 = vrot.slane %v4831_v34, 5  ;;  %v1406_v13 = vrot.slane %v1404_v37, 4 }
  0xb0   :  { %v1397_v12 = vrot.slane %v1396_v32, 4  ;;  %v4837_v51 = vshll.u32 %v4543_v40, 16  ;;  %v4841_v52 = vshrl.u32 %v4543_v40, 16  ;;  %v4847_v44 = vshll.u32 %v4544_v42, 16  ;;  %v1084_v53 = vld [vmem:[#allocation2 + $0x7c] sm:$0xf] }
  0xb1   :  { %v4821_v4 = vrot.slane %v4820_v39, 4  ;;  %v1409_v55 = vrot.slane %v1407_v45, 5  ;;  %v4834_v47 = vor.u32 %v4833_v48, %v4830_v43  ;;  %v1138_v59 = vld [vmem:[#allocation2 + $0x80] sm:$0x1]  ;;  %v1085_v60 = vld [vmem:[#allocation2 + $0x84] sm:$0xf] }
  0xb2   :  { %v1402_v57 = vsel %vm13135_vm11, %v1397_v12, %v1401_v33  ;;  %v4839_v58 = vrot.slane %v4837_v51, 5  ;;  %v4843_v50 = vrot.slane %v4841_v52, 4  ;;  %v4849_v54 = vrot.slane %v4847_v44, 5  ;;  %v1086_v6 = vld [vmem:[#allocation2 + $0x88] sm:$0xf] }
  0xb3   :  { %v10302_v61 = vcombine.low %v1392_v31, %v1402_v57  ;;  %v4826_v62 = vsel %vm13135_vm11, %v4821_v4, %v4825_v15  ;;  %v1410_v1 = vor.u32 %v1409_v55, %v1406_v13  ;;  %v4835_v46 = vrot.slane %v4834_v47, 4  ;;  %v4545_v24 = vld [vmem:[#allocation2 + $0x84] sm:$0xf]  ;;  %v4546_v31 = vld [vmem:[#allocation2 + $0x88] sm:$0xf] }
  0xb4   :  { %v10589_v22 = vcombine.low %v4816_v38, %v4826_v62  ;;  %v4844_v2 = vor.u32 %v4843_v50, %v4839_v58  ;;  %v1413_v5 = vshll.u32 %v1084_v53, 16  ;;  %v1417_v10 = vshrl.u32 %v1084_v53, 16  ;;  %v1139_v15 = vld [vmem:[#allocation2 + $0x8c] sm:$0x1]  ;;  %v149_v4 = vld [vmem:[%s15996_s0 + $0x5c] sm:$0xf] }
  0xb5   :  { %11410 = vmatmul.mubr.msk.bf16.gmra.mrb[16].mxu1 %vm2028_vm12, %v10302_v61  ;;  %v1411_v9 = vrot.slane %v1410_v1, 4  ;;  %v1423_v41 = vshll.u32 %v1138_v59, 16  ;;  %v1428_v33 = vshrl.u32 %v1085_v60, 16  ;;  %v4840_v0 = vsel %vm13135_vm11, %v4835_v46, %v4839_v58  ;;  %v4547_v39 = vld [vmem:[#allocation2 + $0x8c] sm:$0x1] }
  0xb6   :  { %11673 = vmatprep.mubr.msk.bf16.mxu0 %vm2028_vm12, %v10589_v22  ;;  %v4845_v11 = vrot.slane %v4844_v2, 4  ;;  %v1415_v14 = vrot.slane %v1413_v5, 5  ;;  %v1431_v16 = vshll.u32 %v1085_v60, 16  ;;  %v1419_v18 = vrot.slane %v1417_v10, 4  ;;  %v916_v57 = vld [vmem:[#allocation2 + $0x90] sm:$0xf] }
  0xb7   :  { %v1425_v63 = vrot.slane %v1423_v41, 5  ;;  %v1430_v21 = vrot.slane %v1428_v33, 4  ;;  %v1437_v23 = vshll.u32 %v1086_v6, 16  ;;  %v1441_v30 = vshrl.u32 %v1086_v6, 16  ;;  %v150_v47 = vld [vmem:[%s15996_s0 + $0x60] sm:$0xf] }
  0xb8   :  { %v4850_v26 = vsel %vm13135_vm11, %v4845_v11, %v4849_v54  ;;  %v1416_v28 = vsel %vm13135_vm11, %v1411_v9, %v1415_v14  ;;  %v1433_v29 = vrot.slane %v1431_v16, 5  ;;  %v1420_v34 = vor.u32 %v1419_v18, %v1415_v14  ;;  %v151_v61 = vld [vmem:[%s15996_s0 + $0x64] sm:$0xf]  ;;  %v152_v46 = vld [vmem:[%s15996_s0 + $0x68] sm:$0xf] }
  0xb9   :  { %v10590_v32 = vcombine.low %v4840_v0, %v4850_v26  ;;  %v1439_v37 = vrot.slane %v1437_v23, 5  ;;  %v1447_v38 = vshll.u32 %v1139_v15, 16  ;;  %v1443_v42 = vrot.slane %v1441_v30, 4  ;;  %v920_v16 = vld [vmem:[#allocation2 + $0x98] sm:$0x1] }
  0xba   :  { %v1434_v40 = vor.u32 %v1433_v29, %v1430_v21  ;;  %v4852_v43 = vshrl.u32 %v4545_v24, 16  ;;  %v4855_v45 = vshll.u32 %v4545_v24, 16  ;;  %v1421_v12 = vrot.slane %v1420_v34, 4  ;;  %v923_v21 = vld [vmem:[#allocation2 + $0x9c] sm:$0xf] }
  0xbb   :  { %11674 = vmatmul.mubr.msk.bf16.gmra.mrb[16].mxu0 %vm2028_vm12, %v10590_v32  ;;  %v1449_v48 = vrot.slane %v1447_v38, 5  ;;  %v4861_v51 = vshll.u32 %v4546_v31, 16  ;;  %v4865_v52 = vshrl.u32 %v4546_v31, 16  ;;  %v1444_v53 = vor.u32 %v1443_v42, %v1439_v37  ;;  %v153_v29 = vld [vmem:[%s15996_s0 + $0x6c] sm:$0xf] }
  0xbc   :  { %v1435_v44 = vrot.slane %v1434_v40, 4  ;;  %v4854_v13 = vrot.slane %v4852_v43, 4  ;;  %v4857_v55 = vrot.slane %v4855_v45, 5  ;;  %v1426_v58 = vsel %vm13135_vm11, %v1421_v12, %v1425_v63  ;;  %v154_v43 = vld [vmem:[%s15996_s0 + $0x70] sm:$0xf] }
  0xbd   :  { %v4863_v50 = vrot.slane %v4861_v51, 5  ;;  %v4867_v59 = vrot.slane %v4865_v52, 4  ;;  %v4871_v60 = vshll.u32 %v4547_v39, 16  ;;  %v10303_v62 = vcombine.low %v1416_v28, %v1426_v58  ;;  %v927_v28 = vld [vmem:[#allocation2 + $0xa4] sm:$0x1] }
  0xbe   :  { %v1440_v54 = vsel %vm13135_vm11, %v1435_v44, %v1439_v37  ;;  %v1445_v1 = vrot.slane %v1444_v53, 4  ;;  %v4858_v22 = vor.u32 %v4857_v55, %v4854_v13  ;;  %v386_v6 = vor.u32 %v384_v35, %v13395_v49  ;;  %v930_v52 = vld [vmem:[#allocation2 + $0xa8] sm:$0xf]  ;;  %v934_v58 = vld [vmem:[#allocation2 + $0xb0] sm:$0x1] }
  0xbf   :  { %v4868_v2 = vor.u32 %v4867_v59, %v4863_v50  ;;  %v4873_v5 = vrot.slane %v4871_v60, 5  ;;  %v387_v9 = vrot.slane %v13395_v49, 4  ;;  %11413 = vmatprep.mubr.msk.bf16.mxu1 %vm2028_vm12, %v10303_v62  ;;  %v389_v33 = vshrl.u32 %v149_v4, 16 }
  0xc0   :  { %v1450_v10 = vsel %vm13135_vm11, %v1445_v1, %v1449_v48  ;;  %v4859_v41 = vrot.slane %v4858_v22, 4  ;;  %v392_v0 = vshll.u32 %v149_v4, 16  ;;  %v917_v15 = vsel %vm13114_vm9, %v386_v6, %v916_v57  ;;  %v13482_v6 = vld [vmem:[#allocation2 + $0x1c] sm:$0xf] }
  0xc1   :  { %v10304_v11 = vcombine.low %v1440_v54, %v1450_v10  ;;  %v4869_v14 = vrot.slane %v4868_v2, 4  ;;  %v398_v18 = vshrl.u32 %v150_v47, 16  ;;  %v391_v35 = vrot.slane %v389_v33, 7  ;;  %918 = vst [vmem:[#allocation2 + $0x90] sm:$0xf] %v917_v15 }
  0xc2   :  { %v4864_v19 = vsel %vm13135_vm11, %v4859_v41, %v4863_v50  ;;  %v401_v49 = vshll.u32 %v150_v47, 16  ;;  %v406_v63 = vshrl.u32 %v151_v61, 16  ;;  %v409_v26 = vshll.u32 %v151_v61, 16 }
  0xc3   :  { %11414 = vmatmul.mubr.msk.bf16.gmra.mrb[20].mxu1 %vm2028_vm12, %v10304_v11  ;;  %v4874_v23 = vsel %vm13135_vm11, %v4869_v14, %v4873_v5  ;;  %v400_v24 = vrot.slane %v398_v18, 7  ;;  %v415_v30 = vshrl.u32 %v152_v46, 16  ;;  %v394_v32 = vor.u32 %v392_v0, %v391_v35  ;;  %v13480_v5 = vld [vmem:[%s15996_s0 + $0x74] sm:$0xf] }
  0xc4   :  { %v10591_v31 = vcombine.low %v4864_v19, %v4874_v23  ;;  %v396_v34 = vrot.slane %v391_v35, 4  ;;  %v408_v37 = vrot.slane %v406_v63, 7  ;;  %v418_v42 = vshll.u32 %v152_v46, 16 }
  0xc5   :  { %v403_v38 = vor.u32 %v401_v49, %v400_v24  ;;  %v404_v39 = vrot.slane %v400_v24, 4  ;;  %v417_v40 = vrot.slane %v415_v30, 7  ;;  %v395_v45 = vsel %vm13105_vm8, %v387_v9, %v394_v32 }
  0xc6   :  { %11677 = vmatprep.mubr.msk.bf16.mxu0 %vm2028_vm12, %v10591_v31  ;;  %v921_v12 = vsel %vm13120_vm10, %v396_v34, %v920_v16  ;;  %v411_v48 = vor.u32 %v409_v26, %v408_v37  ;;  %v413_v51 = vrot.slane %v408_v37, 4  ;;  %919 = vst.msk [vmem:[#allocation2 + $0x94] sm:$0xf] %vm16_vm1, %v395_v45  ;;  %v423_v13 = vshrl.u32 %v153_v29, 16 }
  0xc7   :  { %922 = vst [vmem:[#allocation2 + $0x98] sm:$0x1] %v921_v12  ;;  %v924_v4 = vsel %vm13114_vm9, %v403_v38, %v923_v21  ;;  %v420_v44 = vor.u32 %v418_v42, %v417_v40  ;;  %v421_v53 = vrot.slane %v417_v40, 4  ;;  %v426_v47 = vshll.u32 %v153_v29, 16 }
  0xc8   :  { %v412_v55 = vsel %vm13105_vm8, %v404_v39, %v411_v48  ;;  %925 = vst [vmem:[#allocation2 + $0x9c] sm:$0xf] %v924_v4  ;;  %v928_v57 = vsel %vm13120_vm10, %v413_v51, %v927_v28  ;;  %v432_v50 = vshrl.u32 %v154_v43, 16  ;;  %v4548_v59 = vld [vmem:[#allocation2 + $0x90] sm:$0xf]  ;;  %v425_v61 = vrot.slane %v423_v13, 7 }
  0xc9   :  { %v1087_v60 = vld [vmem:[#allocation2 + $0x90] sm:$0xf]  ;;  %926 = vst.msk [vmem:[#allocation2 + $0xa0] sm:$0xf] %vm16_vm1, %v412_v55  ;;  %929 = vst [vmem:[#allocation2 + $0xa4] sm:$0x1] %v928_v57  ;;  %v931_v62 = vsel %vm13114_vm9, %v420_v44, %v930_v52 }
  0xca   :  { %v435_v54 = vshll.u32 %v154_v43, 16  ;;  %v4876_v1 = vshrl.u32 %v4548_v59, 16  ;;  %v4879_v22 = vshll.u32 %v4548_v59, 16  ;;  %v1452_v46 = vshrl.u32 %v1087_v60, 16  ;;  %932 = vst [vmem:[#allocation2 + $0xa8] sm:$0xf] %v931_v62 }
  0xcb   :  { %v1455_v2 = vshll.u32 %v1087_v60, 16  ;;  %v6065_v9 = vrot.slane %v13482_v6, 5  ;;  %v428_v10 = vor.u32 %v426_v47, %v425_v61  ;;  %v430_v41 = vrot.slane %v425_v61, 4 }
  0xcc   :  { %v13485_v33 = vrot.slane %v432_v50, 7  ;;  %v4878_v0 = vrot.slane %v4876_v1, 4  ;;  %v4881_v11 = vrot.slane %v4879_v22, 5  ;;  %v1454_v14 = vrot.slane %v1452_v46, 4 }
  0xcd   :  { %v1457_v15 = vrot.slane %v1455_v2, 5  ;;  %v429_v16 = vsel %vm13105_vm8, %v421_v53, %v428_v10  ;;  %v935_v18 = vsel %vm13120_vm10, %v430_v41, %v934_v58  ;;  %v440_v35 = vshrl.u32 %v13480_v5, 16  ;;  %v4549_v49 = vld [vmem:[#allocation2 + $0x94] sm:$0xf] }
  0xce   :  { %v438_v19 = vrot.slane %v13485_v33, 4  ;;  %v4550_v63 = vld [vmem:[#allocation2 + $0x98] sm:$0x1]  ;;  %v4882_v21 = vor.u32 %v4881_v11, %v4878_v0  ;;  %v1088_v23 = vld [vmem:[#allocation2 + $0x94] sm:$0xf]  ;;  %v13495_v26 = vor.u32 %v435_v54, %v13485_v33  ;;  %v4885_v28 = vshll.u32 %v4549_v49, 16 }
  0xcf   :  { %v1458_v24 = vor.u32 %v1457_v15, %v1454_v14  ;;  %933 = vst.msk [vmem:[#allocation2 + $0xac] sm:$0xf] %vm16_vm1, %v429_v16  ;;  %936 = vst [vmem:[#allocation2 + $0xb0] sm:$0x1] %v935_v18  ;;  %v4889_v29 = vshrl.u32 %v4549_v49, 16  ;;  %v4895_v30 = vshll.u32 %v4550_v63, 16 }
  0xd0   :  { %v1140_v31 = vld [vmem:[#allocation2 + $0x98] sm:$0x1]  ;;  %v1461_v32 = vshll.u32 %v1088_v23, 16  ;;  %v4883_v34 = vrot.slane %v4882_v21, 4  ;;  %v1465_v38 = vshrl.u32 %v1088_v23, 16  ;;  %v4887_v42 = vrot.slane %v4885_v28, 5 }
  0xd1   :  { %v1459_v37 = vrot.slane %v1458_v24, 4  ;;  %v1471_v39 = vshll.u32 %v1140_v31, 16  ;;  %v1089_v40 = vld [vmem:[#allocation2 + $0x9c] sm:$0xf]  ;;  %v4891_v43 = vrot.slane %v4889_v29, 4  ;;  %v4897_v45 = vrot.slane %v4895_v30, 5 }
  0xd2   :  { %v1463_v12 = vrot.slane %v1461_v32, 5  ;;  %v1090_v48 = vld [vmem:[#allocation2 + $0xa0] sm:$0xf]  ;;  %v1467_v51 = vrot.slane %v1465_v38, 4  ;;  %v1141_v4 = vld [vmem:[#allocation2 + $0xa4] sm:$0x1]  ;;  %v4888_v13 = vsel %vm13135_vm11, %v4883_v34, %v4887_v42 }
  0xd3   :  { %v1473_v52 = vrot.slane %v1471_v39, 5  ;;  %v1476_v44 = vshrl.u32 %v1089_v40, 16  ;;  %v1479_v53 = vshll.u32 %v1089_v40, 16  ;;  %v4892_v55 = vor.u32 %v4891_v43, %v4887_v42  ;;  %v4551_v58 = vld [vmem:[#allocation2 + $0x9c] sm:$0xf] }
  0xd4   :  { %v1464_v57 = vsel %vm13135_vm11, %v1459_v37, %v1463_v12  ;;  %v1485_v47 = vshll.u32 %v1090_v48, 16  ;;  %v1468_v50 = vor.u32 %v1467_v51, %v1463_v12  ;;  %v1489_v61 = vshrl.u32 %v1090_v48, 16  ;;  %v4552_v62 = vld [vmem:[#allocation2 + $0xa0] sm:$0xf]  ;;  %v4553_v0 = vld [vmem:[#allocation2 + $0xa4] sm:$0x1] }
  0xd5   :  { %v1478_v59 = vrot.slane %v1476_v44, 4  ;;  %v1481_v60 = vrot.slane %v1479_v53, 5  ;;  %v4893_v54 = vrot.slane %v4892_v55, 4  ;;  %v1495_v22 = vshll.u32 %v1141_v4, 16  ;;  %v4554_v49 = vld [vmem:[#allocation2 + $0xa8] sm:$0xf] }
  0xd6   :  { %v1487_v1 = vrot.slane %v1485_v47, 5  ;;  %v4900_v46 = vshrl.u32 %v4551_v58, 16  ;;  %v1469_v2 = vrot.slane %v1468_v50, 4  ;;  %v1491_v41 = vrot.slane %v1489_v61, 4  ;;  %v4555_v28 = vld [vmem:[#allocation2 + $0xac] sm:$0xf] }
  0xd7   :  { %v1482_v10 = vor.u32 %v1481_v60, %v1478_v59  ;;  %v4903_v11 = vshll.u32 %v4551_v58, 16  ;;  %v4898_v14 = vsel %vm13135_vm11, %v4893_v54, %v4897_v45  ;;  %v1497_v15 = vrot.slane %v1495_v22, 5  ;;  %v4556_v39 = vld [vmem:[#allocation2 + $0xb0] sm:$0x1]  ;;  %v1091_v48 = vld [vmem:[#allocation2 + $0xa8] sm:$0xf] }
  0xd8   :  { %v4902_v16 = vrot.slane %v4900_v46, 4  ;;  %v4909_v18 = vshll.u32 %v4552_v62, 16  ;;  %v10592_v63 = vcombine.low %v4888_v13, %v4898_v14  ;;  %v1474_v21 = vsel %vm13135_vm11, %v1469_v2, %v1473_v52  ;;  %v1092_v47 = vld [vmem:[#allocation2 + $0xac] sm:$0xf]  ;;  %v937_v46 = vld [vmem:[#allocation2 + $0xb4] sm:$0xf] }
  0xd9   :  { %v1483_v23 = vrot.slane %v1482_v10, 4  ;;  %v1492_v24 = vor.u32 %v1491_v41, %v1487_v1  ;;  %v10305_v29 = vcombine.low %v1464_v57, %v1474_v21  ;;  %v4905_v30 = vrot.slane %v4903_v11, 5 }
  0xda   :  { %v4911_v31 = vrot.slane %v4909_v18, 5  ;;  %v4913_v32 = vshrl.u32 %v4552_v62, 16  ;;  %11678 = vmatmul.mubr.msk.bf16.gmra.mrb[20].mxu0 %vm2028_vm12, %v10592_v63  ;;  %v4919_v38 = vshll.u32 %v4553_v0, 16  ;;  %v4924_v40 = vshrl.u32 %v4554_v49, 16  ;;  %v156_v18 = vld [vmem:[%s15996_s0 + $0x78] sm:$0xf] }
  0xdb   :  { %v1488_v34 = vsel %vm13135_vm11, %v1483_v23, %v1487_v1  ;;  %v1493_v37 = vrot.slane %v1492_v24, 4  ;;  %11417 = vmatprep.mubr.msk.bf16.mxu1 %vm2028_vm12, %v10305_v29  ;;  %v4906_v42 = vor.u32 %v4905_v30, %v4902_v16  ;;  %v4927_v45 = vshll.u32 %v4554_v49, 16  ;;  %v1142_v1 = vld [vmem:[#allocation2 + $0xb0] sm:$0x1]  ;;  %v941_v24 = vld [vmem:[#allocation2 + $0xbc] sm:$0x1] }
  0xdc   :  { %v4915_v43 = vrot.slane %v4913_v32, 4  ;;  %v4933_v12 = vshll.u32 %v4555_v28, 16  ;;  %v4921_v52 = vrot.slane %v4919_v38, 5  ;;  %v4926_v4 = vrot.slane %v4924_v40, 4 }
  0xdd   :  { %v1498_v51 = vsel %vm13135_vm11, %v1493_v37, %v1497_v15  ;;  %v4937_v44 = vshrl.u32 %v4555_v28, 16  ;;  %v4907_v13 = vrot.slane %v4906_v42, 4  ;;  %v4929_v57 = vrot.slane %v4927_v45, 5  ;;  %v157_v28 = vld [vmem:[%s15996_s0 + $0x7c] sm:$0xf] }
  0xde   :  { %v10306_v53 = vcombine.low %v1488_v34, %v1498_v51  ;;  %v4916_v55 = vor.u32 %v4915_v43, %v4911_v31  ;;  %v4935_v58 = vrot.slane %v4933_v12, 5  ;;  %v4943_v59 = vshll.u32 %v4556_v39, 16  ;;  %v1095_v34 = vld [vmem:[#allocation2 + $0xd8] sm:$0xf] }
  0xdf   :  { %v4939_v50 = vrot.slane %v4937_v44, 4  ;;  %v1500_v60 = vshrl.u32 %v1091_v48, 16  ;;  %v4912_v61 = vsel %vm13135_vm11, %v4907_v13, %v4911_v31  ;;  %v4930_v54 = vor.u32 %v4929_v57, %v4926_v4  ;;  %v1096_v4 = vld [vmem:[#allocation2 + $0xdc] sm:$0xf] }
  0xe0   :  { %11418 = vmatmul.mubr.msk.bf16.gmra.mrb[24].mxu1 %vm2028_vm12, %v10306_v53  ;;  %v4917_v62 = vrot.slane %v4916_v55, 4  ;;  %v1503_v22 = vshll.u32 %v1091_v48, 16  ;;  %v4945_v10 = vrot.slane %v4943_v59, 5  ;;  %v1509_v0 = vshll.u32 %v1092_v47, 16  ;;  %v1144_v59 = vld [vmem:[#allocation2 + $0xe0] sm:$0x1] }
  0xe1   :  { %v4940_v2 = vor.u32 %v4939_v50, %v4935_v58  ;;  %v1502_v41 = vrot.slane %v1500_v60, 4  ;;  %v4931_v14 = vrot.slane %v4930_v54, 4  ;;  %v1513_v16 = vshrl.u32 %v1092_v47, 16  ;;  %v944_v47 = vld [vmem:[#allocation2 + $0xc0] sm:$0xf] }
  0xe2   :  { %v4922_v11 = vsel %vm13135_vm11, %v4917_v62, %v4921_v52  ;;  %v1505_v15 = vrot.slane %v1503_v22, 5  ;;  %v1511_v21 = vrot.slane %v1509_v0, 5  ;;  %v1519_v23 = vshll.u32 %v1142_v1, 16 }
  0xe3   :  { %v10593_v49 = vcombine.low %v4912_v61, %v4922_v11  ;;  %v4941_v63 = vrot.slane %v4940_v2, 4  ;;  %v4936_v29 = vsel %vm13135_vm11, %v4931_v14, %v4935_v58  ;;  %v1515_v31 = vrot.slane %v1513_v16, 4 }
  0xe4   :  { %v1506_v30 = vor.u32 %v1505_v15, %v1502_v41  ;;  %v442_v32 = vrot.slane %v440_v35, 7  ;;  %v1521_v38 = vrot.slane %v1519_v23, 5  ;;  %v443_v39 = vshll.u32 %v13480_v5, 16 }
  0xe5   :  { %11681 = vmatprep.mubr.msk.bf16.mxu0 %vm2028_vm12, %v10593_v49  ;;  %v4946_v37 = vsel %vm13135_vm11, %v4941_v63, %v4945_v10  ;;  %v938_v40 = vsel %vm13114_vm9, %v13495_v26, %v937_v46  ;;  %v1516_v45 = vor.u32 %v1515_v31, %v1511_v21  ;;  %v449_v35 = vshrl.u32 %v156_v18, 16  ;;  %v948_v46 = vld [vmem:[#allocation2 + $0xc8] sm:$0x1] }
  0xe6   :  { %v10594_v42 = vcombine.low %v4936_v29, %v4946_v37  ;;  %v1507_v43 = vrot.slane %v1506_v30, 4  ;;  %v447_v12 = vrot.slane %v442_v32, 4  ;;  %939 = vst [vmem:[#allocation2 + $0xb4] sm:$0xf] %v938_v40  ;;  %v445_v48 = vor.u32 %v443_v39, %v442_v32 }
  0xe7   :  { %v452_v51 = vshll.u32 %v156_v18, 16  ;;  %v457_v52 = vshrl.u32 %v157_v28, 16  ;;  %v1517_v5 = vrot.slane %v1516_v45, 4  ;;  %v460_v26 = vshll.u32 %v157_v28, 16  ;;  %v13559_v28 = vld [vmem:[#allocation2 + $0x20] sm:$0x1] }
  0xe8   :  { %11682 = vmatmul.mubr.msk.bf16.gmra.mrb[24].mxu0 %vm2028_vm12, %v10594_v42  ;;  %v1512_v44 = vsel %vm13135_vm11, %v1507_v43, %v1511_v21  ;;  %v942_v53 = vsel %vm13120_vm10, %v447_v12, %v941_v24  ;;  %v446_v13 = vsel %vm13105_vm8, %v438_v19, %v445_v48  ;;  %v451_v55 = vrot.slane %v449_v35, 7 }
  0xe9   :  { %943 = vst [vmem:[#allocation2 + $0xbc] sm:$0x1] %v942_v53  ;;  %v459_v57 = vrot.slane %v457_v52, 7  ;;  %v1548_v58 = vshrl.u32 %v1095_v34, 16  ;;  %v1522_v50 = vsel %vm13135_vm11, %v1517_v5, %v1521_v38  ;;  %940 = vst.msk [vmem:[#allocation2 + $0xb8] sm:$0xf] %vm16_vm1, %v446_v13 }
  0xea   :  { %v1551_v60 = vshll.u32 %v1095_v34, 16  ;;  %v1557_v61 = vshll.u32 %v1096_v4, 16  ;;  %v1561_v62 = vshrl.u32 %v1096_v4, 16  ;;  %v10307_v54 = vcombine.low %v1512_v44, %v1522_v50 }
  0xeb   :  { %v454_v1 = vor.u32 %v452_v51, %v451_v55  ;;  %v455_v33 = vrot.slane %v451_v55, 4  ;;  %v462_v22 = vor.u32 %v460_v26, %v459_v57  ;;  %v464_v19 = vrot.slane %v459_v57, 4 }
  0xec   :  { %v1550_v2 = vrot.slane %v1548_v58, 4  ;;  %v1553_v10 = vrot.slane %v1551_v60, 5  ;;  %v13545_v41 = vrot.slane %v1557_v61, 5  ;;  %11421 = vmatprep.mubr.msk.bf16.mxu1 %vm2028_vm12, %v10307_v54  ;;  %v13552_v16 = vrot.slane %v1561_v62, 4 }
  0xed   :  { %v1093_v0 = vld [vmem:[#allocation2 + $0xb4] sm:$0xf]  ;;  %v463_v14 = vsel %vm13105_vm8, %v455_v33, %v462_v22  ;;  %v945_v15 = vsel %vm13114_vm9, %v454_v1, %v944_v47  ;;  %v1567_v18 = vshll.u32 %v1144_v59, 16  ;;  %v13557_v24 = vrot.slane %v6065_v9, 4 }
  0xee   :  { %v4557_v11 = vld [vmem:[#allocation2 + $0xb4] sm:$0xf]  ;;  %v1524_v49 = vshrl.u32 %v1093_v0, 16  ;;  %v1527_v63 = vshll.u32 %v1093_v0, 16  ;;  %946 = vst [vmem:[#allocation2 + $0xc0] sm:$0xf] %v945_v15  ;;  %v949_v30 = vsel %vm13120_vm10, %v464_v19, %v948_v46  ;;  %v1554_v45 = vor.u32 %v1553_v10, %v1550_v2 }
  0xef   :  { %v4948_v21 = vshrl.u32 %v4557_v11, 16  ;;  %v4951_v23 = vshll.u32 %v4557_v11, 16  ;;  %947 = vst.msk [vmem:[#allocation2 + $0xc4] sm:$0xf] %vm16_vm1, %v463_v14  ;;  %v6068_v29 = vrot.slane %v13559_v28, 5  ;;  %v13564_v31 = vrot.slane %v1567_v18, 5 }
  0xf0   :  { %v1143_v32 = vld [vmem:[#allocation2 + $0xbc] sm:$0x1]  ;;  %v1526_v34 = vrot.slane %v1524_v49, 4  ;;  %v1529_v37 = vrot.slane %v1527_v63, 5  ;;  %950 = vst [vmem:[#allocation2 + $0xc8] sm:$0x1] %v949_v30  ;;  %v1564_v12 = vor.u32 %v13552_v16, %v13545_v41 }
  0xf1   :  { %v4559_v38 = vld [vmem:[#allocation2 + $0xbc] sm:$0x1]  ;;  %v1094_v39 = vld [vmem:[#allocation2 + $0xb8] sm:$0xf]  ;;  %v1543_v40 = vshll.u32 %v1143_v32, 16  ;;  %v4950_v43 = vrot.slane %v4948_v21, 4  ;;  %v6069_v20 = vsel %vm13595_vm15, %v13557_v24, %v6068_v29 }
  0xf2   :  { %v4558_v42 = vld [vmem:[#allocation2 + $0xb8] sm:$0xf]  ;;  %v1530_v48 = vor.u32 %v1529_v37, %v1526_v34  ;;  %v1533_v35 = vshll.u32 %v1094_v39, 16  ;;  %v1537_v51 = vshrl.u32 %v1094_v39, 16  ;;  %v4953_v52 = vrot.slane %v4951_v23, 5 }
  0xf3   :  { %v1545_v4 = vrot.slane %v1543_v40, 5  ;;  %v4957_v44 = vshll.u32 %v4558_v42, 16  ;;  %v4961_v5 = vshrl.u32 %v4558_v42, 16  ;;  %v4967_v53 = vshll.u32 %v4559_v38, 16  ;;  %v158_v0 = vld [vmem:[%s15996_s0 + $0x80] sm:$0xf] }
  0xf4   :  { %v1531_v26 = vrot.slane %v1530_v48, 4  ;;  %v1535_v13 = vrot.slane %v1533_v35, 5  ;;  %v1539_v55 = vrot.slane %v1537_v51, 4  ;;  %v4954_v57 = vor.u32 %v4953_v52, %v4950_v43  ;;  %v159_v23 = vld [vmem:[%s15996_s0 + $0x84] sm:$0xf] }
  0xf5   :  { %v4959_v47 = vrot.slane %v4957_v44, 5  ;;  %v4963_v58 = vrot.slane %v4961_v5, 4  ;;  %v4969_v50 = vrot.slane %v4967_v53, 5  ;;  %v4560_v59 = vld [vmem:[#allocation2 + $0xc0] sm:$0xf]  ;;  %v1555_v60 = vrot.slane %v1554_v45, 4 }
  0xf6   :  { %v1536_v61 = vsel %vm13135_vm11, %v1531_v26, %v1535_v13  ;;  %v1540_v62 = vor.u32 %v1539_v55, %v1535_v13  ;;  %v4955_v54 = vrot.slane %v4954_v57, 4  ;;  %v4561_v1 = vld [vmem:[#allocation2 + $0xc4] sm:$0xf]  ;;  %v4972_v33 = vshrl.u32 %v4560_v59, 16  ;;  %v5928_v51 = vld [vmem:[#allocation2 + $0xc] sm:$0xe] }
  0xf7   :  { %v4964_v22 = vor.u32 %v4963_v58, %v4959_v47  ;;  %v4562_v46 = vld [vmem:[#allocation2 + $0xc8] sm:$0x1]  ;;  %v4975_v19 = vshll.u32 %v4560_v59, 16  ;;  %v4981_v2 = vshll.u32 %v4561_v1, 16  ;;  %v4985_v10 = vshrl.u32 %v4561_v1, 16 }
  0xf8   :  { %v1541_v11 = vrot.slane %v1540_v62, 4  ;;  %v4960_v14 = vsel %vm13135_vm11, %v4955_v54, %v4959_v47  ;;  %v4974_v15 = vrot.slane %v4972_v33, 4  ;;  %v4991_v16 = vshll.u32 %v4562_v46, 16  ;;  %v951_v44 = vld [vmem:[#allocation2 + $0xe4] sm:$0xf] }
  0xf9   :  { %v4965_v18 = vrot.slane %v4964_v22, 4  ;;  %v4977_v49 = vrot.slane %v4975_v19, 5  ;;  %v4983_v63 = vrot.slane %v4981_v2, 5  ;;  %v4987_v21 = vrot.slane %v4985_v10, 4  ;;  %v955_v26 = vld [vmem:[#allocation2 + $0xec] sm:$0x1] }
  0xfa   :  { %v1546_v30 = vsel %vm13135_vm11, %v1541_v11, %v1545_v4  ;;  %v4993_v32 = vrot.slane %v4991_v16, 5  ;;  %v1560_v34 = vsel %vm13135_vm11, %v1555_v60, %v13545_v41  ;;  %v1565_v37 = vrot.slane %v1564_v12, 4  ;;  %v5929_v13 = vld [vmem:[#allocation2 + $0x18] sm:$0xe]  ;;  %v161_v59 = vld [vmem:[%s15996_s0 + $0x8c] sm:$0xf] }
  0xfb   :  { %v10308_v38 = vcombine.low %v1536_v61, %v1546_v30  ;;  %v4970_v39 = vsel %vm13135_vm11, %v4965_v18, %v4969_v50  ;;  %v4978_v40 = vor.u32 %v4977_v49, %v4974_v15  ;;  %v4988_v42 = vor.u32 %v4987_v21, %v4983_v63  ;;  %v160_v50 = vld [vmem:[%s15996_s0 + $0x88] sm:$0xf]  ;;  %v162_v1 = vld [vmem:[%s15996_s0 + $0x90] sm:$0xf]  ;;  %v163_v33 = vld [vmem:[%s15996_s0 + $0x94] sm:$0xf] }
  0xfc   :  { %v10595_v43 = vcombine.low %v4960_v14, %v4970_v39  ;;  %v1570_v45 = vsel %vm13135_vm11, %v1565_v37, %v13564_v31  ;;  %v466_v48 = vshrl.u32 %v158_v0, 16  ;;  %v469_v35 = vshll.u32 %v158_v0, 16  ;;  %v5930_v10 = vld [vmem:[#allocation2 + $0x24] sm:$0xe] }
  0xfd   :  { %11422 = vmatmul.mubr.msk.bf16.gmra.mrb[28].mxu1 %vm2028_vm12, %v10308_v38  ;;  %v4979_v52 = vrot.slane %v4978_v40, 4  ;;  %v4989_v4 = vrot.slane %v4988_v42, 4  ;;  %v10309_v41 = vcombine.low %v1560_v34, %v1570_v45  ;;  %v474_v12 = vshrl.u32 %v159_v23, 16 }
  0xfe   :  { %11685 = vmatprep.mubr.msk.bf16.mxu0 %vm2028_vm12, %v10595_v43  ;;  %v468_v5 = vrot.slane %v466_v48, 7  ;;  %v477_v53 = vshll.u32 %v159_v23, 16  ;;  %v10645_v58 = vrot.slane %v5928_v51, 9  ;;  %v6060_v54 = vrot.slane %v6058_v8, 4 }
  0xff   :  { %v4984_v31 = vsel %vm13135_vm11, %v4979_v52, %v4983_v63  ;;  %v4994_v55 = vsel %vm13135_vm11, %v4989_v4, %v4993_v32  ;;  %11425 = vmatprep.mubr.msk.bf16.mxu1 %vm2028_vm12, %v10309_v41  ;;  %v476_v57 = vrot.slane %v474_v12, 7  ;;  %v10646_v2 = vrot.slane %v5929_v13, 9 }
 0x100   :  { %v10596_v60 = vcombine.low %v4984_v31, %v4994_v55  ;;  %v471_v61 = vor.u32 %v469_v35, %v468_v5  ;;  %v472_v62 = vrot.slane %v468_v5, 4  ;;  %v6059_v19 = vsel %vm13595_vm15, %v10645_v58, %v6058_v8  ;;  %v12579_v8 = vld [vmem:[%s15997_s1 + $0x18] sm:$0xf] }
 0x101   :  { %v479_v22 = vor.u32 %v477_v53, %v476_v57  ;;  %v481_v46 = vrot.slane %v476_v57, 4  ;;  %v6062_v11 = vsel %vm13595_vm15, %v6060_v54, %v6061_v7  ;;  %v7152_v14 = vsel %vm2125_vm0, %v12579_v8, 0 }
 0x102   :  { %11686 = vmatmul.mubr.msk.bf16.gmra.mrb[28].mxu0 %vm2028_vm12, %v10596_v60  ;;  %v952_v0 = vsel %vm13114_vm9, %v471_v61, %v951_v44  ;;  %v10677_v7 = vcombine.low %v6059_v19, %v6062_v11  ;;  %v6066_v28 = vsel %vm13595_vm15, %v10646_v2, %v6065_v9 }
 0x103   :  { %v480_v15 = vsel %vm13105_vm8, %v472_v62, %v479_v22  ;;  %953 = vst [vmem:[#allocation2 + $0xe4] sm:$0xf] %v952_v0  ;;  %v956_v27 = vsel %vm13120_vm10, %v481_v46, %v955_v26 }
 0x104   :  { %8 = vsyncpa [#allocation4], 0  ;;  %954 = vst.msk [vmem:[#allocation2 + $0xe8] sm:$0xf] %vm16_vm1, %v480_v15  ;;  %v10678_v24 = vcombine.low %v6066_v28, %v6069_v20  ;;  %v483_v29 = vshrl.u32 %v160_v50, 16  ;;  %v486_v16 = vshll.u32 %v160_v50, 16  ;;  %11723 = vmatprep.mubr.msk.bf16.mxu0 %vm2028_vm12, %v10677_v7 }
 0x105   :  { %957 = vst [vmem:[#allocation2 + $0xec] sm:$0x1] %v956_v27  ;;  %v491_v18 = vshrl.u32 %v161_v59, 16  ;;  %v494_v49 = vshll.u32 %v161_v59, 16  ;;  %v500_v63 = vshrl.u32 %v162_v1, 16  ;;  %v503_v21 = vshll.u32 %v162_v1, 16 }
 0x106   :  { %v508_v23 = vshrl.u32 %v163_v33, 16  ;;  %v485_v30 = vrot.slane %v483_v29, 7  ;;  %v958_v6 = vld [vmem:[#allocation2 + $0xf0] sm:$0xf]  ;;  %v511_v34 = vshll.u32 %v163_v33, 16  ;;  %v10647_v37 = vrot.slane %v5930_v10, 9 }
 0x107   :  { %v493_v32 = vrot.slane %v491_v18, 7  ;;  %v962_v9 = vld [vmem:[#allocation2 + $0xf8] sm:$0x1]  ;;  %v502_v38 = vrot.slane %v500_v63, 7  ;;  %v12580_v40 = vld [vmem:[#allocation2 + $0x28] sm:$0xf] }
 0x108   :  { %v510_v39 = vrot.slane %v508_v23, 7  ;;  %v6072_v42 = vrot.slane %v12580_v40, 5  ;;  %v12581_v43 = vld [vmem:[#allocation2 + $0x2c] sm:$0x1]  ;;  %v488_v48 = vor.u32 %v486_v16, %v485_v30  ;;  %v489_v35 = vrot.slane %v485_v30, 4 }
 0x109   :  { %v6075_v45 = vrot.slane %v12581_v43, 5  ;;  %v496_v51 = vor.u32 %v494_v49, %v493_v32  ;;  %v498_v52 = vrot.slane %v493_v32, 4  ;;  %v965_v4 = vld [vmem:[#allocation2 + $0xfc] sm:$0xf]  ;;  %v505_v41 = vor.u32 %v503_v21, %v502_v38  ;;  %v969_v53 = vld [vmem:[#allocation2 + $0x104] sm:$0x1] }
 0x10a   :  { %v506_v12 = vrot.slane %v502_v38, 4  ;;  %v513_v44 = vor.u32 %v511_v34, %v510_v39  ;;  %v515_v5 = vrot.slane %v510_v39, 4  ;;  %v1097_v26 = vld [vmem:[#allocation2 + $0xe4] sm:$0xf]  ;;  %11724 = vmatmul.mubr.msk.bf16.vlgmr.msra.gmra.mrb[0].mxu0 %vm2028_vm12, %v10678_v24  ;;  %v959_v31 = vsel %vm13114_vm9, %v488_v48, %v958_v6  ;;  %v5931_v58 = vld [vmem:[#allocation2 + $0x30] sm:$0xe] }
 0x10b   :  { %v497_v13 = vsel %vm13105_vm8, %v489_v35, %v496_v51  ;;  %v963_v55 = vsel %vm13120_vm10, %v498_v52, %v962_v9  ;;  %v6073_v57 = vsel %vm13595_vm15, %v10647_v37, %v6072_v42  ;;  %v13655_v50 = vld [vmem:[%s15996_s0 + $0x98] sm:$0xf]  ;;  %v1098_v59 = vld [vmem:[#allocation2 + $0xe8] sm:$0xf]  ;;  %v1572_v61 = vshrl.u32 %v1097_v26, 16  ;;  %11788 = vmatpush3.bf16.msra.mxu0 %v7152_v14 }
 0x10c   :  { %v1145_v60 = vld [vmem:[#allocation2 + $0xec] sm:$0x1]  ;;  %v1575_v62 = vshll.u32 %v1097_v26, 16  ;;  %960 = vst [vmem:[#allocation2 + $0xf0] sm:$0xf] %v959_v31  ;;  %v514_v54 = vsel %vm13105_vm8, %v506_v12, %v513_v44  ;;  %v966_v1 = vsel %vm13114_vm9, %v505_v41, %v965_v4  ;;  %v1581_v33 = vshll.u32 %v1098_v59, 16 }
 0x10d   :  { %961 = vst.msk [vmem:[#allocation2 + $0xf4] sm:$0xf] %vm16_vm1, %v497_v13  ;;  %964 = vst [vmem:[#allocation2 + $0xf8] sm:$0x1] %v963_v55  ;;  %v1585_v22 = vshrl.u32 %v1098_v59, 16  ;;  %v1591_v46 = vshll.u32 %v1145_v60, 16  ;;  %v970_v19 = vsel %vm13120_vm10, %v515_v5, %v969_v53 }
 0x10e   :  { %967 = vst [vmem:[#allocation2 + $0xfc] sm:$0xf] %v966_v1  ;;  %968 = vst.msk [vmem:[#allocation2 + $0x100] sm:$0xf] %vm16_vm1, %v514_v54  ;;  %v1574_v2 = vrot.slane %v1572_v61, 4  ;;  %v1577_v10 = vrot.slane %v1575_v62, 5 }
 0x10f   :  { %971 = vst [vmem:[#allocation2 + $0x104] sm:$0x1] %v970_v19  ;;  %v6074_v0 = vrot.slane %v6072_v42, 4  ;;  %v10648_v11 = vrot.slane %v5931_v58, 9  ;;  %v1583_v20 = vrot.slane %v1581_v33, 5  ;;  %v1587_v8 = vrot.slane %v1585_v22, 4 }
 0x110   :  { %v1593_v14 = vrot.slane %v1591_v46, 5  ;;  %v12582_v15 = vld [vmem:[#allocation2 + $0x34] sm:$0xf]  ;;  %v13668_v7 = vld [vmem:[%s15996_s0 + $0x9c] sm:$0xf]  ;;  %v1578_v28 = vor.u32 %v1577_v10, %v1574_v2  ;;  %v517_v18 = vshrl.u32 %v13655_v50, 16 }
 0x111   :  { %v6079_v27 = vrot.slane %v12582_v15, 5  ;;  %v6076_v24 = vsel %vm13595_vm15, %v6074_v0, %v6075_v45  ;;  %v12583_v29 = vld [vmem:[#allocation2 + $0x38] sm:$0x1]  ;;  %v1588_v49 = vor.u32 %v1587_v8, %v1583_v20  ;;  %v520_v6 = vshll.u32 %v13655_v50, 16  ;;  %v972_v46 = vld [vmem:[#allocation2 + $0x108] sm:$0xf] }
 0x112   :  { %v6082_v16 = vrot.slane %v12583_v29, 5  ;;  %v10679_v63 = vcombine.low %v6073_v57, %v6076_v24  ;;  %v1579_v30 = vrot.slane %v1578_v28, 4  ;;  %v13675_v32 = vrot.slane %v517_v18, 7  ;;  %v166_v19 = vld [vmem:[%s15996_s0 + $0xa0] sm:$0xf] }
 0x113   :  { %v6080_v21 = vsel %vm13595_vm15, %v10648_v11, %v6079_v27  ;;  %v6081_v23 = vrot.slane %v6079_v27, 4  ;;  %v525_v34 = vshrl.u32 %v13668_v7, 16  ;;  %v1589_v37 = vrot.slane %v1588_v49, 4  ;;  %v1099_v9 = vld [vmem:[#allocation2 + $0xf0] sm:$0xf] }
 0x114   :  { %v1100_v38 = vld [vmem:[#allocation2 + $0xf4] sm:$0xf]  ;;  %11727 = vmatprep.mubr.msk.bf16.mxu0 %vm2028_vm12, %v10679_v63  ;;  %v528_v40 = vshll.u32 %v13668_v7, 16  ;;  %v1584_v42 = vsel %vm13135_vm11, %v1579_v30, %v1583_v20  ;;  %v1146_v43 = vld [vmem:[#allocation2 + $0xf8] sm:$0x1]  ;;  %v1596_v45 = vshrl.u32 %v1099_v9, 16  ;;  %v522_v22 = vor.u32 %v520_v6, %v13675_v32 }
 0x115   :  { %v6083_v39 = vsel %vm13595_vm15, %v6081_v23, %v6082_v16  ;;  %v1599_v48 = vshll.u32 %v1099_v9, 16  ;;  %v1605_v35 = vshll.u32 %v1100_v38, 16  ;;  %v1594_v51 = vsel %vm13135_vm11, %v1589_v37, %v1593_v14  ;;  %v1101_v41 = vld [vmem:[#allocation2 + $0xfc] sm:$0xf]  ;;  %v1102_v12 = vld [vmem:[#allocation2 + $0x100] sm:$0xf] }
 0x116   :  { %v1609_v52 = vshrl.u32 %v1100_v38, 16  ;;  %v1615_v4 = vshll.u32 %v1146_v43, 16  ;;  %v10680_v44 = vcombine.low %v6080_v21, %v6083_v39  ;;  %v10310_v5 = vcombine.low %v1584_v42, %v1594_v51  ;;  %v1147_v31 = vld [vmem:[#allocation2 + $0x104] sm:$0x1]  ;;  %v976_v7 = vld [vmem:[#allocation2 + $0x110] sm:$0x1] }
 0x117   :  { %v1598_v53 = vrot.slane %v1596_v45, 4  ;;  %v1601_v26 = vrot.slane %v1599_v48, 5  ;;  %v1607_v13 = vrot.slane %v1605_v35, 5  ;;  %v1620_v58 = vshrl.u32 %v1101_v41, 16  ;;  %v167_v20 = vld [vmem:[%s15996_s0 + $0xa4] sm:$0xf] }
 0x118   :  { %v1611_v55 = vrot.slane %v1609_v52, 4  ;;  %v1617_v57 = vrot.slane %v1615_v4, 5  ;;  %v1623_v50 = vshll.u32 %v1101_v41, 16  ;;  %11728 = vmatmul.mubr.msk.bf16.gmra.mrb[4].mxu0 %vm2028_vm12, %v10680_v44  ;;  %11426 = vmatmul.mubr.msk.bf16.gmra.mrb[32].mxu1 %vm2028_vm12, %v10310_v5  ;;  %v1629_v60 = vshll.u32 %v1102_v12, 16  ;;  %v5932_v18 = vld [vmem:[#allocation2 + $0x3c] sm:$0xe] }
 0x119   :  { %v1602_v59 = vor.u32 %v1601_v26, %v1598_v53  ;;  %v1633_v61 = vshrl.u32 %v1102_v12, 16  ;;  %v1639_v62 = vshll.u32 %v1147_v31, 16  ;;  %v1622_v1 = vrot.slane %v1620_v58, 4  ;;  %v979_v30 = vld [vmem:[#allocation2 + $0x114] sm:$0xf] }
 0x11a   :  { %v1612_v54 = vor.u32 %v1611_v55, %v1607_v13  ;;  %v1625_v33 = vrot.slane %v1623_v50, 5  ;;  %v1631_v10 = vrot.slane %v1629_v60, 5  ;;  %v523_v15 = vrot.slane %v13675_v32, 4  ;;  %v3289_v9 = vld [vmem:[%s15997_s1 + $0x8] sm:$0xf] }
 0x11b   :  { %v1603_v2 = vrot.slane %v1602_v59, 4  ;;  %v1635_v0 = vrot.slane %v1633_v61, 4  ;;  %v1641_v11 = vrot.slane %v1639_v62, 5  ;;  %v527_v27 = vrot.slane %v525_v34, 7  ;;  %v5933_v43 = vld [vmem:[#allocation2 + $0x48] sm:$0xe]  ;;  %12501 = vmatprep.subr.msk.bf16.mxu1 %vm2125_vm0, %v3289_v9 }
 0x11c   :  { %v1613_v8 = vrot.slane %v1612_v54, 4  ;;  %v1626_v14 = vor.u32 %v1625_v33, %v1622_v1  ;;  %v973_v29 = vsel %vm13114_vm9, %v522_v22, %v972_v46  ;;  %v534_v16 = vshrl.u32 %v166_v19, 16  ;;  %v983_v52 = vld [vmem:[#allocation2 + $0x11c] sm:$0x1]  ;;  %v168_v4 = vld [vmem:[%s15996_s0 + $0xa8] sm:$0xf] }
 0x11d   :  { %v1608_v28 = vsel %vm13135_vm11, %v1603_v2, %v1607_v13  ;;  %v1636_v24 = vor.u32 %v1635_v0, %v1631_v10  ;;  %v530_v21 = vor.u32 %v528_v40, %v527_v27  ;;  %v532_v23 = vrot.slane %v527_v27, 4  ;;  %974 = vst [vmem:[#allocation2 + $0x108] sm:$0xf] %v973_v29  ;;  %v12584_v5 = vld [vmem:[#allocation2 + $0x40] sm:$0xf] }
 0x11e   :  { %v1618_v49 = vsel %vm13135_vm11, %v1613_v8, %v1617_v57  ;;  %v1627_v63 = vrot.slane %v1626_v14, 4  ;;  %v536_v34 = vrot.slane %v534_v16, 7  ;;  %v537_v37 = vshll.u32 %v166_v19, 16  ;;  %v12585_v13 = vld [vmem:[#allocation2 + $0x44] sm:$0x1] }
 0x11f   :  { %v10311_v32 = vcombine.low %v1608_v28, %v1618_v49  ;;  %v1637_v6 = vrot.slane %v1636_v24, 4  ;;  %v531_v39 = vsel %vm13105_vm8, %v523_v15, %v530_v21  ;;  %v977_v40 = vsel %vm13120_vm10, %v532_v23, %v976_v7  ;;  %v12586_v57 = vld [vmem:[#allocation2 + $0x4c] sm:$0xf]  ;;  %v12587_v33 = vld [vmem:[#allocation2 + $0x50] sm:$0x1] }
 0x120   :  { %v1632_v38 = vsel %vm13135_vm11, %v1627_v63, %v1631_v10  ;;  %v542_v42 = vshrl.u32 %v167_v20, 16  ;;  %975 = vst.msk [vmem:[#allocation2 + $0x10c] sm:$0xf] %vm16_vm1, %v531_v39  ;;  %978 = vst [vmem:[#allocation2 + $0x110] sm:$0x1] %v977_v40  ;;  %v539_v48 = vor.u32 %v537_v37, %v536_v34  ;;  %v540_v35 = vrot.slane %v536_v34, 4 }
 0x121   :  { %11429 = vmatprep.mubr.msk.bf16.mxu1 %vm2028_vm12, %v10311_v32  ;;  %v1642_v45 = vsel %vm13135_vm11, %v1637_v6, %v1641_v11  ;;  %v545_v51 = vshll.u32 %v167_v20, 16  ;;  %v10649_v44 = vrot.slane %v5932_v18, 9  ;;  %v6086_v53 = vrot.slane %v12584_v5, 5  ;;  %v169_v11 = vld [vmem:[%s15996_s0 + $0xac] sm:$0xf] }
 0x122   :  { %v10312_v41 = vcombine.low %v1632_v38, %v1642_v45  ;;  %v544_v12 = vrot.slane %v542_v42, 7  ;;  %v980_v26 = vsel %vm13114_vm9, %v539_v48, %v979_v30  ;;  %v6089_v31 = vrot.slane %v12585_v13, 5  ;;  %v986_v27 = vld [vmem:[#allocation2 + $0x120] sm:$0xf]  ;;  %v170_v30 = vld [vmem:[%s15996_s0 + $0xb0] sm:$0xf] }
 0x123   :  { %v10650_v55 = vrot.slane %v5933_v43, 9  ;;  %v6093_v58 = vrot.slane %v12586_v57, 5  ;;  %981 = vst [vmem:[#allocation2 + $0x114] sm:$0xf] %v980_v26  ;;  %v6087_v60 = vsel %vm13595_vm15, %v10649_v44, %v6086_v53  ;;  %v6088_v61 = vrot.slane %v6086_v53, 4 }
 0x124   :  { %11430 = vmatmul.mubr.msk.bf16.gmra.mrb[36].mxu1 %vm2028_vm12, %v10312_v41  ;;  %v547_v50 = vor.u32 %v545_v51, %v544_v12  ;;  %v549_v59 = vrot.slane %v544_v12, 4  ;;  %v1103_v62 = vld [vmem:[#allocation2 + $0x108] sm:$0xf]  ;;  %v6096_v22 = vrot.slane %v12587_v33, 5  ;;  %v551_v46 = vshrl.u32 %v168_v4, 16 }
 0x125   :  { %v6094_v54 = vsel %vm13595_vm15, %v10650_v55, %v6093_v58  ;;  %v6095_v1 = vrot.slane %v6093_v58, 4  ;;  %v1644_v19 = vshrl.u32 %v1103_v62, 16  ;;  %v1647_v2 = vshll.u32 %v1103_v62, 16  ;;  %v171_v9 = vld [vmem:[%s15996_s0 + $0xb4] sm:$0xf] }
 0x126   :  { %v548_v10 = vsel %vm13105_vm8, %v540_v35, %v547_v50  ;;  %v984_v0 = vsel %vm13120_vm10, %v549_v59, %v983_v52  ;;  %v6090_v20 = vsel %vm13595_vm15, %v6088_v61, %v6089_v31  ;;  %v553_v14 = vrot.slane %v551_v46, 7  ;;  %v5934_v33 = vld [vmem:[#allocation2 + $0x54] sm:$0xe] }
 0x127   :  { %982 = vst.msk [vmem:[#allocation2 + $0x118] sm:$0xf] %vm16_vm1, %v548_v10  ;;  %985 = vst [vmem:[#allocation2 + $0x11c] sm:$0x1] %v984_v0  ;;  %v6097_v8 = vsel %vm13595_vm15, %v6095_v1, %v6096_v22  ;;  %v554_v15 = vshll.u32 %v168_v4, 16  ;;  %v1646_v24 = vrot.slane %v1644_v19, 4  ;;  %v10681_v16 = vcombine.low %v6087_v60, %v6090_v20 }
 0x128   :  { %v1104_v7 = vld [vmem:[#allocation2 + $0x10c] sm:$0xf]  ;;  %v1148_v28 = vld [vmem:[#allocation2 + $0x110] sm:$0x1]  ;;  %v1649_v29 = vrot.slane %v1647_v2, 5  ;;  %v10682_v18 = vcombine.low %v6094_v54, %v6097_v8  ;;  %v557_v6 = vrot.slane %v553_v14, 4 }
 0x129   :  { %v1653_v49 = vshll.u32 %v1104_v7, 16  ;;  %v1657_v63 = vshrl.u32 %v1104_v7, 16  ;;  %v1663_v21 = vshll.u32 %v1148_v28, 16  ;;  %v556_v23 = vor.u32 %v554_v15, %v553_v14  ;;  %11731 = vmatprep.mubr.msk.bf16.mxu0 %vm2028_vm12, %v10681_v16  ;;  %v990_v4 = vld [vmem:[#allocation2 + $0x128] sm:$0x1] }
 0x12a   :  { %v1650_v32 = vor.u32 %v1649_v29, %v1646_v24  ;;  %v559_v34 = vshrl.u32 %v169_v11, 16  ;;  %v562_v37 = vshll.u32 %v169_v11, 16  ;;  %v1105_v42 = vld [vmem:[#allocation2 + $0x114] sm:$0xf]  ;;  %11732 = vmatmul.mubr.msk.bf16.gmra.mrb[8].mxu0 %vm2028_vm12, %v10682_v18  ;;  %v568_v41 = vshrl.u32 %v170_v30, 16 }
 0x12b   :  { %v1655_v38 = vrot.slane %v1653_v49, 5  ;;  %v1659_v39 = vrot.slane %v1657_v63, 4  ;;  %v1665_v40 = vrot.slane %v1663_v21, 5  ;;  %v987_v43 = vsel %vm13114_vm9, %v556_v23, %v986_v27  ;;  %v993_v60 = vld [vmem:[#allocation2 + $0x12c] sm:$0xf] }
 0x12c   :  { %v1651_v45 = vrot.slane %v1650_v32, 4  ;;  %v1668_v48 = vshrl.u32 %v1105_v42, 16  ;;  %v1671_v35 = vshll.u32 %v1105_v42, 16  ;;  %v561_v51 = vrot.slane %v559_v34, 7  ;;  %988 = vst [vmem:[#allocation2 + $0x120] sm:$0xf] %v987_v43 }
 0x12d   :  { %v1660_v52 = vor.u32 %v1659_v39, %v1655_v38  ;;  %v571_v12 = vshll.u32 %v170_v30, 16  ;;  %v576_v44 = vshrl.u32 %v171_v9, 16  ;;  %v570_v1 = vrot.slane %v568_v41, 7  ;;  %v997_v8 = vld [vmem:[#allocation2 + $0x134] sm:$0x1] }
 0x12e   :  { %v1656_v5 = vsel %vm13135_vm11, %v1651_v45, %v1655_v38  ;;  %v1106_v53 = vld [vmem:[#allocation2 + $0x118] sm:$0xf]  ;;  %v1149_v26 = vld [vmem:[#allocation2 + $0x11c] sm:$0x1]  ;;  %v1670_v13 = vrot.slane %v1668_v48, 4  ;;  %v1673_v31 = vrot.slane %v1671_v35, 5  ;;  %v564_v55 = vor.u32 %v562_v37, %v561_v51 }
 0x12f   :  { %v1661_v57 = vrot.slane %v1660_v52, 4  ;;  %v1677_v58 = vshll.u32 %v1106_v53, 16  ;;  %v1681_v50 = vshrl.u32 %v1106_v53, 16  ;;  %v1687_v59 = vshll.u32 %v1149_v26, 16  ;;  %v5935_v49 = vld [vmem:[#allocation2 + $0x60] sm:$0xe] }
 0x130   :  { %v1674_v61 = vor.u32 %v1673_v31, %v1670_v13  ;;  %v565_v62 = vsel %vm13105_vm8, %v557_v6, %v564_v55  ;;  %v566_v54 = vrot.slane %v561_v51, 4  ;;  %v573_v20 = vor.u32 %v571_v12, %v570_v1  ;;  %v12588_v34 = vld [vmem:[#allocation2 + $0x58] sm:$0xf]  ;;  %v173_v41 = vld [vmem:[%s15996_s0 + $0xbc] sm:$0xf] }
 0x131   :  { %v1666_v22 = vsel %vm13135_vm11, %v1661_v57, %v1665_v40  ;;  %v1679_v46 = vrot.slane %v1677_v58, 5  ;;  %v1683_v19 = vrot.slane %v1681_v50, 4  ;;  %v1689_v2 = vrot.slane %v1687_v59, 5  ;;  %989 = vst.msk [vmem:[#allocation2 + $0x124] sm:$0xf] %vm16_vm1, %v565_v62 }
 0x132   :  { %v10313_v10 = vcombine.low %v1656_v5, %v1666_v22  ;;  %v1675_v0 = vrot.slane %v1674_v61, 4  ;;  %v991_v11 = vsel %vm13120_vm10, %v566_v54, %v990_v4  ;;  %v574_v27 = vrot.slane %v570_v1, 4  ;;  %v172_v45 = vld [vmem:[%s15996_s0 + $0xb8] sm:$0xf]  ;;  %v12590_v5 = vld [vmem:[#allocation2 + $0x64] sm:$0xf] }
 0x133   :  { %v1684_v14 = vor.u32 %v1683_v19, %v1679_v46  ;;  %992 = vst [vmem:[#allocation2 + $0x128] sm:$0x1] %v991_v11  ;;  %v1107_v15 = vld [vmem:[#allocation2 + $0x120] sm:$0xf]  ;;  %v578_v7 = vrot.slane %v576_v44, 7  ;;  %v579_v28 = vshll.u32 %v171_v9, 16  ;;  %v994_v18 = vsel %vm13114_vm9, %v573_v20, %v993_v60 }
 0x134   :  { %11433 = vmatprep.mubr.msk.bf16.mxu1 %vm2028_vm12, %v10313_v10  ;;  %v1680_v24 = vsel %vm13135_vm11, %v1675_v0, %v1679_v46  ;;  %v1692_v29 = vshrl.u32 %v1107_v15, 16  ;;  %v1695_v16 = vshll.u32 %v1107_v15, 16  ;;  %995 = vst [vmem:[#allocation2 + $0x12c] sm:$0xf] %v994_v18  ;;  %v10651_v30 = vrot.slane %v5934_v33, 9 }
 0x135   :  { %v1685_v63 = vrot.slane %v1684_v14, 4  ;;  %v581_v21 = vor.u32 %v579_v28, %v578_v7  ;;  %v583_v23 = vrot.slane %v578_v7, 4  ;;  %v6100_v37 = vrot.slane %v12588_v34, 5  ;;  %v12589_v9 = vld [vmem:[#allocation2 + $0x5c] sm:$0x1] }
 0x136   :  { %v1694_v32 = vrot.slane %v1692_v29, 4  ;;  %v1697_v6 = vrot.slane %v1695_v16, 5  ;;  %v6103_v38 = vrot.slane %v12589_v9, 5  ;;  %v10652_v43 = vrot.slane %v5935_v49, 9  ;;  %v12591_v26 = vld [vmem:[#allocation2 + $0x68] sm:$0x1] }
 0x137   :  { %v1690_v39 = vsel %vm13135_vm11, %v1685_v63, %v1689_v2  ;;  %v582_v40 = vsel %vm13105_vm8, %v574_v27, %v581_v21  ;;  %v998_v42 = vsel %vm13120_vm10, %v583_v23, %v997_v8  ;;  %v6101_v52 = vsel %vm13595_vm15, %v10651_v30, %v6100_v37  ;;  %v1000_v46 = vld [vmem:[#allocation2 + $0x138] sm:$0xf]  ;;  %v174_v21 = vld [vmem:[%s15996_s0 + $0xc0] sm:$0xf] }
 0x138   :  { %v10314_v48 = vcombine.low %v1680_v24, %v1690_v39  ;;  %v1108_v35 = vld [vmem:[#allocation2 + $0x124] sm:$0xf]  ;;  %v1698_v51 = vor.u32 %v1697_v6, %v1694_v32  ;;  %996 = vst.msk [vmem:[#allocation2 + $0x130] sm:$0xf] %vm16_vm1, %v582_v40  ;;  %999 = vst [vmem:[#allocation2 + $0x134] sm:$0x1] %v998_v42 }
 0x139   :  { %v6102_v4 = vrot.slane %v6100_v37, 4  ;;  %v1701_v12 = vshll.u32 %v1108_v35, 16  ;;  %v1705_v44 = vshrl.u32 %v1108_v35, 16  ;;  %v6107_v53 = vrot.slane %v12590_v5, 5  ;;  %v1004_v34 = vld [vmem:[#allocation2 + $0x140] sm:$0x1] }
 0x13a   :  { %v6110_v13 = vrot.slane %v12591_v26, 5  ;;  %11434 = vmatmul.mubr.msk.bf16.gmra.mrb[40].mxu1 %vm2028_vm12, %v10314_v48  ;;  %v1150_v31 = vld [vmem:[#allocation2 + $0x128] sm:$0x1]  ;;  %v1699_v55 = vrot.slane %v1698_v51, 4  ;;  %v585_v58 = vshrl.u32 %v172_v45, 16  ;;  %v588_v50 = vshll.u32 %v172_v45, 16 }
 0x13b   :  { %v6104_v57 = vsel %vm13595_vm15, %v6102_v4, %v6103_v38  ;;  %v1703_v59 = vrot.slane %v1701_v12, 5  ;;  %v1707_v60 = vrot.slane %v1705_v44, 4  ;;  %v1711_v61 = vshll.u32 %v1150_v31, 16  ;;  %v1109_v54 = vld [vmem:[#allocation2 + $0x12c] sm:$0xf] }
 0x13c   :  { %v10683_v62 = vcombine.low %v6101_v52, %v6104_v57  ;;  %v6108_v1 = vsel %vm13595_vm15, %v10652_v43, %v6107_v53  ;;  %v6109_v33 = vrot.slane %v6107_v53, 4  ;;  %v587_v22 = vrot.slane %v585_v58, 7  ;;  %v175_v37 = vld [vmem:[%s15996_s0 + $0xc4] sm:$0xf]  ;;  %v5936_v42 = vld [vmem:[#allocation2 + $0x6c] sm:$0xe] }
 0x13d   :  { %v1708_v19 = vor.u32 %v1707_v60, %v1703_v59  ;;  %v1713_v2 = vrot.slane %v1711_v61, 5  ;;  %v1716_v10 = vshrl.u32 %v1109_v54, 16  ;;  %v593_v0 = vshrl.u32 %v173_v41, 16  ;;  %v5937_v26 = vld [vmem:[#allocation2 + $0x78] sm:$0xe] }
 0x13e   :  { %11735 = vmatprep.mubr.msk.bf16.mxu0 %vm2028_vm12, %v10683_v62  ;;  %v1719_v11 = vshll.u32 %v1109_v54, 16  ;;  %v6111_v20 = vsel %vm13595_vm15, %v6109_v33, %v6110_v13  ;;  %v590_v8 = vor.u32 %v588_v50, %v587_v22  ;;  %v591_v14 = vrot.slane %v587_v22, 4  ;;  %v1007_v57 = vld [vmem:[#allocation2 + $0x144] sm:$0xf]  ;;  %v1011_v60 = vld [vmem:[#allocation2 + $0x14c] sm:$0x1] }
 0x13f   :  { %v1704_v15 = vsel %vm13135_vm11, %v1699_v55, %v1703_v59  ;;  %v1709_v27 = vrot.slane %v1708_v19, 4  ;;  %v1110_v7 = vld [vmem:[#allocation2 + $0x130] sm:$0xf]  ;;  %v1151_v28 = vld [vmem:[#allocation2 + $0x134] sm:$0x1]  ;;  %v1718_v24 = vrot.slane %v1716_v10, 4  ;;  %v10684_v29 = vcombine.low %v6108_v1, %v6111_v20 }
 0x140   :  { %v1721_v16 = vrot.slane %v1719_v11, 5  ;;  %v1725_v18 = vshll.u32 %v1110_v7, 16  ;;  %v1729_v49 = vshrl.u32 %v1110_v7, 16  ;;  %v1735_v63 = vshll.u32 %v1151_v28, 16  ;;  %v12592_v61 = vld [vmem:[#allocation2 + $0x70] sm:$0xf] }
 0x141   :  { %v1714_v23 = vsel %vm13135_vm11, %v1709_v27, %v1713_v2  ;;  %11736 = vmatmul.mubr.msk.bf16.gmra.mrb[12].mxu0 %vm2028_vm12, %v10684_v29  ;;  %v595_v30 = vrot.slane %v593_v0, 7  ;;  %v596_v32 = vshll.u32 %v173_v41, 16  ;;  %v1001_v6 = vsel %vm13114_vm9, %v590_v8, %v1000_v46  ;;  %v12593_v54 = vld [vmem:[#allocation2 + $0x74] sm:$0x1]  ;;  %v176_v2 = vld [vmem:[%s15996_s0 + $0xc8] sm:$0xf] }
 0x142   :  { %v10315_v9 = vcombine.low %v1704_v15, %v1714_v23  ;;  %v1722_v38 = vor.u32 %v1721_v16, %v1718_v24  ;;  %v1727_v39 = vrot.slane %v1725_v18, 5  ;;  %v1731_v40 = vrot.slane %v1729_v49, 4  ;;  %1002 = vst [vmem:[#allocation2 + $0x138] sm:$0xf] %v1001_v6  ;;  %v177_v28 = vld [vmem:[%s15996_s0 + $0xcc] sm:$0xf] }
 0x143   :  { %v1737_v43 = vrot.slane %v1735_v63, 5  ;;  %v598_v45 = vor.u32 %v596_v32, %v595_v30  ;;  %v600_v48 = vrot.slane %v595_v30, 4  ;;  %v602_v35 = vshrl.u32 %v174_v21, 16  ;;  %v12594_v29 = vld [vmem:[#allocation2 + $0x7c] sm:$0xf] }
 0x144   :  { %11437 = vmatprep.mubr.msk.bf16.mxu1 %vm2028_vm12, %v10315_v9  ;;  %v1723_v51 = vrot.slane %v1722_v38, 4  ;;  %v1732_v52 = vor.u32 %v1731_v40, %v1727_v39  ;;  %v605_v4 = vshll.u32 %v174_v21, 16  ;;  %v610_v41 = vshrl.u32 %v175_v37, 16  ;;  %v12595_v18 = vld [vmem:[#allocation2 + $0x80] sm:$0x1] }
 0x145   :  { %v599_v12 = vsel %vm13105_vm8, %v591_v14, %v598_v45  ;;  %v1005_v44 = vsel %vm13120_vm10, %v600_v48, %v1004_v34  ;;  %v604_v5 = vrot.slane %v602_v35, 7  ;;  %v613_v53 = vshll.u32 %v175_v37, 16  ;;  %v1014_v45 = vld [vmem:[#allocation2 + $0x150] sm:$0xf] }
 0x146   :  { %v1728_v13 = vsel %vm13135_vm11, %v1723_v51, %v1727_v39  ;;  %v1733_v31 = vrot.slane %v1732_v52, 4  ;;  %1003 = vst.msk [vmem:[#allocation2 + $0x13c] sm:$0xf] %vm16_vm1, %v599_v12  ;;  %1006 = vst [vmem:[#allocation2 + $0x140] sm:$0x1] %v1005_v44  ;;  %v612_v55 = vrot.slane %v610_v41, 7 }
 0x147   :  { %v10653_v58 = vrot.slane %v5936_v42, 9  ;;  %v607_v50 = vor.u32 %v605_v4, %v604_v5  ;;  %v608_v59 = vrot.slane %v604_v5, 4  ;;  %v6114_v62 = vrot.slane %v12592_v61, 5 }
 0x148   :  { %v6117_v1 = vrot.slane %v12593_v54, 5  ;;  %v1738_v33 = vsel %vm13135_vm11, %v1733_v31, %v1737_v43  ;;  %v615_v22 = vor.u32 %v613_v53, %v612_v55  ;;  %v617_v46 = vrot.slane %v612_v55, 4  ;;  %v178_v55 = vld [vmem:[%s15996_s0 + $0xd0] sm:$0xf] }
 0x149   :  { %v10654_v19 = vrot.slane %v5937_v26, 9  ;;  %v10316_v10 = vcombine.low %v1728_v13, %v1738_v33  ;;  %v1111_v0 = vld [vmem:[#allocation2 + $0x138] sm:$0xf]  ;;  %v1008_v11 = vsel %vm13114_vm9, %v607_v50, %v1007_v57  ;;  %v6115_v20 = vsel %vm13595_vm15, %v10653_v58, %v6114_v62 }
 0x14a   :  { %v6116_v8 = vrot.slane %v6114_v62, 4  ;;  %v1740_v14 = vshrl.u32 %v1111_v0, 16  ;;  %v1743_v15 = vshll.u32 %v1111_v0, 16  ;;  %v616_v27 = vsel %vm13105_vm8, %v608_v59, %v615_v22  ;;  %1009 = vst [vmem:[#allocation2 + $0x144] sm:$0xf] %v1008_v11 }
 0x14b   :  { %v1012_v7 = vsel %vm13120_vm10, %v617_v46, %v1011_v60  ;;  %11438 = vmatmul.mubr.msk.bf16.gmra.mrb[44].mxu1 %vm2028_vm12, %v10316_v10  ;;  %1010 = vst.msk [vmem:[#allocation2 + $0x148] sm:$0xf] %vm16_vm1, %v616_v27  ;;  %v6121_v16 = vrot.slane %v12594_v29, 5  ;;  %v6124_v49 = vrot.slane %v12595_v18, 5  ;;  %v619_v63 = vshrl.u32 %v176_v2, 16 }
 0x14c   :  { %1013 = vst [vmem:[#allocation2 + $0x14c] sm:$0x1] %v1012_v7  ;;  %v6118_v24 = vsel %vm13595_vm15, %v6116_v8, %v6117_v1  ;;  %v1742_v21 = vrot.slane %v1740_v14, 4  ;;  %v1745_v23 = vrot.slane %v1743_v15, 5  ;;  %v622_v32 = vshll.u32 %v176_v2, 16 }
 0x14d   :  { %v10685_v30 = vcombine.low %v6115_v20, %v6118_v24  ;;  %v1112_v6 = vld [vmem:[#allocation2 + $0x13c] sm:$0xf]  ;;  %v1152_v34 = vld [vmem:[#allocation2 + $0x140] sm:$0x1]  ;;  %v6122_v37 = vsel %vm13595_vm15, %v10654_v19, %v6121_v16  ;;  %v6123_v9 = vrot.slane %v6121_v16, 4  ;;  %v621_v38 = vrot.slane %v619_v63, 7 }
 0x14e   :  { %v1746_v39 = vor.u32 %v1745_v23, %v1742_v21  ;;  %v1749_v40 = vshll.u32 %v1112_v6, 16  ;;  %v1753_v42 = vshrl.u32 %v1112_v6, 16  ;;  %v1759_v43 = vshll.u32 %v1152_v34, 16  ;;  %v179_v62 = vld [vmem:[%s15996_s0 + $0xd4] sm:$0xf] }
 0x14f   :  { %11739 = vmatprep.mubr.msk.bf16.mxu0 %vm2028_vm12, %v10685_v30  ;;  %v6125_v48 = vsel %vm13595_vm15, %v6123_v9, %v6124_v49  ;;  %v624_v35 = vor.u32 %v622_v32, %v621_v38  ;;  %v625_v51 = vrot.slane %v621_v38, 4  ;;  %v627_v52 = vshrl.u32 %v177_v28, 16  ;;  %v1018_v46 = vld [vmem:[#allocation2 + $0x158] sm:$0x1]  ;;  %v5938_v11 = vld [vmem:[#allocation2 + $0x84] sm:$0xe] }
 0x150   :  { %v1747_v4 = vrot.slane %v1746_v39, 4  ;;  %v1751_v41 = vrot.slane %v1749_v40, 5  ;;  %v1755_v12 = vrot.slane %v1753_v42, 4  ;;  %v1761_v44 = vrot.slane %v1759_v43, 5  ;;  %v1021_v30 = vld [vmem:[#allocation2 + $0x15c] sm:$0xf] }
 0x151   :  { %v1113_v5 = vld [vmem:[#allocation2 + $0x144] sm:$0xf]  ;;  %v10686_v53 = vcombine.low %v6122_v37, %v6125_v48  ;;  %v629_v26 = vrot.slane %v627_v52, 7  ;;  %v630_v13 = vshll.u32 %v177_v28, 16  ;;  %v1015_v31 = vsel %vm13114_vm9, %v624_v35, %v1014_v45  ;;  %v12596_v9 = vld [vmem:[#allocation2 + $0x88] sm:$0xf] }
 0x152   :  { %v1752_v57 = vsel %vm13135_vm11, %v1747_v4, %v1751_v41  ;;  %v1756_v58 = vor.u32 %v1755_v12, %v1751_v41  ;;  %v1114_v50 = vld [vmem:[#allocation2 + $0x148] sm:$0xf]  ;;  %v1764_v60 = vshrl.u32 %v1113_v5, 16  ;;  %v1767_v61 = vshll.u32 %v1113_v5, 16  ;;  %1016 = vst [vmem:[#allocation2 + $0x150] sm:$0xf] %v1015_v31 }
 0x153   :  { %v1153_v59 = vld [vmem:[#allocation2 + $0x14c] sm:$0x1]  ;;  %v1773_v54 = vshll.u32 %v1114_v50, 16  ;;  %v1777_v1 = vshrl.u32 %v1114_v50, 16  ;;  %11740 = vmatmul.mubr.msk.bf16.gmra.mrb[16].mxu0 %vm2028_vm12, %v10686_v53  ;;  %v632_v22 = vor.u32 %v630_v13, %v629_v26  ;;  %v634_v0 = vrot.slane %v629_v26, 4 }
 0x154   :  { %v1783_v33 = vshll.u32 %v1153_v59, 16  ;;  %v1757_v19 = vrot.slane %v1756_v58, 4  ;;  %v1766_v2 = vrot.slane %v1764_v60, 4  ;;  %v1769_v10 = vrot.slane %v1767_v61, 5  ;;  %v12597_v39 = vld [vmem:[#allocation2 + $0x8c] sm:$0x1] }
 0x155   :  { %v1775_v20 = vrot.slane %v1773_v54, 5  ;;  %v1779_v8 = vrot.slane %v1777_v1, 4  ;;  %v633_v15 = vsel %vm13105_vm8, %v625_v51, %v632_v22  ;;  %v1019_v28 = vsel %vm13120_vm10, %v634_v0, %v1018_v46  ;;  %v1025_v35 = vld [vmem:[#allocation2 + $0x164] sm:$0x1]  ;;  %v5939_v12 = vld [vmem:[#allocation2 + $0x90] sm:$0xe] }
 0x156   :  { %v1785_v14 = vrot.slane %v1783_v33, 5  ;;  %v1762_v27 = vsel %vm13135_vm11, %v1757_v19, %v1761_v44  ;;  %v1770_v7 = vor.u32 %v1769_v10, %v1766_v2  ;;  %1017 = vst.msk [vmem:[#allocation2 + $0x154] sm:$0xf] %vm16_vm1, %v633_v15  ;;  %v636_v24 = vshrl.u32 %v178_v55, 16  ;;  %1020 = vst [vmem:[#allocation2 + $0x158] sm:$0x1] %v1019_v28 }
 0x157   :  { %v10317_v29 = vcombine.low %v1752_v57, %v1762_v27  ;;  %v1780_v16 = vor.u32 %v1779_v8, %v1775_v20  ;;  %v639_v18 = vshll.u32 %v178_v55, 16  ;;  %v644_v49 = vshrl.u32 %v179_v62, 16  ;;  %v180_v13 = vld [vmem:[%s15996_s0 + $0xd8] sm:$0xf]  ;;  %v181_v59 = vld [vmem:[%s15996_s0 + $0xdc] sm:$0xf] }
 0x158   :  { %v1771_v63 = vrot.slane %v1770_v7, 4  ;;  %v638_v21 = vrot.slane %v636_v24, 7  ;;  %v647_v23 = vshll.u32 %v179_v62, 16  ;;  %v10655_v32 = vrot.slane %v5938_v11, 9  ;;  %v12598_v46 = vld [vmem:[#allocation2 + $0x94] sm:$0xf] }
 0x159   :  { %11441 = vmatprep.mubr.msk.bf16.mxu1 %vm2028_vm12, %v10317_v29  ;;  %v1781_v6 = vrot.slane %v1780_v16, 4  ;;  %v1115_v34 = vld [vmem:[#allocation2 + $0x150] sm:$0xf]  ;;  %v646_v37 = vrot.slane %v644_v49, 7  ;;  %v6128_v38 = vrot.slane %v12596_v9, 5  ;;  %v6131_v40 = vrot.slane %v12597_v39, 5 }
 0x15a   :  { %v1776_v42 = vsel %vm13135_vm11, %v1771_v63, %v1775_v20  ;;  %v1788_v43 = vshrl.u32 %v1115_v34, 16  ;;  %v1791_v45 = vshll.u32 %v1115_v34, 16  ;;  %v641_v48 = vor.u32 %v639_v18, %v638_v21  ;;  %v12599_v2 = vld [vmem:[#allocation2 + $0x98] sm:$0x1]  ;;  %v13876_v0 = vld [vmem:[%s15996_s0 + $0xe0] sm:$0xf] }
 0x15b   :  { %v1786_v51 = vsel %vm13135_vm11, %v1781_v6, %v1785_v14  ;;  %v642_v52 = vrot.slane %v638_v21, 4  ;;  %v649_v4 = vor.u32 %v647_v23, %v646_v37  ;;  %v651_v41 = vrot.slane %v646_v37, 4  ;;  %v13881_v15 = vld [vmem:[%s15997_s1 + $0x1c] sm:$0xf]  ;;  %v1028_v9 = vld [vmem:[#allocation2 + $0x168] sm:$0xf] }
 0x15c   :  { %v10318_v44 = vcombine.low %v1776_v42, %v1786_v51  ;;  %v1790_v5 = vrot.slane %v1788_v43, 4  ;;  %v1793_v53 = vrot.slane %v1791_v45, 5  ;;  %v1022_v26 = vsel %vm13114_vm9, %v641_v48, %v1021_v30  ;;  %12507 = vmatprep.subr.msk.bf16.mxu0 %vm2125_vm0, %v13881_v15  ;;  %v183_v48 = vld [vmem:[%s15996_s0 + $0xe4] sm:$0xf] }
 0x15d   :  { %v1116_v31 = vld [vmem:[#allocation2 + $0x154] sm:$0xf]  ;;  %v650_v55 = vsel %vm13105_vm8, %v642_v52, %v649_v4  ;;  %1023 = vst [vmem:[#allocation2 + $0x15c] sm:$0xf] %v1022_v26  ;;  %v1026_v57 = vsel %vm13120_vm10, %v651_v41, %v1025_v35  ;;  %v6129_v58 = vsel %vm13595_vm15, %v10655_v32, %v6128_v38  ;;  %v6130_v50 = vrot.slane %v6128_v38, 4 }
 0x15e   :  { %11442 = vmatmul.mubr.msk.bf16.gmra.mrb[48].mxu1 %vm2028_vm12, %v10318_v44  ;;  %v1154_v60 = vld [vmem:[#allocation2 + $0x158] sm:$0x1]  ;;  %v1794_v61 = vor.u32 %v1793_v53, %v1790_v5  ;;  %v1797_v62 = vshll.u32 %v1116_v31, 16  ;;  %v1801_v54 = vshrl.u32 %v1116_v31, 16  ;;  %1024 = vst.msk [vmem:[#allocation2 + $0x160] sm:$0xf] %vm16_vm1, %v650_v55 }
 0x15f   :  { %1027 = vst [vmem:[#allocation2 + $0x164] sm:$0x1] %v1026_v57  ;;  %v10656_v1 = vrot.slane %v5939_v12, 9  ;;  %v1807_v33 = vshll.u32 %v1154_v60, 16  ;;  %v6132_v22 = vsel %vm13595_vm15, %v6130_v50, %v6131_v40  ;;  %v6135_v19 = vrot.slane %v12598_v46, 5 }
 0x160   :  { %v6138_v10 = vrot.slane %v12599_v2, 5  ;;  %v1795_v11 = vrot.slane %v1794_v61, 4  ;;  %v1799_v20 = vrot.slane %v1797_v62, 5  ;;  %v1803_v8 = vrot.slane %v1801_v54, 4  ;;  %v1032_v41 = vld [vmem:[#allocation2 + $0x170] sm:$0x1] }
 0x161   :  { %v10687_v14 = vcombine.low %v6129_v58, %v6132_v22  ;;  %v1809_v27 = vrot.slane %v1807_v33, 5  ;;  %v6136_v7 = vsel %vm13595_vm15, %v10656_v1, %v6135_v19  ;;  %v6137_v28 = vrot.slane %v6135_v19, 4  ;;  %v5940_v26 = vld [vmem:[#allocation2 + $0x9c] sm:$0xe]  ;;  %v1035_v58 = vld [vmem:[#allocation2 + $0x174] sm:$0xf] }
 0x162   :  { %v653_v24 = vshrl.u32 %v180_v13, 16  ;;  %v1800_v29 = vsel %vm13135_vm11, %v1795_v11, %v1799_v20  ;;  %v1804_v16 = vor.u32 %v1803_v8, %v1799_v20  ;;  %v656_v18 = vshll.u32 %v180_v13, 16  ;;  %v5941_v50 = vld [vmem:[#allocation2 + $0xa8] sm:$0xe]  ;;  %v12600_v8 = vld [vmem:[#allocation2 + $0xa0] sm:$0xf] }
 0x163   :  { %11743 = vmatprep.mubr.msk.bf16.mxu0 %vm2028_vm12, %v10687_v14  ;;  %v661_v49 = vshrl.u32 %v181_v59, 16  ;;  %v6139_v63 = vsel %vm13595_vm15, %v6137_v28, %v6138_v10  ;;  %v664_v23 = vshll.u32 %v181_v59, 16  ;;  %v670_v30 = vshrl.u32 %v13876_v0, 16  ;;  %v1039_v28 = vld [vmem:[#allocation2 + $0x17c] sm:$0x1] }
 0x164   :  { %v655_v21 = vrot.slane %v653_v24, 7  ;;  %v1805_v32 = vrot.slane %v1804_v16, 4  ;;  %v1117_v6 = vld [vmem:[#allocation2 + $0x15c] sm:$0xf]  ;;  %v10688_v34 = vcombine.low %v6136_v7, %v6139_v63  ;;  %v673_v38 = vshll.u32 %v13876_v0, 16 }
 0x165   :  { %v663_v37 = vrot.slane %v661_v49, 7  ;;  %v1118_v39 = vld [vmem:[#allocation2 + $0x160] sm:$0xf]  ;;  %v1812_v42 = vshrl.u32 %v1117_v6, 16  ;;  %v1815_v43 = vshll.u32 %v1117_v6, 16  ;;  %v672_v62 = vrot.slane %v670_v30, 7 }
 0x166   :  { %v1155_v40 = vld [vmem:[#allocation2 + $0x164] sm:$0x1]  ;;  %v658_v45 = vor.u32 %v656_v18, %v655_v21  ;;  %v1810_v35 = vsel %vm13135_vm11, %v1805_v32, %v1809_v27  ;;  %v1821_v51 = vshll.u32 %v1118_v39, 16  ;;  %v1825_v52 = vshrl.u32 %v1118_v39, 16  ;;  %11744 = vmatmul.mubr.msk.bf16.gmra.mrb[20].mxu0 %vm2028_vm12, %v10688_v34  ;;  %v184_v18 = vld [vmem:[%s15996_s0 + $0xe8] sm:$0xf] }
 0x167   :  { %v1831_v4 = vshll.u32 %v1155_v40, 16  ;;  %v10319_v12 = vcombine.low %v1800_v29, %v1810_v35  ;;  %v1814_v44 = vrot.slane %v1812_v42, 4  ;;  %v1817_v5 = vrot.slane %v1815_v43, 5  ;;  %v12601_v24 = vld [vmem:[#allocation2 + $0xa4] sm:$0x1] }
 0x168   :  { %v659_v53 = vrot.slane %v655_v21, 4  ;;  %v1823_v13 = vrot.slane %v1821_v51, 5  ;;  %v1827_v31 = vrot.slane %v1825_v52, 4  ;;  %v666_v57 = vor.u32 %v664_v23, %v663_v37  ;;  %v13922_v30 = vld [vmem:[%s15996_s0 + $0xec] sm:$0xf] }
 0x169   :  { %v1833_v55 = vrot.slane %v1831_v4, 5  ;;  %11445 = vmatprep.mubr.msk.bf16.mxu1 %vm2028_vm12, %v10319_v12  ;;  %v1818_v59 = vor.u32 %v1817_v5, %v1814_v44  ;;  %v668_v60 = vrot.slane %v663_v37, 4  ;;  %v1029_v61 = vsel %vm13114_vm9, %v658_v45, %v1028_v9  ;;  %v12602_v34 = vld [vmem:[#allocation2 + $0xac] sm:$0xf]  ;;  %v12603_v9 = vld [vmem:[#allocation2 + $0xb0] sm:$0x1] }
 0x16a   :  { %v1828_v54 = vor.u32 %v1827_v31, %v1823_v13  ;;  %v667_v1 = vsel %vm13105_vm8, %v659_v53, %v666_v57  ;;  %1030 = vst [vmem:[#allocation2 + $0x168] sm:$0xf] %v1029_v61  ;;  %v678_v33 = vshrl.u32 %v183_v48, 16  ;;  %v681_v22 = vshll.u32 %v183_v48, 16 }
 0x16b   :  { %v1819_v46 = vrot.slane %v1818_v59, 4  ;;  %1031 = vst.msk [vmem:[#allocation2 + $0x16c] sm:$0xf] %vm16_vm1, %v667_v1  ;;  %v1033_v19 = vsel %vm13120_vm10, %v668_v60, %v1032_v41  ;;  %v675_v2 = vor.u32 %v673_v38, %v672_v62  ;;  %v676_v10 = vrot.slane %v672_v62, 4  ;;  %v1042_v60 = vld [vmem:[#allocation2 + $0x180] sm:$0xf] }
 0x16c   :  { %v1829_v0 = vrot.slane %v1828_v54, 4  ;;  %1034 = vst [vmem:[#allocation2 + $0x170] sm:$0x1] %v1033_v19  ;;  %v680_v11 = vrot.slane %v678_v33, 7  ;;  %v10657_v20 = vrot.slane %v5940_v26, 9  ;;  %v6142_v14 = vrot.slane %v12600_v8, 5 }
 0x16d   :  { %v1824_v27 = vsel %vm13135_vm11, %v1819_v46, %v1823_v13  ;;  %v1036_v7 = vsel %vm13114_vm9, %v675_v2, %v1035_v58  ;;  %v6145_v29 = vrot.slane %v12601_v24, 5  ;;  %v10658_v16 = vrot.slane %v5941_v50, 9  ;;  %v1046_v8 = vld [vmem:[#allocation2 + $0x188] sm:$0x1] }
 0x16e   :  { %v1834_v49 = vsel %vm13135_vm11, %v1829_v0, %v1833_v55  ;;  %v683_v63 = vor.u32 %v681_v22, %v680_v11  ;;  %v685_v21 = vrot.slane %v680_v11, 4  ;;  %1037 = vst [vmem:[#allocation2 + $0x174] sm:$0xf] %v1036_v7  ;;  %v6143_v23 = vsel %vm13595_vm15, %v10657_v20, %v6142_v14 }
 0x16f   :  { %v10320_v32 = vcombine.low %v1824_v27, %v1834_v49  ;;  %v6144_v6 = vrot.slane %v6142_v14, 4  ;;  %v6149_v37 = vrot.slane %v12602_v34, 5  ;;  %v6152_v38 = vrot.slane %v12603_v9, 5  ;;  %v186_v14 = vld [vmem:[%s15996_s0 + $0xf0] sm:$0xf] }
 0x170   :  { %v684_v39 = vsel %vm13105_vm8, %v676_v10, %v683_v63  ;;  %v1040_v40 = vsel %vm13120_vm10, %v685_v21, %v1039_v28  ;;  %v687_v42 = vshrl.u32 %v184_v18, 16  ;;  %v690_v43 = vshll.u32 %v184_v18, 16  ;;  %v187_v63 = vld [vmem:[%s15996_s0 + $0xf4] sm:$0xf] }
 0x171   :  { %11446 = vmatmul.mubr.msk.bf16.gmra.mrb[52].mxu1 %vm2028_vm12, %v10320_v32  ;;  %v13929_v45 = vld [vmem:[#allocation2 + $0x168] sm:$0xf]  ;;  %1038 = vst.msk [vmem:[#allocation2 + $0x178] sm:$0xf] %vm16_vm1, %v684_v39  ;;  %1041 = vst [vmem:[#allocation2 + $0x17c] sm:$0x1] %v1040_v40  ;;  %v6146_v48 = vsel %vm13595_vm15, %v6144_v6, %v6145_v29  ;;  %v6150_v35 = vsel %vm13595_vm15, %v10658_v16, %v6149_v37 }
 0x172   :  { %v6151_v51 = vrot.slane %v6149_v37, 4  ;;  %v695_v52 = vshrl.u32 %v13922_v30, 16  ;;  %v13937_v4 = vld [vmem:[#allocation2 + $0x16c] sm:$0xf]  ;;  %v1836_v41 = vshrl.u32 %v13929_v45, 16  ;;  %v1839_v12 = vshll.u32 %v13929_v45, 16 }
 0x173   :  { %v10689_v44 = vcombine.low %v6143_v23, %v6146_v48  ;;  %v689_v5 = vrot.slane %v687_v42, 7  ;;  %v1156_v53 = vld [vmem:[#allocation2 + $0x170] sm:$0x1]  ;;  %v1845_v26 = vshll.u32 %v13937_v4, 16  ;;  %v1849_v13 = vshrl.u32 %v13937_v4, 16 }
 0x174   :  { %v6153_v31 = vsel %vm13595_vm15, %v6151_v51, %v6152_v38  ;;  %v697_v55 = vrot.slane %v695_v52, 7  ;;  %v1838_v57 = vrot.slane %v1836_v41, 4  ;;  %v1841_v58 = vrot.slane %v1839_v12, 5  ;;  %v5942_v6 = vld [vmem:[#allocation2 + $0xb4] sm:$0xe] }
 0x175   :  { %v1855_v50 = vshll.u32 %v1156_v53, 16  ;;  %11747 = vmatprep.mubr.msk.bf16.mxu0 %vm2028_vm12, %v10689_v44  ;;  %v10690_v59 = vcombine.low %v6150_v35, %v6153_v31  ;;  %v1847_v61 = vrot.slane %v1845_v26, 5  ;;  %v1851_v62 = vrot.slane %v1849_v13, 4  ;;  %v13946_v54 = vld [vmem:[#allocation2 + $0x174] sm:$0xf] }
 0x176   :  { %v692_v1 = vor.u32 %v690_v43, %v689_v5  ;;  %v693_v33 = vrot.slane %v689_v5, 4  ;;  %v1842_v22 = vor.u32 %v1841_v58, %v1838_v57  ;;  %v1860_v19 = vshrl.u32 %v13946_v54, 16  ;;  %v1049_v41 = vld [vmem:[#allocation2 + $0x18c] sm:$0xf]  ;;  %v1053_v5 = vld [vmem:[#allocation2 + $0x194] sm:$0x1] }
 0x177   :  { %v1857_v46 = vrot.slane %v1855_v50, 5  ;;  %v1863_v2 = vshll.u32 %v13946_v54, 16  ;;  %11748 = vmatmul.mubr.msk.bf16.gmra.mrb[24].mxu0 %vm2028_vm12, %v10690_v59  ;;  %v1852_v10 = vor.u32 %v1851_v62, %v1847_v61  ;;  %v698_v0 = vshll.u32 %v13922_v30, 16  ;;  %v12604_v57 = vld [vmem:[#allocation2 + $0xb8] sm:$0xf] }
 0x178   :  { %v702_v11 = vrot.slane %v697_v55, 4  ;;  %v1043_v20 = vsel %vm13114_vm9, %v692_v1, %v1042_v60  ;;  %v1843_v27 = vrot.slane %v1842_v22, 4  ;;  %v13957_v7 = vld [vmem:[#allocation2 + $0x178] sm:$0xf]  ;;  %v1157_v28 = vld [vmem:[#allocation2 + $0x17c] sm:$0x1] }
 0x179   :  { %v1862_v24 = vrot.slane %v1860_v19, 4  ;;  %1044 = vst [vmem:[#allocation2 + $0x180] sm:$0xf] %v1043_v20  ;;  %v1853_v29 = vrot.slane %v1852_v10, 4  ;;  %v1865_v16 = vrot.slane %v1863_v2, 5  ;;  %v1869_v18 = vshll.u32 %v13957_v7, 16 }
 0x17a   :  { %v1873_v49 = vshrl.u32 %v13957_v7, 16  ;;  %v1848_v21 = vsel %vm13135_vm11, %v1843_v27, %v1847_v61  ;;  %v1879_v23 = vshll.u32 %v1157_v28, 16  ;;  %v700_v30 = vor.u32 %v698_v0, %v697_v55  ;;  %v5943_v62 = vld [vmem:[#allocation2 + $0xc0] sm:$0xe] }
 0x17b   :  { %v1047_v32 = vsel %vm13120_vm10, %v702_v11, %v1046_v8  ;;  %v1858_v34 = vsel %vm13135_vm11, %v1853_v29, %v1857_v46  ;;  %v1866_v37 = vor.u32 %v1865_v16, %v1862_v24  ;;  %v1871_v9 = vrot.slane %v1869_v18, 5  ;;  %v12605_v46 = vld [vmem:[#allocation2 + $0xbc] sm:$0x1]  ;;  %v4564_v8 = vld [vmem:[#allocation2 + $0xe8] sm:$0xf] }
 0x17c   :  { %v1875_v38 = vrot.slane %v1873_v49, 4  ;;  %1048 = vst [vmem:[#allocation2 + $0x188] sm:$0x1] %v1047_v32  ;;  %v10321_v39 = vcombine.low %v1848_v21, %v1858_v34  ;;  %v1881_v40 = vrot.slane %v1879_v23, 5  ;;  %v701_v42 = vsel %vm13105_vm8, %v693_v33, %v700_v30  ;;  %v5944_v29 = vld [vmem:[#allocation2 + $0xe4] sm:$0xe] }
 0x17d   :  { %v704_v43 = vshrl.u32 %v186_v14, 16  ;;  %v1867_v48 = vrot.slane %v1866_v37, 4  ;;  %1045 = vst.msk [vmem:[#allocation2 + $0x184] sm:$0xf] %vm16_vm1, %v701_v42  ;;  %v707_v51 = vshll.u32 %v186_v14, 16  ;;  %v712_v52 = vshrl.u32 %v187_v63, 16 }
 0x17e   :  { %v1876_v35 = vor.u32 %v1875_v38, %v1871_v9  ;;  %11449 = vmatprep.mubr.msk.bf16.mxu1 %vm2028_vm12, %v10321_v39  ;;  %v715_v44 = vshll.u32 %v187_v63, 16  ;;  %v10659_v53 = vrot.slane %v5942_v6, 9  ;;  %v6156_v58 = vrot.slane %v12604_v57, 5  ;;  %v12606_v63 = vld [vmem:[#allocation2 + $0xc4] sm:$0xf] }
 0x17f   :  { %v706_v12 = vrot.slane %v704_v43, 7  ;;  %v1872_v26 = vsel %vm13135_vm11, %v1867_v48, %v1871_v9  ;;  %v714_v55 = vrot.slane %v712_v52, 7  ;;  %v6159_v19 = vrot.slane %v12605_v46, 5  ;;  %v12607_v23 = vld [vmem:[#allocation2 + $0xc8] sm:$0x1] }
 0x180   :  { %v1877_v13 = vrot.slane %v1876_v35, 4  ;;  %v13976_v31 = vld [vmem:[#allocation2 + $0x180] sm:$0xf]  ;;  %v6157_v28 = vsel %vm13595_vm15, %v10659_v53, %v6156_v58  ;;  %v6158_v24 = vrot.slane %v6156_v58, 4  ;;  %v10660_v49 = vrot.slane %v5943_v62, 9 }
 0x181   :  { %v1884_v50 = vshrl.u32 %v13976_v31, 16  ;;  %v1887_v59 = vshll.u32 %v13976_v31, 16  ;;  %v709_v60 = vor.u32 %v707_v51, %v706_v12  ;;  %v710_v61 = vrot.slane %v706_v12, 4  ;;  %v4565_v42 = vld [vmem:[#allocation2 + $0xec] sm:$0x1] }
 0x182   :  { %v1882_v1 = vsel %vm13135_vm11, %v1877_v13, %v1881_v40  ;;  %v717_v33 = vor.u32 %v715_v44, %v714_v55  ;;  %v719_v22 = vrot.slane %v714_v55, 4  ;;  %v6163_v21 = vrot.slane %v12606_v63, 5  ;;  %v5945_v46 = vld [vmem:[#allocation2 + $0xf0] sm:$0xe] }
 0x183   :  { %v10322_v2 = vcombine.low %v1872_v26, %v1882_v1  ;;  %v1158_v10 = vld [vmem:[#allocation2 + $0x188] sm:$0x1]  ;;  %v1886_v0 = vrot.slane %v1884_v50, 4  ;;  %v1889_v11 = vrot.slane %v1887_v59, 5  ;;  %v1050_v20 = vsel %vm13114_vm9, %v709_v60, %v1049_v41  ;;  %v14013_v60 = vld [vmem:[#allocation2 + $0xf4] sm:$0xf] }
 0x184   :  { %v718_v14 = vsel %vm13105_vm8, %v710_v61, %v717_v33  ;;  %1051 = vst [vmem:[#allocation2 + $0x18c] sm:$0xf] %v1050_v20  ;;  %v1054_v27 = vsel %vm13120_vm10, %v719_v22, %v1053_v5  ;;  %v13991_v16 = vld [vmem:[#allocation2 + $0x184] sm:$0xf]  ;;  %v6166_v30 = vrot.slane %v12607_v23, 5  ;;  %v1903_v34 = vshll.u32 %v1158_v10, 16 }
 0x185   :  { %11450 = vmatmul.mubr.msk.bf16.gmra.mrb[56].mxu1 %vm2028_vm12, %v10322_v2  ;;  %v1890_v18 = vor.u32 %v1889_v11, %v1886_v0  ;;  %1052 = vst.msk [vmem:[#allocation2 + $0x190] sm:$0xf] %vm16_vm1, %v718_v14  ;;  %1055 = vst [vmem:[#allocation2 + $0x194] sm:$0x1] %v1054_v27  ;;  %v1893_v32 = vshll.u32 %v13991_v16, 16  ;;  %v1897_v6 = vshrl.u32 %v13991_v16, 16  ;;  %v6160_v37 = vsel %vm13595_vm15, %v6158_v24, %v6159_v19 }
 0x186   :  { %v10691_v38 = vcombine.low %v6157_v28, %v6160_v37  ;;  %v6164_v39 = vsel %vm13595_vm15, %v10660_v49, %v6163_v21  ;;  %v6165_v40 = vrot.slane %v6163_v21, 4  ;;  %v10661_v35 = vrot.slane %v5944_v29, 9  ;;  %v14018_v22 = vld [vmem:[#allocation2 + $0xf8] sm:$0x1]  ;;  %v4570_v0 = vld [vmem:[#allocation2 + $0x100] sm:$0xf] }
 0x187   :  { %v1891_v9 = vrot.slane %v1890_v18, 4  ;;  %v1895_v43 = vrot.slane %v1893_v32, 5  ;;  %v1899_v48 = vrot.slane %v1897_v6, 4  ;;  %v6170_v51 = vrot.slane %v4564_v8, 5  ;;  %v5946_v11 = vld [vmem:[#allocation2 + $0xfc] sm:$0xe] }
 0x188   :  { %11751 = vmatprep.mubr.msk.bf16.mxu0 %vm2028_vm12, %v10691_v38  ;;  %v6167_v52 = vsel %vm13595_vm15, %v6165_v40, %v6166_v30  ;;  %v1905_v12 = vrot.slane %v1903_v34, 5  ;;  %v6173_v5 = vrot.slane %v4565_v42, 5  ;;  %v4571_v28 = vld [vmem:[#allocation2 + $0x104] sm:$0x1]  ;;  %v5947_v24 = vld [vmem:[#allocation2 + $0x108] sm:$0xe] }
 0x189   :  { %v1900_v41 = vor.u32 %v1899_v48, %v1895_v43  ;;  %v10692_v44 = vcombine.low %v6164_v39, %v6167_v52  ;;  %v6172_v26 = vrot.slane %v6170_v51, 4  ;;  %v1896_v13 = vsel %vm13135_vm11, %v1891_v9, %v1895_v43  ;;  %v12608_v30 = vld [vmem:[#allocation2] sm:$0xf]  ;;  %v14026_v32 = vld [vmem:[#allocation2 + $0x4] sm:$0xf] }
 0x18a   :  { %v6171_v59 = vsel %vm13595_vm15, %v10661_v35, %v6170_v51  ;;  %v10662_v21 = vrot.slane %v5945_v46, 9  ;;  %v6177_v23 = vrot.slane %v14013_v60, 5  ;;  %v10357_v6 = vcombine.low %v12608_v30, %v14026_v32  ;;  %v4573_v38 = vld [vmem:[#allocation2 + $0x10c] sm:$0xf]  ;;  %v4574_v48 = vld [vmem:[#allocation2 + $0x110] sm:$0x1] }
 0x18b   :  { %v14003_v53 = vld [vmem:[#allocation2 + $0x18c] sm:$0xf]  ;;  %v1901_v55 = vrot.slane %v1900_v41, 4  ;;  %11752 = vmatmul.mubr.msk.bf16.gmra.mrb[28].mxu0 %vm2028_vm12, %v10692_v44  ;;  %v6174_v10 = vsel %vm13595_vm15, %v6172_v26, %v6173_v5  ;;  %v6180_v34 = vrot.slane %v14018_v22, 5  ;;  %v10663_v37 = vrot.slane %v5946_v11, 9 }
 0x18c   :  { %v14007_v57 = vld [vmem:[#allocation2 + $0x190] sm:$0xf]  ;;  %v1159_v58 = vld [vmem:[#allocation2 + $0x194] sm:$0x1]  ;;  %v1908_v50 = vshrl.u32 %v14003_v53, 16  ;;  %v1911_v61 = vshll.u32 %v14003_v53, 16  ;;  %v10693_v18 = vcombine.low %v6171_v59, %v6174_v10  ;;  %v6178_v42 = vsel %vm13595_vm15, %v10662_v21, %v6177_v23 }
 0x18d   :  { %v1917_v62 = vshll.u32 %v14007_v57, 16  ;;  %v1921_v1 = vshrl.u32 %v14007_v57, 16  ;;  %v1927_v33 = vshll.u32 %v1159_v58, 16  ;;  %v1906_v19 = vsel %vm13135_vm11, %v1901_v55, %v1905_v12  ;;  %v5948_v12 = vld [vmem:[#allocation2 + $0x114] sm:$0xe] }
 0x18e   :  { %v1910_v2 = vrot.slane %v1908_v50, 4  ;;  %v10323_v20 = vcombine.low %v1896_v13, %v1906_v19  ;;  %v1913_v8 = vrot.slane %v1911_v61, 5  ;;  %11755 = vmatprep.mubr.msk.bf16.mxu0 %vm2028_vm12, %v10693_v18  ;;  %v6184_v9 = vrot.slane %v4570_v0, 5  ;;  %v4576_v55 = vld [vmem:[#allocation2 + $0x118] sm:$0xf] }
 0x18f   :  { %v1919_v14 = vrot.slane %v1917_v62, 5  ;;  %v1923_v27 = vrot.slane %v1921_v1, 4  ;;  %v1929_v29 = vrot.slane %v1927_v33, 5  ;;  %v6179_v43 = vrot.slane %v6177_v23, 4  ;;  %v4577_v58 = vld [vmem:[#allocation2 + $0x11c] sm:$0x1] }
 0x190   :  { %11453 = vmatprep.mubr.msk.bf16.mxu1 %vm2028_vm12, %v10323_v20  ;;  %v1914_v49 = vor.u32 %v1913_v8, %v1910_v2  ;;  %v6185_v35 = vsel %vm13595_vm15, %v10663_v37, %v6184_v9  ;;  %v6186_v51 = vrot.slane %v6184_v9, 4  ;;  %v6187_v52 = vrot.slane %v4571_v28, 5  ;;  %v4579_v1 = vld [vmem:[#allocation2 + $0x124] sm:$0xf]  ;;  %v4582_v0 = vld [vmem:[#allocation2 + $0x130] sm:$0xf] }
 0x191   :  { %v1924_v63 = vor.u32 %v1923_v27, %v1919_v14  ;;  %v10664_v41 = vrot.slane %v5947_v24, 9  ;;  %v6181_v26 = vsel %vm13595_vm15, %v6179_v43, %v6180_v34  ;;  %v6191_v13 = vrot.slane %v4573_v38, 5  ;;  %v4580_v27 = vld [vmem:[#allocation2 + $0x128] sm:$0x1]  ;;  %v5949_v28 = vld [vmem:[#allocation2 + $0x120] sm:$0xe] }
 0x192   :  { %v1915_v39 = vrot.slane %v1914_v49, 4  ;;  %v10694_v59 = vcombine.low %v6178_v42, %v6181_v26  ;;  %v6188_v61 = vsel %vm13595_vm15, %v6186_v51, %v6187_v52  ;;  %v6194_v62 = vrot.slane %v4574_v48, 5  ;;  %v5950_v18 = vld [vmem:[#allocation2 + $0x12c] sm:$0xe]  ;;  %v14053_v21 = vld [vmem:[#allocation2 + $0x10] sm:$0xf] }
 0x193   :  { %v1925_v40 = vrot.slane %v1924_v63, 4  ;;  %v10695_v33 = vcombine.low %v6185_v35, %v6188_v61  ;;  %v6193_v46 = vrot.slane %v6191_v13, 4  ;;  %v10665_v19 = vrot.slane %v5948_v12, 9  ;;  %v12610_v63 = vld [vmem:[#allocation2 + $0xc] sm:$0xf] }
 0x194   :  { %v1920_v44 = vsel %vm13135_vm11, %v1915_v39, %v1919_v14  ;;  %11756 = vmatmul.mubr.msk.bf16.gmra.mrb[32].mxu0 %vm2028_vm12, %v10694_v59  ;;  %v6198_v2 = vrot.slane %v4576_v55, 5  ;;  %v6201_v10 = vrot.slane %v4577_v58, 5  ;;  %v6192_v11 = vsel %vm13595_vm15, %v10664_v41, %v6191_v13  ;;  %v12612_v30 = vld [vmem:[#allocation2 + $0x18] sm:$0xf]  ;;  %v12614_v38 = vld [vmem:[%s15997_s1 + $0x8] sm:$0xf] }
 0x195   :  { %v1930_v5 = vsel %vm13135_vm11, %v1925_v40, %v1929_v29  ;;  %11759 = vmatprep.mubr.msk.bf16.mxu0 %vm2028_vm12, %v10695_v33  ;;  %v6195_v20 = vsel %vm13595_vm15, %v6193_v46, %v6194_v62  ;;  %v6205_v8 = vrot.slane %v4579_v1, 5  ;;  %v4583_v29 = vld [vmem:[#allocation2 + $0x134] sm:$0x1]  ;;  %v6212_v49 = vrot.slane %v4582_v0, 5  ;;  %v4585_v41 = vld [vmem:[#allocation2 + $0x13c] sm:$0xf] }
 0x196   :  { %v10324_v50 = vcombine.low %v1920_v44, %v1930_v5  ;;  %v6200_v14 = vrot.slane %v6198_v2, 4  ;;  %v6199_v24 = vsel %vm13595_vm15, %v10665_v19, %v6198_v2  ;;  %v10358_v23 = vcombine.low %v12610_v63, %v14053_v21  ;;  %v4588_v12 = vld [vmem:[#allocation2 + $0x148] sm:$0xf]  ;;  %v14070_v44 = vld [vmem:[%s15997_s1 + $0xc] sm:$0xf] }
 0x197   :  { %v10696_v37 = vcombine.low %v6192_v11, %v6195_v20  ;;  %v3483_v39 = vsel %vm2125_vm0, %v12614_v38, 0  ;;  %v10666_v40 = vrot.slane %v5949_v28, 9  ;;  %v6207_v42 = vrot.slane %v6205_v8, 4  ;;  %v5951_v59 = vld [vmem:[#allocation2 + $0x138] sm:$0xe] }
 0x198   :  { %11454 = vmatmul.mubr.msk.bf16.gmra.mrb[60].mxu1 %vm2028_vm12, %v10324_v50  ;;  %v6202_v9 = vsel %vm13595_vm15, %v6200_v14, %v6201_v10  ;;  %v6208_v43 = vrot.slane %v4580_v27, 5  ;;  %v10667_v35 = vrot.slane %v5950_v18, 9  ;;  %v6214_v51 = vrot.slane %v6212_v49, 4  ;;  %v4586_v50 = vld [vmem:[#allocation2 + $0x140] sm:$0x1] }
 0x199   :  { %11459 = vmatprep.mubr.msk.bf16.mxu1 %vm2028_vm12, %v10357_v6  ;;  %v14056_v6 = vld [vmem:[#allocation2 + $0x1c] sm:$0xf]  ;;  %v10697_v48 = vcombine.low %v6199_v24, %v6202_v9  ;;  %v6215_v52 = vrot.slane %v4583_v29, 5  ;;  %v6206_v5 = vsel %vm13595_vm15, %v10666_v40, %v6205_v8  ;;  %v6219_v13 = vrot.slane %v4585_v41, 5  ;;  %v4589_v62 = vld [vmem:[#allocation2 + $0x14c] sm:$0x1] }
 0x19a   :  { %v10359_v34 = vcombine.low %v12612_v30, %v14056_v6  ;;  %v6209_v26 = vsel %vm13595_vm15, %v6207_v42, %v6208_v43  ;;  %v6213_v55 = vsel %vm13595_vm15, %v10667_v35, %v6212_v49  ;;  %v6226_v61 = vrot.slane %v4588_v12, 5  ;;  %v5952_v1 = vld [vmem:[#allocation2 + $0x144] sm:$0xe]  ;;  %v14084_v46 = vld [vmem:[#allocation2 + $0x28] sm:$0xf] }
 0x19b   :  { %v6216_v58 = vsel %vm13595_vm15, %v6214_v51, %v6215_v52  ;;  %v12615_v33 = vld [vmem:[#allocation2 + $0x24] sm:$0xf]  ;;  %v12617_v2 = vld [vmem:[#allocation2 + $0x30] sm:$0xf]  ;;  %v14087_v10 = vld [vmem:[#allocation2 + $0x34] sm:$0xf]  ;;  %v10698_v11 = vcombine.low %v6206_v5, %v6209_v26 }
 0x19c   :  { %11760 = vmatmul.mubr.msk.bf16.gmra.mrb[36].mxu0 %vm2028_vm12, %v10696_v37  ;;  %v10360_v19 = vcombine.low %v12615_v33, %v14084_v46  ;;  %v10361_v0 = vcombine.low %v12617_v2, %v14087_v10  ;;  %v10699_v20 = vcombine.low %v6213_v55, %v6216_v58  ;;  %v10668_v8 = vrot.slane %v5951_v59, 9  ;;  %v4591_v18 = vld [vmem:[#allocation2 + $0x154] sm:$0xf]  ;;  %v4594_v49 = vld [vmem:[#allocation2 + $0x160] sm:$0xf] }
 0x19d   :  { %11763 = vmatprep.mubr.msk.bf16.mxu0 %vm2028_vm12, %v10697_v48  ;;  %v6221_v14 = vrot.slane %v6219_v13, 4  ;;  %v6222_v27 = vrot.slane %v4586_v50, 5  ;;  %v10669_v28 = vrot.slane %v5952_v1, 9  ;;  %v6228_v24 = vrot.slane %v6226_v61, 4  ;;  %v5953_v63 = vld [vmem:[#allocation2 + $0x150] sm:$0xe] }
 0x19e   :  { %v6229_v29 = vrot.slane %v4589_v62, 5  ;;  %v6233_v37 = vrot.slane %v4591_v18, 5  ;;  %v188_v9 = vld [vmem:[%s15996_s0 + $0xf8] sm:$0xf]  ;;  %v5954_v40 = vld [vmem:[#allocation2 + $0x15c] sm:$0xe] }
 0x19f   :  { %v6223_v30 = vsel %vm13595_vm15, %v6221_v14, %v6222_v27  ;;  %v6227_v38 = vsel %vm13595_vm15, %v10669_v28, %v6226_v61  ;;  %v6240_v42 = vrot.slane %v4594_v49, 5  ;;  %v189_v43 = vld [vmem:[%s15996_s0 + $0xfc] sm:$0xf]  ;;  %v14108_v35 = vld [vmem:[#allocation2 + $0x40] sm:$0xf]  ;;  %v10670_v5 = vrot.slane %v5953_v63, 9 }
 0x1a0   :  { %11460 = vmatmul.mubr.msk.bf16.vlgmr.msra.gmra.mrb[0].mxu1 %vm2028_vm12, %v10358_v23  ;;  %v6220_v23 = vsel %vm13595_vm15, %v10668_v8, %v6219_v13  ;;  %v12619_v48 = vld [vmem:[#allocation2 + $0x3c] sm:$0xf]  ;;  %v12621_v52 = vld [vmem:[#allocation2 + $0x48] sm:$0xf]  ;;  %v14111_v41 = vld [vmem:[#allocation2 + $0x4c] sm:$0xf] }
 0x1a1   :  { %11524 = vmatpush3.bf16.msra.mxu1 %v3483_v39  ;;  %11463 = vmatprep.mubr.msk.bf16.mxu1 %vm2028_vm12, %v10359_v34  ;;  %v4592_v34 = vld [vmem:[#allocation2 + $0x158] sm:$0x1]  ;;  %v6230_v39 = vsel %vm13595_vm15, %v6228_v24, %v6229_v29  ;;  %v10362_v51 = vcombine.low %v12619_v48, %v14108_v35  ;;  %v10363_v12 = vcombine.low %v12621_v52, %v14111_v41  ;;  %v4595_v26 = vld [vmem:[#allocation2 + $0x164] sm:$0x1]  ;;  %v721_v58 = vshrl.u32 %v188_v9, 16 }
 0x1a2   :  { %12502 = vmatprep.subr.msk.bf16.mxu1 %vm2125_vm0, %v14070_v44  ;;  %v10700_v13 = vcombine.low %v6220_v23, %v6223_v30  ;;  %v6236_v55 = vrot.slane %v4592_v34, 5  ;;  %v724_v50 = vshll.u32 %v188_v9, 16  ;;  %v10701_v59 = vcombine.low %v6227_v38, %v6230_v39  ;;  %v4597_v2 = vld [vmem:[#allocation2 + $0x16c] sm:$0xf]  ;;  %v1056_v14 = vld [vmem:[#allocation2 + $0x198] sm:$0xf] }
 0x1a3   :  { %v6235_v61 = vrot.slane %v6233_v37, 4  ;;  %v10671_v62 = vrot.slane %v5954_v40, 9  ;;  %v729_v1 = vshrl.u32 %v189_v43, 16  ;;  %v6242_v33 = vrot.slane %v6240_v42, 4  ;;  %v1060_v29 = vld [vmem:[#allocation2 + $0x1a0] sm:$0x1] }
 0x1a4   :  { %11764 = vmatmul.mubr.msk.bf16.gmra.mrb[40].mxu0 %vm2028_vm12, %v10698_v11  ;;  %v732_v11 = vshll.u32 %v189_v43, 16  ;;  %v6234_v27 = vsel %vm13595_vm15, %v10670_v5, %v6233_v37  ;;  %v6247_v49 = vrot.slane %v4597_v2, 5  ;;  %v4598_v37 = vld [vmem:[#allocation2 + $0x170] sm:$0x1]  ;;  %v5955_v9 = vld [vmem:[#allocation2 + $0x168] sm:$0xe] }
 0x1a5   :  { %11767 = vmatprep.mubr.msk.bf16.mxu0 %vm2028_vm12, %v10699_v20  ;;  %v4600_v20 = vld [vmem:[#allocation2 + $0x178] sm:$0xf]  ;;  %v731_v8 = vrot.slane %v729_v1, 7  ;;  %v6237_v18 = vsel %vm13595_vm15, %v6235_v61, %v6236_v55  ;;  %v6241_v30 = vsel %vm13595_vm15, %v10671_v62, %v6240_v42  ;;  %v4601_v40 = vld [vmem:[#allocation2 + $0x17c] sm:$0x1]  ;;  %v10672_v55 = vrot.slane %v5955_v9, 9 }
 0x1a6   :  { %v6254_v38 = vrot.slane %v4600_v20, 5  ;;  %v5956_v43 = vld [vmem:[#allocation2 + $0x174] sm:$0xe]  ;;  %v14132_v42 = vld [vmem:[#allocation2 + $0x58] sm:$0xf]  ;;  %v6257_v61 = vrot.slane %v4601_v40, 5 }
 0x1a7   :  { %v734_v63 = vor.u32 %v732_v11, %v731_v8  ;;  %v736_v23 = vrot.slane %v731_v8, 4  ;;  %v12623_v52 = vld [vmem:[#allocation2 + $0x54] sm:$0xf]  ;;  %v12625_v5 = vld [vmem:[#allocation2 + $0x60] sm:$0xf]  ;;  %v10673_v36 = vrot.slane %v5956_v43, 9 }
 0x1a8   :  { %11464 = vmatmul.mubr.msk.bf16.gmra.mrb[4].mxu1 %vm2028_vm12, %v10360_v19  ;;  %v6243_v19 = vrot.slane %v4595_v26, 5  ;;  %v14135_v26 = vld [vmem:[#allocation2 + $0x64] sm:$0xf]  ;;  %v4606_v1 = vld [vmem:[#allocation2 + $0x190] sm:$0xf] }
 0x1a9   :  { %11467 = vmatprep.mubr.msk.bf16.mxu1 %vm2028_vm12, %v10361_v0  ;;  %v723_v0 = vrot.slane %v721_v58, 7  ;;  %v10365_v25 = vcombine.low %v12625_v5, %v14135_v26  ;;  %v6249_v58 = vrot.slane %v6247_v49, 4  ;;  %v4603_v62 = vld [vmem:[#allocation2 + $0x184] sm:$0xf]  ;;  %v4604_v2 = vld [vmem:[#allocation2 + $0x188] sm:$0x1]  ;;  %v6255_v20 = vsel %vm13595_vm15, %v10673_v36, %v6254_v38 }
 0x1aa   :  { %v6244_v34 = vsel %vm13595_vm15, %v6242_v33, %v6243_v19  ;;  %v6248_v33 = vsel %vm13595_vm15, %v10672_v55, %v6247_v49  ;;  %v6261_v11 = vrot.slane %v4603_v62, 5  ;;  %v12629_v49 = vld [vmem:[#allocation2 + $0x78] sm:$0xf]  ;;  %v12631_v55 = vld [vmem:[#allocation2 + $0x84] sm:$0xf] }
 0x1ab   :  { %v726_v28 = vor.u32 %v724_v50, %v723_v0  ;;  %v727_v24 = vrot.slane %v723_v0, 4  ;;  %v10703_v17 = vcombine.low %v6241_v30, %v6244_v34  ;;  %v6250_v50 = vrot.slane %v4598_v37, 5  ;;  %v5957_v0 = vld [vmem:[#allocation2 + $0x180] sm:$0xe]  ;;  %v12633_v36 = vld [vmem:[#allocation2 + $0x90] sm:$0xf] }
 0x1ac   :  { %11768 = vmatmul.mubr.msk.bf16.gmra.mrb[44].mxu0 %vm2028_vm12, %v10700_v13  ;;  %v10702_v13 = vcombine.low %v6234_v27, %v6237_v18  ;;  %v6268_v27 = vrot.slane %v4606_v1, 5  ;;  %v10674_v34 = vrot.slane %v5957_v0, 9  ;;  %v6263_v9 = vrot.slane %v6261_v11, 4 }
 0x1ad   :  { %11771 = vmatprep.mubr.msk.bf16.mxu0 %vm2028_vm12, %v10701_v59  ;;  %v1057_v39 = vsel %vm13114_vm9, %v726_v28, %v1056_v14  ;;  %v735_v48 = vsel %vm13105_vm8, %v727_v24, %v734_v63  ;;  %v6256_v59 = vrot.slane %v6254_v38, 4  ;;  %v6251_v19 = vsel %vm13595_vm15, %v6249_v58, %v6250_v50  ;;  %v5958_v14 = vld [vmem:[#allocation2 + $0x18c] sm:$0xe]  ;;  %v4607_v28 = vld [vmem:[#allocation2 + $0x194] sm:$0x1] }
 0x1ae   :  { %1058 = vst [vmem:[#allocation2 + $0x198] sm:$0xf] %v1057_v39  ;;  %1059 = vst.msk [vmem:[#allocation2 + $0x19c] sm:$0xf] %vm16_vm1, %v735_v48  ;;  %v12627_v24 = vld [vmem:[#allocation2 + $0x6c] sm:$0xf]  ;;  %v10704_v30 = vcombine.low %v6248_v33, %v6251_v19 }
 0x1af   :  { %v6258_v8 = vsel %vm13595_vm15, %v6256_v59, %v6257_v61  ;;  %v14154_v63 = vld [vmem:[#allocation2 + $0x7c] sm:$0xf]  ;;  %v6264_v38 = vrot.slane %v4604_v2, 5  ;;  %v10675_v39 = vrot.slane %v5958_v14, 9  ;;  %v6270_v40 = vrot.slane %v6268_v27, 4 }
 0x1b0   :  { %11468 = vmatmul.mubr.msk.bf16.gmra.mrb[8].mxu1 %vm2028_vm12, %v10362_v51  ;;  %v1061_v51 = vsel %vm13120_vm10, %v736_v23, %v1060_v29  ;;  %v14151_v29 = vld [vmem:[#allocation2 + $0x70] sm:$0xf]  ;;  %v10367_v23 = vcombine.low %v12629_v49, %v14154_v63  ;;  %v10705_v37 = vcombine.low %v6255_v20, %v6258_v8  ;;  %v6271_v43 = vrot.slane %v4607_v28, 5  ;;  %v14169_v58 = vld [vmem:[#allocation2 + $0x88] sm:$0xf]  ;;  %v12513_v49 = vld [vmem:[#allocation2 + $0x18] sm:$0xff]  }
 0x1b1   :  { %11471 = vmatprep.mubr.msk.bf16.mxu1 %vm2028_vm12, %v10363_v12  ;;  %v10364_v12 = vcombine.low %v12623_v52, %v14132_v42  ;;  %1062 = vst [vmem:[#allocation2 + $0x1a0] sm:$0x1] %v1061_v51  ;;  %v10366_v18 = vcombine.low %v12627_v24, %v14151_v29  ;;  %v6262_v51 = vsel %vm13595_vm15, %v10674_v34, %v6261_v11  ;;  %v14172_v59 = vld [vmem:[#allocation2 + $0x94] sm:$0xf]  ;;  %v12635_v20 = vld [vmem:[#allocation2 + $0x9c] sm:$0xf] }
 0x1b2   :  { %v6265_v52 = vsel %vm13595_vm15, %v6263_v9, %v6264_v38  ;;  %v6269_v5 = vsel %vm13595_vm15, %v10675_v39, %v6268_v27  ;;  %v10368_v50 = vcombine.low %v12631_v55, %v14169_v58  ;;  %v10369_v61 = vcombine.low %v12633_v36, %v14172_v59  ;;  %v14183_v8 = vld [vmem:[#allocation2 + $0xa0] sm:$0xf]  ;;  %v12637_v28 = vld [vmem:[#allocation2 + $0xa8] sm:$0xf]  ;;  %v14186_v24 = vld [vmem:[#allocation2 + $0xac] sm:$0xf] }
 0x1b3   :  { %v10706_v62 = vcombine.low %v6262_v51, %v6265_v52  ;;  %v10370_v14 = vcombine.low %v12635_v20, %v14183_v8  ;;  %v12641_v9 = vld [vmem:[#allocation2 + $0xd8] sm:$0xf]  ;;  %v14196_v38 = vld [vmem:[#allocation2 + $0xdc] sm:$0xf]  ;;  %v14205_v51 = vld [vmem:[#allocation2 + $0xe8] sm:$0xf] }
 0x1b4   :  { %11772 = vmatmul.mubr.msk.bf16.gmra.mrb[48].mxu0 %vm2028_vm12, %v10702_v13  ;;  %v10373_v39 = vcombine.low %v12641_v9, %v14196_v38  ;;  %v12647_v55 = vld [vmem:[#allocation2 + $0xfc] sm:$0xf]  ;;  %v12520_v20 = vld [vmem:[#allocation2 + $0x6c] sm:$0xff]   ;;  %v5029_v9 = vshll.u32 %v14013_v60, 16 }
 0x1b5   :  { %11775 = vmatprep.mubr.msk.bf16.mxu0 %vm2028_vm12, %v10703_v17  ;;  %v4609_v48 = vld [vmem:[#allocation2 + $0x19c] sm:$0xf]  ;;  %v5959_v17 = vld [vmem:[#allocation2 + $0x198] sm:$0xe] }
 0x1b6   :  { %v10676_v33 = vrot.slane %v5959_v17, 9  ;;  %v14216_v17 = vld [vmem:[%s15997_s1 + $0x20] sm:$0xf] }
 0x1b8   :  { %11472 = vmatmul.mubr.msk.bf16.gmra.mrb[12].mxu1 %vm2028_vm12, %v10364_v12  ;;  %v6275_v12 = vrot.slane %v4609_v48, 5  ;;  %v4610_v13 = vld [vmem:[#allocation2 + $0x1a0] sm:$0x1]  ;;  %v12643_v48 = vld [vmem:[#allocation2 + $0xe4] sm:$0xf] }
 0x1b9   :  { %11475 = vmatprep.mubr.msk.bf16.mxu1 %vm2028_vm12, %v10365_v25  ;;  %v6272_v25 = vsel %vm13595_vm15, %v6270_v40, %v6271_v43  ;;  %v6278_v2 = vrot.slane %v4610_v13, 5  ;;  %v8565_v40 = vsel %vm2125_vm0, %v13881_v15, 0  ;;  %v12515_v43 = vld [vmem:[#allocation2 + $0x30] sm:$0xff]   ;;  %v10374_v52 = vcombine.low %v12643_v48, %v14205_v51  ;;  %v12517_v13 = vld [vmem:[#allocation2 + $0x48] sm:$0xff]  }
 0x1ba   :  { %v10707_v1 = vcombine.low %v6269_v5, %v6272_v25  ;;  %v6277_v19 = vrot.slane %v6275_v12, 4  ;;  %v6276_v0 = vsel %vm13595_vm15, %v10676_v33, %v6275_v12  ;;  %v12516_v12 = vld [vmem:[#allocation2 + $0x3c] sm:$0xff]   ;;  %v12645_v5 = vld [vmem:[#allocation2 + $0xf0] sm:$0xf]  ;;  %v14208_v25 = vld [vmem:[#allocation2 + $0xf4] sm:$0xf] }
 0x1bb   :  { %v10375_v15 = vcombine.low %v12645_v5, %v14208_v25  ;;  %v2966_v5 = vld [vmem:[#allocation2] sm:$0xe] }
 0x1bc   :  { %11776 = vmatmul.mubr.msk.bf16.gmra.mrb[52].mxu0 %vm2028_vm12, %v10704_v30  ;;  %v6279_v11 = vsel %vm13595_vm15, %v6277_v19, %v6278_v2  ;;  %v14193_v30 = vld [vmem:[#allocation2 + $0xb8] sm:$0xf]  ;;  %v12519_v19 = vld [vmem:[#allocation2 + $0x60] sm:$0xff]   ;;  %v12651_v2 = vld [vmem:[#allocation2 + $0x114] sm:$0xf] }
 0x1bd   :  { %11779 = vmatprep.mubr.msk.bf16.mxu0 %vm2028_vm12, %v10705_v37  ;;  %v10708_v27 = vcombine.low %v6276_v0, %v6279_v11  ;;  %v12514_v37 = vld [vmem:[#allocation2 + $0x24] sm:$0xff]   ;;  %v14232_v0 = vld [vmem:[#allocation2 + $0x118] sm:$0xf] }
 0x1be   :  { %v10378_v11 = vcombine.low %v12651_v2, %v14232_v0 }
 0x1c0   :  { %11476 = vmatmul.mubr.msk.bf16.gmra.mrb[16].mxu1 %vm2028_vm12, %v10366_v18  ;;  %v10371_v18 = vcombine.low %v12637_v28, %v14186_v24 }
 0x1c1   :  { %11479 = vmatprep.mubr.msk.bf16.mxu1 %vm2028_vm12, %v10367_v23  ;;  %v12639_v23 = vld [vmem:[#allocation2 + $0xb4] sm:$0xf] }
 0x1c2   :  { %v10372_v34 = vcombine.low %v12639_v23, %v14193_v30  ;;  %v14242_v23 = vld [vmem:[#allocation2 + $0x130] sm:$0xf] }
 0x1c3   :  { %16033 = vst [vmem:[#allocation8_spill] sm:$0xff] %v14242_v23 }
 0x1c4   :  { %11780 = vmatmul.mubr.msk.bf16.gmra.mrb[56].mxu0 %vm2028_vm12, %v10706_v62  ;;  %v12649_v62 = vld [vmem:[#allocation2 + $0x108] sm:$0xf] }
 0x1c5   :  { %11783 = vmatprep.mubr.msk.bf16.mxu0 %vm2028_vm12, %v10707_v1  ;;  %v14225_v1 = vld [vmem:[#allocation2 + $0x10c] sm:$0xf] }
 0x1c6   :  { %v10377_v33 = vcombine.low %v12649_v62, %v14225_v1  ;;  %v5039_v62 = vshll.u32 %v14018_v22, 16 }
 0x1c8   :  { %11480 = vmatmul.mubr.msk.bf16.gmra.mrb[20].mxu1 %vm2028_vm12, %v10368_v50  ;;  %v14222_v50 = vld [vmem:[#allocation2 + $0x100] sm:$0xf] }
 0x1c9   :  { %11483 = vmatprep.mubr.msk.bf16.mxu1 %vm2028_vm12, %v10369_v61  ;;  %v10376_v36 = vcombine.low %v12647_v55, %v14222_v50  ;;  %v12518_v61 = vld [vmem:[#allocation2 + $0x54] sm:$0xff]  }
 0x1ca   :  { %v2968_v55 = vld [vmem:[#allocation2 + $0x18] sm:$0xe] }
 0x1cc   :  { %11784 = vmatmul.mubr.msk.bf16.gmra.mrb[60].mxu0 %vm2028_vm12, %v10708_v27  ;;  %v14235_v27 = vld [vmem:[#allocation2 + $0x124] sm:$0xf] }
 0x1cd   :  { %11789 = vmatprep.mubr.msk.bf16.mxu0 %vm2028_vm12, %v12513_v49  ;;  %16032 = vst [vmem:[#allocation7_spill] sm:$0xff] %v14235_v27  ;;  %v12655_v49 = vld [vmem:[#allocation2 + $0x12c] sm:$0xf] }
 0x1d0   :  { %11484 = vmatmul.mubr.msk.bf16.gmra.mrb[24].mxu1 %vm2028_vm12, %v10370_v14  ;;  %v12653_v14 = vld [vmem:[#allocation2 + $0x120] sm:$0xf] }
 0x1d1   :  { %11487 = vmatprep.mubr.msk.bf16.mxu1 %vm2028_vm12, %v10371_v18  ;;  %v10379_v28 = vcombine.low %v12653_v14, %v14235_v27  ;;  %v12521_v18 = vld [vmem:[#allocation2 + $0x78] sm:$0xff]   ;;  %v10423_v14 = vrot.slane %v2968_v55, 9  ;;  %v12525_v55 = vld [vmem:[#allocation2 + $0xa8] sm:$0xff]  }
 0x1d4   :  { %11790 = vmatmul.mubr.msk.bf16.vlgmr.msra.gmra.mrb[0].mxu0 %vm2028_vm12, %v12514_v37  ;;  %v12522_v37 = vld [vmem:[#allocation2 + $0x84] sm:$0xff]  }
 0x1d5   :  { %11854 = vmatpush3.bf16.msra.mxu0 %v8565_v40  ;;  %11793 = vmatprep.mubr.msk.bf16.mxu0 %vm2028_vm12, %v12515_v43  ;;  %v12657_v40 = vld [vmem:[#allocation2 + $0x138] sm:$0xf]  ;;  %v14247_v43 = vld [vmem:[#allocation2 + $0x13c] sm:$0xf] }
 0x1d6   :  { %12508 = vmatprep.subr.msk.bf16.mxu0 %vm2125_vm0, %v14216_v17  ;;  %16034 = vst [vmem:[#allocation9_spill] sm:$0xff] %v14247_v43  ;;  %v10381_v48 = vcombine.low %v12657_v40, %v14247_v43 }
 0x1d8   :  { %11488 = vmatmul.mubr.msk.bf16.gmra.mrb[28].mxu1 %vm2028_vm12, %v10372_v34  ;;  %v10380_v34 = vcombine.low %v12655_v49, %v14242_v23  ;;  %v12524_v49 = vld [vmem:[#allocation2 + $0x9c] sm:$0xff]  }
 0x1d9   :  { %11491 = vmatprep.mubr.msk.bf16.mxu1 %vm2028_vm12, %v10373_v39  ;;  %v5033_v39 = vshrl.u32 %v14013_v60, 16  ;;  %v14255_v60 = vrot.slane %v5029_v9, 5 }
 0x1db   :  { %16035 = vst [vmem:[#allocation10_spill] sm:$0xff] %v14255_v60  ;;  %v3088_v60 = vrot.slane %v14084_v46, 5 }
 0x1dc   :  { %11794 = vmatmul.mubr.msk.bf16.gmra.mrb[4].mxu0 %vm2028_vm12, %v12516_v12  ;;  %v3074_v12 = vrot.slane %v14053_v21, 5  ;;  %v10421_v21 = vrot.slane %v2966_v5, 9  ;;  %v14269_v5 = vld [vmem:[#allocation2 + $0x154] sm:$0xf] }
 0x1dd   :  { %11797 = vmatprep.mubr.msk.bf16.mxu0 %vm2028_vm12, %v12517_v13  ;;  %v3067_v13 = vrot.slane %v14026_v32, 5  ;;  %16039 = vst [vmem:[#allocation14_spill] sm:$0xff] %v14269_v5 }
 0x1de   :  { %v3076_v32 = vrot.slane %v3074_v12, 4 }
 0x1df   :  { %v14279_v40 = vsel %vm13595_vm15, %v10421_v21, %v3067_v13 }
 0x1e0   :  { %11492 = vmatmul.mubr.msk.bf16.gmra.mrb[32].mxu1 %vm2028_vm12, %v10374_v52  ;;  %v12523_v52 = vld [vmem:[#allocation2 + $0x90] sm:$0xff]  }
 0x1e1   :  { %11495 = vmatprep.mubr.msk.bf16.mxu1 %vm2028_vm12, %v10375_v15  ;;  %v2967_v15 = vld [vmem:[#allocation2 + $0xc] sm:$0xe] }
 0x1e4   :  { %11798 = vmatmul.mubr.msk.bf16.gmra.mrb[8].mxu0 %vm2028_vm12, %v12518_v61  ;;  %v14257_v61 = vrot.slane %v5033_v39, 4  ;;  %v2969_v39 = vld [vmem:[#allocation2 + $0x24] sm:$0xe] }
 0x1e5   :  { %11801 = vmatprep.mubr.msk.bf16.mxu0 %vm2028_vm12, %v12519_v19  ;;  %v12659_v19 = vld [vmem:[#allocation2 + $0x8] sm:$0x1] }
 0x1e6   :  { %16036 = vst [vmem:[#allocation11_spill] sm:$0xff] %v14257_v61  ;;  %v3070_v2 = vrot.slane %v12659_v19, 5  ;;  %v2970_v19 = vld [vmem:[#allocation2 + $0x30] sm:$0xe] }
 0x1e7   :  { %v10425_v21 = vrot.slane %v2970_v19, 9  ;;  %v12526_v19 = vld [vmem:[#allocation2 + $0xb4] sm:$0xff]  }
 0x1e8   :  { %11496 = vmatmul.mubr.msk.bf16.gmra.mrb[36].mxu1 %vm2028_vm12, %v10376_v36  ;;  %v3081_v36 = vrot.slane %v14056_v6, 5  ;;  %v14262_v6 = vld [vmem:[#allocation2 + $0x148] sm:$0xf] }
 0x1e9   :  { %11499 = vmatprep.mubr.msk.bf16.mxu1 %vm2028_vm12, %v10377_v33  ;;  %v10422_v33 = vrot.slane %v2967_v15, 9  ;;  %16037 = vst [vmem:[#allocation12_spill] sm:$0xff] %v14262_v6 }
 0x1ea   :  { %v3083_v22 = vrot.slane %v3081_v36, 4 }
 0x1ec   :  { %11802 = vmatmul.mubr.msk.bf16.gmra.mrb[12].mxu0 %vm2028_vm12, %v12520_v20 }
 0x1ed   :  { %11805 = vmatprep.mubr.msk.bf16.mxu0 %vm2028_vm12, %v12521_v18 }
 0x1f0   :  { %11500 = vmatmul.mubr.msk.bf16.gmra.mrb[40].mxu1 %vm2028_vm12, %v10378_v11  ;;  %v12660_v11 = vld [vmem:[#allocation2 + $0x14] sm:$0x1] }
 0x1f1   :  { %11503 = vmatprep.mubr.msk.bf16.mxu1 %vm2028_vm12, %v10379_v28  ;;  %v3077_v20 = vrot.slane %v12660_v11, 5  ;;  %v12661_v28 = vld [vmem:[#allocation2 + $0x144] sm:$0xf]  ;;  %v12666_v11 = vld [vmem:[#allocation2 + $0x15c] sm:$0xf] }
 0x1f2   :  { %v10382_v18 = vcombine.low %v12661_v28, %v14262_v6  ;;  %v14272_v28 = vld [vmem:[#allocation2 + $0x160] sm:$0xf]  ;;  %v12671_v6 = vld [vmem:[#allocation2 + $0x50] sm:$0x1] }
 0x1f3   :  { %16040 = vst [vmem:[#allocation15_spill] sm:$0xff] %v14272_v28  ;;  %v10384_v3 = vcombine.low %v12666_v11, %v14272_v28  ;;  %v10424_v11 = vrot.slane %v2969_v39, 9  ;;  %v3090_v39 = vrot.slane %v3088_v60, 4  ;;  %v3112_v43 = vrot.slane %v12671_v6, 5  ;;  %v2976_v6 = vld [vmem:[#allocation2 + $0x78] sm:$0xe] }
 0x1f4   :  { %11806 = vmatmul.mubr.msk.bf16.gmra.mrb[16].mxu0 %vm2028_vm12, %v12522_v37  ;;  %v12663_v37 = vld [vmem:[#allocation2 + $0x20] sm:$0x1] }
 0x1f5   :  { %11809 = vmatprep.mubr.msk.bf16.mxu0 %vm2028_vm12, %v12523_v52  ;;  %v3084_v9 = vrot.slane %v12663_v37, 5  ;;  %v12664_v52 = vld [vmem:[#allocation2 + $0x150] sm:$0xf]  ;;  %v12670_v37 = vld [vmem:[#allocation2 + $0x44] sm:$0x1] }
 0x1f6   :  { %v10383_v15 = vcombine.low %v12664_v52, %v14269_v5  ;;  %v14287_v52 = vsel %vm13595_vm15, %v3076_v32, %v3077_v20  ;;  %v3102_v20 = vrot.slane %v14108_v35, 5  ;;  %v2972_v35 = vld [vmem:[#allocation2 + $0x48] sm:$0xe]  ;;  %v12527_v32 = vld [vmem:[#allocation2 + $0xc0] sm:$0xff]   ;;  %v3105_v61 = vrot.slane %v12670_v37, 5 }
 0x1f7   :  { %v10427_v28 = vrot.slane %v2972_v35, 9  ;;  %v12673_v35 = vld [vmem:[#allocation2 + $0x68] sm:$0x1] }
 0x1f8   :  { %11504 = vmatmul.mubr.msk.bf16.gmra.mrb[44].mxu1 %vm2028_vm12, %v10380_v34  ;;  %v3069_v34 = vrot.slane %v3067_v13, 4  ;;  %v3104_v46 = vrot.slane %v3102_v20, 4  ;;  %v3126_v27 = vrot.slane %v12673_v35, 5  ;;  %v2978_v35 = vld [vmem:[#allocation2 + $0x90] sm:$0xe] }
 0x1f9   :  { %11507 = vmatprep.mubr.msk.bf16.mxu1 %vm2028_vm12, %v10381_v48  ;;  %v14267_v48 = vrot.slane %v5039_v62, 5  ;;  %v14283_v62 = vsel %vm13595_vm15, %v10422_v33, %v3074_v12  ;;  %v14302_v12 = vsel %vm13595_vm15, %v3083_v22, %v3084_v9  ;;  %v3095_v33 = vrot.slane %v14087_v10, 5 }
 0x1fa   :  { %v14298_v13 = vsel %vm13595_vm15, %v3069_v34, %v3070_v2  ;;  %v14318_v10 = vsel %vm2125_vm0, %v14070_v44, 0  ;;  %v3109_v34 = vrot.slane %v14111_v41, 5  ;;  %v14328_v44 = vsel %vm13595_vm15, %v10424_v11, %v3088_v60  ;;  %v12669_v2 = vld [vmem:[#allocation2 + $0x38] sm:$0x1] }
 0x1fb   :  { %16038 = vst [vmem:[#allocation13_spill] sm:$0xff] %v14267_v48  ;;  %v14291_v48 = vsel %vm13595_vm15, %v10423_v14, %v3081_v36  ;;  %v12668_v14 = vld [vmem:[#allocation2 + $0x2c] sm:$0x1]  ;;  %v14332_v41 = vsel %vm13595_vm15, %v10425_v21, %v3095_v33  ;;  %v3123_v22 = vrot.slane %v14135_v26, 5  ;;  %v3098_v9 = vrot.slane %v12669_v2, 5 }
 0x1fc   :  { %11810 = vmatmul.mubr.msk.bf16.gmra.mrb[20].mxu0 %vm2028_vm12, %v12524_v49  ;;  %v2971_v49 = vld [vmem:[#allocation2 + $0x3c] sm:$0xe]  ;;  %v3111_v5 = vrot.slane %v3109_v34, 4  ;;  %v2975_v26 = vld [vmem:[#allocation2 + $0x6c] sm:$0xe]  ;;  %v3130_v2 = vrot.slane %v14151_v29, 5 }
 0x1fd   :  { %11813 = vmatprep.mubr.msk.bf16.mxu0 %vm2028_vm12, %v12525_v55  ;;  %v3116_v55 = vrot.slane %v14132_v42, 5  ;;  %v10426_v36 = vrot.slane %v2971_v49, 9  ;;  %v2974_v42 = vld [vmem:[#allocation2 + $0x60] sm:$0xe]  ;;  %v3125_v49 = vrot.slane %v3123_v22, 4 }
 0x1fe   :  { %v10429_v37 = vrot.slane %v2974_v42, 9  ;;  %v12529_v42 = vld [vmem:[#allocation2 + $0xf0] sm:$0xff]  }
 0x1ff   :  { %v3118_v21 = vrot.slane %v3116_v55, 4 }
 0x200   :  { %11508 = vmatmul.mubr.msk.bf16.gmra.mrb[48].mxu1 %vm2028_vm12, %v10382_v18  ;;  %v3091_v18 = vrot.slane %v12668_v14, 5  ;;  %v3097_v14 = vrot.slane %v3095_v33, 4  ;;  %v12672_v33 = vld [vmem:[#allocation2 + $0x5c] sm:$0x1] }
 0x201   :  { %11511 = vmatprep.mubr.msk.bf16.mxu1 %vm2028_vm12, %v10383_v15  ;;  %v2973_v15 = vld [vmem:[#allocation2 + $0x54] sm:$0xe]  ;;  %v3119_v23 = vrot.slane %v12672_v33, 5  ;;  %v12676_v33 = vld [vmem:[#allocation2 + $0x8c] sm:$0x1] }
 0x202   :  { %v10428_v60 = vrot.slane %v2973_v15, 9  ;;  %v14337_v11 = vsel %vm13595_vm15, %v3090_v39, %v3091_v18  ;;  %v3137_v15 = vrot.slane %v14154_v63, 5  ;;  %v16041_v18 = vcombine.low %v13929_v45, %v13937_v4 }
 0x203   :  { %v14350_v29 = vsel %vm13595_vm15, %v3097_v14, %v3098_v9  ;;  %v14358_v39 = vsel %vm13595_vm15, %v3104_v46, %v3105_v61  ;;  %v3144_v63 = vrot.slane %v14169_v58, 5  ;;  %v14363_v45 = vsel %vm13595_vm15, %v10427_v28, %v3109_v34  ;;  %v12674_v58 = vld [vmem:[#allocation2 + $0x74] sm:$0x1]  ;;  %v12528_v28 = vld [vmem:[#allocation2 + $0xcc] sm:$0xff]  }
 0x204   :  { %11814 = vmatmul.mubr.msk.bf16.gmra.mrb[24].mxu0 %vm2028_vm12, %v12526_v19  ;;  %v14367_v4 = vsel %vm13595_vm15, %v3111_v5, %v3112_v43  ;;  %v14375_v61 = vsel %vm13595_vm15, %v3118_v21, %v3119_v23  ;;  %v3132_v46 = vrot.slane %v3130_v2, 4  ;;  %v3133_v9 = vrot.slane %v12674_v58, 5 }
 0x205   :  { %11817 = vmatprep.mubr.msk.bf16.mxu0 %vm2028_vm12, %v12527_v32  ;;  %v14371_v32 = vsel %vm13595_vm15, %v10428_v60, %v3116_v55  ;;  %v10431_v19 = vrot.slane %v2976_v6, 9  ;;  %v14379_v34 = vsel %vm13595_vm15, %v10429_v37, %v3123_v22  ;;  %v14383_v43 = vsel %vm13595_vm15, %v3125_v49, %v3126_v27  ;;  %v12675_v55 = vld [vmem:[#allocation2 + $0x80] sm:$0x1]  ;;  %v7507_v6 = vld [vmem:[#allocation2 + $0x18] sm:$0xf] }
 0x206   :  { %v3139_v5 = vrot.slane %v3137_v15, 4  ;;  %v3140_v14 = vrot.slane %v12675_v55, 5  ;;  %v3146_v21 = vrot.slane %v3144_v63, 4  ;;  %v14403_v58 = vsel %vm13595_vm15, %v3132_v46, %v3133_v9  ;;  %v2979_v9 = vld [vmem:[#allocation2 + $0x9c] sm:$0xe] }
 0x207   :  { %16043 = vst [vmem:[#allocation17_spill] sm:$0xff] %v14403_v58  ;;  %v14407_v55 = vsel %vm13595_vm15, %v10431_v19, %v3137_v15  ;;  %v16045_v49 = vcombine.low %v13946_v54, %v13957_v7  ;;  %v3151_v46 = vrot.slane %v14172_v59, 5  ;;  %v16047_v15 = vcombine.low %v13976_v31, %v13991_v16  ;;  %v7510_v37 = vld [vmem:[#allocation2 + $0x24] sm:$0xf]  ;;  %v12679_v22 = vld [vmem:[#allocation2 + $0xb0] sm:$0x1] }
 0x208   :  { %11512 = vmatmul.mubr.msk.bf16.gmra.mrb[52].mxu1 %vm2028_vm12, %v10384_v3  ;;  %v14354_v3 = vsel %vm13595_vm15, %v10426_v36, %v3102_v20  ;;  %v10430_v36 = vrot.slane %v2975_v26, 9  ;;  %v2977_v20 = vld [vmem:[#allocation2 + $0x84] sm:$0xe]  ;;  %v3147_v26 = vrot.slane %v12676_v33, 5  ;;  %16044 = vst [vmem:[#allocation18_spill] sm:$0xff] %v14407_v55  ;;  %v7604_v19 = vshrl.u32 %v7507_v6, 16 }
 0x209   :  { %11515 = vmatprep.mubr.msk.bf16.mxu1 %vm2028_vm12, %v16041_v18  ;;  %v10432_v60 = vrot.slane %v2977_v20, 9  ;;  %v7508_v33 = vld [vmem:[#allocation2 + $0x1c] sm:$0xf]  ;;  %v3158_v18 = vrot.slane %v14183_v8, 5  ;;  %v7607_v59 = vshll.u32 %v7507_v6, 16  ;;  %v3168_v23 = vrot.slane %v12679_v22, 5 }
 0x20a   :  { %v14399_v20 = vsel %vm13595_vm15, %v10430_v36, %v3130_v2  ;;  %v14416_v2 = vsel %vm13595_vm15, %v3139_v5, %v3140_v14  ;;  %v10433_v36 = vrot.slane %v2978_v35, 9  ;;  %v14431_v7 = vsel %vm13595_vm15, %v3146_v21, %v3147_v26  ;;  %v2980_v35 = vld [vmem:[#allocation2 + $0xa8] sm:$0xe]  ;;  %v12530_v21 = vld [vmem:[#allocation2 + $0xfc] sm:$0xff]   ;;  %v12678_v8 = vld [vmem:[#allocation2 + $0xa4] sm:$0x1] }
 0x20b   :  { %16042 = vst [vmem:[#allocation16_spill] sm:$0xff] %v14399_v20  ;;  %16046 = vst [vmem:[#allocation19_spill] sm:$0xff] %v14416_v2  ;;  %v14427_v54 = vsel %vm13595_vm15, %v10432_v60, %v3144_v63  ;;  %v7613_v31 = vshll.u32 %v7508_v33, 16  ;;  %v7617_v16 = vshrl.u32 %v7508_v33, 16  ;;  %v3165_v63 = vrot.slane %v14186_v24, 5  ;;  %v12531_v26 = vld [vmem:[#allocation2 + $0x108] sm:$0xff]  }
 0x20c   :  { %11818 = vmatmul.mubr.msk.bf16.gmra.mrb[28].mxu0 %vm2028_vm12, %v12528_v28  ;;  %16048 = vst [vmem:[#allocation20_spill] sm:$0xff] %v14427_v54  ;;  %16049 = vst [vmem:[#allocation21_spill] sm:$0xff] %v14431_v7  ;;  %v12677_v28 = vld [vmem:[#allocation2 + $0x98] sm:$0x1]  ;;  %v3172_v60 = vrot.slane %v14193_v30, 5  ;;  %v14443_v6 = vsel %vm13595_vm15, %v10433_v36, %v3151_v46  ;;  %v3160_v33 = vrot.slane %v3158_v18, 4 }
 0x20d   :  { %11821 = vmatprep.mubr.msk.bf16.mxu0 %vm2028_vm12, %v12529_v42  ;;  %v3154_v5 = vrot.slane %v12677_v28, 5  ;;  %v10434_v42 = vrot.slane %v2979_v9, 9  ;;  %v2981_v28 = vld [vmem:[#allocation2 + $0xb4] sm:$0xe]  ;;  %v3161_v14 = vrot.slane %v12678_v8, 5  ;;  %v3179_v9 = vrot.slane %v14196_v38, 5 }
 0x20e   :  { %v7606_v27 = vrot.slane %v7604_v19, 4  ;;  %v7609_v24 = vrot.slane %v7607_v59, 5  ;;  %v10435_v30 = vrot.slane %v2980_v35, 9  ;;  %v2982_v2 = vld [vmem:[#allocation2 + $0xd8] sm:$0xe]  ;;  %v14446_v55 = vrot.slane %v7613_v31, 5 }
 0x20f   :  { %v3167_v7 = vrot.slane %v3165_v63, 4  ;;  %v10436_v36 = vrot.slane %v2981_v28, 9  ;;  %v3174_v54 = vrot.slane %v3172_v60, 4  ;;  %v7509_v20 = vld [vmem:[#allocation2 + $0x20] sm:$0x1]  ;;  %v16050_v8 = vcombine.low %v14003_v53, %v14007_v57 }
 0x210   :  { %11516 = vmatmul.mubr.msk.bf16.gmra.mrb[56].mxu1 %vm2028_vm12, %v16045_v49  ;;  %v7619_v49 = vrot.slane %v7617_v16, 4  ;;  %v14459_v22 = vsel %vm13595_vm15, %v10434_v42, %v3158_v18  ;;  %v3186_v19 = vrot.slane %v14205_v51, 5  ;;  %v7511_v59 = vld [vmem:[#allocation2 + $0x28] sm:$0xf]  ;;  %v7628_v31 = vshrl.u32 %v7510_v37, 16 }
 0x211   :  { %11519 = vmatprep.mubr.msk.bf16.mxu1 %vm2028_vm12, %v16047_v15  ;;  %v3153_v15 = vrot.slane %v3151_v46, 4  ;;  %v12680_v46 = vld [vmem:[#allocation2 + $0xbc] sm:$0x1]  ;;  %v16051_v16 = vcombine.low %v14279_v40, %v14298_v13  ;;  %v10437_v53 = vrot.slane %v2982_v2, 9  ;;  %v3181_v57 = vrot.slane %v3179_v9, 4 }
 0x212   :  { %v3175_v58 = vrot.slane %v12680_v46, 5  ;;  %v12681_v35 = vld [vmem:[#allocation2 + $0xe0] sm:$0x1]  ;;  %v14469_v18 = vsel %vm13595_vm15, %v3160_v33, %v3161_v14  ;;  %v7620_v51 = vor.u32 %v7619_v49, %v14446_v55  ;;  %v7623_v42 = vshll.u32 %v7509_v20, 16  ;;  %v12532_v14 = vld [vmem:[#allocation2 + $0x114] sm:$0xff]  }
 0x213   :  { %v14455_v38 = vsel %vm13595_vm15, %v3153_v15, %v3154_v5  ;;  %v3182_v5 = vrot.slane %v12681_v35, 5  ;;  %v7610_v15 = vor.u32 %v7609_v24, %v7606_v27  ;;  %v7631_v28 = vshll.u32 %v7510_v37, 16  ;;  %v12682_v37 = vld [vmem:[#allocation2 + $0xec] sm:$0x1]  ;;  %v7513_v46 = vld [vmem:[#allocation2 + $0x30] sm:$0xf] }
 0x214   :  { %11822 = vmatmul.mubr.msk.bf16.gmra.mrb[32].mxu0 %vm2028_vm12, %v12530_v21  ;;  %v2983_v21 = vld [vmem:[#allocation2 + $0xe4] sm:$0xe]  ;;  %v14474_v40 = vsel %vm13595_vm15, %v10435_v30, %v3165_v63  ;;  %v14478_v13 = vsel %vm13595_vm15, %v3167_v7, %v3168_v23  ;;  %v14482_v2 = vsel %vm13595_vm15, %v10436_v36, %v3172_v60  ;;  %v14486_v27 = vsel %vm13595_vm15, %v3174_v54, %v3175_v58 }
 0x215   :  { %11825 = vmatprep.mubr.msk.bf16.mxu0 %vm2028_vm12, %v12531_v26  ;;  %v10438_v26 = vrot.slane %v2983_v21, 9  ;;  %v3188_v20 = vrot.slane %v3186_v19, 4  ;;  %v3189_v49 = vrot.slane %v12682_v37, 5  ;;  %v7637_v33 = vshll.u32 %v7511_v59, 16  ;;  %v12533_v63 = vld [vmem:[#allocation2 + $0x120] sm:$0xff]  }
 0x216   :  { %v14490_v24 = vsel %vm13595_vm15, %v10437_v53, %v3179_v9  ;;  %v14494_v23 = vsel %vm13595_vm15, %v3181_v57, %v3182_v5  ;;  %v7611_v7 = vrot.slane %v7610_v15, 4  ;;  %v7630_v60 = vrot.slane %v7628_v31, 4  ;;  %v7512_v5 = vld [vmem:[#allocation2 + $0x2c] sm:$0x1]  ;;  %v7514_v21 = vld [vmem:[#allocation2 + $0x34] sm:$0xf] }
 0x217   :  { %v7621_v30 = vrot.slane %v7620_v51, 4  ;;  %v7625_v58 = vrot.slane %v7623_v42, 5  ;;  %v7633_v54 = vrot.slane %v7631_v28, 5  ;;  %v7641_v36 = vshrl.u32 %v7511_v59, 16  ;;  %v7516_v15 = vld [vmem:[#allocation2 + $0x3c] sm:$0xf] }
 0x218   :  { %11520 = vmatmul.mubr.msk.bf16.gmra.mrb[60].mxu1 %vm2028_vm12, %v16050_v8  ;;  %v16052_v31 = vcombine.low %v14283_v62, %v14287_v52  ;;  %v14513_v57 = vsel %vm13595_vm15, %v10438_v26, %v3186_v19  ;;  %v14517_v35 = vsel %vm13595_vm15, %v3188_v20, %v3189_v49  ;;  %v16054_v62 = vcombine.low %v14291_v48, %v14302_v12  ;;  %v7517_v28 = vld [vmem:[#allocation2 + $0x40] sm:$0xf]  ;;  %v12683_v12 = vld [vmem:[%s15997_s1 + $0x10] sm:$0xf]  ;;  %v7515_v9 = vld [vmem:[#allocation2 + $0x38] sm:$0x1] }
 0x219   :  { %11525 = vmatprep.mubr.msk.bf16.mxu1 %vm2028_vm12, %v16051_v16  ;;  %16053 = vst [vmem:[#allocation22_spill] sm:$0xff] %v14517_v35  ;;  %v7616_v52 = vsel %vm13135_vm11, %v7611_v7, %v14446_v55  ;;  %v14527_v19 = vrot.slane %v7637_v33, 5  ;;  %v7652_v51 = vshrl.u32 %v7513_v46, 16  ;;  %v7655_v42 = vshll.u32 %v7513_v46, 16  ;;  %v2984_v55 = vld [vmem:[#allocation2 + $0xf0] sm:$0xe] }
 0x21a   :  { %v7643_v26 = vrot.slane %v7641_v36, 4  ;;  %v3193_v48 = vrot.slane %v14208_v25, 5  ;;  %v7661_v20 = vshll.u32 %v7514_v21, 16  ;;  %v7665_v37 = vshrl.u32 %v7514_v21, 16  ;;  %v12534_v7 = vld [vmem:[#allocation2 + $0x12c] sm:$0xff]  }
 0x21b   :  { %v7676_v49 = vshrl.u32 %v7516_v15, 16  ;;  %v7679_v33 = vshll.u32 %v7516_v15, 16  ;;  %v12684_v36 = vld [vmem:[#allocation2 + $0xf8] sm:$0x1]  ;;  %v10439_v15 = vrot.slane %v2984_v55, 9 }
 0x21c   :  { %11826 = vmatmul.mubr.msk.bf16.gmra.mrb[36].mxu0 %vm2028_vm12, %v12532_v14  ;;  %v7626_v14 = vsel %vm13135_vm11, %v7621_v30, %v7625_v58  ;;  %v7647_v30 = vshll.u32 %v7512_v5, 16  ;;  %v7689_v58 = vshrl.u32 %v7517_v28, 16  ;;  %v3196_v46 = vrot.slane %v12684_v36, 5  ;;  %v7520_v36 = vld [vmem:[#allocation2 + $0x4c] sm:$0xf] }
 0x21d   :  { %11829 = vmatprep.mubr.msk.bf16.mxu0 %vm2028_vm12, %v12533_v63  ;;  %v14539_v25 = vcombine.low %v7616_v52, %v7626_v14  ;;  %v7644_v21 = vor.u32 %v7643_v26, %v14527_v19  ;;  %v3195_v53 = vrot.slane %v3193_v48, 4  ;;  %v14544_v16 = vrot.slane %v7661_v20, 5  ;;  %v12686_v35 = vld [vmem:[#allocation2 + $0x110] sm:$0x1] }
 0x21e   :  { %v7667_v5 = vrot.slane %v7665_v37, 4  ;;  %v7678_v63 = vrot.slane %v7676_v49, 4  ;;  %v16055_v52 = vcombine.low %v14328_v44, %v14337_v11  ;;  %v16056_v26 = vcombine.low %v14332_v41, %v14350_v29  ;;  %v12685_v11 = vld [vmem:[#allocation2 + $0x104] sm:$0x1] }
 0x21f   :  { %v14559_v55 = vrot.slane %v7647_v30, 5  ;;  %v14563_v44 = vsel %vm2125_vm0, %v14216_v17, 0  ;;  %v3203_v20 = vrot.slane %v12685_v11, 5  ;;  %v14571_v41 = vsel %vm13595_vm15, %v10439_v15, %v3193_v48  ;;  %v7519_v17 = vld [vmem:[#allocation2 + $0x48] sm:$0xf] }
 0x220   :  { %11526 = vmatmul.mubr.msk.bf16.vlgmr.msra.gmra.mrb[0].mxu1 %vm2028_vm12, %v16052_v31  ;;  %v2985_v31 = vld [vmem:[#allocation2 + $0xfc] sm:$0xe]  ;;  %v14575_v29 = vsel %vm13595_vm15, %v3195_v53, %v3196_v46  ;;  %v7668_v30 = vor.u32 %v7667_v5, %v14544_v16  ;;  %v2987_v15 = vld [vmem:[#allocation2 + $0x114] sm:$0xe]  ;;  %v7700_v5 = vshrl.u32 %v7519_v17, 16 }
 0x221   :  { %11590 = vmatpush3.bf16.msra.mxu1 %v14318_v10  ;;  %11529 = vmatprep.mubr.msk.bf16.mxu1 %vm2028_vm12, %v16054_v62  ;;  %v7634_v10 = vor.u32 %v7633_v54, %v7630_v60  ;;  %v7685_v60 = vshll.u32 %v7517_v28, 16  ;;  %v12535_v54 = vld [vmem:[#allocation2 + $0x138] sm:$0xff]   ;;  %v7654_v62 = vrot.slane %v7652_v51, 4  ;;  %v7681_v28 = vrot.slane %v7679_v33, 5 }
 0x222   :  { %12504 = vmatprep.subr.msk.bf16.mxu1 %vm2125_vm0, %v12683_v12  ;;  %v7657_v12 = vrot.slane %v7655_v42, 5  ;;  %v10440_v51 = vrot.slane %v2985_v31, 9  ;;  %v3200_v42 = vrot.slane %v14222_v50, 5  ;;  %v7518_v50 = vld [vmem:[#allocation2 + $0x44] sm:$0x1]  ;;  %v7671_v33 = vshll.u32 %v7515_v9, 16 }
 0x223   :  { %v14541_v59 = vrot.slane %v7634_v10, 4  ;;  %v14552_v14 = vrot.slane %v7685_v60, 5  ;;  %v7691_v10 = vrot.slane %v7689_v58, 4  ;;  %v7682_v60 = vor.u32 %v7681_v28, %v7678_v63  ;;  %v2986_v58 = vld [vmem:[#allocation2 + $0x108] sm:$0xe] }
 0x224   :  { %11830 = vmatmul.mubr.msk.bf16.gmra.mrb[40].mxu0 %vm2028_vm12, %v12534_v7  ;;  %v7658_v37 = vor.u32 %v7657_v12, %v7654_v62  ;;  %v7645_v7 = vrot.slane %v7644_v21, 4  ;;  %v12536_v31 = vld [vmem:[#allocation2 + $0x144] sm:$0xff]   ;;  %v12537_v62 = vld [vmem:[#allocation2 + $0x150] sm:$0xff]   ;;  %v14581_v48 = vsel %vm13595_vm15, %v10440_v51, %v3200_v42  ;;  %v3202_v12 = vrot.slane %v3200_v42, 4 }
 0x225   :  { %11833 = vmatprep.mubr.msk.bf16.mxu0 %vm2028_vm12, %v12535_v54  ;;  %v3207_v54 = vrot.slane %v14225_v1, 5  ;;  %v7692_v53 = vor.u32 %v7691_v10, %v14552_v14  ;;  %v7695_v46 = vshll.u32 %v7518_v50, 16  ;;  %v3214_v21 = vrot.slane %v14232_v0, 5 }
 0x226   :  { %v7659_v9 = vrot.slane %v7658_v37, 4  ;;  %v7703_v63 = vshll.u32 %v7519_v17, 16  ;;  %v7673_v28 = vrot.slane %v7671_v33, 5  ;;  %v7709_v1 = vshll.u32 %v7520_v36, 16  ;;  %v7522_v33 = vld [vmem:[#allocation2 + $0x54] sm:$0xf] }
 0x227   :  { %v7669_v11 = vrot.slane %v7668_v30, 4  ;;  %v7683_v8 = vrot.slane %v7682_v60, 4  ;;  %v3209_v49 = vrot.slane %v3207_v54, 4  ;;  %v3210_v51 = vrot.slane %v12686_v35, 5  ;;  %v7521_v30 = vld [vmem:[#allocation2 + $0x50] sm:$0x1] }
 0x228   :  { %11530 = vmatmul.mubr.msk.bf16.gmra.mrb[4].mxu1 %vm2028_vm12, %v16055_v52  ;;  %v10441_v52 = vrot.slane %v2986_v58, 9  ;;  %v16057_v42 = vcombine.low %v14354_v3, %v14358_v39  ;;  %v7650_v0 = vsel %vm13135_vm11, %v7645_v7, %v14559_v55  ;;  %v7693_v10 = vrot.slane %v7692_v53, 4  ;;  %v12687_v39 = vld [vmem:[#allocation2 + $0x11c] sm:$0x1] }
 0x229   :  { %11533 = vmatprep.mubr.msk.bf16.mxu1 %vm2028_vm12, %v16056_v26  ;;  %v7713_v26 = vshrl.u32 %v7520_v36, 16  ;;  %v7697_v37 = vrot.slane %v7695_v46, 5  ;;  %v10442_v50 = vrot.slane %v2987_v15, 9  ;;  %v16058_v17 = vcombine.low %v14363_v45, %v14367_v4 }
 0x22a   :  { %v3216_v3 = vrot.slane %v3214_v21, 4  ;;  %v3217_v35 = vrot.slane %v12687_v39, 5  ;;  %v7702_v60 = vrot.slane %v7700_v5, 4  ;;  %v7705_v58 = vrot.slane %v7703_v63, 5  ;;  %v12539_v5 = vld [vmem:[#allocation2 + $0x168] sm:$0xff]  }
 0x22b   :  { %v14600_v55 = vsel %vm13595_vm15, %v3202_v12, %v3203_v20  ;;  %v7664_v7 = vsel %vm13135_vm11, %v7659_v9, %v14544_v16  ;;  %v14605_v36 = vrot.slane %v7709_v1, 5  ;;  %v7715_v45 = vrot.slane %v7713_v26, 4  ;;  %v7523_v12 = vld [vmem:[#allocation2 + $0x58] sm:$0xf]  ;;  %v12538_v16 = vld [vmem:[#allocation2 + $0x15c] sm:$0xff]  }
 0x22c   :  { %11834 = vmatmul.mubr.msk.bf16.gmra.mrb[44].mxu0 %vm2028_vm12, %v12536_v31  ;;  %v7674_v4 = vsel %vm13135_vm11, %v7669_v11, %v7673_v28  ;;  %v7688_v31 = vsel %vm13135_vm11, %v7683_v8, %v14552_v14  ;;  %v14618_v20 = vsel %vm13595_vm15, %v3209_v49, %v3210_v51  ;;  %v7698_v53 = vsel %vm13135_vm11, %v7693_v10, %v7697_v37  ;;  %v7525_v11 = vld [vmem:[#allocation2 + $0x60] sm:$0xf]  ;;  %v7524_v37 = vld [vmem:[#allocation2 + $0x5c] sm:$0x1]  ;;  %v7529_v39 = vld [vmem:[#allocation2 + $0x70] sm:$0xf] }
 0x22d   :  { %11837 = vmatprep.mubr.msk.bf16.mxu0 %vm2028_vm12, %v12537_v62  ;;  %v14614_v62 = vsel %vm13595_vm15, %v10441_v52, %v3207_v54  ;;  %16060 = vst [vmem:[#allocation24_spill] sm:$0xff] %v14618_v20  ;;  %v7719_v46 = vshll.u32 %v7521_v30, 16  ;;  %v7724_v9 = vshrl.u32 %v7522_v33, 16  ;;  %v7727_v15 = vshll.u32 %v7522_v33, 16  ;;  %v16067_v10 = vld [vmem:[#allocation16_spill] sm:$0xff] }
 0x22e   :  { %16059 = vst [vmem:[#allocation23_spill] sm:$0xff] %v14614_v62  ;;  %v14626_v14 = vsel %vm13595_vm15, %v10442_v50, %v3214_v21  ;;  %v14630_v49 = vsel %vm13595_vm15, %v3216_v3, %v3217_v35  ;;  %v7706_v54 = vor.u32 %v7705_v58, %v7702_v60  ;;  %v16063_v63 = vsel %vm13135_vm11, %v14541_v59, %v14527_v19  ;;  %v7526_v50 = vld [vmem:[#allocation2 + $0x64] sm:$0xf]  ;;  %v7528_v59 = vld [vmem:[#allocation2 + $0x6c] sm:$0xf] }
 0x22f   :  { %16061 = vst [vmem:[#allocation25_spill] sm:$0xff] %v14626_v14  ;;  %16062 = vst [vmem:[#allocation26_spill] sm:$0xff] %v14630_v49  ;;  %v14637_v28 = vcombine.low %v16063_v63, %v7650_v0  ;;  %v7716_v52 = vor.u32 %v7715_v45, %v14605_v36  ;;  %v7733_v1 = vshll.u32 %v7523_v12, 16  ;;  %v7737_v26 = vshrl.u32 %v7523_v12, 16  ;;  %v16068_v21 = vld [vmem:[#allocation17_spill] sm:$0xff] }
 0x230   :  { %11534 = vmatmul.mubr.msk.bf16.gmra.mrb[8].mxu1 %vm2028_vm12, %v16057_v42  ;;  %v14642_v51 = vcombine.low %v7664_v7, %v7674_v4  ;;  %v14644_v42 = vcombine.low %v7688_v31, %v7698_v53  ;;  %v16064_v19 = vcombine.low %v14371_v32, %v14375_v61  ;;  %v7721_v33 = vrot.slane %v7719_v46, 5  ;;  %v2988_v32 = vld [vmem:[#allocation2 + $0x120] sm:$0xe]  ;;  %v16066_v61 = vld [vmem:[#allocation7_spill] sm:$0xff]  ;;  %v12690_v62 = vld [vmem:[#allocation2 + $0x140] sm:$0x1] }
 0x231   :  { %11537 = vmatprep.mubr.msk.bf16.mxu1 %vm2028_vm12, %v16058_v17  ;;  %v7726_v17 = vrot.slane %v7724_v9, 4  ;;  %v7729_v3 = vrot.slane %v7727_v15, 5  ;;  %v16065_v35 = vcombine.low %v14379_v34, %v14383_v43  ;;  %v7707_v30 = vrot.slane %v7706_v54, 4  ;;  %v12540_v43 = vld [vmem:[#allocation2 + $0x174] sm:$0xff]  }
 0x232   :  { %v3221_v60 = vrot.slane %v16066_v61, 5  ;;  %v7748_v58 = vshrl.u32 %v7525_v11, 16  ;;  %v7751_v7 = vshll.u32 %v7525_v11, 16  ;;  %v7717_v45 = vrot.slane %v7716_v52, 4 }
 0x233   :  { %v14661_v4 = vrot.slane %v7733_v1, 5  ;;  %v7739_v31 = vrot.slane %v7737_v26, 4  ;;  %v7743_v12 = vshll.u32 %v7524_v37, 16  ;;  %v7757_v53 = vshll.u32 %v7526_v50, 16 }
 0x234   :  { %11838 = vmatmul.mubr.msk.bf16.gmra.mrb[48].mxu0 %vm2028_vm12, %v12538_v16  ;;  %v2989_v16 = vld [vmem:[#allocation2 + $0x12c] sm:$0xe]  ;;  %v7761_v46 = vshrl.u32 %v7526_v50, 16  ;;  %v7772_v9 = vshrl.u32 %v7528_v59, 16  ;;  %v7775_v34 = vshll.u32 %v7528_v59, 16  ;;  %v7730_v15 = vor.u32 %v7729_v3, %v7726_v17 }
 0x235   :  { %11841 = vmatprep.mubr.msk.bf16.mxu0 %vm2028_vm12, %v12539_v5  ;;  %v10443_v63 = vrot.slane %v2988_v32, 9  ;;  %v7781_v5 = vshll.u32 %v7529_v39, 16  ;;  %v7785_v54 = vshrl.u32 %v7529_v39, 16  ;;  %v7712_v11 = vsel %vm13135_vm11, %v7707_v30, %v14605_v36  ;;  %v12688_v50 = vld [vmem:[#allocation2 + $0x128] sm:$0x1] }
 0x236   :  { %v3223_v52 = vrot.slane %v3221_v60, 4  ;;  %v7750_v1 = vrot.slane %v7748_v58, 4  ;;  %v7722_v26 = vsel %vm13135_vm11, %v7717_v45, %v7721_v33  ;;  %v7740_v37 = vor.u32 %v7739_v31, %v14661_v4  ;;  %v7527_v17 = vld [vmem:[#allocation2 + $0x68] sm:$0x1]  ;;  %v16070_v33 = vld [vmem:[#allocation8_spill] sm:$0xff]  ;;  %v16071_v31 = vld [vmem:[#allocation18_spill] sm:$0xff] }
 0x237   :  { %v3224_v59 = vrot.slane %v12688_v50, 5  ;;  %v10444_v61 = vrot.slane %v2989_v16, 9  ;;  %v14669_v3 = vrot.slane %v7757_v53, 5  ;;  %v7763_v39 = vrot.slane %v7761_v46, 4  ;;  %v16072_v16 = vld [vmem:[#allocation19_spill] sm:$0xff] }
 0x238   :  { %11538 = vmatmul.mubr.msk.bf16.gmra.mrb[12].mxu1 %vm2028_vm12, %v16064_v19  ;;  %v12541_v19 = vld [vmem:[#allocation2 + $0x180] sm:$0xff]   ;;  %v7774_v32 = vrot.slane %v7772_v9, 4  ;;  %v7777_v0 = vrot.slane %v7775_v34, 5  ;;  %v16069_v36 = vcombine.low %v16067_v10, %v16068_v21  ;;  %v14676_v30 = vrot.slane %v7730_v15, 4  ;;  %v7530_v34 = vld [vmem:[#allocation2 + $0x74] sm:$0x1] }
 0x239   :  { %11541 = vmatprep.mubr.msk.bf16.mxu1 %vm2028_vm12, %v16065_v35  ;;  %v7753_v35 = vrot.slane %v7751_v7, 5  ;;  %v3228_v58 = vrot.slane %v16070_v33, 5  ;;  %v14679_v7 = vrot.slane %v7781_v5, 5  ;;  %v7787_v45 = vrot.slane %v7785_v54, 4  ;;  %v12689_v54 = vld [vmem:[#allocation2 + $0x134] sm:$0x1] }
 0x23a   :  { %v16073_v53 = vcombine.low %v16071_v31, %v16072_v16  ;;  %v14686_v46 = vrot.slane %v7743_v12, 5  ;;  %v14690_v21 = vsel %vm13595_vm15, %v10443_v63, %v3221_v60  ;;  %v7767_v9 = vshll.u32 %v7527_v17, 16  ;;  %v12543_v33 = vld [vmem:[#allocation2 + $0x198] sm:$0xff]  }
 0x23b   :  { %v7754_v10 = vor.u32 %v7753_v35, %v7750_v1  ;;  %v7741_v15 = vrot.slane %v7740_v37, 4  ;;  %v14696_v5 = vsel %vm13595_vm15, %v3223_v52, %v3224_v59  ;;  %v3231_v50 = vrot.slane %v12689_v54, 5  ;;  %v7531_v35 = vld [vmem:[#allocation2 + $0x78] sm:$0xf] }
 0x23c   :  { %11842 = vmatmul.mubr.msk.bf16.gmra.mrb[52].mxu0 %vm2028_vm12, %v12540_v43  ;;  %v14692_v43 = vcombine.low %v7712_v11, %v7722_v26  ;;  %v14700_v12 = vsel %vm13595_vm15, %v10444_v61, %v3228_v58  ;;  %v7764_v60 = vor.u32 %v7763_v39, %v14669_v3  ;;  %v7778_v63 = vor.u32 %v7777_v0, %v7774_v32  ;;  %v7532_v11 = vld [vmem:[#allocation2 + $0x7c] sm:$0xf]  ;;  %v12542_v26 = vld [vmem:[#allocation2 + $0x18c] sm:$0xff]   ;;  %v16075_v39 = vld [vmem:[#allocation12_spill] sm:$0xff] }
 0x23d   :  { %11845 = vmatprep.mubr.msk.bf16.mxu0 %vm2028_vm12, %v12541_v19  ;;  %v16074_v19 = vld [vmem:[#allocation9_spill] sm:$0xff]  ;;  %v7736_v52 = vsel %vm13135_vm11, %v14676_v30, %v14661_v4  ;;  %v3230_v37 = vrot.slane %v3228_v58, 4  ;;  %v7788_v59 = vor.u32 %v7787_v45, %v14679_v7  ;;  %v7791_v17 = vshll.u32 %v7530_v34, 16  ;;  %v2991_v32 = vld [vmem:[#allocation2 + $0x144] sm:$0xe] }
 0x23e   :  { %v3235_v1 = vrot.slane %v16074_v19, 5  ;;  %v7755_v61 = vrot.slane %v7754_v10, 4  ;;  %v7769_v31 = vrot.slane %v7767_v9, 5  ;;  %v3242_v0 = vrot.slane %v16075_v39, 5  ;;  %v16076_v30 = vld [vmem:[#allocation20_spill] sm:$0xff]  ;;  %v16077_v58 = vld [vmem:[#allocation21_spill] sm:$0xff] }
 0x23f   :  { %v7799_v54 = vshll.u32 %v7531_v35, 16  ;;  %v7805_v19 = vshll.u32 %v7532_v11, 16  ;;  %v7809_v8 = vshrl.u32 %v7532_v11, 16  ;;  %v7765_v49 = vrot.slane %v7764_v60, 4  ;;  %v7534_v60 = vld [vmem:[#allocation2 + $0x84] sm:$0xf] }
 0x240   :  { %11542 = vmatmul.mubr.msk.bf16.gmra.mrb[16].mxu1 %vm2028_vm12, %v16069_v36  ;;  %v2990_v36 = vld [vmem:[#allocation2 + $0x138] sm:$0xe]  ;;  %v7779_v14 = vrot.slane %v7778_v63, 4  ;;  %v3237_v20 = vrot.slane %v3235_v1, 4  ;;  %v3238_v4 = vrot.slane %v12690_v62, 5  ;;  %v16078_v45 = vcombine.low %v16076_v30, %v16077_v58  ;;  %v12544_v39 = vld [vmem:[#allocation2 + $0x1a4] sm:$0xff]  }
 0x241   :  { %11545 = vmatprep.mubr.msk.bf16.mxu1 %vm2028_vm12, %v16073_v53  ;;  %v10445_v16 = vrot.slane %v2990_v36, 9  ;;  %v7796_v53 = vshrl.u32 %v7531_v35, 16  ;;  %v7746_v10 = vsel %vm13135_vm11, %v7741_v15, %v14686_v46  ;;  %v14720_v9 = vsel %vm13595_vm15, %v3230_v37, %v3231_v50  ;;  %v12691_v15 = vld [vmem:[#allocation2 + $0x14c] sm:$0x1]  ;;  %v7533_v50 = vld [vmem:[#allocation2 + $0x80] sm:$0x1] }
 0x242   :  { %v7789_v34 = vrot.slane %v7788_v59, 4  ;;  %v7793_v36 = vrot.slane %v7791_v17, 5  ;;  %v16079_v62 = vcombine.low %v14443_v6, %v14455_v38  ;;  %v7760_v63 = vsel %vm13135_vm11, %v7755_v61, %v14669_v3  ;;  %v7535_v61 = vld [vmem:[#allocation2 + $0x88] sm:$0xf]  ;;  %v7538_v30 = vld [vmem:[#allocation2 + $0x94] sm:$0xf] }
 0x243   :  { %v10446_v35 = vrot.slane %v2991_v32, 9  ;;  %v3244_v46 = vrot.slane %v3242_v0, 4  ;;  %v3245_v11 = vrot.slane %v12691_v15, 5  ;;  %v7801_v37 = vrot.slane %v7799_v54, 5 }
 0x244   :  { %11846 = vmatmul.mubr.msk.bf16.gmra.mrb[56].mxu0 %vm2028_vm12, %v12542_v26  ;;  %v7798_v26 = vrot.slane %v7796_v53, 4  ;;  %v14730_v59 = vrot.slane %v7805_v19, 5  ;;  %v7811_v17 = vrot.slane %v7809_v8, 4  ;;  %v7770_v6 = vsel %vm13135_vm11, %v7765_v49, %v7769_v31 }
 0x245   :  { %11849 = vmatprep.mubr.msk.bf16.mxu0 %vm2028_vm12, %v12543_v33  ;;  %v7784_v38 = vsel %vm13135_vm11, %v7779_v14, %v14679_v7  ;;  %v14739_v3 = vsel %vm13595_vm15, %v10445_v16, %v3235_v1  ;;  %v14743_v33 = vsel %vm13595_vm15, %v3237_v20, %v3238_v4  ;;  %v7794_v8 = vsel %vm13135_vm11, %v7789_v34, %v7793_v36  ;;  %v7537_v4 = vld [vmem:[#allocation2 + $0x90] sm:$0xf]  ;;  %v7540_v34 = vld [vmem:[#allocation2 + $0x9c] sm:$0xf] }
 0x246   :  { %v7815_v32 = vshll.u32 %v7533_v50, 16  ;;  %v7820_v53 = vshrl.u32 %v7534_v60, 16  ;;  %v7823_v49 = vshll.u32 %v7534_v60, 16  ;;  %v14747_v31 = vcombine.low %v7736_v52, %v7746_v10  ;;  %v7536_v10 = vld [vmem:[#allocation2 + $0x8c] sm:$0x1] }
 0x247   :  { %v10475_v14 = vcombine.low %v14690_v21, %v14696_v5  ;;  %v14753_v7 = vsel %vm13595_vm15, %v10446_v35, %v3242_v0  ;;  %v14757_v20 = vsel %vm13595_vm15, %v3244_v46, %v3245_v11  ;;  %v7802_v1 = vor.u32 %v7801_v37, %v7798_v26  ;;  %v7541_v46 = vld [vmem:[#allocation2 + $0xa0] sm:$0xf]  ;;  %v7558_v0 = vld [vmem:[#allocation2 + $0xfc] sm:$0xf] }
 0x248   :  { %11546 = vmatmul.mubr.msk.bf16.gmra.mrb[20].mxu1 %vm2028_vm12, %v16078_v45  ;;  %v7812_v16 = vor.u32 %v7811_v17, %v14730_v59  ;;  %v7829_v54 = vshll.u32 %v7535_v61, 16  ;;  %v7833_v19 = vshrl.u32 %v7535_v61, 16  ;;  %v10476_v52 = vcombine.low %v14700_v12, %v14720_v9  ;;  %v2993_v61 = vld [vmem:[#allocation2 + $0x15c] sm:$0xe] }
 0x249   :  { %11549 = vmatprep.mubr.msk.bf16.mxu1 %vm2028_vm12, %v16079_v62  ;;  %v14762_v58 = vcombine.low %v7760_v63, %v7770_v6  ;;  %v14764_v45 = vcombine.low %v7784_v38, %v7794_v8  ;;  %v16080_v36 = vcombine.low %v14459_v22, %v14469_v18  ;;  %v7817_v62 = vrot.slane %v7815_v32, 5  ;;  %v2992_v22 = vld [vmem:[#allocation2 + $0x150] sm:$0xe] }
 0x24a   :  { %v7822_v63 = vrot.slane %v7820_v53, 4  ;;  %v7825_v35 = vrot.slane %v7823_v49, 5  ;;  %v16081_v15 = vcombine.low %v14474_v40, %v14478_v13  ;;  %v7844_v18 = vshrl.u32 %v7537_v4, 16 }
 0x24b   :  { %v7847_v11 = vshll.u32 %v7537_v4, 16  ;;  %v7853_v50 = vshll.u32 %v7538_v30, 16  ;;  %v7857_v26 = vshrl.u32 %v7538_v30, 16  ;;  %v7803_v37 = vrot.slane %v7802_v1, 4 }
 0x24c   :  { %11850 = vmatmul.mubr.msk.bf16.gmra.mrb[60].mxu0 %vm2028_vm12, %v12544_v39  ;;  %v7813_v17 = vrot.slane %v7812_v16, 4  ;;  %v14781_v6 = vrot.slane %v7829_v54, 5  ;;  %v7835_v38 = vrot.slane %v7833_v19, 4  ;;  %v7868_v39 = vshrl.u32 %v7540_v34, 16 }
 0x24d   :  { %11855 = vmatprep.mubr.msk.bf16.mxu0 %vm2028_vm12, %v14539_v25  ;;  %v7871_v8 = vshll.u32 %v7540_v34, 16  ;;  %v7877_v32 = vshll.u32 %v7541_v46, 16  ;;  %v7881_v40 = vshrl.u32 %v7541_v46, 16  ;;  %v7826_v13 = vor.u32 %v7825_v35, %v7822_v63  ;;  %v7539_v34 = vld [vmem:[#allocation2 + $0x98] sm:$0x1] }
 0x24e   :  { %v7839_v53 = vshll.u32 %v7536_v10, 16  ;;  %v10447_v49 = vrot.slane %v2992_v22, 9  ;;  %v7849_v60 = vrot.slane %v7847_v11, 5  ;;  %v14784_v4 = vrot.slane %v7853_v50, 5  ;;  %v7542_v10 = vld [vmem:[#allocation2 + $0xa4] sm:$0x1] }
 0x24f   :  { %v7859_v30 = vrot.slane %v7857_v26, 4  ;;  %v7808_v1 = vsel %vm13135_vm11, %v7803_v37, %v14730_v59  ;;  %v7818_v16 = vsel %vm13135_vm11, %v7813_v17, %v7817_v62  ;;  %v7836_v54 = vor.u32 %v7835_v38, %v14781_v6  ;;  %v12692_v11 = vld [vmem:[#allocation2 + $0x158] sm:$0x1] }
 0x250   :  { %11550 = vmatmul.mubr.msk.bf16.gmra.mrb[24].mxu1 %vm2028_vm12, %v16080_v36  ;;  %v16082_v36 = vld [vmem:[#allocation14_spill] sm:$0xff]  ;;  %v10448_v19 = vrot.slane %v2993_v61, 9  ;;  %v7870_v63 = vrot.slane %v7868_v39, 4  ;;  %v7873_v35 = vrot.slane %v7871_v8, 5  ;;  %v14792_v46 = vrot.slane %v7877_v32, 5  ;;  %v16084_v26 = vld [vmem:[#allocation15_spill] sm:$0xff] }
 0x251   :  { %11553 = vmatprep.mubr.msk.bf16.mxu1 %vm2028_vm12, %v16081_v15  ;;  %v3249_v25 = vrot.slane %v16082_v36, 5  ;;  %v7846_v15 = vrot.slane %v7844_v18, 4  ;;  %v7883_v22 = vrot.slane %v7881_v40, 4  ;;  %v16083_v18 = vcombine.low %v14482_v2, %v14486_v27  ;;  %v12694_v36 = vld [vmem:[#allocation2 + $0x164] sm:$0x1] }
 0x252   :  { %v14800_v59 = vrot.slane %v7826_v13, 4  ;;  %v3252_v50 = vrot.slane %v12692_v11, 5  ;;  %v3256_v37 = vrot.slane %v16084_v26, 5  ;;  %v16085_v17 = vcombine.low %v14490_v24, %v14494_v23  ;;  %v12693_v24 = vld [vmem:[#allocation2 + $0x16c] sm:$0xf]  ;;  %v16086_v26 = vld [vmem:[#allocation22_spill] sm:$0xff] }
 0x253   :  { %v3251_v62 = vrot.slane %v3249_v25, 4  ;;  %v7850_v2 = vor.u32 %v7849_v60, %v7846_v15  ;;  %v7860_v27 = vor.u32 %v7859_v30, %v14784_v4  ;;  %v7863_v38 = vshll.u32 %v7539_v34, 16  ;;  %v2994_v13 = vld [vmem:[#allocation2 + $0x168] sm:$0xe] }
 0x254   :  { %11856 = vmatmul.mubr.msk.bf16.vlgmr.msra.gmra.mrb[0].mxu0 %vm2028_vm12, %v14637_v28  ;;  %v7887_v61 = vshll.u32 %v7542_v10, 16  ;;  %v14811_v28 = vcombine.low %v7808_v1, %v7818_v16  ;;  %v7841_v39 = vrot.slane %v7839_v53, 5  ;;  %v14815_v8 = vsel %vm13595_vm15, %v10447_v49, %v3249_v25  ;;  %v7543_v15 = vld [vmem:[#allocation2 + $0xa8] sm:$0xf] }
 0x255   :  { %11920 = vmatpush3.bf16.msra.mxu0 %v14563_v44  ;;  %11859 = vmatprep.mubr.msk.bf16.mxu0 %vm2028_vm12, %v14642_v51  ;;  %v3263_v23 = vrot.slane %v12693_v24, 5  ;;  %v7837_v32 = vrot.slane %v7836_v54, 4  ;;  %v14819_v44 = vsel %vm13595_vm15, %v10448_v19, %v3256_v37  ;;  %v7874_v60 = vor.u32 %v7873_v35, %v7870_v63  ;;  %v7544_v19 = vld [vmem:[#allocation2 + $0xac] sm:$0xf]  ;;  %v12695_v63 = vld [vmem:[#allocation2 + $0x170] sm:$0x1] }
 0x256   :  { %v7884_v40 = vor.u32 %v7883_v22, %v14792_v46  ;;  %v7832_v51 = vsel %vm13135_vm11, %v14800_v59, %v14781_v6  ;;  %v14828_v53 = vsel %vm13595_vm15, %v3251_v62, %v3252_v50  ;;  %v3258_v49 = vrot.slane %v3256_v37, 4  ;;  %v2995_v22 = vld [vmem:[#allocation2 + $0x174] sm:$0xe] }
 0x257   :  { %v3259_v25 = vrot.slane %v12694_v36, 5  ;;  %v7851_v30 = vrot.slane %v7850_v2, 4  ;;  %v7861_v1 = vrot.slane %v7860_v27, 4  ;;  %v7865_v16 = vrot.slane %v7863_v38, 5 }
 0x258   :  { %11554 = vmatmul.mubr.msk.bf16.gmra.mrb[28].mxu1 %vm2028_vm12, %v16083_v18  ;;  %v7889_v54 = vrot.slane %v7887_v61, 5  ;;  %v10449_v34 = vrot.slane %v2994_v13, 9  ;;  %v3265_v10 = vrot.slane %v3263_v23, 4  ;;  %v3266_v35 = vrot.slane %v12695_v63, 5  ;;  %v12696_v18 = vld [vmem:[#allocation2 + $0x178] sm:$0xf] }
 0x259   :  { %11557 = vmatprep.mubr.msk.bf16.mxu1 %vm2028_vm12, %v16085_v17  ;;  %v3270_v6 = vrot.slane %v12696_v18, 5  ;;  %v7875_v59 = vrot.slane %v7874_v60, 4  ;;  %v7885_v11 = vrot.slane %v7884_v40, 4  ;;  %v7892_v62 = vshrl.u32 %v7543_v15, 16  ;;  %v12697_v60 = vld [vmem:[#allocation2 + $0x17c] sm:$0x1] }
 0x25a   :  { %v7895_v50 = vshll.u32 %v7543_v15, 16  ;;  %v16087_v37 = vcombine.low %v14513_v57, %v16086_v26  ;;  %v7842_v17 = vsel %vm13135_vm11, %v7837_v32, %v7841_v39  ;;  %v7901_v27 = vshll.u32 %v7544_v19, 16  ;;  %v7545_v32 = vld [vmem:[#allocation2 + $0xb0] sm:$0x1]  ;;  %v7547_v15 = vld [vmem:[#allocation2 + $0xb8] sm:$0xf] }
 0x25b   :  { %v7905_v38 = vshrl.u32 %v7544_v19, 16  ;;  %v16088_v61 = vcombine.low %v14571_v41, %v14575_v29  ;;  %v14848_v57 = vsel %vm13595_vm15, %v3258_v49, %v3259_v25  ;;  %v7866_v39 = vsel %vm13135_vm11, %v7861_v1, %v7865_v16  ;;  %v7546_v25 = vld [vmem:[#allocation2 + $0xb4] sm:$0xf]  ;;  %v7548_v19 = vld [vmem:[#allocation2 + $0xbc] sm:$0x1] }
 0x25c   :  { %11860 = vmatmul.mubr.msk.bf16.gmra.mrb[4].mxu0 %vm2028_vm12, %v14644_v42  ;;  %v7856_v42 = vsel %vm13135_vm11, %v7851_v30, %v14784_v4  ;;  %v10450_v24 = vrot.slane %v2995_v22, 9  ;;  %v14857_v41 = vsel %vm13595_vm15, %v10449_v34, %v3263_v23  ;;  %v14861_v29 = vsel %vm13595_vm15, %v3265_v10, %v3266_v35  ;;  %v7549_v63 = vld [vmem:[#allocation2 + $0xc0] sm:$0xf] }
 0x25d   :  { %11863 = vmatprep.mubr.msk.bf16.mxu0 %vm2028_vm12, %v14692_v43  ;;  %v3272_v43 = vrot.slane %v3270_v6, 4  ;;  %v3273_v40 = vrot.slane %v12697_v60, 5  ;;  %v7880_v4 = vsel %vm13135_vm11, %v7875_v59, %v14792_v46  ;;  %v7890_v13 = vsel %vm13135_vm11, %v7885_v11, %v7889_v54  ;;  %v7550_v59 = vld [vmem:[#allocation2 + $0xc4] sm:$0xf]  ;;  %v7552_v11 = vld [vmem:[#allocation2 + $0xcc] sm:$0xf] }
 0x25e   :  { %v7894_v49 = vrot.slane %v7892_v62, 4  ;;  %v7897_v36 = vrot.slane %v7895_v50, 5  ;;  %v14868_v23 = vcombine.low %v7832_v51, %v7842_v17  ;;  %v14870_v30 = vrot.slane %v7901_v27, 5  ;;  %v7553_v17 = vld [vmem:[#allocation2 + $0xd0] sm:$0xf] }
 0x25f   :  { %v7907_v1 = vrot.slane %v7905_v38, 4  ;;  %v7911_v16 = vshll.u32 %v7545_v32, 16  ;;  %v14874_v10 = vcombine.low %v7856_v42, %v7866_v39  ;;  %v14880_v54 = vsel %vm13595_vm15, %v10450_v24, %v3270_v6  ;;  %v16090_v39 = vld [vmem:[#allocation23_spill] sm:$0xff]  ;;  %v16091_v24 = vld [vmem:[#allocation24_spill] sm:$0xff]  ;;  %v16094_v46 = vld [vmem:[#allocation26_spill] sm:$0xff] }
 0x260   :  { %11558 = vmatmul.mubr.msk.bf16.gmra.mrb[32].mxu1 %vm2028_vm12, %v16087_v37  ;;  %v14882_v51 = vcombine.low %v7880_v4, %v7890_v13  ;;  %v14886_v35 = vsel %vm13595_vm15, %v3272_v43, %v3273_v40  ;;  %v7916_v22 = vshrl.u32 %v7546_v25, 16  ;;  %v7919_v18 = vshll.u32 %v7546_v25, 16 }
 0x261   :  { %11561 = vmatprep.mubr.msk.bf16.mxu1 %vm2028_vm12, %v16088_v61  ;;  %v7898_v62 = vor.u32 %v7897_v36, %v7894_v49  ;;  %v7925_v50 = vshll.u32 %v7547_v15, 16  ;;  %v7929_v26 = vshrl.u32 %v7547_v15, 16  ;;  %v7935_v37 = vshll.u32 %v7548_v19, 16 }
 0x262   :  { %v16089_v6 = vcombine.low %v14581_v48, %v14600_v55  ;;  %v7908_v27 = vor.u32 %v7907_v1, %v14870_v30  ;;  %v14895_v38 = vrot.slane %v7911_v16, 5  ;;  %v7940_v61 = vshrl.u32 %v7549_v63, 16  ;;  %v14903_v48 = vld [vmem:[#allocation2 + $0x180] sm:$0xe]  ;;  %v7555_v16 = vld [vmem:[#allocation2 + $0xf0] sm:$0xf] }
 0x263   :  { %v7943_v42 = vshll.u32 %v7549_v63, 16  ;;  %v16092_v32 = vcombine.low %v16090_v39, %v16091_v24  ;;  %v7949_v55 = vshll.u32 %v7550_v59, 16  ;;  %v7953_v43 = vshrl.u32 %v7550_v59, 16  ;;  %v7551_v63 = vld [vmem:[#allocation2 + $0xc8] sm:$0x1] }
 0x264   :  { %11864 = vmatmul.mubr.msk.bf16.gmra.mrb[8].mxu0 %vm2028_vm12, %v14747_v31  ;;  %v7964_v60 = vshrl.u32 %v7552_v11, 16  ;;  %v7967_v31 = vshll.u32 %v7552_v11, 16  ;;  %v7918_v40 = vrot.slane %v7916_v22, 4  ;;  %v7921_v4 = vrot.slane %v7919_v18, 5  ;;  %v7554_v18 = vld [vmem:[#allocation2 + $0xd4] sm:$0x1] }
 0x265   :  { %11867 = vmatprep.mubr.msk.bf16.mxu0 %vm2028_vm12, %v14762_v58  ;;  %v7973_v13 = vshll.u32 %v7553_v17, 16  ;;  %v7977_v49 = vshrl.u32 %v7553_v17, 16  ;;  %v14905_v36 = vrot.slane %v7898_v62, 4  ;;  %v14907_v25 = vrot.slane %v7925_v50, 5 }
 0x266   :  { %v7931_v15 = vrot.slane %v7929_v26, 4  ;;  %v14909_v1 = vrot.slane %v7935_v37, 5  ;;  %v14911_v19 = vrot.slane %v7908_v27, 4  ;;  %v10451_v58 = vrot.slane %v14903_v48, 9  ;;  %v7556_v26 = vld [vmem:[#allocation2 + $0xf4] sm:$0xf] }
 0x267   :  { %v7942_v59 = vrot.slane %v7940_v61, 4  ;;  %v14914_v11 = vrot.slane %v7949_v55, 5  ;;  %v7955_v22 = vrot.slane %v7953_v43, 4  ;;  %v7966_v17 = vrot.slane %v7964_v60, 4  ;;  %v12698_v61 = vld [vmem:[#allocation2 + $0x184] sm:$0xf] }
 0x268   :  { %11562 = vmatmul.mubr.msk.bf16.gmra.mrb[36].mxu1 %vm2028_vm12, %v16089_v6  ;;  %v7945_v6 = vrot.slane %v7943_v42, 5  ;;  %v7969_v62 = vrot.slane %v7967_v31, 5  ;;  %v14916_v39 = vrot.slane %v7973_v13, 5  ;;  %v7979_v50 = vrot.slane %v7977_v49, 4  ;;  %v12699_v48 = vld [vmem:[#allocation2 + $0x188] sm:$0x1] }
 0x269   :  { %11565 = vmatprep.mubr.msk.bf16.mxu1 %vm2028_vm12, %v16092_v32  ;;  %v7988_v37 = vshrl.u32 %v7555_v16, 16  ;;  %v7991_v24 = vshll.u32 %v7555_v16, 16  ;;  %v7922_v32 = vor.u32 %v7921_v4, %v7918_v40  ;;  %v3277_v42 = vrot.slane %v12698_v61, 5  ;;  %v16093_v43 = vld [vmem:[#allocation25_spill] sm:$0xff]  ;;  %v12700_v49 = vld [vmem:[#allocation2 + $0x190] sm:$0xf] }
 0x26a   :  { %v3280_v55 = vrot.slane %v12699_v48, 5  ;;  %v16095_v60 = vcombine.low %v16093_v43, %v16094_v46  ;;  %v7932_v31 = vor.u32 %v7931_v15, %v14907_v25  ;;  %v2997_v13 = vld [vmem:[#allocation2 + $0x18c] sm:$0xe]  ;;  %v3284_v16 = vrot.slane %v12700_v49, 5 }
 0x26b   :  { %v7946_v34 = vor.u32 %v7945_v6, %v7942_v59  ;;  %v7959_v2 = vshll.u32 %v7551_v63, 16  ;;  %v7956_v46 = vor.u32 %v7955_v22, %v14914_v11  ;;  %v7983_v40 = vshll.u32 %v7554_v18, 16  ;;  %v12701_v6 = vld [vmem:[#allocation2 + $0x194] sm:$0x1] }
 0x26c   :  { %11868 = vmatmul.mubr.msk.bf16.gmra.mrb[12].mxu0 %vm2028_vm12, %v14764_v45  ;;  %v7997_v4 = vshll.u32 %v7556_v26, 16  ;;  %v8001_v45 = vshrl.u32 %v7556_v26, 16  ;;  %v7970_v61 = vor.u32 %v7969_v62, %v7966_v17  ;;  %v7980_v15 = vor.u32 %v7979_v50, %v14916_v39  ;;  %v7557_v17 = vld [vmem:[#allocation2 + $0xf8] sm:$0x1] }
 0x26d   :  { %11871 = vmatprep.mubr.msk.bf16.mxu0 %vm2028_vm12, %v14811_v28  ;;  %v7990_v48 = vrot.slane %v7988_v37, 4  ;;  %v7993_v43 = vrot.slane %v7991_v24, 5  ;;  %v7914_v21 = vsel %vm13135_vm11, %v14911_v19, %v14895_v38  ;;  %v7923_v5 = vrot.slane %v7922_v32, 4  ;;  %v7559_v32 = vld [vmem:[#allocation2 + $0x100] sm:$0xf] }
 0x26e   :  { %v10452_v63 = vrot.slane %v2997_v13, 9  ;;  %v7933_v59 = vrot.slane %v7932_v31, 4  ;;  %v3286_v28 = vrot.slane %v3284_v16, 4  ;;  %v3287_v22 = vrot.slane %v12701_v6, 5 }
 0x26f   :  { %v7947_v18 = vrot.slane %v7946_v34, 4  ;;  %v7961_v26 = vrot.slane %v7959_v2, 5  ;;  %v14941_v62 = vrot.slane %v7997_v4, 5  ;;  %v8003_v50 = vrot.slane %v8001_v45, 4  ;;  %v7562_v4 = vld [vmem:[#allocation2 + $0x10c] sm:$0xf] }
 0x270   :  { %11566 = vmatmul.mubr.msk.bf16.gmra.mrb[40].mxu1 %vm2028_vm12, %v16095_v60  ;;  %v7957_v60 = vrot.slane %v7956_v46, 4  ;;  %v7971_v37 = vrot.slane %v7970_v61, 4  ;;  %v7981_v24 = vrot.slane %v7980_v15, 4  ;;  %v7985_v49 = vrot.slane %v7983_v40, 5 }
 0x271   :  { %11569 = vmatprep.mubr.msk.bf16.mxu1 %vm2028_vm12, %v10475_v14  ;;  %v3279_v14 = vrot.slane %v3277_v42, 4  ;;  %v7994_v27 = vor.u32 %v7993_v43, %v7990_v48  ;;  %v7928_v38 = vsel %vm13135_vm11, %v7923_v5, %v14907_v25  ;;  %v14948_v19 = vsel %vm13595_vm15, %v10451_v58, %v3277_v42  ;;  %v7564_v48 = vld [vmem:[#allocation2 + $0x114] sm:$0xf]  ;;  %v7565_v43 = vld [vmem:[#allocation2 + $0x118] sm:$0xf] }
 0x272   :  { %v14956_v34 = vsel %vm13595_vm15, %v10452_v63, %v3284_v16  ;;  %v7938_v25 = vsel %vm13135_vm11, %v7933_v59, %v14909_v1  ;;  %v14969_v58 = vsel %vm13595_vm15, %v3286_v28, %v3287_v22  ;;  %v7952_v42 = vsel %vm13135_vm11, %v7947_v18, %v14914_v11  ;;  %v7568_v22 = vld [vmem:[#allocation2 + $0x124] sm:$0xf] }
 0x273   :  { %v14952_v2 = vsel %vm13595_vm15, %v3279_v14, %v3280_v55  ;;  %v8007_v55 = vshll.u32 %v7557_v17, 16  ;;  %v16096_v12 = vcombine.low %v14739_v3, %v14743_v33  ;;  %v7962_v9 = vsel %vm13135_vm11, %v7957_v60, %v7961_v26  ;;  %v7560_v33 = vld [vmem:[#allocation2 + $0x104] sm:$0x1]  ;;  %v7567_v14 = vld [vmem:[#allocation2 + $0x120] sm:$0xf] }
 0x274   :  { %11872 = vmatmul.mubr.msk.bf16.gmra.mrb[16].mxu0 %vm2028_vm12, %v14868_v23  ;;  %v8012_v23 = vshrl.u32 %v7558_v0, 16  ;;  %v8015_v1 = vshll.u32 %v7558_v0, 16  ;;  %v7976_v11 = vsel %vm13135_vm11, %v7971_v37, %v14916_v39  ;;  %v7986_v31 = vsel %vm13135_vm11, %v7981_v24, %v7985_v49  ;;  %v7561_v39 = vld [vmem:[#allocation2 + $0x108] sm:$0xf] }
 0x275   :  { %11875 = vmatprep.mubr.msk.bf16.mxu0 %vm2028_vm12, %v14874_v10  ;;  %v7995_v3 = vrot.slane %v7994_v27, 4  ;;  %v8021_v13 = vshll.u32 %v7559_v32, 16  ;;  %v10482_v10 = vcombine.low %v14880_v54, %v14886_v35  ;;  %v16097_v16 = vsel %vm13135_vm11, %v14905_v36, %v14870_v30 }
 0x276   :  { %v10817_v46 = vcombine.low %v16097_v16, %v7914_v21  ;;  %v10483_v0 = vcombine.low %v14948_v19, %v14952_v2  ;;  %v8025_v40 = vshrl.u32 %v7559_v32, 16  ;;  %v14997_v45 = vcombine.low %v7928_v38, %v7938_v25  ;;  %v7569_v16 = vld [vmem:[#allocation2 + $0x128] sm:$0x1] }
 0x277   :  { %v10484_v27 = vcombine.low %v14956_v34, %v14969_v58  ;;  %v15001_v61 = vcombine.low %v7952_v42, %v7962_v9  ;;  %v8009_v15 = vrot.slane %v8007_v55, 5  ;;  %v15003_v5 = vcombine.low %v7976_v11, %v7986_v31  ;;  %v7566_v11 = vld [vmem:[#allocation2 + $0x11c] sm:$0x1] }
 0x278   :  { %11570 = vmatmul.mubr.msk.bf16.gmra.mrb[44].mxu1 %vm2028_vm12, %v10476_v52  ;;  %v8004_v52 = vor.u32 %v8003_v50, %v14941_v62  ;;  %v8014_v36 = vrot.slane %v8012_v23, 4  ;;  %v8017_v21 = vrot.slane %v8015_v1, 5  ;;  %v8000_v63 = vsel %vm13135_vm11, %v7995_v3, %v14941_v62  ;;  %v7570_v1 = vld [vmem:[#allocation2 + $0x12c] sm:$0xf] }
 0x279   :  { %11573 = vmatprep.mubr.msk.bf16.mxu1 %vm2028_vm12, %v16096_v12  ;;  %v15008_v59 = vrot.slane %v8021_v13, 5  ;;  %v8031_v28 = vshll.u32 %v7560_v33, 16  ;;  %v8036_v6 = vshrl.u32 %v7561_v39, 16  ;;  %v8027_v18 = vrot.slane %v8025_v40, 4  ;;  %v7563_v12 = vld [vmem:[#allocation2 + $0x110] sm:$0x1] }
 0x27a   :  { %v8005_v30 = vrot.slane %v8004_v52, 4  ;;  %v8039_v60 = vshll.u32 %v7561_v39, 16  ;;  %v8045_v26 = vshll.u32 %v7562_v4, 16  ;;  %v8049_v17 = vshrl.u32 %v7562_v4, 16 }
 0x27b   :  { %v16098_v50 = vcombine.low %v14753_v7, %v14757_v20  ;;  %v8060_v37 = vshrl.u32 %v7564_v48, 16  ;;  %v8063_v24 = vshll.u32 %v7564_v48, 16  ;;  %v8069_v62 = vshll.u32 %v7565_v43, 16 }
 0x27c   :  { %11876 = vmatmul.mubr.msk.bf16.gmra.mrb[20].mxu0 %vm2028_vm12, %v14882_v51  ;;  %v8073_v49 = vshrl.u32 %v7565_v43, 16  ;;  %v16099_v38 = vcombine.low %v14815_v8, %v14828_v53  ;;  %v8084_v32 = vshrl.u32 %v7567_v14, 16  ;;  %v8087_v25 = vshll.u32 %v7567_v14, 16  ;;  %v7571_v43 = vld [vmem:[#allocation2 + $0x130] sm:$0xf] }
 0x27d   :  { %11879 = vmatprep.mubr.msk.bf16.mxu0 %vm2028_vm12, %v10817_v46  ;;  %v8093_v42 = vshll.u32 %v7568_v22, 16  ;;  %v8097_v7 = vshrl.u32 %v7568_v22, 16  ;;  %v8010_v20 = vsel %vm13135_vm11, %v8005_v30, %v8009_v15  ;;  %v8018_v55 = vor.u32 %v8017_v21, %v8014_v36  ;;  %v7573_v22 = vld [vmem:[#allocation2 + $0x138] sm:$0xf] }
 0x27e   :  { %v15023_v51 = vrot.slane %v8031_v28, 5  ;;  %v8038_v9 = vrot.slane %v8036_v6, 4  ;;  %v8028_v52 = vor.u32 %v8027_v18, %v15008_v59  ;;  %v8041_v23 = vrot.slane %v8039_v60, 5 }
 0x27f   :  { %v15026_v8 = vrot.slane %v8045_v26, 5  ;;  %v8051_v53 = vrot.slane %v8049_v17, 4  ;;  %v8062_v31 = vrot.slane %v8060_v37, 4  ;;  %v8065_v3 = vrot.slane %v8063_v24, 5 }
 0x280   :  { %11574 = vmatmul.mubr.msk.bf16.gmra.mrb[48].mxu1 %vm2028_vm12, %v16098_v50  ;;  %v15028_v33 = vrot.slane %v8069_v62, 5  ;;  %v8075_v13 = vrot.slane %v8073_v49, 4  ;;  %v8086_v46 = vrot.slane %v8084_v32, 4  ;;  %v8089_v40 = vrot.slane %v8087_v25, 5  ;;  %v7574_v50 = vld [vmem:[#allocation2 + $0x13c] sm:$0xf] }
 0x281   :  { %11577 = vmatprep.mubr.msk.bf16.mxu1 %vm2028_vm12, %v16099_v38  ;;  %v15030_v39 = vrot.slane %v8093_v42, 5  ;;  %v8099_v4 = vrot.slane %v8097_v7, 4  ;;  %v10821_v15 = vcombine.low %v8000_v63, %v8010_v20  ;;  %v15032_v48 = vrot.slane %v8018_v55, 4 }
 0x282   :  { %v8108_v30 = vshrl.u32 %v7570_v1, 16  ;;  %v8111_v36 = vshll.u32 %v7570_v1, 16  ;;  %v15034_v21 = vrot.slane %v8028_v52, 4  ;;  %v8042_v14 = vor.u32 %v8041_v23, %v8038_v9  ;;  %v7572_v1 = vld [vmem:[#allocation2 + $0x134] sm:$0x1] }
 0x283   :  { %v8052_v28 = vor.u32 %v8051_v53, %v15026_v8  ;;  %v8055_v6 = vshll.u32 %v7563_v12, 16  ;;  %v16100_v18 = vcombine.low %v14819_v44, %v14848_v57  ;;  %v8066_v63 = vor.u32 %v8065_v3, %v8062_v31 }
 0x284   :  { %11880 = vmatmul.mubr.msk.bf16.gmra.mrb[24].mxu0 %vm2028_vm12, %v14997_v45  ;;  %v8076_v60 = vor.u32 %v8075_v13, %v15028_v33  ;;  %v8079_v26 = vshll.u32 %v7566_v11, 16  ;;  %v8103_v17 = vshll.u32 %v7569_v16, 16  ;;  %v16101_v37 = vcombine.low %v14857_v41, %v14861_v29 }
 0x285   :  { %11883 = vmatprep.mubr.msk.bf16.mxu0 %vm2028_vm12, %v15001_v61  ;;  %v8090_v44 = vor.u32 %v8089_v40, %v8086_v46  ;;  %v8100_v57 = vor.u32 %v8099_v4, %v15030_v39  ;;  %v8117_v24 = vshll.u32 %v7571_v43, 16  ;;  %v8121_v62 = vshrl.u32 %v7571_v43, 16  ;;  %v7575_v46 = vld [vmem:[#allocation2 + $0x140] sm:$0x1]  ;;  %v16102_v43 = vld [vmem:[#allocation11_spill] sm:$0xff] }
 0x286   :  { %v8110_v45 = vrot.slane %v8108_v30, 4  ;;  %v8113_v49 = vrot.slane %v8111_v36, 5  ;;  %v8132_v38 = vshrl.u32 %v7573_v22, 16  ;;  %v8135_v32 = vshll.u32 %v7573_v22, 16  ;;  %v16103_v30 = vld [vmem:[#allocation10_spill] sm:$0xff] }
 0x287   :  { %v8043_v25 = vrot.slane %v8042_v14, 4  ;;  %v8057_v42 = vrot.slane %v8055_v6, 5  ;;  %v8141_v7 = vshll.u32 %v7574_v50, 16  ;;  %v8145_v20 = vshrl.u32 %v7574_v50, 16 }
 0x288   :  { %11578 = vmatmul.mubr.msk.bf16.gmra.mrb[52].mxu1 %vm2028_vm12, %v16100_v18  ;;  %v8053_v55 = vrot.slane %v8052_v28, 4  ;;  %v8067_v41 = vrot.slane %v8066_v63, 4  ;;  %v8077_v29 = vrot.slane %v8076_v60, 4  ;;  %v8081_v12 = vrot.slane %v8079_v26, 5  ;;  %v7577_v28 = vld [vmem:[#allocation2 + $0x148] sm:$0xf] }
 0x289   :  { %11581 = vmatprep.mubr.msk.bf16.mxu1 %vm2028_vm12, %v16101_v37  ;;  %v8091_v9 = vrot.slane %v8090_v44, 4  ;;  %v8105_v52 = vrot.slane %v8103_v17, 5  ;;  %v15051_v61 = vrot.slane %v8117_v24, 5  ;;  %v8123_v23 = vrot.slane %v8121_v62, 4  ;;  %v12545_v63 = vld [vmem:[#allocation2 + $0xc] sm:$0xff]  }
 0x28a   :  { %v8101_v53 = vrot.slane %v8100_v57, 4  ;;  %v8114_v11 = vor.u32 %v8113_v49, %v8110_v45  ;;  %v8134_v31 = vrot.slane %v8132_v38, 4  ;;  %v8137_v3 = vrot.slane %v8135_v32, 5  ;;  %v7580_v57 = vld [vmem:[#allocation2 + $0x154] sm:$0xf] }
 0x28b   :  { %v8024_v13 = vsel %vm13135_vm11, %v15032_v48, %v15008_v59  ;;  %v8034_v16 = vsel %vm13135_vm11, %v15034_v21, %v15023_v51  ;;  %v15061_v40 = vrot.slane %v8141_v7, 5  ;;  %v8147_v4 = vrot.slane %v8145_v20, 4  ;;  %v7576_v21 = vld [vmem:[#allocation2 + $0x144] sm:$0xf]  ;;  %v7582_v62 = vld [vmem:[#allocation2 + $0x15c] sm:$0xf] }
 0x28c   :  { %v16104_v36 = vor.u32 %v16102_v43, %v16103_v30  ;;  %11884 = vmatmul.mubr.msk.bf16.gmra.mrb[28].mxu0 %vm2028_vm12, %v15003_v5  ;;  %v8048_v59 = vsel %vm13135_vm11, %v8043_v25, %v15026_v8  ;;  %v8058_v51 = vsel %vm13135_vm11, %v8053_v55, %v8057_v42  ;;  %v8072_v48 = vsel %vm13135_vm11, %v8067_v41, %v15028_v33  ;;  %v7579_v8 = vld [vmem:[#allocation2 + $0x150] sm:$0xf]  ;;  %v7583_v41 = vld [vmem:[#allocation2 + $0x160] sm:$0xf] }
 0x28d   :  { %11887 = vmatprep.mubr.msk.bf16.mxu0 %vm2028_vm12, %v10821_v15  ;;  %v8082_v54 = vsel %vm13135_vm11, %v8077_v29, %v8081_v12  ;;  %v8096_v35 = vsel %vm13135_vm11, %v8091_v9, %v15030_v39  ;;  %v8127_v5 = vshll.u32 %v7572_v1, 16  ;;  %v8106_v33 = vsel %vm13135_vm11, %v8101_v53, %v8105_v52  ;;  %v4566_v25 = vld [vmem:[#allocation2 + $0xf0] sm:$0xf]  ;;  %v7578_v29 = vld [vmem:[#allocation2 + $0x14c] sm:$0x1] }
 0x28e   :  { %v15066_v14 = vrot.slane %v16104_v36, 4  ;;  %v15095_v6 = vrot.slane %v8114_v11, 4  ;;  %v8138_v19 = vor.u32 %v8137_v3, %v8134_v31  ;;  %v8151_v2 = vshll.u32 %v7575_v46, 16  ;;  %v16105_v31 = vld [vmem:[#allocation13_spill] sm:$0xff]  ;;  %v12546_v36 = vld [vmem:[#allocation2 + $0x18] sm:$0xff]  }
 0x28f   :  { %v8156_v15 = vshrl.u32 %v7576_v21, 16  ;;  %v8159_v22 = vshll.u32 %v7576_v21, 16  ;;  %v8165_v18 = vshll.u32 %v7577_v28, 16  ;;  %v10822_v60 = vcombine.low %v8024_v13, %v8034_v16 }
 0x290   :  { %11582 = vmatmul.mubr.msk.bf16.gmra.mrb[56].mxu1 %vm2028_vm12, %v10482_v10  ;;  %v8124_v10 = vor.u32 %v8123_v23, %v15051_v61  ;;  %v10823_v26 = vcombine.low %v8048_v59, %v8058_v51  ;;  %v8169_v39 = vshrl.u32 %v7577_v28, 16  ;;  %v8180_v17 = vshrl.u32 %v7579_v8, 16  ;;  %v12547_v28 = vld [vmem:[#allocation2 + $0x24] sm:$0xff]  }
 0x291   :  { %11585 = vmatprep.mubr.msk.bf16.mxu1 %vm2028_vm12, %v10483_v0  ;;  %v8148_v0 = vor.u32 %v8147_v4, %v15061_v40  ;;  %v10824_v50 = vcombine.low %v8072_v48, %v8082_v54  ;;  %v15098_v37 = vcombine.low %v8096_v35, %v8106_v33  ;;  %v15100_v44 = vrot.slane %v8127_v5, 5  ;;  %v7581_v48 = vld [vmem:[#allocation2 + $0x158] sm:$0x1]  ;;  %v7585_v5 = vld [vmem:[#allocation2 + $0x168] sm:$0xf] }
 0x292   :  { %v8183_v24 = vshll.u32 %v7579_v8, 16  ;;  %v8120_v45 = vsel %vm13135_vm11, %v15095_v6, %v15051_v61  ;;  %v15106_v49 = vrot.slane %v8124_v10, 4  ;;  %v15108_v38 = vrot.slane %v8138_v19, 4 }
 0x293   :  { %v15110_v32 = vrot.slane %v8151_v2, 5  ;;  %v15112_v42 = vrot.slane %v8148_v0, 4  ;;  %v8158_v7 = vrot.slane %v8156_v15, 4  ;;  %v8161_v20 = vrot.slane %v8159_v22, 5  ;;  %v7586_v15 = vld [vmem:[#allocation2 + $0x16c] sm:$0xf] }
 0x294   :  { %v15114_v55 = vrot.slane %v8165_v18, 5  ;;  %11888 = vmatmul.mubr.msk.bf16.gmra.mrb[32].mxu0 %vm2028_vm12, %v10822_v60  ;;  %v8171_v12 = vrot.slane %v8169_v39, 4  ;;  %v8182_v9 = vrot.slane %v8180_v17, 4  ;;  %v8189_v52 = vshll.u32 %v7580_v57, 16  ;;  %v7584_v60 = vld [vmem:[#allocation2 + $0x164] sm:$0x1] }
 0x295   :  { %v8193_v23 = vshrl.u32 %v7580_v57, 16  ;;  %11891 = vmatprep.mubr.msk.bf16.mxu0 %vm2028_vm12, %v10823_v26  ;;  %v8185_v53 = vrot.slane %v8183_v24, 5  ;;  %v5020_v1 = vshrl.u32 %v4566_v25, 16  ;;  %v5023_v11 = vshll.u32 %v4566_v25, 16  ;;  %v16106_v57 = vld [vmem:[#allocation6_spill] sm:$0xff] }
 0x296   :  { %v5042_v34 = vsel %vm13135_vm11, %v15066_v14, %v16105_v31  ;;  %v8204_v58 = vshrl.u32 %v7582_v62, 16  ;;  %v8213_v3 = vshll.u32 %v7583_v41, 16  ;;  %v8217_v13 = vshrl.u32 %v7583_v41, 16  ;;  %v7591_v31 = vld [vmem:[#allocation2 + $0x180] sm:$0xf] }
 0x297   :  { %v8162_v16 = vor.u32 %v8161_v20, %v8158_v7  ;;  %v8175_v46 = vshll.u32 %v7578_v29, 16  ;;  %v5022_v4 = vrot.slane %v5020_v1, 4  ;;  %v5025_v43 = vrot.slane %v5023_v11, 5  ;;  %v12548_v20 = vld [vmem:[#allocation2 + $0x30] sm:$0xff]  }
 0x298   :  { %11586 = vmatmul.mubr.msk.bf16.gmra.mrb[60].mxu1 %vm2028_vm12, %v10484_v27  ;;  %v8207_v27 = vshll.u32 %v7582_v62, 16  ;;  %v8130_v59 = vsel %vm13135_vm11, %v15106_v49, %v15100_v44  ;;  %v8172_v51 = vor.u32 %v8171_v12, %v15114_v55  ;;  %v15132_v21 = vrot.slane %v8189_v52, 5  ;;  %v7587_v12 = vld [vmem:[#allocation2 + $0x170] sm:$0x1]  ;;  %v12549_v52 = vld [vmem:[#allocation2 + $0x3c] sm:$0xff]  }
 0x299   :  { %11591 = vmatprep.mubr.msk.bf16.mxu1 %vm2028_vm12, %v12545_v63  ;;  %v8195_v14 = vrot.slane %v8193_v23, 4  ;;  %v8144_v54 = vsel %vm13135_vm11, %v15108_v38, %v15061_v40  ;;  %v8154_v35 = vsel %vm13135_vm11, %v15112_v42, %v15110_v32  ;;  %v8186_v10 = vor.u32 %v8185_v53, %v8182_v9  ;;  %v7588_v42 = vld [vmem:[#allocation2 + $0x174] sm:$0xf]  ;;  %v7589_v9 = vld [vmem:[#allocation2 + $0x178] sm:$0xf] }
 0x29a   :  { %v5026_v8 = vor.u32 %v5025_v43, %v5022_v4  ;;  %v8206_v33 = vrot.slane %v8204_v58, 4  ;;  %v8209_v19 = vrot.slane %v8207_v27, 5  ;;  %v15142_v2 = vrot.slane %v8213_v3, 5  ;;  %v7592_v58 = vld [vmem:[#allocation2 + $0x184] sm:$0xf] }
 0x29b   :  { %v8219_v0 = vrot.slane %v8217_v13, 4  ;;  %v8163_v22 = vrot.slane %v8162_v16, 4  ;;  %v8177_v18 = vrot.slane %v8175_v46, 5  ;;  %v8199_v63 = vshll.u32 %v7581_v48, 16 }
 0x29c   :  { %v5027_v26 = vrot.slane %v5026_v8, 4  ;;  %11892 = vmatmul.mubr.msk.bf16.gmra.mrb[36].mxu0 %vm2028_vm12, %v10824_v50  ;;  %v8173_v40 = vrot.slane %v8172_v51, 4  ;;  %v8196_v39 = vor.u32 %v8195_v14, %v15132_v21  ;;  %v8228_v17 = vshrl.u32 %v7585_v5, 16  ;;  %v7590_v8 = vld [vmem:[#allocation2 + $0x17c] sm:$0x1] }
 0x29d   :  { %v8231_v44 = vshll.u32 %v7585_v5, 16  ;;  %v8187_v24 = vrot.slane %v8186_v10, 4  ;;  %v8237_v62 = vshll.u32 %v7586_v15, 16  ;;  %v8241_v49 = vshrl.u32 %v7586_v15, 16  ;;  %11895 = vmatprep.mubr.msk.bf16.mxu0 %vm2028_vm12, %v15098_v37 }
 0x29e   :  { %v5032_v38 = vsel %vm13135_vm11, %v5027_v26, %v16103_v30  ;;  %v8210_v50 = vor.u32 %v8209_v19, %v8206_v33  ;;  %v8220_v32 = vor.u32 %v8219_v0, %v15142_v2  ;;  %v8223_v25 = vshll.u32 %v7584_v60, 16  ;;  %v7593_v26 = vld [vmem:[#allocation2 + $0x188] sm:$0x1] }
 0x29f   :  { %v15155_v7 = vcombine.low %v5032_v38, %v5042_v34  ;;  %v10826_v41 = vcombine.low %v8120_v45, %v8130_v59  ;;  %v10827_v29 = vcombine.low %v8144_v54, %v8154_v35  ;;  %v8168_v30 = vsel %vm13135_vm11, %v8163_v22, %v15114_v55  ;;  %v7594_v22 = vld [vmem:[#allocation2 + $0x18c] sm:$0xf] }
 0x2a0   :  { %11592 = vmatmul.mubr.msk.bf16.vlgmr.msra.gmra.mrb[0].mxu1 %vm2028_vm12, %v12546_v36  ;;  %v8201_v37 = vrot.slane %v8199_v63, 5  ;;  %v8178_v23 = vsel %vm13135_vm11, %v8173_v40, %v8177_v18  ;;  %v8197_v53 = vrot.slane %v8196_v39, 4  ;;  %v8230_v1 = vrot.slane %v8228_v17, 4  ;;  %v12550_v18 = vld [vmem:[#allocation2 + $0x48] sm:$0xff]   ;;  %v12551_v17 = vld [vmem:[#allocation2 + $0x54] sm:$0xff]  }
 0x2a1   :  { %11986 = vmatpush3.bf16.msra.mxu1 %v16106_v57  ;;  %11595 = vmatprep.mubr.msk.bf16.mxu1 %vm2028_vm12, %v12547_v28  ;;  %v8233_v11 = vrot.slane %v8231_v44, 5  ;;  %v15167_v34 = vrot.slane %v8237_v62, 5  ;;  %v8243_v61 = vrot.slane %v8241_v49, 4  ;;  %v8252_v6 = vshrl.u32 %v7588_v42, 16  ;;  %v7595_v62 = vld [vmem:[#allocation2 + $0x190] sm:$0xf] }
 0x2a2   :  { %v8255_v45 = vshll.u32 %v7588_v42, 16  ;;  %v8192_v55 = vsel %vm13135_vm11, %v8187_v24, %v15132_v21  ;;  %v8211_v27 = vrot.slane %v8210_v50, 4  ;;  %v8221_v3 = vrot.slane %v8220_v32, 4  ;;  %v7597_v42 = vld [vmem:[#allocation2 + $0x198] sm:$0xf] }
 0x2a3   :  { %v8225_v13 = vrot.slane %v8223_v25, 5  ;;  %v8261_v16 = vshll.u32 %v7589_v9, 16  ;;  %v8265_v46 = vshrl.u32 %v7589_v9, 16  ;;  %v8276_v4 = vshrl.u32 %v7591_v31, 16 }
 0x2a4   :  { %v8279_v43 = vshll.u32 %v7591_v31, 16  ;;  %11896 = vmatmul.mubr.msk.bf16.gmra.mrb[40].mxu0 %vm2028_vm12, %v10826_v41  ;;  %v8202_v36 = vsel %vm13135_vm11, %v8197_v53, %v8201_v37  ;;  %v8247_v59 = vshll.u32 %v7587_v12, 16  ;;  %v8285_v51 = vshll.u32 %v7592_v58, 16 }
 0x2a5   :  { %v8289_v48 = vshrl.u32 %v7592_v58, 16  ;;  %11899 = vmatprep.mubr.msk.bf16.mxu0 %vm2028_vm12, %v10827_v29  ;;  %v8234_v21 = vor.u32 %v8233_v11, %v8230_v1  ;;  %v8244_v14 = vor.u32 %v8243_v61, %v15167_v34  ;;  %v8254_v28 = vrot.slane %v8252_v6, 4 }
 0x2a6   :  { %v8257_v54 = vrot.slane %v8255_v45, 5  ;;  %v10828_v35 = vcombine.low %v8168_v30, %v8178_v23  ;;  %v8216_v10 = vsel %vm13135_vm11, %v8211_v27, %v15142_v2  ;;  %v8226_v5 = vsel %vm13135_vm11, %v8221_v3, %v8225_v13 }
 0x2a7   :  { %v15184_v33 = vrot.slane %v8261_v16, 5  ;;  %v8267_v19 = vrot.slane %v8265_v46, 4  ;;  %v8278_v0 = vrot.slane %v8276_v4, 4  ;;  %v8281_v15 = vrot.slane %v8279_v43, 5  ;;  %v12553_v46 = vld [vmem:[#allocation2 + $0x6c] sm:$0xff]  }
 0x2a8   :  { %11596 = vmatmul.mubr.msk.bf16.gmra.mrb[4].mxu1 %vm2028_vm12, %v12548_v20  ;;  %v10829_v63 = vcombine.low %v8192_v55, %v8202_v36  ;;  %v8249_v60 = vrot.slane %v8247_v59, 5  ;;  %v15186_v40 = vrot.slane %v8285_v51, 5  ;;  %v8291_v39 = vrot.slane %v8289_v48, 4  ;;  %v7598_v20 = vld [vmem:[#allocation2 + $0x19c] sm:$0xf]  ;;  %v12552_v55 = vld [vmem:[#allocation2 + $0x60] sm:$0xff]  }
 0x2a9   :  { %11599 = vmatprep.mubr.msk.bf16.mxu1 %vm2028_vm12, %v12549_v52  ;;  %v8235_v44 = vrot.slane %v8234_v21, 4  ;;  %v8245_v2 = vrot.slane %v8244_v14, 4  ;;  %v8258_v57 = vor.u32 %v8257_v54, %v8254_v28  ;;  %v8271_v24 = vshll.u32 %v7590_v8, 16  ;;  %v7596_v4 = vld [vmem:[#allocation2 + $0x194] sm:$0x1] }
 0x2aa   :  { %v10830_v49 = vcombine.low %v8216_v10, %v8226_v5  ;;  %v8268_v38 = vor.u32 %v8267_v19, %v15184_v33  ;;  %v8282_v50 = vor.u32 %v8281_v15, %v8278_v0  ;;  %v8295_v32 = vshll.u32 %v7593_v26, 16  ;;  %v7600_v43 = vld [vmem:[#allocation2 + $0x1a4] sm:$0xf]  ;;  %v7601_v21 = vld [vmem:[#allocation2 + $0x1a8] sm:$0xf] }
 0x2ab   :  { %v8300_v25 = vshrl.u32 %v7594_v22, 16  ;;  %v8292_v41 = vor.u32 %v8291_v39, %v15186_v40  ;;  %v8303_v29 = vshll.u32 %v7594_v22, 16  ;;  %v8309_v30 = vshll.u32 %v7595_v62, 16 }
 0x2ac   :  { %11900 = vmatmul.mubr.msk.bf16.gmra.mrb[44].mxu0 %vm2028_vm12, %v10828_v35  ;;  %v8313_v37 = vshrl.u32 %v7595_v62, 16  ;;  %v8240_v12 = vsel %vm13135_vm11, %v8235_v44, %v15167_v34  ;;  %v8250_v9 = vsel %vm13135_vm11, %v8245_v2, %v8249_v60  ;;  %v8259_v52 = vrot.slane %v8258_v57, 4  ;;  %v7599_v35 = vld [vmem:[#allocation2 + $0x1a0] sm:$0x1]  ;;  %v12555_v57 = vld [vmem:[#allocation2 + $0x84] sm:$0xff]  }
 0x2ad   :  { %11903 = vmatprep.mubr.msk.bf16.mxu0 %vm2028_vm12, %v10829_v63  ;;  %v8273_v23 = vrot.slane %v8271_v24, 5  ;;  %v8324_v53 = vshrl.u32 %v7597_v42, 16  ;;  %v8327_v1 = vshll.u32 %v7597_v42, 16  ;;  %v8333_v11 = vshll.u32 %v7598_v20, 16  ;;  %v7602_v42 = vld [vmem:[#allocation2 + $0x1ac] sm:$0x1] }
 0x2ae   :  { %v8337_v31 = vshrl.u32 %v7598_v20, 16  ;;  %v8269_v61 = vrot.slane %v8268_v38, 4  ;;  %v8283_v6 = vrot.slane %v8282_v50, 4  ;;  %v8297_v45 = vrot.slane %v8295_v32, 5 }
 0x2af   :  { %v8302_v58 = vrot.slane %v8300_v25, 4  ;;  %v8293_v27 = vrot.slane %v8292_v41, 4  ;;  %v8305_v3 = vrot.slane %v8303_v29, 5  ;;  %v8311_v13 = vrot.slane %v8309_v30, 5 }
 0x2b0   :  { %11600 = vmatmul.mubr.msk.bf16.gmra.mrb[8].mxu1 %vm2028_vm12, %v12550_v18  ;;  %v8315_v16 = vrot.slane %v8313_v37, 4  ;;  %v10831_v34 = vcombine.low %v8240_v12, %v8250_v9  ;;  %v8326_v36 = vrot.slane %v8324_v53, 4  ;;  %v8329_v59 = vrot.slane %v8327_v1, 5  ;;  %v8920_v53 = vld [vmem:[#allocation2 + $0x18] sm:$0xe]  ;;  %v12556_v1 = vld [vmem:[#allocation2 + $0x90] sm:$0xff]  }
 0x2b1   :  { %11603 = vmatprep.mubr.msk.bf16.mxu1 %vm2028_vm12, %v12551_v17  ;;  %v8335_v51 = vrot.slane %v8333_v11, 5  ;;  %v8339_v48 = vrot.slane %v8337_v31, 4  ;;  %v8264_v14 = vsel %vm13135_vm11, %v8259_v52, %v15184_v33  ;;  %v8274_v28 = vsel %vm13135_vm11, %v8269_v61, %v8273_v23  ;;  %v12702_v52 = vld [vmem:[#allocation2 + $0x1c] sm:$0xf] }
 0x2b2   :  { %v8288_v54 = vsel %vm13135_vm11, %v8283_v6, %v15186_v40  ;;  %v8298_v10 = vsel %vm13135_vm11, %v8293_v27, %v8297_v45  ;;  %v8306_v5 = vor.u32 %v8305_v3, %v8302_v58  ;;  %v8316_v8 = vor.u32 %v8315_v16, %v8311_v13  ;;  %v12554_v40 = vld [vmem:[#allocation2 + $0x78] sm:$0xff]   ;;  %v12703_v3 = vld [vmem:[#allocation2 + $0x20] sm:$0x1] }
 0x2b3   :  { %v8319_v19 = vshll.u32 %v7596_v4, 16  ;;  %v8348_v33 = vshrl.u32 %v7600_v43, 16  ;;  %v8351_v0 = vshll.u32 %v7600_v43, 16  ;;  %v8357_v15 = vshll.u32 %v7601_v21, 16  ;;  %v12557_v31 = vld [vmem:[#allocation2 + $0x9c] sm:$0xff]  }
 0x2b4   :  { %11904 = vmatmul.mubr.msk.bf16.gmra.mrb[48].mxu0 %vm2028_vm12, %v10830_v49  ;;  %v8361_v22 = vshrl.u32 %v7601_v21, 16  ;;  %v8330_v18 = vor.u32 %v8329_v59, %v8326_v36  ;;  %v8340_v63 = vor.u32 %v8339_v48, %v8335_v51  ;;  %v8343_v60 = vshll.u32 %v7599_v35, 16  ;;  %v8921_v59 = vld [vmem:[#allocation2 + $0x24] sm:$0xe]  ;;  %v8922_v21 = vld [vmem:[#allocation2 + $0x30] sm:$0xe] }
 0x2b5   :  { %11907 = vmatprep.mubr.msk.bf16.mxu0 %vm2028_vm12, %v10831_v34  ;;  %v10832_v26 = vcombine.low %v8264_v14, %v8274_v28  ;;  %v10833_v39 = vcombine.low %v8288_v54, %v8298_v10  ;;  %v8307_v17 = vrot.slane %v8306_v5, 4  ;;  %v8317_v44 = vrot.slane %v8316_v8, 4  ;;  %v12704_v34 = vld [vmem:[#allocation2 + $0x28] sm:$0xf]  ;;  %v12559_v54 = vld [vmem:[#allocation2 + $0xb4] sm:$0xff]  }
 0x2b6   :  { %v8321_v2 = vrot.slane %v8319_v19, 5  ;;  %v8350_v24 = vrot.slane %v8348_v33, 4  ;;  %v8353_v62 = vrot.slane %v8351_v0, 5  ;;  %v8359_v49 = vrot.slane %v8357_v15, 5  ;;  %v12558_v14 = vld [vmem:[#allocation2 + $0xa8] sm:$0xff]  }
 0x2b7   :  { %v8363_v38 = vrot.slane %v8361_v22, 4  ;;  %v8331_v50 = vrot.slane %v8330_v18, 4  ;;  %v8341_v32 = vrot.slane %v8340_v63, 4  ;;  %v8345_v25 = vrot.slane %v8343_v60, 5  ;;  %v12706_v8 = vld [vmem:[#allocation2 + $0x2c] sm:$0x1] }
 0x2b8   :  { %11604 = vmatmul.mubr.msk.bf16.gmra.mrb[12].mxu1 %vm2028_vm12, %v12552_v55  ;;  %v8312_v20 = vsel %vm13135_vm11, %v8307_v17, %v8311_v13  ;;  %v8322_v41 = vsel %vm13135_vm11, %v8317_v44, %v8321_v2  ;;  %v8354_v29 = vor.u32 %v8353_v62, %v8350_v24  ;;  %v8367_v37 = vshll.u32 %v7602_v42, 16  ;;  %v12707_v15 = vld [vmem:[#allocation2 + $0x38] sm:$0x1]  ;;  %v12708_v60 = vld [vmem:[#allocation2 + $0x40] sm:$0xf] }
 0x2b9   :  { %11607 = vmatprep.mubr.msk.bf16.mxu1 %vm2028_vm12, %v12553_v46  ;;  %v8364_v30 = vor.u32 %v8363_v38, %v8359_v49  ;;  %v8336_v12 = vsel %vm13135_vm11, %v8331_v50, %v8335_v51  ;;  %v8346_v9 = vsel %vm13135_vm11, %v8341_v32, %v8345_v25  ;;  %v9050_v23 = vrot.slane %v12702_v52, 5  ;;  %v12705_v51 = vld [vmem:[#allocation2 + $0x34] sm:$0xf]  ;;  %v8923_v17 = vld [vmem:[#allocation2 + $0x3c] sm:$0xe]  ;;  %v12560_v24 = vld [vmem:[#allocation2 + $0xc0] sm:$0xff]  }
 0x2ba   :  { %v10834_v11 = vcombine.low %v8312_v20, %v8322_v41  ;;  %v10835_v61 = vcombine.low %v8336_v12, %v8346_v9  ;;  %v8355_v6 = vrot.slane %v8354_v29, 4  ;;  %v8369_v58 = vrot.slane %v8367_v37, 5  ;;  %v12709_v44 = vld [vmem:[#allocation2 + $0x4c] sm:$0xf]  ;;  %v12710_v25 = vld [vmem:[#allocation2 + $0x44] sm:$0x1] }
 0x2bb   :  { %v8365_v45 = vrot.slane %v8364_v30, 4  ;;  %v10869_v55 = vrot.slane %v8920_v53, 9  ;;  %v9052_v27 = vrot.slane %v9050_v23, 4  ;;  %v9053_v13 = vrot.slane %v12703_v3, 5  ;;  %v12711_v29 = vld [vmem:[#allocation2 + $0x50] sm:$0x1] }
 0x2bc   :  { %11908 = vmatmul.mubr.msk.bf16.gmra.mrb[52].mxu0 %vm2028_vm12, %v10832_v26  ;;  %v8360_v16 = vsel %vm13135_vm11, %v8355_v6, %v8359_v49  ;;  %v9057_v4 = vrot.slane %v12704_v34, 5  ;;  %v9064_v48 = vrot.slane %v12705_v51, 5  ;;  %v10870_v10 = vrot.slane %v8921_v59, 9  ;;  %v12561_v49 = vld [vmem:[#allocation2 + $0xe4] sm:$0xff]   ;;  %v8925_v37 = vld [vmem:[#allocation2 + $0x54] sm:$0xe] }
 0x2bd   :  { %11911 = vmatprep.mubr.msk.bf16.mxu0 %vm2028_vm12, %v10833_v39  ;;  %v8370_v46 = vsel %vm13135_vm11, %v8365_v45, %v8369_v58  ;;  %v9051_v43 = vsel %vm13595_vm15, %v10869_v55, %v9050_v23  ;;  %v9054_v36 = vsel %vm13595_vm15, %v9052_v27, %v9053_v13  ;;  %v9060_v19 = vrot.slane %v12706_v8, 5  ;;  %v12712_v12 = vld [vmem:[#allocation2 + $0x58] sm:$0xf]  ;;  %v8926_v52 = vld [vmem:[#allocation2 + $0x60] sm:$0xe] }
 0x2be   :  { %v10836_v28 = vcombine.low %v8360_v16, %v8370_v46  ;;  %v10901_v35 = vcombine.low %v9051_v43, %v9054_v36  ;;  %v9059_v5 = vrot.slane %v9057_v4, 4  ;;  %v10871_v33 = vrot.slane %v8922_v21, 9  ;;  %v12713_v23 = vld [vmem:[#allocation2 + $0x64] sm:$0xf]  ;;  %v12714_v58 = vld [vmem:[#allocation2 + $0x5c] sm:$0x1] }
 0x2bf   :  { %v9066_v0 = vrot.slane %v9064_v48, 4  ;;  %v9067_v22 = vrot.slane %v12707_v15, 5  ;;  %v9058_v18 = vsel %vm13595_vm15, %v10870_v10, %v9057_v4  ;;  %v9071_v26 = vrot.slane %v12708_v60, 5  ;;  %v8927_v3 = vld [vmem:[#allocation2 + $0x6c] sm:$0xe]  ;;  %v12562_v46 = vld [vmem:[#allocation2 + $0xf0] sm:$0xff]  }
 0x2c0   :  { %11608 = vmatmul.mubr.msk.bf16.gmra.mrb[16].mxu1 %vm2028_vm12, %v12554_v40  ;;  %v9061_v63 = vsel %vm13595_vm15, %v9059_v5, %v9060_v19  ;;  %v9065_v40 = vsel %vm13595_vm15, %v10871_v33, %v9064_v48  ;;  %v9078_v2 = vrot.slane %v12709_v44, 5  ;;  %v10872_v50 = vrot.slane %v8923_v17, 9  ;;  %v12715_v13 = vld [vmem:[#allocation2 + $0x70] sm:$0xf]  ;;  %v12716_v43 = vld [vmem:[#allocation2 + $0x68] sm:$0x1] }
 0x2c1   :  { %11611 = vmatprep.mubr.msk.bf16.mxu1 %vm2028_vm12, %v12555_v57  ;;  %v9068_v39 = vsel %vm13595_vm15, %v9066_v0, %v9067_v22  ;;  %v8924_v57 = vld [vmem:[#allocation2 + $0x48] sm:$0xe]  ;;  %v10902_v62 = vcombine.low %v9058_v18, %v9061_v63  ;;  %v9073_v32 = vrot.slane %v9071_v26, 4  ;;  %v9074_v42 = vrot.slane %v12710_v25, 5  ;;  %v8928_v59 = vld [vmem:[#allocation2 + $0x78] sm:$0xe] }
 0x2c2   :  { %v10903_v38 = vcombine.low %v9065_v40, %v9068_v39  ;;  %v10873_v20 = vrot.slane %v8924_v57, 9  ;;  %v9080_v41 = vrot.slane %v9078_v2, 4  ;;  %v9081_v30 = vrot.slane %v12711_v29, 5  ;;  %v12717_v51 = vld [vmem:[#allocation2 + $0x7c] sm:$0xf] }
 0x2c3   :  { %v9085_v9 = vrot.slane %v12712_v12, 5  ;;  %v9092_v53 = vrot.slane %v12713_v23, 5  ;;  %v9088_v55 = vrot.slane %v12714_v58, 5  ;;  %v10875_v27 = vrot.slane %v8926_v52, 9  ;;  %v12563_v21 = vld [vmem:[#allocation2 + $0xfc] sm:$0xff]   ;;  %v12565_v58 = vld [vmem:[#allocation2 + $0x114] sm:$0xff]  }
 0x2c4   :  { %11912 = vmatmul.mubr.msk.bf16.gmra.mrb[56].mxu0 %vm2028_vm12, %v10834_v11  ;;  %v9075_v11 = vsel %vm13595_vm15, %v9073_v32, %v9074_v42  ;;  %v9082_v6 = vsel %vm13595_vm15, %v9080_v41, %v9081_v30  ;;  %v9099_v16 = vrot.slane %v12715_v13, 5  ;;  %v9095_v36 = vrot.slane %v12716_v43, 5  ;;  %v8930_v5 = vld [vmem:[#allocation2 + $0x90] sm:$0xe]  ;;  %v12719_v33 = vld [vmem:[#allocation2 + $0x94] sm:$0xf] }
 0x2c5   :  { %11915 = vmatprep.mubr.msk.bf16.mxu0 %vm2028_vm12, %v10835_v61  ;;  %v9079_v61 = vsel %vm13595_vm15, %v10873_v20, %v9078_v2  ;;  %v9087_v45 = vrot.slane %v9085_v9, 4  ;;  %v9094_v4 = vrot.slane %v9092_v53, 4  ;;  %v9106_v48 = vrot.slane %v12717_v51, 5  ;;  %v8931_v15 = vld [vmem:[#allocation2 + $0x9c] sm:$0xe] }
 0x2c6   :  { %v10876_v19 = vrot.slane %v8927_v3, 9  ;;  %v9120_v0 = vrot.slane %v12719_v33, 5  ;;  %v12720_v22 = vld [vmem:[#allocation2 + $0xa0] sm:$0xf]  ;;  %v9093_v63 = vsel %vm13595_vm15, %v10875_v27, %v9092_v53  ;;  %v9101_v60 = vrot.slane %v9099_v16, 4  ;;  %v12564_v53 = vld [vmem:[#allocation2 + $0x108] sm:$0xff]  }
 0x2c7   :  { %v9089_v8 = vsel %vm13595_vm15, %v9087_v45, %v9088_v55  ;;  %v9127_v18 = vrot.slane %v12720_v22, 5  ;;  %v10877_v39 = vrot.slane %v8928_v59, 9  ;;  %v9096_v17 = vsel %vm13595_vm15, %v9094_v4, %v9095_v36  ;;  %v12722_v2 = vld [vmem:[#allocation2 + $0x80] sm:$0x1]  ;;  %v12724_v42 = vld [vmem:[#allocation2 + $0x98] sm:$0x1] }
 0x2c8   :  { %11612 = vmatmul.mubr.msk.bf16.gmra.mrb[20].mxu1 %vm2028_vm12, %v12556_v1  ;;  %v9072_v1 = vsel %vm13595_vm15, %v10872_v50, %v9071_v26  ;;  %v12721_v26 = vld [vmem:[#allocation2 + $0x74] sm:$0x1]  ;;  %v9108_v44 = vrot.slane %v9106_v48, 4  ;;  %v9109_v57 = vrot.slane %v12722_v2, 5  ;;  %v10879_v50 = vrot.slane %v8930_v5, 9  ;;  %v12567_v2 = vld [vmem:[#allocation2 + $0x12c] sm:$0xff]  }
 0x2c9   :  { %11615 = vmatprep.mubr.msk.bf16.mxu1 %vm2028_vm12, %v12557_v31  ;;  %v10874_v31 = vrot.slane %v8925_v37, 9  ;;  %v10904_v34 = vcombine.low %v9072_v1, %v9075_v11  ;;  %v9102_v40 = vrot.slane %v12721_v26, 5  ;;  %v10880_v32 = vrot.slane %v8931_v15, 9  ;;  %v12725_v29 = vld [vmem:[#allocation2 + $0xa4] sm:$0x1] }
 0x2ca   :  { %v9122_v25 = vrot.slane %v9120_v0, 4  ;;  %v9123_v20 = vrot.slane %v12724_v42, 5  ;;  %v9129_v41 = vrot.slane %v9127_v18, 4  ;;  %v9130_v30 = vrot.slane %v12725_v29, 5  ;;  %v8932_v52 = vld [vmem:[#allocation2 + $0xa8] sm:$0xe] }
 0x2cb   :  { %v10907_v12 = vcombine.low %v9093_v63, %v9096_v17  ;;  %v8933_v23 = vld [vmem:[#allocation2 + $0xb4] sm:$0xe]  ;;  %v15282_v1 = vsel %vm13595_vm15, %v9101_v60, %v9102_v40  ;;  %v15286_v11 = vsel %vm13595_vm15, %v10877_v39, %v9106_v48  ;;  %v4563_v45 = vld [vmem:[#allocation2 + $0xe4] sm:$0xf]  ;;  %v15294_v55 = vsel %vm13595_vm15, %v9108_v44, %v9109_v57  ;;  %v12727_v59 = vld [vmem:[#allocation2 + $0xe8] sm:$0xf] }
 0x2cc   :  { %11916 = vmatmul.mubr.msk.bf16.gmra.mrb[60].mxu0 %vm2028_vm12, %v10836_v28  ;;  %v15263_v28 = vsel %vm13595_vm15, %v10874_v31, %v9085_v9  ;;  %v15278_v9 = vsel %vm13595_vm15, %v10876_v19, %v9099_v16  ;;  %v15302_v3 = vsel %vm13595_vm15, %v10879_v50, %v9120_v0  ;;  %v15306_v13 = vsel %vm13595_vm15, %v10880_v32, %v9127_v18  ;;  %v12730_v22 = vld [vmem:[#allocation2 + $0xc4] sm:$0xf]  ;;  %v4569_v63 = vld [vmem:[#allocation2 + $0xfc] sm:$0xf]  ;;  %v8934_v60 = vld [vmem:[#allocation2 + $0xc0] sm:$0xe] }
 0x2cd   :  { %11921 = vmatprep.mubr.msk.bf16.mxu0 %vm2028_vm12, %v10901_v35  ;;  %v12718_v35 = vld [vmem:[#allocation2 + $0x88] sm:$0xf]  ;;  %v10906_v37 = vcombine.low %v15263_v28, %v9089_v8  ;;  %v15310_v16 = vsel %vm13595_vm15, %v9122_v25, %v9123_v20  ;;  %v10882_v4 = vrot.slane %v8933_v23, 9  ;;  %v4996_v43 = vshrl.u32 %v4563_v45, 16  ;;  %v12728_v28 = vld [vmem:[#allocation2 + $0xb0] sm:$0x1] }
 0x2ce   :  { %v9113_v10 = vrot.slane %v12718_v35, 5  ;;  %v4999_v36 = vshll.u32 %v4563_v45, 16  ;;  %v5005_v51 = vshll.u32 %v12727_v59, 16  ;;  %v5009_v48 = vshrl.u32 %v12727_v59, 16  ;;  %v12729_v35 = vld [vmem:[#allocation2 + $0xb8] sm:$0xf] }
 0x2cf   :  { %v10909_v5 = vcombine.low %v15286_v11, %v15294_v55  ;;  %v10911_v19 = vcombine.low %v15302_v3, %v15310_v16  ;;  %v9148_v18 = vrot.slane %v12730_v22, 5  ;;  %v4998_v26 = vrot.slane %v4996_v43, 4  ;;  %v12566_v44 = vld [vmem:[#allocation2 + $0x120] sm:$0xff]   ;;  %v8935_v32 = vld [vmem:[#allocation2 + $0xcc] sm:$0xe] }
 0x2d0   :  { %11616 = vmatmul.mubr.msk.bf16.gmra.mrb[24].mxu1 %vm2028_vm12, %v12558_v14  ;;  %v10905_v14 = vcombine.low %v9079_v61, %v9082_v6  ;;  %v12726_v61 = vld [vmem:[#allocation2 + $0xac] sm:$0xf]  ;;  %v5001_v40 = vrot.slane %v4999_v36, 5  ;;  %v15338_v39 = vrot.slane %v5005_v51, 5  ;;  %v5011_v17 = vrot.slane %v5009_v48, 4 }
 0x2d1   :  { %11619 = vmatprep.mubr.msk.bf16.mxu1 %vm2028_vm12, %v12559_v54  ;;  %v8929_v54 = vld [vmem:[#allocation2 + $0x84] sm:$0xe]  ;;  %v9134_v6 = vrot.slane %v12726_v61, 5  ;;  %v5044_v25 = vshrl.u32 %v4569_v63, 16  ;;  %v5047_v42 = vshll.u32 %v4569_v63, 16  ;;  %vm10212_vm0 = vcmask 519168  }
 0x2d2   :  { %v12733_v20 = vld [vmem:[#allocation2 + $0x100] sm:$0xf]  ;;  %v5012_v11 = vor.u32 %v5011_v17, %v15338_v39  ;;  %v12736_v61 = vld [vmem:[#allocation2 + $0xf4] sm:$0xf]  ;;  %v8937_v36 = vld [vmem:[#allocation2 + $0xfc] sm:$0xe] }
 0x2d3   :  { %v5057_v29 = vshrl.u32 %v12733_v20, 16  ;;  %v5046_v59 = vrot.slane %v5044_v25, 4  ;;  %v5049_v51 = vrot.slane %v5047_v42, 5  ;;  %v12739_v17 = vld [vmem:[#allocation2 + $0xf8] sm:$0x1] }
 0x2d4   :  { %11922 = vmatmul.mubr.msk.bf16.vlgmr.msra.gmra.mrb[0].mxu0 %vm2028_vm12, %v10902_v62  ;;  %v9115_v62 = vrot.slane %v9113_v10, 4  ;;  %v5013_v63 = vrot.slane %v5012_v11, 4  ;;  %v12741_v42 = vld [vmem:[#allocation2 + $0x104] sm:$0x1] }
 0x2d5   :  { %11925 = vmatprep.mubr.msk.bf16.mxu0 %vm2028_vm12, %v10903_v38 }
 0x2d8   :  { %11620 = vmatmul.mubr.msk.bf16.gmra.mrb[28].mxu1 %vm2028_vm12, %v12560_v24  ;;  %v10878_v24 = vrot.slane %v8929_v54, 9  ;;  %v9137_v54 = vrot.slane %v12728_v28, 5 }
 0x2d9   :  { %11623 = vmatprep.mubr.msk.bf16.mxu1 %vm2028_vm12, %v12561_v49  ;;  %v12723_v49 = vld [vmem:[#allocation2 + $0x8c] sm:$0x1] }
 0x2da   :  { %v9116_v38 = vrot.slane %v12723_v49, 5  ;;  %v15290_v31 = vsel %vm13595_vm15, %v10878_v24, %v9113_v10  ;;  %v9141_v10 = vrot.slane %v12729_v35, 5 }
 0x2dc   :  { %11926 = vmatmul.mubr.msk.bf16.gmra.mrb[4].mxu0 %vm2028_vm12, %v10904_v34  ;;  %v15298_v27 = vsel %vm13595_vm15, %v9115_v62, %v9116_v38  ;;  %v10881_v34 = vrot.slane %v8932_v52, 9  ;;  %v15336_v15 = vsel %vm13595_vm15, %v10882_v4, %v9141_v10  ;;  %v9143_v24 = vrot.slane %v9141_v10, 4  ;;  %v12731_v62 = vld [vmem:[#allocation2 + $0xbc] sm:$0x1]  ;;  %v12732_v38 = vld [vmem:[#allocation2 + $0xd0] sm:$0xf] }
 0x2dd   :  { %11929 = vmatprep.mubr.msk.bf16.mxu0 %vm2028_vm12, %v10905_v14  ;;  %v9136_v14 = vrot.slane %v9134_v6, 4  ;;  %v10910_v8 = vcombine.low %v15290_v31, %v15298_v27  ;;  %v9144_v49 = vrot.slane %v12731_v62, 5  ;;  %v9155_v50 = vrot.slane %v12732_v38, 5  ;;  %v12735_v52 = vld [vmem:[#allocation2 + $0xec] sm:$0x1] }
 0x2de   :  { %v15332_v0 = vsel %vm13595_vm15, %v10881_v34, %v9134_v6  ;;  %v5015_v23 = vshll.u32 %v12735_v52, 16  ;;  %v9162_v6 = vrot.slane %v12736_v61, 5  ;;  %v8936_v34 = vld [vmem:[#allocation2 + $0xf0] sm:$0xe]  ;;  %v12737_v4 = vld [vmem:[#allocation2 + $0x100] sm:$0xf] }
 0x2df   :  { %v15342_v57 = vsel %vm13595_vm15, %v9136_v14, %v9137_v54  ;;  %v15351_v45 = vsel %vm13595_vm15, %v9143_v24, %v9144_v49  ;;  %v9157_v55 = vrot.slane %v9155_v50, 4  ;;  %v9169_v43 = vrot.slane %v12737_v4, 5  ;;  %v12738_v54 = vld [vmem:[#allocation2 + $0xd4] sm:$0x1]  ;;  %v12740_v62 = vld [vmem:[#allocation2 + $0x104] sm:$0x1] }
 0x2e0   :  { %11624 = vmatmul.mubr.msk.bf16.gmra.mrb[32].mxu1 %vm2028_vm12, %v12562_v46  ;;  %v15314_v46 = vsel %vm13595_vm15, %v9129_v41, %v9130_v30  ;;  %v5053_v41 = vshll.u32 %v12733_v20, 16  ;;  %v10883_v30 = vrot.slane %v8934_v60, 9  ;;  %v5059_v14 = vrot.slane %v5057_v29, 4  ;;  %v12569_v49 = vld [vmem:[#allocation2 + $0x144] sm:$0xff]   ;;  %v12743_v61 = vld [vmem:[#allocation2 + $0x110] sm:$0x1] }
 0x2e1   :  { %11627 = vmatprep.mubr.msk.bf16.mxu1 %vm2028_vm12, %v12563_v21  ;;  %v10908_v21 = vcombine.low %v15278_v9, %v15282_v1  ;;  %v10912_v33 = vcombine.low %v15306_v13, %v15314_v46  ;;  %v5002_v1 = vor.u32 %v5001_v40, %v4998_v26  ;;  %v9158_v35 = vrot.slane %v12738_v54, 5  ;;  %v4572_v26 = vld [vmem:[#allocation2 + $0x108] sm:$0xf]  ;;  %v12568_v40 = vld [vmem:[#allocation2 + $0x138] sm:$0xff]   ;;  %v12570_v54 = vld [vmem:[#allocation2 + $0x150] sm:$0xff]  }
 0x2e2   :  { %v15355_v48 = vrot.slane %v5053_v41, 5  ;;  %v5017_v10 = vrot.slane %v5015_v23, 5  ;;  %v9164_v60 = vrot.slane %v9162_v6, 4  ;;  %v9171_v24 = vrot.slane %v9169_v43, 4 }
 0x2e3   :  { %v5003_v22 = vrot.slane %v5002_v1, 4  ;;  %v5063_v20 = vshll.u32 %v12741_v42, 16  ;;  %v5068_v41 = vshrl.u32 %v4572_v26, 16  ;;  %v5071_v29 = vshll.u32 %v4572_v26, 16  ;;  %v12746_v42 = vld [vmem:[#allocation2 + $0x118] sm:$0xf] }
 0x2e4   :  { %11930 = vmatmul.mubr.msk.bf16.gmra.mrb[8].mxu0 %vm2028_vm12, %v10906_v37  ;;  %v9150_v37 = vrot.slane %v9148_v18, 4  ;;  %v5060_v25 = vor.u32 %v5059_v14, %v15355_v48  ;;  %v8939_v14 = vld [vmem:[#allocation2 + $0x114] sm:$0xe] }
 0x2e5   :  { %11933 = vmatprep.mubr.msk.bf16.mxu0 %vm2028_vm12, %v10907_v12  ;;  %v12734_v12 = vld [vmem:[#allocation2 + $0xc8] sm:$0x1]  ;;  %v5008_v52 = vsel %vm13135_vm11, %v5003_v22, %v15338_v39 }
 0x2e6   :  { %v9151_v9 = vrot.slane %v12734_v12, 5  ;;  %v5061_v27 = vrot.slane %v5060_v25, 4 }
 0x2e8   :  { %11628 = vmatmul.mubr.msk.bf16.gmra.mrb[36].mxu1 %vm2028_vm12, %v12564_v53  ;;  %v10913_v53 = vcombine.low %v15332_v0, %v15342_v57  ;;  %v15363_v28 = vsel %vm13595_vm15, %v9150_v37, %v9151_v9  ;;  %v15372_v9 = vsel %vm13595_vm15, %v9157_v55, %v9158_v35  ;;  %v5070_v55 = vrot.slane %v5068_v41, 4  ;;  %v12747_v41 = vld [vmem:[#allocation2 + $0x118] sm:$0xf] }
 0x2e9   :  { %11631 = vmatprep.mubr.msk.bf16.mxu1 %vm2028_vm12, %v12565_v58  ;;  %v10884_v58 = vrot.slane %v8935_v32, 9  ;;  %v5050_v32 = vor.u32 %v5049_v51, %v5046_v59  ;;  %v10914_v59 = vcombine.low %v15336_v15, %v15351_v45 }
 0x2eb   :  { %v15367_v38 = vsel %vm13595_vm15, %v10884_v58, %v9155_v50  ;;  %v5018_v50 = vsel %vm13135_vm11, %v5013_v63, %v5017_v10  ;;  %v5051_v31 = vrot.slane %v5050_v32, 4  ;;  %v8938_v58 = vld [vmem:[#allocation2 + $0x108] sm:$0xe]  ;;  %v12745_v32 = vld [vmem:[#allocation2 + $0x110] sm:$0x1] }
 0x2ec   :  { %11934 = vmatmul.mubr.msk.bf16.gmra.mrb[12].mxu0 %vm2028_vm12, %v10908_v21  ;;  %v15359_v21 = vsel %vm13595_vm15, %v10883_v30, %v9148_v18  ;;  %v9172_v18 = vrot.slane %v12740_v62, 5  ;;  %v12742_v30 = vld [vmem:[#allocation2 + $0x10c] sm:$0xf]  ;;  %v10916_v16 = vcombine.low %v15367_v38, %v15372_v9  ;;  %v15413_v35 = vcombine.low %v5008_v52, %v5018_v50 }
 0x2ed   :  { %11937 = vmatprep.mubr.msk.bf16.mxu0 %vm2028_vm12, %v10909_v5  ;;  %v10885_v5 = vrot.slane %v8936_v34, 9  ;;  %v5077_v37 = vshll.u32 %v12742_v30, 16  ;;  %v5081_v12 = vshrl.u32 %v12742_v30, 16  ;;  %v5073_v34 = vrot.slane %v5071_v29, 5 }
 0x2ee   :  { %v15398_v11 = vsel %vm13595_vm15, %v9171_v24, %v9172_v18  ;;  %v10915_v3 = vcombine.low %v15359_v21, %v15363_v28  ;;  %v10887_v63 = vrot.slane %v8938_v58, 9  ;;  %v10888_v18 = vrot.slane %v8939_v14, 9  ;;  %v12574_v21 = vld [vmem:[#allocation2 + $0x180] sm:$0xff]  }
 0x2ef   :  { %v15381_v23 = vsel %vm13595_vm15, %v10885_v5, %v9162_v6  ;;  %v5087_v6 = vshll.u32 %v12743_v61, 16  ;;  %v15405_v4 = vrot.slane %v5077_v37, 5  ;;  %v12571_v5 = vld [vmem:[#allocation2 + $0x15c] sm:$0xff]   ;;  %v9179_v25 = vrot.slane %v12745_v32, 5  ;;  %v12752_v32 = vld [vmem:[#allocation2 + $0x130] sm:$0xf] }
 0x2f0   :  { %11632 = vmatmul.mubr.msk.bf16.gmra.mrb[40].mxu1 %vm2028_vm12, %v12566_v44  ;;  %v9165_v44 = vrot.slane %v12739_v17, 5  ;;  %v5101_v29 = vshll.u32 %v12747_v41, 16  ;;  %v5105_v30 = vshrl.u32 %v12747_v41, 16 }
 0x2f1   :  { %11635 = vmatprep.mubr.msk.bf16.mxu1 %vm2028_vm12, %v12567_v2  ;;  %v10886_v2 = vrot.slane %v8937_v36, 9  ;;  %v4575_v36 = vld [vmem:[#allocation2 + $0x114] sm:$0xf]  ;;  %v15425_v62 = vrot.slane %v5087_v6, 5 }
 0x2f2   :  { %v15390_v1 = vsel %vm13595_vm15, %v9164_v60, %v9165_v44  ;;  %v5056_v60 = vsel %vm13135_vm11, %v5051_v31, %v15355_v48  ;;  %v5095_v17 = vshll.u32 %v4575_v36, 16  ;;  %v4578_v44 = vld [vmem:[#allocation2 + $0x120] sm:$0xf]  ;;  %v12748_v31 = vld [vmem:[#allocation2 + $0x124] sm:$0xf]  ;;  %v15455_v58 = vrot.slane %v5101_v29, 5 }
 0x2f3   :  { %v15394_v39 = vsel %vm13595_vm15, %v10886_v2, %v9169_v43  ;;  %v5083_v43 = vrot.slane %v5081_v12, 4  ;;  %v10917_v10 = vcombine.low %v15381_v23, %v15390_v1  ;;  %v5074_v2 = vor.u32 %v5073_v34, %v5070_v55  ;;  %v4581_v55 = vld [vmem:[#allocation2 + $0x12c] sm:$0xf]  ;;  %v8942_v1 = vld [vmem:[#allocation2 + $0x138] sm:$0xe] }
 0x2f4   :  { %11938 = vmatmul.mubr.msk.bf16.gmra.mrb[16].mxu0 %vm2028_vm12, %v10910_v8  ;;  %v5065_v8 = vrot.slane %v5063_v20, 5  ;;  %v10918_v22 = vcombine.low %v15394_v39, %v15398_v11  ;;  %v9183_v20 = vrot.slane %v12746_v42, 5  ;;  %v5116_v37 = vshrl.u32 %v4578_v44, 16  ;;  %v12572_v34 = vld [vmem:[#allocation2 + $0x168] sm:$0xff]  }
 0x2f5   :  { %11941 = vmatprep.mubr.msk.bf16.mxu0 %vm2028_vm12, %v10911_v19  ;;  %v12744_v19 = vld [vmem:[#allocation2 + $0x10c] sm:$0xf]  ;;  %v5084_v24 = vor.u32 %v5083_v43, %v15405_v4  ;;  %v5119_v12 = vshll.u32 %v4578_v44, 16  ;;  %v5097_v50 = vrot.slane %v5095_v17, 5  ;;  %v15439_v13 = vrot.slane %v5074_v2, 4 }
 0x2f6   :  { %v9176_v51 = vrot.slane %v12744_v19, 5  ;;  %v5066_v26 = vsel %vm13135_vm11, %v5061_v27, %v5065_v8  ;;  %v5125_v27 = vshll.u32 %v12748_v31, 16  ;;  %v5129_v8 = vshrl.u32 %v12748_v31, 16  ;;  %v12754_v31 = vld [vmem:[#allocation2 + $0x130] sm:$0xf] }
 0x2f7   :  { %v15432_v48 = vcombine.low %v5056_v60, %v5066_v26  ;;  %v15441_v46 = vrot.slane %v5084_v24, 4  ;;  %v15449_v61 = vsel %vm13595_vm15, %v10888_v18, %v9183_v20  ;;  %v9185_v57 = vrot.slane %v9183_v20, 4  ;;  %v12751_v26 = vld [vmem:[#allocation2 + $0x128] sm:$0x1]  ;;  %v4584_v20 = vld [vmem:[#allocation2 + $0x138] sm:$0xf] }
 0x2f8   :  { %11636 = vmatmul.mubr.msk.bf16.gmra.mrb[44].mxu1 %vm2028_vm12, %v12568_v40  ;;  %v5092_v40 = vshrl.u32 %v4575_v36, 16  ;;  %v5107_v43 = vrot.slane %v5105_v30, 4  ;;  %v12750_v36 = vld [vmem:[#allocation2 + $0x11c] sm:$0x1]  ;;  %v5121_v14 = vrot.slane %v5119_v12, 5  ;;  %v5131_v60 = vrot.slane %v5129_v8, 4 }
 0x2f9   :  { %11639 = vmatprep.mubr.msk.bf16.mxu1 %vm2028_vm12, %v12569_v49  ;;  %v9178_v49 = vrot.slane %v9176_v51, 4  ;;  %v5111_v19 = vshll.u32 %v12750_v36, 16  ;;  %v5080_v17 = vsel %vm13135_vm11, %v15439_v13, %v15405_v4  ;;  %v5090_v44 = vsel %vm13135_vm11, %v15441_v46, %v15425_v62  ;;  %v12753_v12 = vld [vmem:[#allocation2 + $0x124] sm:$0xf] }
 0x2fa   :  { %v5094_v52 = vrot.slane %v5092_v40, 4  ;;  %v5135_v40 = vshll.u32 %v12751_v26, 16  ;;  %v5140_v2 = vshrl.u32 %v4581_v55, 16  ;;  %v5143_v24 = vshll.u32 %v4581_v55, 16  ;;  %v4587_v46 = vld [vmem:[#allocation2 + $0x144] sm:$0xf] }
 0x2fb   :  { %v15453_v0 = vsel %vm13595_vm15, %v9178_v49, %v9179_v25  ;;  %v5149_v25 = vshll.u32 %v12752_v32, 16  ;;  %v5153_v42 = vshrl.u32 %v12752_v32, 16  ;;  %v5108_v41 = vor.u32 %v5107_v43, %v15455_v58 }
 0x2fc   :  { %11942 = vmatmul.mubr.msk.bf16.gmra.mrb[20].mxu0 %vm2028_vm12, %v10912_v33  ;;  %v15445_v33 = vsel %vm13595_vm15, %v10887_v63, %v9176_v51  ;;  %v5118_v51 = vrot.slane %v5116_v37, 4  ;;  %v5098_v63 = vor.u32 %v5097_v50, %v5094_v52  ;;  %v15479_v29 = vrot.slane %v5111_v19, 5  ;;  %v8940_v37 = vld [vmem:[#allocation2 + $0x120] sm:$0xe] }
 0x2fd   :  { %11945 = vmatprep.mubr.msk.bf16.mxu0 %vm2028_vm12, %v10913_v53  ;;  %v12749_v53 = vld [vmem:[#allocation2 + $0x11c] sm:$0x1]  ;;  %v10919_v18 = vcombine.low %v15445_v33, %v15453_v0  ;;  %v9190_v52 = vrot.slane %v12753_v12, 5  ;;  %v5137_v45 = vrot.slane %v5135_v40, 5  ;;  %v5142_v8 = vrot.slane %v5140_v2, 4 }
 0x2fe   :  { %v9186_v6 = vrot.slane %v12749_v53, 5  ;;  %v5122_v30 = vor.u32 %v5121_v14, %v5118_v51  ;;  %v5099_v50 = vrot.slane %v5098_v63, 4  ;;  %v5164_v53 = vshrl.u32 %v4584_v20, 16  ;;  %v12757_v40 = vld [vmem:[#allocation2 + $0x13c] sm:$0xf] }
 0x2ff   :  { %v10889_v55 = vrot.slane %v8940_v37, 9  ;;  %v15487_v36 = vrot.slane %v5149_v25, 5  ;;  %v5155_v19 = vrot.slane %v5153_v42, 4  ;;  %v5109_v28 = vrot.slane %v5108_v41, 4 }
 0x300   :  { %11640 = vmatmul.mubr.msk.bf16.gmra.mrb[48].mxu1 %vm2028_vm12, %v12570_v54  ;;  %v12573_v54 = vld [vmem:[#allocation2 + $0x174] sm:$0xff]   ;;  %v15471_v49 = vsel %vm13595_vm15, %v9185_v57, %v9186_v6  ;;  %v5145_v57 = vrot.slane %v5143_v24, 5  ;;  %v5167_v6 = vshll.u32 %v4584_v20, 16  ;;  %v9192_v51 = vrot.slane %v9190_v52, 4 }
 0x301   :  { %11643 = vmatprep.mubr.msk.bf16.mxu1 %vm2028_vm12, %v12571_v5  ;;  %v15457_v5 = vrot.slane %v5125_v27, 5  ;;  %v9197_v27 = vrot.slane %v12754_v31, 5  ;;  %v5173_v2 = vshll.u32 %v12757_v40, 16  ;;  %v5177_v24 = vshrl.u32 %v12757_v40, 16 }
 0x302   :  { %v5146_v20 = vor.u32 %v5145_v57, %v5142_v8  ;;  %v5166_v37 = vrot.slane %v5164_v53, 4  ;;  %v5169_v12 = vrot.slane %v5167_v6, 5  ;;  %v5104_v25 = vsel %vm13135_vm11, %v5099_v50, %v15455_v58  ;;  %v12759_v8 = vld [vmem:[#allocation2 + $0x140] sm:$0x1]  ;;  %v12760_v57 = vld [vmem:[#allocation2 + $0x13c] sm:$0xf] }
 0x303   :  { %v5132_v15 = vor.u32 %v5131_v60, %v15457_v5  ;;  %v12756_v60 = vld [vmem:[#allocation2 + $0x134] sm:$0x1]  ;;  %v9199_v32 = vrot.slane %v9197_v27, 4  ;;  %v15494_v42 = vsel %vm13595_vm15, %v10889_v55, %v9190_v52  ;;  %v5156_v41 = vor.u32 %v5155_v19, %v15487_v36  ;;  %v12576_v6 = vld [vmem:[#allocation2 + $0x198] sm:$0xff]  }
 0x304   :  { %11946 = vmatmul.mubr.msk.bf16.gmra.mrb[24].mxu0 %vm2028_vm12, %v10914_v59  ;;  %v8941_v59 = vld [vmem:[#allocation2 + $0x12c] sm:$0xe]  ;;  %v9200_v26 = vrot.slane %v12756_v60, 5  ;;  %v5147_v50 = vrot.slane %v5146_v20, 4  ;;  %v5170_v31 = vor.u32 %v5169_v12, %v5166_v37  ;;  %v5183_v23 = vshll.u32 %v12759_v8, 16 }
 0x305   :  { %11949 = vmatprep.mubr.msk.bf16.mxu0 %vm2028_vm12, %v10915_v3  ;;  %v5123_v3 = vrot.slane %v5122_v30, 4  ;;  %v10890_v14 = vrot.slane %v8941_v59, 9  ;;  %v5133_v63 = vrot.slane %v5132_v15, 4  ;;  %v12758_v30 = vld [vmem:[#allocation2 + $0x134] sm:$0x1]  ;;  %v5114_v59 = vsel %vm13135_vm11, %v5109_v28, %v15479_v29 }
 0x306   :  { %v5159_v15 = vshll.u32 %v12758_v30, 16  ;;  %v15527_v29 = vsel %vm13595_vm15, %v9199_v32, %v9200_v26  ;;  %v9204_v53 = vrot.slane %v12760_v57, 5  ;;  %v10920_v55 = vcombine.low %v15449_v61, %v15471_v49  ;;  %v12766_v57 = vld [vmem:[#allocation2 + $0x14c] sm:$0x1] }
 0x307   :  { %v5128_v58 = vsel %vm13135_vm11, %v5123_v3, %v15457_v5  ;;  %v5138_v38 = vsel %vm13135_vm11, %v5133_v63, %v5137_v45  ;;  %v15521_v9 = vsel %vm13595_vm15, %v10890_v14, %v9197_v27  ;;  %v5179_v5 = vrot.slane %v5177_v24, 4  ;;  %v8943_v14 = vld [vmem:[#allocation2 + $0x144] sm:$0xe] }
 0x308   :  { %11644 = vmatmul.mubr.msk.bf16.gmra.mrb[52].mxu1 %vm2028_vm12, %v12572_v34  ;;  %v12755_v34 = vld [vmem:[#allocation2 + $0x128] sm:$0x1]  ;;  %v5157_v45 = vrot.slane %v5156_v41, 4  ;;  %v5161_v27 = vrot.slane %v5159_v15, 5  ;;  %v10922_v4 = vcombine.low %v15521_v9, %v15527_v29  ;;  %v5152_v28 = vsel %vm13135_vm11, %v5147_v50, %v15487_v36  ;;  %v12764_v41 = vld [vmem:[#allocation2 + $0x154] sm:$0xf] }
 0x309   :  { %11647 = vmatprep.mubr.msk.bf16.mxu1 %vm2028_vm12, %v12573_v54  ;;  %v9193_v43 = vrot.slane %v12755_v34, 5  ;;  %v12575_v54 = vld [vmem:[#allocation2 + $0x18c] sm:$0xff]   ;;  %v15543_v34 = vcombine.low %v5104_v25, %v5114_v59  ;;  %v15555_v3 = vrot.slane %v5170_v31, 4  ;;  %v9206_v26 = vrot.slane %v9204_v53, 4  ;;  %v12763_v36 = vld [vmem:[#allocation2 + $0x148] sm:$0xf] }
 0x30a   :  { %v5162_v60 = vsel %vm13135_vm11, %v5157_v45, %v5161_v27  ;;  %v5188_v40 = vshrl.u32 %v4587_v46, 16  ;;  %v5197_v24 = vshll.u32 %v12763_v36, 16  ;;  %v5201_v32 = vshrl.u32 %v12763_v36, 16  ;;  %v12765_v59 = vld [vmem:[#allocation2 + $0x14c] sm:$0x1] }
 0x30b   :  { %v15510_v52 = vsel %vm13595_vm15, %v9192_v51, %v9193_v43  ;;  %v15545_v43 = vcombine.low %v5128_v58, %v5138_v38  ;;  %v5185_v51 = vrot.slane %v5183_v23, 5  ;;  %v10892_v25 = vrot.slane %v8943_v14, 9  ;;  %v4593_v38 = vld [vmem:[#allocation2 + $0x15c] sm:$0xf]  ;;  %v4596_v36 = vld [vmem:[#allocation2 + $0x168] sm:$0xf] }
 0x30c   :  { %11950 = vmatmul.mubr.msk.bf16.gmra.mrb[28].mxu0 %vm2028_vm12, %v10916_v16  ;;  %v15523_v16 = vrot.slane %v5173_v2, 5  ;;  %v10921_v62 = vcombine.low %v15494_v42, %v15510_v52  ;;  %v5191_v2 = vshll.u32 %v4587_v46, 16  ;;  %v5221_v30 = vshll.u32 %v12764_v41, 16 }
 0x30d   :  { %11953 = vmatprep.mubr.msk.bf16.mxu0 %vm2028_vm12, %v10917_v10  ;;  %v15539_v10 = vcombine.low %v5080_v17, %v5090_v44  ;;  %v10891_v17 = vrot.slane %v8942_v1, 9  ;;  %v12761_v44 = vld [vmem:[#allocation2 + $0x140] sm:$0x1]  ;;  %v5225_v39 = vshrl.u32 %v12764_v41, 16  ;;  %v15570_v11 = vcombine.low %v5152_v28, %v5162_v60 }
 0x30e   :  { %v5180_v13 = vor.u32 %v5179_v5, %v15523_v16  ;;  %v9207_v19 = vrot.slane %v12761_v44, 5  ;;  %v9214_v58 = vrot.slane %v12765_v59, 5  ;;  %v5190_v0 = vrot.slane %v5188_v40, 4 }
 0x30f   :  { %v15584_v5 = vrot.slane %v5197_v24, 5  ;;  %v5203_v50 = vrot.slane %v5201_v32, 4  ;;  %v5227_v45 = vrot.slane %v5225_v39, 4  ;;  %v5239_v46 = vshll.u32 %v4593_v38, 16 }
 0x310   :  { %11648 = vmatmul.mubr.msk.bf16.gmra.mrb[56].mxu1 %vm2028_vm12, %v12574_v21  ;;  %v4590_v21 = vld [vmem:[#allocation2 + $0x150] sm:$0xf]  ;;  %v5181_v12 = vrot.slane %v5180_v13, 4  ;;  %v15582_v33 = vsel %vm13595_vm15, %v9206_v26, %v9207_v19 }
 0x311   :  { %11651 = vmatprep.mubr.msk.bf16.mxu1 %vm2028_vm12, %v12575_v54  ;;  %v12762_v54 = vld [vmem:[#allocation2 + $0x148] sm:$0xf]  ;;  %v5212_v20 = vshrl.u32 %v4590_v21, 16  ;;  %v5215_v37 = vshll.u32 %v4590_v21, 16  ;;  %v8944_v19 = vld [vmem:[#allocation2 + $0x150] sm:$0xe]  ;;  %v5204_v14 = vor.u32 %v5203_v50, %v15584_v5 }
 0x312   :  { %v9211_v63 = vrot.slane %v12762_v54, 5  ;;  %v5186_v23 = vsel %vm13135_vm11, %v5181_v12, %v5185_v51  ;;  %v12768_v21 = vld [vmem:[#allocation2 + $0x160] sm:$0xf]  ;;  %v10893_v26 = vrot.slane %v8944_v19, 9 }
 0x313   :  { %v5214_v31 = vrot.slane %v5212_v20, 4  ;;  %v5217_v8 = vrot.slane %v5215_v37, 5  ;;  %v5245_v28 = vshll.u32 %v12768_v21, 16  ;;  %v5205_v42 = vrot.slane %v5204_v14, 4  ;;  %v12770_v37 = vld [vmem:[#allocation2 + $0x158] sm:$0x1] }
 0x314   :  { %11954 = vmatmul.mubr.msk.bf16.gmra.mrb[32].mxu0 %vm2028_vm12, %v10918_v22  ;;  %v15574_v22 = vsel %vm13595_vm15, %v10891_v17, %v9204_v53  ;;  %v9213_v15 = vrot.slane %v9211_v63, 4  ;;  %v15590_v1 = vsel %vm13595_vm15, %v10892_v25, %v9211_v63  ;;  %v5207_v53 = vshll.u32 %v12766_v57, 16  ;;  %v12767_v17 = vld [vmem:[#allocation2 + $0x158] sm:$0x1]  ;;  %v12769_v63 = vld [vmem:[#allocation2 + $0x154] sm:$0xf] }
 0x315   :  { %11957 = vmatprep.mubr.msk.bf16.mxu0 %vm2028_vm12, %v10919_v18  ;;  %v5193_v18 = vrot.slane %v5191_v2, 5  ;;  %v5231_v44 = vshll.u32 %v12767_v17, 16  ;;  %v10923_v51 = vcombine.low %v15574_v22, %v15582_v33  ;;  %v5218_v54 = vor.u32 %v5217_v8, %v5214_v31  ;;  %v8945_v25 = vld [vmem:[#allocation2 + $0x15c] sm:$0xe]  ;;  %v12773_v31 = vld [vmem:[#allocation2 + $0x164] sm:$0x1] }
 0x316   :  { %v15596_v27 = vsel %vm13595_vm15, %v9213_v15, %v9214_v58  ;;  %v9218_v60 = vrot.slane %v12769_v63, 5  ;;  %v5241_v2 = vrot.slane %v5239_v46, 5  ;;  %v9221_v12 = vrot.slane %v12770_v37, 5  ;;  %v12774_v57 = vld [vmem:[#allocation2 + $0x164] sm:$0x1] }
 0x317   :  { %v5194_v13 = vor.u32 %v5193_v18, %v5190_v0  ;;  %v10924_v61 = vcombine.low %v15590_v1, %v15596_v27  ;;  %v5233_v32 = vrot.slane %v5231_v44, 5  ;;  %v5219_v52 = vrot.slane %v5218_v54, 4  ;;  %v8946_v17 = vld [vmem:[#allocation2 + $0x168] sm:$0xe]  ;;  %v12775_v44 = vld [vmem:[#allocation2 + $0x16c] sm:$0xf] }
 0x318   :  { %11652 = vmatmul.mubr.msk.bf16.gmra.mrb[60].mxu1 %vm2028_vm12, %v12576_v6  ;;  %v5236_v6 = vshrl.u32 %v4593_v38, 16  ;;  %v5260_v22 = vshrl.u32 %v4596_v36, 16  ;;  %v5263_v15 = vshll.u32 %v4596_v36, 16  ;;  %v15622_v59 = vsel %vm13595_vm15, %v10893_v26, %v9218_v60  ;;  %v12776_v14 = vld [vmem:[#allocation2 + $0x170] sm:$0x1] }
 0x319   :  { %11689 = vmatprep.mubr.msk.bf16.mxu1 %vm2028_vm12, %v15413_v35  ;;  %v5176_v35 = vsel %vm13135_vm11, %v15555_v3, %v15523_v16  ;;  %v15592_v16 = vrot.slane %v5221_v30, 5  ;;  %v5249_v3 = vshrl.u32 %v12768_v21, 16  ;;  %v5195_v24 = vrot.slane %v5194_v13, 4  ;;  %v12771_v30 = vld [vmem:[#allocation2 + $0x160] sm:$0xf] }
 0x31a   :  { %v5238_v40 = vrot.slane %v5236_v6, 4  ;;  %v9225_v39 = vrot.slane %v12771_v30, 5  ;;  %v10894_v38 = vrot.slane %v8945_v25, 9  ;;  %v5255_v8 = vshll.u32 %v12773_v31, 16  ;;  %v4599_v6 = vld [vmem:[#allocation2 + $0x174] sm:$0xf] }
 0x31b   :  { %v5228_v49 = vor.u32 %v5227_v45, %v15592_v16  ;;  %v5251_v20 = vrot.slane %v5249_v3, 4  ;;  %v5200_v18 = vsel %vm13135_vm11, %v5195_v24, %v15584_v5  ;;  %v5224_v5 = vsel %vm13135_vm11, %v5219_v52, %v15592_v16  ;;  %v12780_v1 = vld [vmem:[#allocation2 + $0x17c] sm:$0x1] }
 0x31c   :  { %11958 = vmatmul.mubr.msk.bf16.gmra.mrb[36].mxu0 %vm2028_vm12, %v10920_v55  ;;  %v5209_v55 = vrot.slane %v5207_v53, 5  ;;  %v5242_v58 = vor.u32 %v5241_v2, %v5238_v40  ;;  %v9228_v53 = vrot.slane %v12774_v57, 5  ;;  %v9227_v29 = vrot.slane %v9225_v39, 4  ;;  %v12782_v31 = vld [vmem:[#allocation2 + $0x17c] sm:$0x1] }
 0x31d   :  { %11961 = vmatprep.mubr.msk.bf16.mxu0 %vm2028_vm12, %v10921_v62  ;;  %v9220_v62 = vrot.slane %v9218_v60, 4  ;;  %v5229_v41 = vrot.slane %v5228_v49, 4  ;;  %v9232_v19 = vrot.slane %v12775_v44, 5  ;;  %v5257_v3 = vrot.slane %v5255_v8, 5  ;;  %v12784_v44 = vld [vmem:[#allocation2 + $0x188] sm:$0x1] }
 0x31e   :  { %v5243_v46 = vrot.slane %v5242_v58, 4  ;;  %v5279_v54 = vshll.u32 %v12776_v14, 16  ;;  %v5284_v63 = vshrl.u32 %v4599_v6, 16  ;;  %v5287_v60 = vshll.u32 %v4599_v6, 16  ;;  %v12785_v14 = vld [vmem:[#allocation2 + $0x190] sm:$0xf] }
 0x31f   :  { %v9222_v45 = vsel %vm13595_vm15, %v9220_v62, %v9221_v12  ;;  %v5234_v9 = vsel %vm13135_vm11, %v5229_v41, %v5233_v32  ;;  %v10895_v40 = vrot.slane %v8946_v17, 9  ;;  %v9234_v24 = vrot.slane %v9232_v19, 4  ;;  %v12777_v32 = vld [vmem:[#allocation2 + $0x170] sm:$0x1]  ;;  %v12778_v62 = vld [vmem:[#allocation2 + $0x178] sm:$0xf] }
 0x320   :  { %11690 = vmatmul.mubr.msk.bf16.vlgmr.msra.gmra.mrb[32].mxu1 %vm2028_vm12, %v15155_v7  ;;  %v15613_v7 = vcombine.low %v5176_v35, %v5186_v23  ;;  %v12772_v35 = vld [vmem:[#allocation2 + $0x16c] sm:$0xf]  ;;  %v5210_v23 = vsel %vm13135_vm11, %v5205_v42, %v5209_v55  ;;  %v15655_v49 = vcombine.low %v5224_v5, %v5234_v9  ;;  %v9229_v55 = vsel %vm13595_vm15, %v9227_v29, %v9228_v53  ;;  %v8947_v42 = vld [vmem:[#allocation2 + $0x174] sm:$0xe]  ;;  %v12779_v12 = vld [vmem:[#allocation2 + $0x178] sm:$0xf] }
 0x321   :  { %11693 = vmatprep.mubr.msk.bf16.mxu1 %vm2028_vm12, %v15432_v48  ;;  %v15618_v48 = vrot.slane %v5245_v28, 5  ;;  %v5269_v33 = vshll.u32 %v12772_v35, 16  ;;  %v5273_v0 = vshrl.u32 %v12772_v35, 16  ;;  %v15648_v21 = vcombine.low %v5200_v18, %v5210_v23  ;;  %v8948_v23 = vld [vmem:[#allocation2 + $0x180] sm:$0xe] }
 0x322   :  { %v9239_v37 = vrot.slane %v12778_v62, 5  ;;  %v5293_v25 = vshll.u32 %v12779_v12, 16  ;;  %v5297_v41 = vshrl.u32 %v12779_v12, 16  ;;  %v15672_v30 = vrot.slane %v5279_v54, 5  ;;  %v12783_v53 = vld [vmem:[#allocation2 + $0x184] sm:$0xf] }
 0x323   :  { %v5252_v50 = vor.u32 %v5251_v20, %v15618_v48  ;;  %v15646_v13 = vrot.slane %v5269_v33, 5  ;;  %v5275_v16 = vrot.slane %v5273_v0, 4  ;;  %v5248_v2 = vsel %vm13135_vm11, %v5243_v46, %v15618_v48  ;;  %v12781_v0 = vld [vmem:[#allocation2 + $0x184] sm:$0xf]  ;;  %v12787_v62 = vld [vmem:[#allocation2 + $0x19c] sm:$0xf] }
 0x324   :  { %11962 = vmatmul.mubr.msk.bf16.gmra.mrb[40].mxu0 %vm2028_vm12, %v10922_v4  ;;  %v5265_v4 = vrot.slane %v5263_v15, 5  ;;  %v9235_v20 = vrot.slane %v12777_v32, 5  ;;  %v9242_v27 = vrot.slane %v12780_v1, 5  ;;  %v9241_v18 = vrot.slane %v9239_v37, 4  ;;  %v12786_v32 = vld [vmem:[#allocation2 + $0x190] sm:$0xf] }
 0x325   :  { %11965 = vmatprep.mubr.msk.bf16.mxu0 %vm2028_vm12, %v10923_v51  ;;  %v5253_v28 = vrot.slane %v5252_v50, 4  ;;  %v15653_v51 = vsel %vm13595_vm15, %v10894_v38, %v9225_v39  ;;  %v5276_v36 = vor.u32 %v5275_v16, %v15646_v13  ;;  %v5286_v39 = vrot.slane %v5284_v63, 4  ;;  %v12789_v1 = vld [vmem:[#allocation2 + $0x188] sm:$0x1] }
 0x326   :  { %v10926_v48 = vcombine.low %v15653_v51, %v9229_v55  ;;  %v9236_v33 = vsel %vm13595_vm15, %v9234_v24, %v9235_v20  ;;  %v15687_v38 = vrot.slane %v5293_v25, 5  ;;  %v5299_v50 = vrot.slane %v5297_v41, 4 }
 0x327   :  { %v5258_v52 = vsel %vm13135_vm11, %v5253_v28, %v5257_v3  ;;  %v15683_v35 = vrot.slane %v5276_v36, 4  ;;  %v5303_v8 = vshll.u32 %v12782_v31, 16  ;;  %v5317_v9 = vshll.u32 %v12783_v53, 16 }
 0x328   :  { %11694 = vmatmul.mubr.msk.bf16.gmra.mrb[36].mxu1 %vm2028_vm12, %v15539_v10  ;;  %v5262_v10 = vrot.slane %v5260_v22, 4  ;;  %v5289_v22 = vrot.slane %v5287_v60, 5  ;;  %v15681_v58 = vcombine.low %v5248_v2, %v5258_v52  ;;  %v5321_v6 = vshrl.u32 %v12783_v53, 16 }
 0x329   :  { %11697 = vmatprep.mubr.msk.bf16.mxu1 %vm2028_vm12, %v15543_v34  ;;  %v10925_v34 = vcombine.low %v15622_v59, %v9222_v45  ;;  %v10896_v59 = vrot.slane %v8947_v42, 9  ;;  %v5282_v46 = vsel %vm13135_vm11, %v15683_v35, %v15672_v30  ;;  %v10897_v16 = vrot.slane %v8948_v23, 9  ;;  %v12790_v23 = vld [vmem:[#allocation2 + $0x1a0] sm:$0x1]  ;;  %v8951_v35 = vld [vmem:[#allocation2 + $0x1a4] sm:$0xe] }
 0x32a   :  { %v5266_v26 = vor.u32 %v5265_v4, %v5262_v10  ;;  %v5290_v5 = vor.u32 %v5289_v22, %v5286_v39  ;;  %v9243_v28 = vsel %vm13595_vm15, %v9241_v18, %v9242_v27  ;;  %v5300_v3 = vor.u32 %v5299_v50, %v15687_v38  ;;  %v8950_v39 = vld [vmem:[#allocation2 + $0x198] sm:$0xe] }
 0x32b   :  { %v9240_v4 = vsel %vm13595_vm15, %v10896_v59, %v9239_v37  ;;  %v15702_v51 = vrot.slane %v5303_v8, 5  ;;  %v9253_v54 = vrot.slane %v12785_v14, 5  ;;  %v5323_v2 = vrot.slane %v5321_v6, 4  ;;  %v4608_v18 = vld [vmem:[#allocation2 + $0x198] sm:$0xf] }
 0x32c   :  { %11966 = vmatmul.mubr.msk.bf16.gmra.mrb[44].mxu0 %vm2028_vm12, %v10924_v61  ;;  %v15677_v15 = vrot.slane %v5266_v26, 4  ;;  %v4602_v61 = vld [vmem:[#allocation2 + $0x180] sm:$0xf]  ;;  %v15707_v63 = vrot.slane %v5290_v5, 4  ;;  %v15709_v26 = vrot.slane %v5317_v9, 5  ;;  %v5341_v20 = vshll.u32 %v12786_v32, 16 }
 0x32d   :  { %11969 = vmatprep.mubr.msk.bf16.mxu0 %vm2028_vm12, %v10925_v34  ;;  %v5308_v45 = vshrl.u32 %v4602_v61, 16  ;;  %v5311_v57 = vshll.u32 %v4602_v61, 16  ;;  %v4605_v34 = vld [vmem:[#allocation2 + $0x18c] sm:$0xf]  ;;  %v5345_v52 = vshrl.u32 %v12786_v32, 16  ;;  %v9260_v37 = vrot.slane %v12787_v62, 5 }
 0x32e   :  { %v5272_v29 = vsel %vm13135_vm11, %v15677_v15, %v15646_v13  ;;  %v5332_v36 = vshrl.u32 %v4605_v34, 16  ;;  %v5335_v24 = vshll.u32 %v4605_v34, 16  ;;  %v5301_v12 = vrot.slane %v5300_v3, 4  ;;  %v12793_v34 = vld [vmem:[#allocation2 + $0x1a8] sm:$0xf] }
 0x32f   :  { %v5310_v60 = vrot.slane %v5308_v45, 4  ;;  %v5313_v55 = vrot.slane %v5311_v57, 5  ;;  %v9255_v41 = vrot.slane %v9253_v54, 4  ;;  %v10928_v22 = vcombine.low %v9240_v4, %v9243_v28  ;;  %v12791_v4 = vld [vmem:[#allocation2 + $0x19c] sm:$0xf] }
 0x330   :  { %11698 = vmatmul.mubr.msk.bf16.gmra.mrb[40].mxu1 %vm2028_vm12, %v15545_v43  ;;  %v9233_v43 = vsel %vm13595_vm15, %v10895_v40, %v9232_v19  ;;  %v9249_v19 = vrot.slane %v12784_v44, 5  ;;  %v8949_v40 = vld [vmem:[#allocation2 + $0x18c] sm:$0xe]  ;;  %v5327_v27 = vshll.u32 %v12789_v1, 16  ;;  %v5347_v50 = vrot.slane %v5345_v52, 4 }
 0x331   :  { %11701 = vmatprep.mubr.msk.bf16.mxu1 %vm2028_vm12, %v15570_v11  ;;  %v9246_v11 = vrot.slane %v12781_v0, 5  ;;  %v10927_v10 = vcombine.low %v9233_v43, %v9236_v33  ;;  %v10898_v25 = vrot.slane %v8949_v40, 9  ;;  %v5296_v43 = vsel %vm13135_vm11, %v15707_v63, %v15687_v38  ;;  %v12792_v44 = vld [vmem:[#allocation2 + $0x194] sm:$0x1] }
 0x332   :  { %v5314_v59 = vor.u32 %v5313_v55, %v5310_v60  ;;  %v5334_v33 = vrot.slane %v5332_v36, 4  ;;  %v5337_v0 = vrot.slane %v5335_v24, 5  ;;  %v10899_v31 = vrot.slane %v8950_v39, 9  ;;  %v12794_v36 = vld [vmem:[#allocation2 + $0x1ac] sm:$0x1] }
 0x333   :  { %v9248_v17 = vrot.slane %v9246_v11, 4  ;;  %v9262_v8 = vrot.slane %v9260_v37, 4  ;;  %v9263_v5 = vrot.slane %v12790_v23, 5  ;;  %v5306_v45 = vsel %vm13135_vm11, %v5301_v12, %v15702_v51  ;;  %v12795_v12 = vld [vmem:[#allocation2 + $0x1a0] sm:$0x1] }
 0x334   :  { %11970 = vmatmul.mubr.msk.bf16.gmra.mrb[48].mxu0 %vm2028_vm12, %v10926_v48  ;;  %v5324_v38 = vor.u32 %v5323_v2, %v15709_v26  ;;  %v9254_v57 = vsel %vm13595_vm15, %v10898_v25, %v9253_v54  ;;  %v5356_v9 = vshrl.u32 %v4608_v18, 16  ;;  %v5365_v6 = vshll.u32 %v12791_v4, 16 }
 0x335   :  { %11973 = vmatprep.mubr.msk.bf16.mxu0 %vm2028_vm12, %v10927_v10  ;;  %v9250_v42 = vsel %vm13595_vm15, %v9248_v17, %v9249_v19  ;;  %v5359_v10 = vshll.u32 %v4608_v18, 16  ;;  %v5329_v17 = vrot.slane %v5327_v27, 5  ;;  %v5351_v19 = vshll.u32 %v12792_v44, 16 }
 0x336   :  { %v9267_v28 = vrot.slane %v12793_v34, 5  ;;  %v5338_v3 = vor.u32 %v5337_v0, %v5334_v33  ;;  %v9261_v51 = vsel %vm13595_vm15, %v10899_v31, %v9260_v37  ;;  %v9264_v30 = vsel %vm13595_vm15, %v9262_v8, %v9263_v5 }
 0x337   :  { %v10609_v14 = vcombine.low %v5296_v43, %v5306_v45  ;;  %v5315_v13 = vrot.slane %v5314_v59, 4  ;;  %v5325_v15 = vrot.slane %v5324_v38, 4  ;;  %v5361_v54 = vrot.slane %v5359_v10, 5 }
 0x338   :  { %11702 = vmatmul.mubr.msk.bf16.gmra.mrb[44].mxu1 %vm2028_vm12, %v15613_v7  ;;  %v9247_v7 = vsel %vm13595_vm15, %v10897_v16, %v9246_v11  ;;  %v15722_v11 = vrot.slane %v5341_v20, 5  ;;  %v5369_v16 = vshrl.u32 %v12791_v4, 16  ;;  %v5367_v63 = vrot.slane %v5365_v6, 5 }
 0x339   :  { %11705 = vmatprep.mubr.msk.bf16.mxu1 %vm2028_vm12, %v15648_v21  ;;  %v12788_v21 = vld [vmem:[#allocation2 + $0x194] sm:$0x1]  ;;  %v10929_v61 = vcombine.low %v9247_v7, %v9250_v42  ;;  %v10931_v55 = vcombine.low %v9261_v51, %v9264_v30  ;;  %v10900_v40 = vrot.slane %v8951_v35, 9  ;;  %v9269_v2 = vrot.slane %v9267_v28, 4 }
 0x33a   :  { %v9256_v48 = vrot.slane %v12788_v21, 5  ;;  %v5371_v60 = vrot.slane %v5369_v16, 4  ;;  %v9270_v24 = vrot.slane %v12794_v36, 5  ;;  %v5339_v32 = vrot.slane %v5338_v3, 4 }
 0x33b   :  { %v5353_v7 = vrot.slane %v5351_v19, 5  ;;  %v5320_v42 = vsel %vm13135_vm11, %v5315_v13, %v15709_v26  ;;  %v5330_v52 = vsel %vm13135_vm11, %v5325_v15, %v5329_v17  ;;  %v5375_v25 = vshll.u32 %v12795_v12, 16  ;;  %v15824_v13 = vld [vmem:[%s15998_s2] ss:$0 sm:$0xff]  ;;  %s12821_s2 = smov [#allocation3]  }
 0x33c   :  { %v9257_v53 = vsel %vm13595_vm15, %v9255_v41, %v9256_v48  ;;  %11974 = vmatmul.mubr.msk.bf16.gmra.mrb[52].mxu0 %vm2028_vm12, %v10928_v22  ;;  %v5372_v37 = vor.u32 %v5371_v60, %v5367_v63  ;;  %v9268_v41 = vsel %vm13595_vm15, %v10900_v40, %v9267_v28  ;;  %v9271_v21 = vsel %vm13595_vm15, %v9269_v2, %v9270_v24  ;;  %s10282_s29 = sshll.u32 %s12821_s2, 4  ;;  %s10283_s29 = int_to_ptr.vmem [resolvable:$true] %s10282_s29 }
 0x33d   :  { %11977 = vmatprep.mubr.msk.bf16.mxu0 %vm2028_vm12, %v10929_v61  ;;  %v5344_v26 = vsel %vm13135_vm11, %v5339_v32, %v15722_v11  ;;  %v10610_v39 = vcombine.low %v5320_v42, %v5330_v52  ;;  %v10932_v22 = vcombine.low %v9268_v41, %v9271_v21  ;;  %v5377_v27 = vrot.slane %v5375_v25, 5  ;;  %s12796_s30 = scalar_lea.vmem %s10283_s29, 4096  ;;  %p12801_p1 = scmp.lt.s32.totalorder %s10283_s29, %s10283_s29 }
 0x33e   :  { %v5373_v1 = vrot.slane %v5372_v37, 4  ;;  %p12797_p0 = scmp.ne.s32.totalorder %s10283_s29, %s12796_s30  ;;  %p12802_p2 = scmp.lt.s32.totalorder %s12796_s30, %s12796_s30 }
 0x340   :  { %11706 = vmatmul.mubr.msk.bf16.gmra.mrb[48].mxu1 %vm2028_vm12, %v15655_v49  ;;  %v10608_v49 = vcombine.low %v5272_v29, %v5282_v46  ;;  %v10930_v29 = vcombine.low %v9254_v57, %v9257_v53  ;;  %v5358_v46 = vrot.slane %v5356_v9, 4  ;;  %v5378_v61 = vsel %vm13135_vm11, %v5373_v1, %v5377_v27  ;;  %p12803_p3 = por %p12802_p2, %p12801_p1 }
 0x341   :  { %11709 = vmatprep.mubr.msk.bf16.mxu1 %vm2028_vm12, %v15681_v58  ;;  %v5348_v58 = vor.u32 %v5347_v50, %v15722_v11 }
 0x342   :  { %v5362_v62 = vor.u32 %v5361_v54, %v5358_v46  ;;  %p12804_p4 = pnand %p12803_p3, %p12797_p0 }
 0x343   :  { %v5349_v20 = vrot.slane %v5348_v58, 4 }
 0x344   :  { %11978 = vmatmul.mubr.msk.bf16.gmra.mrb[56].mxu0 %vm2028_vm12, %v10930_v29  ;;  %v5363_v59 = vrot.slane %v5362_v62, 4 }
 0x345   :  { %11981 = vmatprep.mubr.msk.bf16.mxu0 %vm2028_vm12, %v10931_v55  ;;  %v5354_v48 = vsel %vm13135_vm11, %v5349_v20, %v5353_v7 }
 0x346   :  { %v10611_v43 = vcombine.low %v5344_v26, %v5354_v48  ;;  %v5368_v47 = vsel %vm13135_vm11, %v5363_v59, %v5367_v63 }
 0x347   :  { %v10612_v33 = vcombine.low %v5368_v47, %v5378_v61 }
 0x348   :  { %11710 = vmatmul.mubr.msk.bf16.gmra.mrb[52].mxu1 %vm2028_vm12, %v10608_v49 }
 0x349   :  { %11713 = vmatprep.mubr.msk.bf16.mxu1 %vm2028_vm12, %v10609_v14 }
 0x34c   :  { %11982 = vmatmul.mubr.msk.bf16.gmra.mrb[60].mxu0 %vm2028_vm12, %v10932_v22 }
 0x350   :  { %11714 = vmatmul.mubr.msk.bf16.gmra.mrb[56].mxu1 %vm2028_vm12, %v10610_v39 }
 0x351   :  { %11717 = vmatprep.mubr.msk.bf16.mxu1 %vm2028_vm12, %v10611_v43 }
 0x358   :  { %11718 = vmatmul.mubr.msk.bf16.gmra.mrb[60].mxu1 %vm2028_vm12, %v10612_v33 }
 0x373   :  { %v11593_v0 = vpop.f32.mrb[0].mxu1 }
 0x374   :  { %v4196_v11 = vpop.f32.mrb[1].mxu1 }
 0x375   :  { %v11594_v18 = vpop.f32.mrb[2].mxu1 }
 0x376   :  { %v4199_v50 = vpop.f32.mrb[3].mxu1 }
 0x37b   :  { %v11597_v31 = vpop.f32.mrb[4].mxu1 }
 0x37c   :  { %v4212_v8 = vpop.f32.mrb[5].mxu1 }
 0x37d   :  { %v11598_v23 = vpop.f32.mrb[6].mxu1 }
 0x37e   :  { %v4215_v5 = vpop.f32.mrb[7].mxu1 }
 0x383   :  { %v15779_v45 = vpop.f32.mrb[8].mxu1 }
 0x384   :  { %v15781_v38 = vpop.f32.mrb[9].mxu1 }
 0x385   :  { %v15783_v57 = vpop.f32.mrb[10].mxu1 }
 0x386   :  { %v15785_v53 = vpop.f32.mrb[11].mxu1 }
 0x38b   :  { %v15787_v56 = vpop.f32.mrb[12].mxu1 }
 0x38c   :  { %v15789_v9 = vpop.f32.mrb[13].mxu1 }
 0x38d   :  { %v15791_v10 = vpop.f32.mrb[14].mxu1 }
 0x38e   :  { %v15793_v4 = vpop.f32.mrb[15].mxu1 }
 0x393   :  { %v15795_v6 = vpop.f32.mrb[16].mxu1 }
 0x394   :  { %v15797_v16 = vpop.f32.mrb[17].mxu1 }
 0x395   :  { %v15799_v49 = vpop.f32.mrb[18].mxu1 }
 0x396   :  { %v15801_v17 = vpop.f32.mrb[19].mxu1 }
 0x39b   :  { %v15803_v44 = vpop.f32.mrb[20].mxu1 }
 0x39c   :  { %v15805_v19 = vpop.f32.mrb[21].mxu1 }
 0x39d   :  { %v15807_v34 = vpop.f32.mrb[22].mxu1 }
 0x39e   :  { %v15809_v28 = vpop.f32.mrb[23].mxu1 }
 0x3a3   :  { %v15811_v3 = vpop.f32.mrb[24].mxu1 }
 0x3a4   :  { %v15813_v58 = vpop.f32.mrb[25].mxu1 }
 0x3a5   :  { %v15815_v51 = vpop.f32.mrb[26].mxu1 }
 0x3a6   :  { %v15817_v30 = vpop.f32.mrb[27].mxu1 }
 0x3a7   :  { %v11923_v14 = vpop.f32.mrb[0].mxu0 }
 0x3a8   :  { %v11987_v29 = vadd.f32 %v11923_v14, %v11593_v0  ;;  %v9502_v46 = vpop.f32.mrb[1].mxu0 }
 0x3a9   :  { %v11988_v63 = vadd.f32 %v9502_v46, %v4196_v11  ;;  %v11924_v60 = vpop.f32.mrb[2].mxu0 }
 0x3aa   :  { %v9830_v40 = vadd.f32 %v11987_v29, %v15824_v13  ;;  %v11989_v2 = vadd.f32 %v11924_v60, %v11594_v18  ;;  %v9505_v36 = vpop.f32.mrb[3].mxu0 }
 0x3ab   :  { %v15819_v35 = vpop.f32.mrb[28].mxu1  ;;  %v9828_v24 = vadd.f32 %v11988_v63, %v15824_v13  ;;  %v11990_v32 = vadd.f32 %v9505_v36, %v4199_v50 }
 0x3ac   :  { %v15826_v15 = vpop.f32.mrb[29].mxu1  ;;  %v9894_v20 = vmax.f32 %v9830_v40, 0.0  ;;  %v9831_v7 = vadd.f32 %v11989_v2, %v15824_v13 }
 0x3ad   :  { %v15828_v54 = vpop.f32.mrb[30].mxu1  ;;  %v9892_v42 = vmax.f32 %v9828_v24, 0.0  ;;  %v9829_v52 = vadd.f32 %v11990_v32, %v15824_v13 }
 0x3ae   :  { %v15830_v55 = vpop.f32.mrb[31].mxu1  ;;  %v11032_v62 = vpack.c.bf16 %v9894_v20, %v9894_v20  ;;  %v9895_v37 = vmax.f32 %v9831_v7, 0.0 }
 0x3af   :  { %v11030_v12 = vpack.c.bf16 %v9892_v42, %v9892_v42  ;;  %v9893_v25 = vmax.f32 %v9829_v52, 0.0  ;;  %v11927_v41 = vpop.f32.mrb[4].mxu0 }
 0x3b0   :  { %10215 = vst.msk [vmem:[#allocation3 + $0x8] sm:$0xf] %vm10212_vm0, %v11032_v62  ;;  %v11033_v21 = vpack.c.bf16 %v9895_v37, %v9895_v37  ;;  %v11991_v26 = vadd.f32 %v11927_v41, %v11597_v31  ;;  %v9518_v48 = vpop.f32.mrb[5].mxu0 }
 0x3b1   :  { %10213 = vst.msk [vmem:[#allocation3] sm:$0xf] %vm10212_vm0, %v11030_v12  ;;  %v11031_v39 = vpack.c.bf16 %v9893_v25, %v9893_v25  ;;  %v11992_v22 = vadd.f32 %v9518_v48, %v4212_v8  ;;  %v11928_v43 = vpop.f32.mrb[6].mxu0 }
 0x3b2   :  { %10216 = vst.msk [vmem:[#allocation3 + $0xc] sm:$0xf] %vm10212_vm0, %v11033_v21  ;;  %v9834_v59 = vadd.f32 %v11991_v26, %v15824_v13  ;;  %v11993_v1 = vadd.f32 %v11928_v43, %v11598_v23  ;;  %v9521_v27 = vpop.f32.mrb[7].mxu0 }
 0x3b3   :  { %10214 = vst.msk [vmem:[#allocation3 + $0x4] sm:$0xf] %vm10212_vm0, %v11031_v39  ;;  %v9832_v47 = vadd.f32 %v11992_v22, %v15824_v13  ;;  %v11994_v61 = vadd.f32 %v9521_v27, %v4215_v5 }
 0x3b4   :  { %v9898_v33 = vmax.f32 %v9834_v59, 0.0  ;;  %v9835_v0 = vadd.f32 %v11993_v1, %v15824_v13 }
 0x3b5   :  { %v9896_v11 = vmax.f32 %v9832_v47, 0.0  ;;  %v9833_v18 = vadd.f32 %v11994_v61, %v15824_v13 }
 0x3b6   :  { %v11036_v50 = vpack.c.bf16 %v9898_v33, %v9898_v33  ;;  %v9899_v31 = vmax.f32 %v9835_v0, 0.0 }
 0x3b7   :  { %v11034_v8 = vpack.c.bf16 %v9896_v11, %v9896_v11  ;;  %v9897_v14 = vmax.f32 %v9833_v18, 0.0  ;;  %v11931_v29 = vpop.f32.mrb[8].mxu0 }
 0x3b8   :  { %10219 = vst.msk [vmem:[#allocation3 + $0x18] sm:$0xf] %vm10212_vm0, %v11036_v50  ;;  %v11037_v23 = vpack.c.bf16 %v9899_v31, %v9899_v31  ;;  %v11995_v46 = vadd.f32 %v11931_v29, %v15779_v45  ;;  %v9534_v63 = vpop.f32.mrb[9].mxu0 }
 0x3b9   :  { %10217 = vst.msk [vmem:[#allocation3 + $0x10] sm:$0xf] %vm10212_vm0, %v11034_v8  ;;  %v11035_v5 = vpack.c.bf16 %v9897_v14, %v9897_v14  ;;  %v11996_v60 = vadd.f32 %v9534_v63, %v15781_v38  ;;  %v11932_v40 = vpop.f32.mrb[10].mxu0 }
 0x3ba   :  { %10220 = vst.msk [vmem:[#allocation3 + $0x1c] sm:$0xf] %vm10212_vm0, %v11037_v23  ;;  %v9838_v2 = vadd.f32 %v11995_v46, %v15824_v13  ;;  %v11997_v36 = vadd.f32 %v11932_v40, %v15783_v57  ;;  %v9537_v24 = vpop.f32.mrb[11].mxu0 }
 0x3bb   :  { %10218 = vst.msk [vmem:[#allocation3 + $0x14] sm:$0xf] %vm10212_vm0, %v11035_v5  ;;  %v9836_v32 = vadd.f32 %v11996_v60, %v15824_v13  ;;  %v11998_v45 = vadd.f32 %v9537_v24, %v15785_v53 }
 0x3bc   :  { %v9902_v20 = vmax.f32 %v9838_v2, 0.0  ;;  %v9839_v7 = vadd.f32 %v11997_v36, %v15824_v13 }
 0x3bd   :  { %v9900_v42 = vmax.f32 %v9836_v32, 0.0  ;;  %v9837_v38 = vadd.f32 %v11998_v45, %v15824_v13 }
 0x3be   :  { %v11040_v52 = vpack.c.bf16 %v9902_v20, %v9902_v20  ;;  %v9903_v62 = vmax.f32 %v9839_v7, 0.0 }
 0x3bf   :  { %v11038_v37 = vpack.c.bf16 %v9900_v42, %v9900_v42  ;;  %v9901_v12 = vmax.f32 %v9837_v38, 0.0  ;;  %v11935_v25 = vpop.f32.mrb[12].mxu0 }
 0x3c0   :  { %10223 = vst.msk [vmem:[#allocation3 + $0x28] sm:$0xf] %vm10212_vm0, %v11040_v52  ;;  %v11041_v57 = vpack.c.bf16 %v9903_v62, %v9903_v62  ;;  %v11999_v41 = vadd.f32 %v11935_v25, %v15787_v56  ;;  %v9550_v21 = vpop.f32.mrb[13].mxu0 }
 0x3c1   :  { %10221 = vst.msk [vmem:[#allocation3 + $0x20] sm:$0xf] %vm10212_vm0, %v11038_v37  ;;  %v11039_v53 = vpack.c.bf16 %v9901_v12, %v9901_v12  ;;  %v12000_v26 = vadd.f32 %v9550_v21, %v15789_v9  ;;  %v11936_v48 = vpop.f32.mrb[14].mxu0 }
 0x3c2   :  { %10224 = vst.msk [vmem:[#allocation3 + $0x2c] sm:$0xf] %vm10212_vm0, %v11041_v57  ;;  %v9842_v39 = vadd.f32 %v11999_v41, %v15824_v13  ;;  %v12001_v22 = vadd.f32 %v11936_v48, %v15791_v10  ;;  %v9553_v43 = vpop.f32.mrb[15].mxu0 }
 0x3c3   :  { %10222 = vst.msk [vmem:[#allocation3 + $0x24] sm:$0xf] %vm10212_vm0, %v11039_v53  ;;  %v9840_v59 = vadd.f32 %v12000_v26, %v15824_v13  ;;  %v12002_v56 = vadd.f32 %v9553_v43, %v15793_v4 }
 0x3c4   :  { %v9906_v1 = vmax.f32 %v9842_v39, 0.0  ;;  %v9843_v27 = vadd.f32 %v12001_v22, %v15824_v13 }
 0x3c5   :  { %v9904_v47 = vmax.f32 %v9840_v59, 0.0  ;;  %v9841_v9 = vadd.f32 %v12002_v56, %v15824_v13 }
 0x3c6   :  { %v11044_v61 = vpack.c.bf16 %v9906_v1, %v9906_v1  ;;  %v9907_v33 = vmax.f32 %v9843_v27, 0.0 }
 0x3c7   :  { %v11042_v0 = vpack.c.bf16 %v9904_v47, %v9904_v47  ;;  %v9905_v11 = vmax.f32 %v9841_v9, 0.0  ;;  %v11939_v18 = vpop.f32.mrb[16].mxu0 }
 0x3c8   :  { %10227 = vst.msk [vmem:[#allocation3 + $0x38] sm:$0xf] %vm10212_vm0, %v11044_v61  ;;  %v11045_v10 = vpack.c.bf16 %v9907_v33, %v9907_v33  ;;  %v12003_v50 = vadd.f32 %v11939_v18, %v15795_v6  ;;  %v9566_v31 = vpop.f32.mrb[17].mxu0 }
 0x3c9   :  { %10225 = vst.msk [vmem:[#allocation3 + $0x30] sm:$0xf] %vm10212_vm0, %v11042_v0  ;;  %v11043_v4 = vpack.c.bf16 %v9905_v11, %v9905_v11  ;;  %v12004_v8 = vadd.f32 %v9566_v31, %v15797_v16  ;;  %v11940_v14 = vpop.f32.mrb[18].mxu0 }
 0x3ca   :  { %10228 = vst.msk [vmem:[#allocation3 + $0x3c] sm:$0xf] %vm10212_vm0, %v11045_v10  ;;  %v9846_v29 = vadd.f32 %v12003_v50, %v15824_v13  ;;  %v12005_v23 = vadd.f32 %v11940_v14, %v15799_v49  ;;  %v9569_v46 = vpop.f32.mrb[19].mxu0 }
 0x3cb   :  { %10226 = vst.msk [vmem:[#allocation3 + $0x34] sm:$0xf] %vm10212_vm0, %v11043_v4  ;;  %v9844_v63 = vadd.f32 %v12004_v8, %v15824_v13  ;;  %v12006_v6 = vadd.f32 %v9569_v46, %v15801_v17 }
 0x3cc   :  { %v9910_v5 = vmax.f32 %v9846_v29, 0.0  ;;  %v9847_v60 = vadd.f32 %v12005_v23, %v15824_v13 }
 0x3cd   :  { %v9908_v40 = vmax.f32 %v9844_v63, 0.0  ;;  %v9845_v16 = vadd.f32 %v12006_v6, %v15824_v13 }
 0x3ce   :  { %v11048_v2 = vpack.c.bf16 %v9910_v5, %v9910_v5  ;;  %v9911_v36 = vmax.f32 %v9847_v60, 0.0 }
 0x3cf   :  { %v11046_v24 = vpack.c.bf16 %v9908_v40, %v9908_v40  ;;  %v9909_v32 = vmax.f32 %v9845_v16, 0.0  ;;  %v11943_v45 = vpop.f32.mrb[20].mxu0 }
 0x3d0   :  { %10231 = vst.msk [vmem:[#allocation3 + $0x48] sm:$0xf] %vm10212_vm0, %v11048_v2  ;;  %v11049_v49 = vpack.c.bf16 %v9911_v36, %v9911_v36  ;;  %v12007_v20 = vadd.f32 %v11943_v45, %v15803_v44  ;;  %v9582_v7 = vpop.f32.mrb[21].mxu0 }
 0x3d1   :  { %10229 = vst.msk [vmem:[#allocation3 + $0x40] sm:$0xf] %vm10212_vm0, %v11046_v24  ;;  %v11047_v17 = vpack.c.bf16 %v9909_v32, %v9909_v32  ;;  %v12008_v42 = vadd.f32 %v9582_v7, %v15805_v19  ;;  %v11944_v38 = vpop.f32.mrb[22].mxu0 }
 0x3d2   :  { %10232 = vst.msk [vmem:[#allocation3 + $0x4c] sm:$0xf] %vm10212_vm0, %v11049_v49  ;;  %v9850_v52 = vadd.f32 %v12007_v20, %v15824_v13  ;;  %v12009_v62 = vadd.f32 %v11944_v38, %v15807_v34  ;;  %v9585_v37 = vpop.f32.mrb[23].mxu0 }
 0x3d3   :  { %10230 = vst.msk [vmem:[#allocation3 + $0x44] sm:$0xf] %vm10212_vm0, %v11047_v17  ;;  %v9848_v12 = vadd.f32 %v12008_v42, %v15824_v13  ;;  %v12010_v44 = vadd.f32 %v9585_v37, %v15809_v28 }
 0x3d4   :  { %v9914_v25 = vmax.f32 %v9850_v52, 0.0  ;;  %v9851_v57 = vadd.f32 %v12009_v62, %v15824_v13 }
 0x3d5   :  { %v9912_v41 = vmax.f32 %v9848_v12, 0.0  ;;  %v9849_v19 = vadd.f32 %v12010_v44, %v15824_v13 }
 0x3d6   :  { %v11052_v21 = vpack.c.bf16 %v9914_v25, %v9914_v25  ;;  %v9915_v53 = vmax.f32 %v9851_v57, 0.0 }
 0x3d7   :  { %v11050_v26 = vpack.c.bf16 %v9912_v41, %v9912_v41  ;;  %v9913_v48 = vmax.f32 %v9849_v19, 0.0  ;;  %v11947_v39 = vpop.f32.mrb[24].mxu0 }
 0x3d8   :  { %10235 = vst.msk [vmem:[#allocation3 + $0x58] sm:$0xf] %vm10212_vm0, %v11052_v21  ;;  %v11053_v34 = vpack.c.bf16 %v9915_v53, %v9915_v53  ;;  %v12011_v22 = vadd.f32 %v11947_v39, %v15811_v3  ;;  %v9598_v43 = vpop.f32.mrb[25].mxu0 }
 0x3d9   :  { %10233 = vst.msk [vmem:[#allocation3 + $0x50] sm:$0xf] %vm10212_vm0, %v11050_v26  ;;  %v11051_v28 = vpack.c.bf16 %v9913_v48, %v9913_v48  ;;  %v12012_v59 = vadd.f32 %v9598_v43, %v15813_v58  ;;  %v11948_v56 = vpop.f32.mrb[26].mxu0 }
 0x3da   :  { %10236 = vst.msk [vmem:[#allocation3 + $0x5c] sm:$0xf] %vm10212_vm0, %v11053_v34  ;;  %v9854_v1 = vadd.f32 %v12011_v22, %v15824_v13  ;;  %v12013_v27 = vadd.f32 %v11948_v56, %v15815_v51  ;;  %v9601_v47 = vpop.f32.mrb[27].mxu0 }
 0x3db   :  { %10234 = vst.msk [vmem:[#allocation3 + $0x54] sm:$0xf] %vm10212_vm0, %v11051_v28  ;;  %v9852_v9 = vadd.f32 %v12012_v59, %v15824_v13  ;;  %v12014_v3 = vadd.f32 %v9601_v47, %v15817_v30 }
 0x3dc   :  { %v9918_v61 = vmax.f32 %v9854_v1, 0.0  ;;  %v9855_v33 = vadd.f32 %v12013_v27, %v15824_v13 }
 0x3dd   :  { %v9916_v0 = vmax.f32 %v9852_v9, 0.0  ;;  %v9853_v58 = vadd.f32 %v12014_v3, %v15824_v13 }
 0x3de   :  { %v11056_v11 = vpack.c.bf16 %v9918_v61, %v9918_v61  ;;  %v9919_v18 = vmax.f32 %v9855_v33, 0.0 }
 0x3df   :  { %v11054_v10 = vpack.c.bf16 %v9916_v0, %v9916_v0  ;;  %v9917_v50 = vmax.f32 %v9853_v58, 0.0  ;;  %v11951_v31 = vpop.f32.mrb[28].mxu0 }
 0x3e0   :  { %10239 = vst.msk [vmem:[#allocation3 + $0x68] sm:$0xf] %vm10212_vm0, %v11056_v11  ;;  %v11057_v51 = vpack.c.bf16 %v9919_v18, %v9919_v18  ;;  %v12015_v4 = vadd.f32 %v11951_v31, %v15819_v35  ;;  %v9614_v8 = vpop.f32.mrb[29].mxu0 }
 0x3e1   :  { %10237 = vst.msk [vmem:[#allocation3 + $0x60] sm:$0xf] %vm10212_vm0, %v11054_v10  ;;  %v11055_v30 = vpack.c.bf16 %v9917_v50, %v9917_v50  ;;  %v12016_v14 = vadd.f32 %v9614_v8, %v15826_v15  ;;  %v11952_v29 = vpop.f32.mrb[30].mxu0 }
 0x3e2   :  { %10240 = vst.msk [vmem:[#allocation3 + $0x6c] sm:$0xf] %vm10212_vm0, %v11057_v51  ;;  %v9858_v23 = vadd.f32 %v12015_v4, %v15824_v13  ;;  %v12017_v46 = vadd.f32 %v11952_v29, %v15828_v54  ;;  %v9617_v63 = vpop.f32.mrb[31].mxu0 }
 0x3e3   :  { %10238 = vst.msk [vmem:[#allocation3 + $0x64] sm:$0xf] %vm10212_vm0, %v11055_v30  ;;  %v9856_v6 = vadd.f32 %v12016_v14, %v15824_v13  ;;  %v12018_v35 = vadd.f32 %v9617_v63, %v15830_v55 }
 0x3e4   :  { %v9922_v5 = vmax.f32 %v9858_v23, 0.0  ;;  %v9859_v60 = vadd.f32 %v12017_v46, %v15824_v13 }
 0x3e5   :  { %v9920_v40 = vmax.f32 %v9856_v6, 0.0  ;;  %v9857_v15 = vadd.f32 %v12018_v35, %v15824_v13 }
 0x3e6   :  { %v11060_v16 = vpack.c.bf16 %v9922_v5, %v9922_v5  ;;  %v9923_v2 = vmax.f32 %v9859_v60, 0.0 }
 0x3e7   :  { %v11058_v36 = vpack.c.bf16 %v9920_v40, %v9920_v40  ;;  %v9921_v24 = vmax.f32 %v9857_v15, 0.0  ;;  %v11955_v32 = vpop.f32.mrb[32].mxu0 }
 0x3e8   :  { %10243 = vst.msk [vmem:[#allocation3 + $0x78] sm:$0xf] %vm10212_vm0, %v11060_v16  ;;  %v11061_v54 = vpack.c.bf16 %v9923_v2, %v9923_v2  ;;  %v9630_v45 = vpop.f32.mrb[33].mxu0 }
 0x3e9   :  { %10241 = vst.msk [vmem:[#allocation3 + $0x70] sm:$0xf] %vm10212_vm0, %v11058_v36  ;;  %v11059_v49 = vpack.c.bf16 %v9921_v24, %v9921_v24  ;;  %v11956_v20 = vpop.f32.mrb[34].mxu0 }
 0x3ea   :  { %10244 = vst.msk [vmem:[#allocation3 + $0x7c] sm:$0xf] %vm10212_vm0, %v11061_v54  ;;  %v9633_v55 = vpop.f32.mrb[35].mxu0 }
 0x3eb   :  { %10242 = vst.msk [vmem:[#allocation3 + $0x74] sm:$0xf] %vm10212_vm0, %v11059_v49 }
 0x3ef   :  { %v11959_v17 = vpop.f32.mrb[36].mxu0 }
 0x3f0   :  { %v9646_v52 = vpop.f32.mrb[37].mxu0 }
 0x3f1   :  { %v11960_v12 = vpop.f32.mrb[38].mxu0 }
 0x3f2   :  { %v9649_v41 = vpop.f32.mrb[39].mxu0 }
 0x3f3   :  { %v11691_v7 = vpop.f32.mrb[32].mxu1 }
 0x3f4   :  { %v5737_v42 = vpop.f32.mrb[33].mxu1  ;;  %v12019_v38 = vadd.f32 %v11955_v32, %v11691_v7 }
 0x3f5   :  { %v11692_v62 = vpop.f32.mrb[34].mxu1  ;;  %v12020_v37 = vadd.f32 %v9630_v45, %v5737_v42 }
 0x3f6   :  { %v9862_v44 = vadd.f32 %v12019_v38, %v15824_v13  ;;  %v5740_v25 = vpop.f32.mrb[35].mxu1  ;;  %v12021_v57 = vadd.f32 %v11956_v20, %v11692_v62 }
 0x3f7   :  { %v9860_v19 = vadd.f32 %v12020_v37, %v15824_v13  ;;  %v12022_v21 = vadd.f32 %v9633_v55, %v5740_v25  ;;  %v11963_v56 = vpop.f32.mrb[40].mxu0 }
 0x3f8   :  { %v9926_v53 = vmax.f32 %v9862_v44, 0.0  ;;  %v9863_v26 = vadd.f32 %v12021_v57, %v15824_v13  ;;  %v9662_v9 = vpop.f32.mrb[41].mxu0 }
 0x3f9   :  { %v9924_v48 = vmax.f32 %v9860_v19, 0.0  ;;  %v9861_v39 = vadd.f32 %v12022_v21, %v15824_v13  ;;  %v11964_v0 = vpop.f32.mrb[42].mxu0 }
 0x3fa   :  { %v11064_v34 = vpack.c.bf16 %v9926_v53, %v9926_v53  ;;  %v9927_v22 = vmax.f32 %v9863_v26, 0.0  ;;  %v9665_v10 = vpop.f32.mrb[43].mxu0 }
 0x3fb   :  { %v11062_v43 = vpack.c.bf16 %v9924_v48, %v9924_v48  ;;  %v9925_v28 = vmax.f32 %v9861_v39, 0.0  ;;  %v11695_v59 = vpop.f32.mrb[36].mxu1 }
 0x3fc   :  { %10247 = vst.msk [vmem:[#allocation3 + $0x88] sm:$0xf] %vm10212_vm0, %v11064_v34  ;;  %v11065_v1 = vpack.c.bf16 %v9927_v22, %v9927_v22  ;;  %v5753_v27 = vpop.f32.mrb[37].mxu1  ;;  %v12023_v47 = vadd.f32 %v11959_v17, %v11695_v59 }
 0x3fd   :  { %10245 = vst.msk [vmem:[#allocation3 + $0x80] sm:$0xf] %vm10212_vm0, %v11062_v43  ;;  %v11063_v3 = vpack.c.bf16 %v9925_v28, %v9925_v28  ;;  %v11696_v61 = vpop.f32.mrb[38].mxu1  ;;  %v12024_v33 = vadd.f32 %v9646_v52, %v5753_v27 }
 0x3fe   :  { %10248 = vst.msk [vmem:[#allocation3 + $0x8c] sm:$0xf] %vm10212_vm0, %v11065_v1  ;;  %v9866_v58 = vadd.f32 %v12023_v47, %v15824_v13  ;;  %v5756_v11 = vpop.f32.mrb[39].mxu1  ;;  %v12025_v18 = vadd.f32 %v11960_v12, %v11696_v61 }
 0x3ff   :  { %10246 = vst.msk [vmem:[#allocation3 + $0x84] sm:$0xf] %vm10212_vm0, %v11063_v3  ;;  %v9864_v50 = vadd.f32 %v12024_v33, %v15824_v13  ;;  %v12026_v31 = vadd.f32 %v9649_v41, %v5756_v11  ;;  %v11967_v6 = vpop.f32.mrb[44].mxu0 }
 0x400   :  { %v9930_v51 = vmax.f32 %v9866_v58, 0.0  ;;  %v9867_v4 = vadd.f32 %v12025_v18, %v15824_v13  ;;  %v9678_v40 = vpop.f32.mrb[45].mxu0 }
 0x401   :  { %v9928_v8 = vmax.f32 %v9864_v50, 0.0  ;;  %v9865_v30 = vadd.f32 %v12026_v31, %v15824_v13  ;;  %v11968_v36 = vpop.f32.mrb[46].mxu0 }
 0x402   :  { %v11068_v14 = vpack.c.bf16 %v9930_v51, %v9930_v51  ;;  %v9931_v29 = vmax.f32 %v9867_v4, 0.0  ;;  %v9681_v45 = vpop.f32.mrb[47].mxu0 }
 0x403   :  { %v11066_v23 = vpack.c.bf16 %v9928_v8, %v9928_v8  ;;  %v9929_v46 = vmax.f32 %v9865_v30, 0.0  ;;  %v11699_v63 = vpop.f32.mrb[40].mxu1 }
 0x404   :  { %10251 = vst.msk [vmem:[#allocation3 + $0x98] sm:$0xf] %vm10212_vm0, %v11068_v14  ;;  %v11069_v35 = vpack.c.bf16 %v9931_v29, %v9931_v29  ;;  %v5769_v5 = vpop.f32.mrb[41].mxu1  ;;  %v12027_v60 = vadd.f32 %v11963_v56, %v11699_v63 }
 0x405   :  { %10249 = vst.msk [vmem:[#allocation3 + $0x90] sm:$0xf] %vm10212_vm0, %v11066_v23  ;;  %v11067_v15 = vpack.c.bf16 %v9929_v46, %v9929_v46  ;;  %v11700_v16 = vpop.f32.mrb[42].mxu1  ;;  %v12028_v2 = vadd.f32 %v9662_v9, %v5769_v5 }
 0x406   :  { %10252 = vst.msk [vmem:[#allocation3 + $0x9c] sm:$0xf] %vm10212_vm0, %v11069_v35  ;;  %v9870_v24 = vadd.f32 %v12027_v60, %v15824_v13  ;;  %v5772_v32 = vpop.f32.mrb[43].mxu1  ;;  %v12029_v54 = vadd.f32 %v11964_v0, %v11700_v16 }
 0x407   :  { %10250 = vst.msk [vmem:[#allocation3 + $0x94] sm:$0xf] %vm10212_vm0, %v11067_v15  ;;  %v9868_v49 = vadd.f32 %v12028_v2, %v15824_v13  ;;  %v12030_v20 = vadd.f32 %v9665_v10, %v5772_v32  ;;  %v11971_v44 = vpop.f32.mrb[48].mxu0 }
 0x408   :  { %v9934_v55 = vmax.f32 %v9870_v24, 0.0  ;;  %v9871_v7 = vadd.f32 %v12029_v54, %v15824_v13  ;;  %v9694_v19 = vpop.f32.mrb[49].mxu0 }
 0x409   :  { %v9932_v17 = vmax.f32 %v9868_v49, 0.0  ;;  %v9869_v42 = vadd.f32 %v12030_v20, %v15824_v13  ;;  %v11972_v48 = vpop.f32.mrb[50].mxu0 }
 0x40a   :  { %v11072_v38 = vpack.c.bf16 %v9934_v55, %v9934_v55  ;;  %v9935_v52 = vmax.f32 %v9871_v7, 0.0  ;;  %v9697_v43 = vpop.f32.mrb[51].mxu0 }
 0x40b   :  { %v11070_v62 = vpack.c.bf16 %v9932_v17, %v9932_v17  ;;  %v9933_v37 = vmax.f32 %v9869_v42, 0.0  ;;  %v11703_v12 = vpop.f32.mrb[44].mxu1 }
 0x40c   :  { %10255 = vst.msk [vmem:[#allocation3 + $0xa8] sm:$0xf] %vm10212_vm0, %v11072_v38  ;;  %v11073_v25 = vpack.c.bf16 %v9935_v52, %v9935_v52  ;;  %v5785_v57 = vpop.f32.mrb[45].mxu1  ;;  %v12031_v41 = vadd.f32 %v11967_v6, %v11703_v12 }
 0x40d   :  { %10253 = vst.msk [vmem:[#allocation3 + $0xa0] sm:$0xf] %vm10212_vm0, %v11070_v62  ;;  %v11071_v21 = vpack.c.bf16 %v9933_v37, %v9933_v37  ;;  %v11704_v53 = vpop.f32.mrb[46].mxu1  ;;  %v12032_v26 = vadd.f32 %v9678_v40, %v5785_v57 }
 0x40e   :  { %10256 = vst.msk [vmem:[#allocation3 + $0xac] sm:$0xf] %vm10212_vm0, %v11073_v25  ;;  %v9874_v39 = vadd.f32 %v12031_v41, %v15824_v13  ;;  %v5788_v34 = vpop.f32.mrb[47].mxu1  ;;  %v12033_v22 = vadd.f32 %v11968_v36, %v11704_v53 }
 0x40f   :  { %10254 = vst.msk [vmem:[#allocation3 + $0xa4] sm:$0xf] %vm10212_vm0, %v11071_v21  ;;  %v9872_v28 = vadd.f32 %v12032_v26, %v15824_v13  ;;  %v12034_v59 = vadd.f32 %v9681_v45, %v5788_v34  ;;  %v11975_v58 = vpop.f32.mrb[52].mxu0 }
 0x410   :  { %v9938_v56 = vmax.f32 %v9874_v39, 0.0  ;;  %v9875_v1 = vadd.f32 %v12033_v22, %v15824_v13  ;;  %v9710_v50 = vpop.f32.mrb[53].mxu0 }
 0x411   :  { %v9936_v27 = vmax.f32 %v9872_v28, 0.0  ;;  %v9873_v47 = vadd.f32 %v12034_v59, %v15824_v13  ;;  %v11976_v8 = vpop.f32.mrb[54].mxu0 }
 0x412   :  { %v11076_v9 = vpack.c.bf16 %v9938_v56, %v9938_v56  ;;  %v9939_v3 = vmax.f32 %v9875_v1, 0.0  ;;  %v9713_v23 = vpop.f32.mrb[55].mxu0 }
 0x413   :  { %v11074_v61 = vpack.c.bf16 %v9936_v27, %v9936_v27  ;;  %v9937_v33 = vmax.f32 %v9873_v47, 0.0  ;;  %v11707_v0 = vpop.f32.mrb[48].mxu1 }
 0x414   :  { %10259 = vst.msk [vmem:[#allocation3 + $0xb8] sm:$0xf] %vm10212_vm0, %v11076_v9  ;;  %v11077_v11 = vpack.c.bf16 %v9939_v3, %v9939_v3  ;;  %v5801_v18 = vpop.f32.mrb[49].mxu1  ;;  %v12035_v10 = vadd.f32 %v11971_v44, %v11707_v0 }
 0x415   :  { %10257 = vst.msk [vmem:[#allocation3 + $0xb0] sm:$0xf] %vm10212_vm0, %v11074_v61  ;;  %v11075_v31 = vpack.c.bf16 %v9937_v33, %v9937_v33  ;;  %v11708_v51 = vpop.f32.mrb[50].mxu1  ;;  %v12036_v4 = vadd.f32 %v9694_v19, %v5801_v18 }
 0x416   :  { %10260 = vst.msk [vmem:[#allocation3 + $0xbc] sm:$0xf] %vm10212_vm0, %v11077_v11  ;;  %v9878_v30 = vadd.f32 %v12035_v10, %v15824_v13  ;;  %v5804_v14 = vpop.f32.mrb[51].mxu1  ;;  %v12037_v29 = vadd.f32 %v11972_v48, %v11708_v51 }
 0x417   :  { %10258 = vst.msk [vmem:[#allocation3 + $0xb4] sm:$0xf] %vm10212_vm0, %v11075_v31  ;;  %v9876_v46 = vadd.f32 %v12036_v4, %v15824_v13  ;;  %v12038_v63 = vadd.f32 %v9697_v43, %v5804_v14  ;;  %v11979_v24 = vpop.f32.mrb[56].mxu0 }
 0x418   :  { %v9942_v6 = vmax.f32 %v9878_v30, 0.0  ;;  %v9879_v35 = vadd.f32 %v12037_v29, %v15824_v13  ;;  %v9726_v49 = vpop.f32.mrb[57].mxu0 }
 0x419   :  { %v9940_v5 = vmax.f32 %v9876_v46, 0.0  ;;  %v9877_v60 = vadd.f32 %v12038_v63, %v15824_v13  ;;  %v11980_v17 = vpop.f32.mrb[58].mxu0 }
 0x41a   :  { %v11080_v40 = vpack.c.bf16 %v9942_v6, %v9942_v6  ;;  %v9943_v15 = vmax.f32 %v9879_v35, 0.0  ;;  %v9729_v62 = vpop.f32.mrb[59].mxu0 }
 0x41b   :  { %v11078_v16 = vpack.c.bf16 %v9940_v5, %v9940_v5  ;;  %v9941_v2 = vmax.f32 %v9877_v60, 0.0  ;;  %v11711_v36 = vpop.f32.mrb[52].mxu1 }
 0x41c   :  { %10263 = vst.msk [vmem:[#allocation3 + $0xc8] sm:$0xf] %vm10212_vm0, %v11080_v40  ;;  %v11081_v32 = vpack.c.bf16 %v9943_v15, %v9943_v15  ;;  %v5817_v54 = vpop.f32.mrb[53].mxu1  ;;  %v12039_v45 = vadd.f32 %v11975_v58, %v11711_v36 }
 0x41d   :  { %10261 = vst.msk [vmem:[#allocation3 + $0xc0] sm:$0xf] %vm10212_vm0, %v11078_v16  ;;  %v11079_v20 = vpack.c.bf16 %v9941_v2, %v9941_v2  ;;  %v11712_v55 = vpop.f32.mrb[54].mxu1  ;;  %v12040_v7 = vadd.f32 %v9710_v50, %v5817_v54 }
 0x41e   :  { %10264 = vst.msk [vmem:[#allocation3 + $0xcc] sm:$0xf] %vm10212_vm0, %v11081_v32  ;;  %v9882_v42 = vadd.f32 %v12039_v45, %v15824_v13  ;;  %v5820_v38 = vpop.f32.mrb[55].mxu1  ;;  %v12041_v52 = vadd.f32 %v11976_v8, %v11712_v55 }
 0x41f   :  { %10262 = vst.msk [vmem:[#allocation3 + $0xc4] sm:$0xf] %vm10212_vm0, %v11079_v20  ;;  %v9880_v37 = vadd.f32 %v12040_v7, %v15824_v13  ;;  %v12042_v12 = vadd.f32 %v9713_v23, %v5820_v38  ;;  %v11983_v39 = vpop.f32.mrb[60].mxu0 }
 0x420   :  { %v9946_v44 = vmax.f32 %v9882_v42, 0.0  ;;  %v9883_v25 = vadd.f32 %v12041_v52, %v15824_v13  ;;  %v9742_v28 = vpop.f32.mrb[61].mxu0 }
 0x421   :  { %v9944_v57 = vmax.f32 %v9880_v37, 0.0  ;;  %v9881_v41 = vadd.f32 %v12042_v12, %v15824_v13  ;;  %v11984_v27 = vpop.f32.mrb[62].mxu0 }
 0x422   :  { %v11084_v19 = vpack.c.bf16 %v9946_v44, %v9946_v44  ;;  %v9947_v21 = vmax.f32 %v9883_v25, 0.0  ;;  %v9745_v61 = vpop.f32.mrb[63].mxu0 }
 0x423   :  { %v11082_v53 = vpack.c.bf16 %v9944_v57, %v9944_v57  ;;  %v9945_v26 = vmax.f32 %v9881_v41, 0.0  ;;  %v11715_v48 = vpop.f32.mrb[56].mxu1 }
 0x424   :  { %10267 = vst.msk [vmem:[#allocation3 + $0xd8] sm:$0xf] %vm10212_vm0, %v11084_v19  ;;  %v11085_v34 = vpack.c.bf16 %v9947_v21, %v9947_v21  ;;  %v5833_v22 = vpop.f32.mrb[57].mxu1  ;;  %v12043_v43 = vadd.f32 %v11979_v24, %v11715_v48 }
 0x425   :  { %10265 = vst.msk [vmem:[#allocation3 + $0xd0] sm:$0xf] %vm10212_vm0, %v11082_v53  ;;  %v11083_v59 = vpack.c.bf16 %v9945_v26, %v9945_v26  ;;  %v11716_v56 = vpop.f32.mrb[58].mxu1  ;;  %v12044_v1 = vadd.f32 %v9726_v49, %v5833_v22 }
 0x426   :  { %10268 = vst.msk [vmem:[#allocation3 + $0xdc] sm:$0xf] %vm10212_vm0, %v11085_v34  ;;  %v9886_v47 = vadd.f32 %v12043_v43, %v15824_v13  ;;  %v5836_v9 = vpop.f32.mrb[59].mxu1  ;;  %v12045_v3 = vadd.f32 %v11980_v17, %v11716_v56 }
 0x427   :  { %10266 = vst.msk [vmem:[#allocation3 + $0xd4] sm:$0xf] %vm10212_vm0, %v11083_v59  ;;  %v9884_v33 = vadd.f32 %v12044_v1, %v15824_v13  ;;  %v12046_v0 = vadd.f32 %v9729_v62, %v5836_v9 }
 0x428   :  { %v9950_v58 = vmax.f32 %v9886_v47, 0.0  ;;  %v9887_v11 = vadd.f32 %v12045_v3, %v15824_v13 }
 0x429   :  { %v9948_v18 = vmax.f32 %v9884_v33, 0.0  ;;  %v9885_v10 = vadd.f32 %v12046_v0, %v15824_v13 }
 0x42a   :  { %v11088_v50 = vpack.c.bf16 %v9950_v58, %v9950_v58  ;;  %v9951_v31 = vmax.f32 %v9887_v11, 0.0 }
 0x42b   :  { %v11086_v51 = vpack.c.bf16 %v9948_v18, %v9948_v18  ;;  %v9949_v4 = vmax.f32 %v9885_v10, 0.0  ;;  %v11719_v8 = vpop.f32.mrb[60].mxu1 }
 0x42c   :  { %10271 = vst.msk [vmem:[#allocation3 + $0xe8] sm:$0xf] %vm10212_vm0, %v11088_v50  ;;  %v11089_v30 = vpack.c.bf16 %v9951_v31, %v9951_v31  ;;  %v5849_v14 = vpop.f32.mrb[61].mxu1  ;;  %v12047_v29 = vadd.f32 %v11983_v39, %v11719_v8 }
 0x42d   :  { %10269 = vst.msk [vmem:[#allocation3 + $0xe0] sm:$0xf] %vm10212_vm0, %v11086_v51  ;;  %v11087_v23 = vpack.c.bf16 %v9949_v4, %v9949_v4  ;;  %v11720_v46 = vpop.f32.mrb[62].mxu1  ;;  %v12048_v63 = vadd.f32 %v9742_v28, %v5849_v14 }
 0x42e   :  { %10272 = vst.msk [vmem:[#allocation3 + $0xec] sm:$0xf] %vm10212_vm0, %v11089_v30  ;;  %v9890_v6 = vadd.f32 %v12047_v29, %v15824_v13  ;;  %v5852_v35 = vpop.f32.mrb[63].mxu1  ;;  %v12049_v5 = vadd.f32 %v11984_v27, %v11720_v46 }
 0x42f   :  { %10270 = vst.msk [vmem:[#allocation3 + $0xe4] sm:$0xf] %vm10212_vm0, %v11087_v23  ;;  %v9888_v60 = vadd.f32 %v12048_v63, %v15824_v13  ;;  %v12050_v40 = vadd.f32 %v9745_v61, %v5852_v35 }
 0x430   :  { %v9954_v15 = vmax.f32 %v9890_v6, 0.0  ;;  %v9891_v16 = vadd.f32 %v12049_v5, %v15824_v13 }
 0x431   :  { %v9952_v2 = vmax.f32 %v9888_v60, 0.0  ;;  %v9889_v36 = vadd.f32 %v12050_v40, %v15824_v13 }
 0x432   :  { %v11092_v24 = vpack.c.bf16 %v9954_v15, %v9954_v15  ;;  %v9955_v32 = vmax.f32 %v9891_v16, 0.0 }
 0x433   :  { %v11090_v54 = vpack.c.bf16 %v9952_v2, %v9952_v2  ;;  %v9953_v45 = vmax.f32 %v9889_v36, 0.0 }
 0x434   :  { %10275 = vst.msk [vmem:[#allocation3 + $0xf8] sm:$0xf] %vm10212_vm0, %v11092_v24  ;;  %v11093_v49 = vpack.c.bf16 %v9955_v32, %v9955_v32 }
 0x435   :  { %10273 = vst.msk [vmem:[#allocation3 + $0xf0] sm:$0xf] %vm10212_vm0, %v11090_v54  ;;  %v11091_v20 = vpack.c.bf16 %v9953_v45, %v9953_v45 }
 0x436   :  { %10276 = vst.msk [vmem:[#allocation3 + $0xfc] sm:$0xf] %vm10212_vm0, %v11093_v49 }
 0x437   :  { %10274 = vst.msk [vmem:[#allocation3 + $0xf4] sm:$0xf] %vm10212_vm0, %v11091_v20 }
 0x438   :  { %12807 = shalt.err (!%p12804_p4)
}
 0x439   :  { %s12808_s6 = scalar_lea.hbm %s15999_s3, 4096 }
 0x43a   :  { %p12809_p5 = scmp.ne.s32.totalorder %s15999_s3, %s12808_s6  ;;  %p12812_p6 = scmp.lt.u32.totalorder %s12808_s6, %s15999_s3 }
 0x43c   :  { %p12814_p7 = pnand %p12812_p6, %p12809_p5 }
 0x43e   :  { %12817 = shalt.err (!%p12814_p7)
}
 0x43f   :  { %s12822_s11 = smov 64   ;;  %s12823_s12 = smov 4  }
 0x440   :  { %10288 = dma.vmem_to_hbm [thread:$0]  %s10283_s29, 4096, %s15999_s3, [#allocation4], %s12822_s11, %s12822_s11, %s12823_s12  }
 0x441   :  { %12818 = dma.done.wait [#allocation4], 4096  }
 0x442   :  { %12819 = vsyncadd [#allocation4], 4294963200 }
 0x443   :  { %10292 = vsyncpa [#allocation4], 1 }

</bundles_post_ra>
